<compile_context>
chip_gen: v7x
topology: tpu7x:2x2x1
jax: 0.10.0
libtpu: 0.0.40
codegen_flags: <defaults>
</compile_context>

<pallas_src>
import jax
import jax.numpy as jnp
from jax.experimental import pallas as pl
from jax.experimental.pallas import tpu as pltpu

# ----------------------------- small-model config ---------------------------------
# Structurally identical to the PyTorch module, scaled down:
#   num_lay=32, G=8, M(D)=3 branches, r=4, L=8; input 2 x 3 x 16 x 8.
NUM_LAY = 32
HIDDEN_REG = 32
G = 8
M = 3                    # number of SK branches ("D" in the PyTorch module)
R = 4
L = 8
N_KEYPOINTS = 17

CPAD = 128               # lane-dense channel padding carried end-to-end
DPAD = 128               # padded squeeze dimension "d"
BN_EPS = 1e-5
PADR = 16                # sublane zero-padding (rows) on each side of the flat activation;
                         # covers the max tap offset 3*W + 3 <= 15 at these spatial sizes
VMEM_LIMIT = 32 * 1024 * 1024

INPUT_H, INPUT_W = 16, 8


def _round_up(x, m):
    return (x + m - 1) // m * m


# ================================ Pallas kernels ===================================

def make_skconv_kernel(batch, H, W):
    """Fused SKConv.forward + SKUnit.norm for one unit.

    Input activation is flat (rows=batch*H*W, CPAD) in (b, h, w) row-major order and
    zero-padded with PADR rows on each side; output rows are
    [channel-attended & width-pooled | frequency-attended & width-pooled] halves.
    """
    HW = H * W
    rows = batch * HW
    half = rows // 2

    def kernel(xz_ref, bw_ref, fcw_ref, fcsw_ref, fcsb_ref,
               hmap_ref, wmap_ref, gap_ref, bsel_ref, frq_ref, poolw_ref, o_ref):
        h_map = hmap_ref[...]                        # (rows, 1) f32: h coordinate per row
        w_map = wmap_ref[...]                        # (rows, 1) f32: w coordinate per row

        # ---- M dilated grouped 3x3 convs as implicit GEMM over 9 shifted taps ----
        feats = []
        for m in range(M):
            d = m + 1
            acc = None
            for kh in range(3):
                for kw in range(3):
                    dh, dw = (kh - 1) * d, (kw - 1) * d
                    off = dh * W + dw
                    slab = xz_ref[PADR + off:PADR + off + rows, :]     # (rows, C) f32
                    mask = None
                    if dh > 0:
                        c = (h_map < float(H - dh)).astype(jnp.float32)
                        mask = c if mask is None else mask * c
                    elif dh < 0:
                        c = (h_map >= float(-dh)).astype(jnp.float32)
                        mask = c if mask is None else mask * c
                    if dw > 0:
                        c = (w_map < float(W - dw)).astype(jnp.float32)
                        mask = c if mask is None else mask * c
                    elif dw < 0:
                        c = (w_map >= float(-dw)).astype(jnp.float32)
                        mask = c if mask is None else mask * c
                    if mask is not None:
                        slab = slab * mask                              # zero-padding taps
                    t = m * 9 + kh * 3 + kw
                    term = jnp.dot(slab.astype(jnp.bfloat16), bw_ref[t],
                                   preferred_element_type=jnp.float32)
                    acc = term if acc is None else acc + term
            # per-branch BatchNorm (training-mode batch stats, gamma=1/beta=0) + ReLU
            mu = jnp.mean(acc, axis=0, keepdims=True)
            var = jnp.mean(jnp.square(acc - mu), axis=0, keepdims=True)
            feats.append(jnp.maximum((acc - mu) * jax.lax.rsqrt(var + BN_EPS), 0.0))

        # ---- squeeze: per-batch GAP of the branch sum ----
        feats_u = feats[0]
        for f in feats[1:]:
            feats_u = feats_u + f
        s = jnp.dot(gap_ref[...], feats_u, preferred_element_type=jnp.float32)   # (B, C)

        # ---- fc (1x1) + BN + ReLU ----
        z = jnp.dot(s.astype(jnp.bfloat16), fcw_ref[...],
                    preferred_element_type=jnp.float32)                          # (B, d)
        zmu = jnp.mean(z, axis=0, keepdims=True)
        zvar = jnp.mean(jnp.square(z - zmu), axis=0, keepdims=True)
        z = jnp.maximum((z - zmu) * jax.lax.rsqrt(zvar + BN_EPS), 0.0)

        # ---- the M fcs 1x1 convs (weights concatenated along N at init) + bias ----
        logits = jnp.dot(z.astype(jnp.bfloat16), fcsw_ref[...],
                         preferred_element_type=jnp.float32) + fcsb_ref[...]     # (B, M*C)

        # ---- channel attention: softmax over the branch axis ----
        ls = [logits[:, i * CPAD:(i + 1) * CPAD] for i in range(M)]
        lmax = ls[0]
        for l in ls[1:]:
            lmax = jnp.maximum(lmax, l)
        es = [jnp.exp(l - lmax) for l in ls]
        esum = es[0]
        for e in es[1:]:
            esum = esum + e
        einv = pl.reciprocal(esum, approx=True)
        atts = [e * einv for e in es]                                            # M x (B, C)

        # ---- frequency attention: sum over C, mean over W, softmax over branches ----
        frq = frq_ref[...]                                                        # (rows, rows)
        frb = [jnp.sum(jnp.dot(frq, f, preferred_element_type=jnp.float32),
                       axis=1, keepdims=True) for f in feats]                     # M x (rows, 1)
        fmax = frb[0]
        for f in frb[1:]:
            fmax = jnp.maximum(fmax, f)
        fes = [jnp.exp(f - fmax) for f in frb]
        fsum = fes[0]
        for f in fes[1:]:
            fsum = fsum + f
        finv = pl.reciprocal(fsum, approx=True)
        fatts = [f * finv for f in fes]                                           # M x (rows, 1)

        # ---- fuse the branches with both attentions ----
        bsel = bsel_ref[...]                                                       # (rows, B)
        ch = None
        fr = None
        for i in range(M):
            a_bc = None
            for b in range(batch):
                term = bsel[:, b:b + 1] * atts[i][b:b + 1, :]                      # (rows, C)
                a_bc = term if a_bc is None else a_bc + term
            c_i = feats[i] * a_bc
            f_i = feats[i] * fatts[i]
            ch = c_i if ch is None else ch + c_i
            fr = f_i if fr is None else fr + f_i

        # ---- SKConv.norm: joint batch-stats BN over [channel | frequency] ----
        cnt1 = 2.0 * rows
        mu1 = (jnp.sum(ch, axis=0, keepdims=True)
               + jnp.sum(fr, axis=0, keepdims=True)) / cnt1
        var1 = (jnp.sum(jnp.square(ch - mu1), axis=0, keepdims=True)
                + jnp.sum(jnp.square(fr - mu1), axis=0, keepdims=True)) / cnt1
        sc1 = jax.lax.rsqrt(var1 + BN_EPS)

        # TODO(synk): ChannelTransformer (self.tf) class definition not provided upstream;
        #             applied as identity here (attention-weight output dropped).

        # ---- F.avg_pool2d(kernel=(1,2)) over the concatenated width ----
        # (the per-channel BN affine commutes with width pooling, so normalize after pooling)
        poolw = poolw_ref[...]                                                     # (rows/2, rows)
        chp = (jnp.dot(poolw, ch, preferred_element_type=jnp.float32) - mu1) * sc1
        frp = (jnp.dot(poolw, fr, preferred_element_type=jnp.float32) - mu1) * sc1

        # ---- SKUnit.norm over the pooled (channel | frequency) tensor ----
        mu2 = (jnp.sum(chp, axis=0, keepdims=True)
               + jnp.sum(frp, axis=0, keepdims=True)) / float(rows)
        var2 = (jnp.sum(jnp.square(chp - mu2), axis=0, keepdims=True)
                + jnp.sum(jnp.square(frp - mu2), axis=0, keepdims=True)) / float(rows)
        sc2 = jax.lax.rsqrt(var2 + BN_EPS)
        o_ref[0:half, :] = ((chp - mu2) * sc2).astype(o_ref.dtype)
        o_ref[half:rows, :] = ((frp - mu2) * sc2).astype(o_ref.dtype)

    return kernel


def make_mid_kernel():
    """conv3(unit1)+BN + DSKNet.norm + conv1(unit2)+BN+ReLU fused (row-order preserving)."""
    def kernel(x_ref, w3_ref, w1_ref, o_ref):
        y = jnp.dot(x_ref[...], w3_ref[...], preferred_element_type=jnp.float32)
        for _ in range(2):            # conv3 BN, then DSKNet.norm (both batch stats)
            mu = jnp.mean(y, axis=0, keepdims=True)
            var = jnp.mean(jnp.square(y - mu), axis=0, keepdims=True)
            y = (y - mu) * jax.lax.rsqrt(var + BN_EPS)
        y = jnp.dot(y.astype(jnp.bfloat16), w1_ref[...], preferred_element_type=jnp.float32)
        mu = jnp.mean(y, axis=0, keepdims=True)
        var = jnp.mean(jnp.square(y - mu), axis=0, keepdims=True)
        o_ref[...] = jnp.maximum((y - mu) * jax.lax.rsqrt(var + BN_EPS), 0.0)
    return kernel


def make_head_kernel():
    """conv3(unit2)+BN + final AvgPool2d(2,2) + NCHW flatten + Linear+ReLU+Linear fused."""
    def kernel(x_ref, w3_ref, pool_ref, s0_ref, s1_ref,
               w1a_ref, w1b_ref, b1_ref, w2_ref, b2_ref, o_ref):
        y = jnp.dot(x_ref[...], w3_ref[...], preferred_element_type=jnp.float32)
        mu = jnp.mean(y, axis=0, keepdims=True)
        var = jnp.mean(jnp.square(y - mu), axis=0, keepdims=True)
        y = (y - mu) * jax.lax.rsqrt(var + BN_EPS)                       # conv3 + BN
        pooled = jnp.dot(pool_ref[...], y, preferred_element_type=jnp.float32)   # 2x2 avg pool
        pb = pooled.astype(jnp.bfloat16)
        # NCHW flatten folded into Linear1: W1 pre-split by the h-parity of flat index 2c+h,
        # then rows re-selected per batch element with tiny selection matmuls.
        y0 = jnp.dot(pb, w1a_ref[...], preferred_element_type=jnp.float32)
        y1 = jnp.dot(pb, w1b_ref[...], preferred_element_type=jnp.float32)
        h = (jnp.dot(s0_ref[...], y0, preferred_element_type=jnp.float32)
             + jnp.dot(s1_ref[...], y1, preferred_element_type=jnp.float32) + b1_ref[...])
        h = jnp.maximum(h, 0.0)
        o_ref[...] = (jnp.dot(h.astype(jnp.bfloat16), w2_ref[...],
                              preferred_element_type=jnp.float32) + b2_ref[...])
    return kernel


# ================================ wrappers / glue ===================================

def skconv_skunit_norm(x_flat, p, batch, H, W):
    """Fused SKConv forward + SKUnit.norm. x_flat: (batch*H*W, CPAD) f32, (b,h,w) order."""
    rows = batch * H * W
    xz = jnp.pad(x_flat.astype(jnp.float32), ((PADR, PADR), (0, 0)))
    return pl.pallas_call(
        make_skconv_kernel(batch, H, W),
        out_shape=jax.ShapeDtypeStruct((rows, CPAD), jnp.bfloat16),
        compiler_params=pltpu.CompilerParams(vmem_limit_bytes=VMEM_LIMIT),
    )(xz, p['branch_w'], p['fc_w'], p['fcs_w'], p['fcs_b'],
      p['h_map'], p['w_map'], p['gap_mat'], p['bsel_mat'], p['frq_mat'], p['poolw_mat'])


def halves_to_spatial(x_halves, batch, H, W):
    """Kernel-A output [channel-pooled | frequency-pooled] halves -> (b, h, w) row-major."""
    w2 = W // 2
    t = x_halves.reshape(2, batch, H, w2, CPAD)
    t = jnp.transpose(t, (1, 2, 0, 3, 4))      # width = [channel half | frequency half]
    return t.reshape(batch * H * W, CPAD)


def bn_relu_nhwc(x):
    mu = jnp.mean(x, axis=(0, 1, 2), keepdims=True)
    var = jnp.mean(jnp.square(x - mu), axis=(0, 1, 2), keepdims=True)
    return jnp.maximum((x - mu) * jax.lax.rsqrt(var + BN_EPS), 0.0)


def avg_pool_2x2(x):
    B, H, W, C = x.shape
    return jnp.mean(x.reshape(B, H // 2, 2, W // 2, 2, C), axis=(2, 4))


@jax.jit
def dsknet_forward(x_nchw, params):
    """DSKNetTransMMFI.forward (jit-ed, pure).  NCHW input; returns (B, 17, 2)."""
    batch = x_nchw.shape[0]
    p1, p2 = params['skunit1'], params['skunit2']

    # skunit1.conv1 (1x1, Cin=3) + BN + ReLU on the VPU (K=3 would waste the MXU), then pool
    x = jnp.transpose(x_nchw, (0, 2, 3, 1)).astype(jnp.float32)
    y = jnp.einsum('bhwc,cd->bhwd', x, p1['conv1_w'])
    y = avg_pool_2x2(bn_relu_nhwc(y))                           # (B, 8, 4, CPAD)
    _, H1, W1sp, _ = y.shape

    # fused SKConv1 + SKUnit1.norm
    a1 = skconv_skunit_norm(y.reshape(-1, CPAD), p1, batch, H1, W1sp)
    a1 = halves_to_spatial(a1, batch, H1, W1sp)                 # (64, CPAD) bf16

    # fused conv3_1+BN + DSKNet.norm + skunit2.conv1+BN+ReLU
    mid = pl.pallas_call(
        make_mid_kernel(),
        out_shape=jax.ShapeDtypeStruct((batch * H1 * W1sp, CPAD), jnp.float32),
        compiler_params=pltpu.CompilerParams(vmem_limit_bytes=VMEM_LIMIT),
    )(a1, p1['conv3_w'], p2['conv1_w'])

    # skunit2.pooling
    y2 = avg_pool_2x2(mid.reshape(batch, H1, W1sp, CPAD))       # (B, 4, 2, CPAD)
    _, H2, W2sp, _ = y2.shape

    # fused SKConv2 + SKUnit2.norm
    a2 = skconv_skunit_norm(y2.reshape(-1, CPAD), p2, batch, H2, W2sp)
    a2 = halves_to_spatial(a2, batch, H2, W2sp)                 # (16, CPAD) bf16

    # fused conv3_2+BN + final AvgPool2d(2,2) + NCHW flatten + regression MLP
    # TODO(synk): `regression` class definition not provided upstream; implemented as
    #             flatten(NCHW) -> Linear -> ReLU -> Linear.
    out = pl.pallas_call(
        make_head_kernel(),
        out_shape=jax.ShapeDtypeStruct((batch, params['reg_w2'].shape[1]), jnp.float32),
        compiler_params=pltpu.CompilerParams(vmem_limit_bytes=VMEM_LIMIT),
    )(a2, p2['conv3_w'], params['pool_mat'], params['sel0'], params['sel1'],
      params['reg_w1_h0'], params['reg_w1_h1'], params['reg_b1'],
      params['reg_w2'], params['reg_b2'])

    return out[:, :2 * N_KEYPOINTS].reshape(batch, N_KEYPOINTS, 2)


# ================================ deterministic params =============================

def _nrm(key, shape, scale=0.1):
    return scale * jax.random.normal(key, shape, dtype=jnp.float32)


def _pad2(w, rows, cols):
    r, c = w.shape
    return jnp.pad(w, ((0, rows - r), (0, cols - c)))


def grouped_conv_to_taps(w, groups, cpad):
    """PyTorch grouped weight (Cout, Cin/G, 3, 3) -> (9, cpad, cpad) per-tap dense
    block-diagonal matmul weights W[tap, ci, co] (zeros off-group / off-real-channels)."""
    cout, cg, _, _ = w.shape
    cog = cout // groups
    taps = jnp.zeros((9, cpad, cpad), jnp.float32)
    for g in range(groups):
        ci = slice(g * cg, (g + 1) * cg)
        co = slice(g * cog, (g + 1) * cog)
        blk = jnp.transpose(w[co], (2, 3, 1, 0)).reshape(9, cg, cog)
        taps = taps.at[:, ci, co].set(blk)
    return taps


def make_skconv_aux(batch, H, W):
    """Host-precomputed index maps and averaging/selection matrices for the fused kernel."""
    HW = H * W
    rows = batch * HW
    w2 = W // 2
    r = jnp.arange(rows)
    b_i = r // HW
    h_i = (r % HW) // W
    w_i = r % W
    aux = {
        'h_map': h_i.astype(jnp.float32)[:, None],
        'w_map': w_i.astype(jnp.float32)[:, None],
        # per-batch global average pooling over the HW positions
        'gap_mat': (b_i[None, :] == jnp.arange(batch)[:, None]).astype(jnp.float32) / HW,
        # one-hot batch selector (broadcast per-batch attention back to rows)
        'bsel_mat': (b_i[:, None] == jnp.arange(batch)[None, :]).astype(jnp.float32),
        # per-(b,h) mean over W (block-averaging matrix, already broadcast back to rows)
        'frq_mat': ((r[:, None] // W) == (r[None, :] // W)).astype(jnp.float32) / W,
    }
    p = jnp.arange(rows // 2)
    pb = p // (H * w2)
    ph = (p % (H * w2)) // w2
    pw = p % w2
    match = ((pb[:, None] == b_i[None, :]) & (ph[:, None] == h_i[None, :])
             & (pw[:, None] == (w_i[None, :] // 2)))
    aux['poolw_mat'] = match.astype(jnp.float32) * 0.5          # width-2 average pooling
    return aux


def init_skunit_params(key, cin, cmid, cout, batch, H, W):
    d = max(cmid // R, L)
    keys = iter(jax.random.split(key, 12))
    p = {}

    # conv1 (1x1, bias=False)
    w1 = _nrm(next(keys), (cin, cmid))
    if cin <= 8:
        p['conv1_w'] = _pad2(w1, cin, CPAD)                          # f32: VPU path (jnp)
    else:
        p['conv1_w'] = _pad2(w1, CPAD, CPAD).astype(jnp.bfloat16)    # used in fused B1 kernel

    # SK branch grouped convs -> per-tap dense block-diagonal weights, all branches stacked
    taps = [grouped_conv_to_taps(_nrm(next(keys), (cmid, cmid // G, 3, 3)), G, CPAD)
            for _ in range(M)]
    p['branch_w'] = jnp.concatenate(taps, axis=0).astype(jnp.bfloat16)   # (M*9, CPAD, CPAD)

    # squeeze fc (1x1, bias=False)
    p['fc_w'] = _pad2(_nrm(next(keys), (cmid, d)), CPAD, DPAD).astype(jnp.bfloat16)

    # fcs: M 1x1 convs with bias, concatenated along the output axis (one fused matmul)
    ws = [_pad2(_nrm(next(keys), (d, cmid)), DPAD, CPAD) for _ in range(M)]
    bs = [jnp.pad(_nrm(next(keys), (cmid,)), (0, CPAD - cmid)) for _ in range(M)]
    p['fcs_w'] = jnp.concatenate(ws, axis=1).astype(jnp.bfloat16)        # (DPAD, M*CPAD)
    p['fcs_b'] = jnp.concatenate(bs, axis=0)[None, :]                    # (1, M*CPAD) f32

    # conv3 (1x1, bias=False)
    p['conv3_w'] = _pad2(_nrm(next(keys), (cmid, cout)), CPAD, CPAD).astype(jnp.bfloat16)

    # auxiliary matrices for the fused SKConv kernel (spatial size after conv1 + 2x2 pool)
    p.update(make_skconv_aux(batch, H, W))
    return p


def init_params(key, batch=2):
    k1, k2, k3, k4, k5, k6 = jax.random.split(key, 6)
    # spatial trace: (16,8) -conv1/pool-> (8,4) [SKConv1] -conv3/pool-> (4,2) [SKConv2]
    h1, w1 = INPUT_H // 2, INPUT_W // 2
    h2, w2 = h1 // 2, w1 // 2
    p = {
        'skunit1': init_skunit_params(k1, 3, NUM_LAY, NUM_LAY, batch, h1, w1),
        'skunit2': init_skunit_params(k2, NUM_LAY, 2 * NUM_LAY, 2 * NUM_LAY, batch, h2, w2),
    }

    # regression head: flatten(NCHW) of (B, 2*NUM_LAY, h2/2, w2/2) = 128 -> 32 -> 34
    flat_real = (2 * NUM_LAY) * (h2 // 2) * (w2 // 2)
    hid_pad = _round_up(HIDDEN_REG, 128)
    out_pad = _round_up(2 * N_KEYPOINTS, 128)
    w1m = _nrm(k3, (flat_real, HIDDEN_REG))
    # split W1 rows by the h-parity of the NCHW flat index f = 2*c + h, pad c to CPAD
    w1_h0 = jnp.zeros((CPAD, hid_pad), jnp.float32).at[:flat_real // 2, :HIDDEN_REG].set(w1m[0::2])
    w1_h1 = jnp.zeros((CPAD, hid_pad), jnp.float32).at[:flat_real // 2, :HIDDEN_REG].set(w1m[1::2])
    p['reg_w1_h0'] = w1_h0.astype(jnp.bfloat16)
    p['reg_w1_h1'] = w1_h1.astype(jnp.bfloat16)
    p['reg_b1'] = jnp.pad(_nrm(k4, (HIDDEN_REG,)), (0, hid_pad - HIDDEN_REG))[None, :]
    p['reg_w2'] = _pad2(_nrm(k5, (HIDDEN_REG, 2 * N_KEYPOINTS)), hid_pad, out_pad).astype(jnp.bfloat16)
    p['reg_b2'] = jnp.pad(_nrm(k6, (2 * N_KEYPOINTS,)), (0, out_pad - 2 * N_KEYPOINTS))[None, :]

    # final 2x2 avg-pool + per-batch row selection for the fused head kernel
    rows_b2 = batch * h2 * w2                  # rows entering the head kernel
    ngrp = batch * (h2 // 2) * (w2 // 2)       # pooled rows (groups of 4 consecutive rows)
    p['pool_mat'] = ((jnp.arange(rows_b2)[None, :] // 4)
                     == jnp.arange(ngrp)[:, None]).astype(jnp.float32) * 0.25
    p['sel0'] = (jnp.arange(ngrp)[None, :]
                 == (2 * jnp.arange(batch))[:, None]).astype(jnp.float32)
    p['sel1'] = (jnp.arange(ngrp)[None, :]
                 == (2 * jnp.arange(batch) + 1)[:, None]).astype(jnp.float32)
    return p


# ================================ main ==============================================

if __name__ == "__main__":
    key = jax.random.PRNGKey(0)
    k_x, k_p = jax.random.split(key)

    # input: NCHW, (batch=2, channels=3, H=16, W=8)
    x = jax.random.normal(k_x, (2, 3, INPUT_H, INPUT_W), dtype=jnp.float32)
    params = init_params(k_p, batch=2)

    out = dsknet_forward(x, params)
    out = jax.block_until_ready(out)

    assert out.shape == (2, N_KEYPOINTS, 2), out.shape
    assert bool(jnp.all(jnp.isfinite(out)))
    print("KERNEL_OK")
</pallas_src>

<mosaic_0001>
module attributes {stable_mosaic.version = 11 : i64} {
  func.func @kernel(%arg0: memref<64x128xbf16, #tpu.memory_space<vmem>>, %arg1: memref<128x128xbf16, #tpu.memory_space<vmem>>, %arg2: memref<128x128xbf16, #tpu.memory_space<vmem>>, %arg3: memref<64x128xf32, #tpu.memory_space<vmem>>) attributes {dimension_semantics = [], scalar_prefetch = 0 : i64, scratch_operands = 0 : i64, tpu.core_type = #tpu.core_type<tc>} {
    %c0 = arith.constant 0 : index
    %c0_0 = arith.constant 0 : index
    %0 = vector.load %arg0[%c0, %c0_0] : memref<64x128xbf16, #tpu.memory_space<vmem>>, vector<64x128xbf16>
    %c0_1 = arith.constant 0 : index
    %c0_2 = arith.constant 0 : index
    %1 = vector.load %arg1[%c0_1, %c0_2] : memref<128x128xbf16, #tpu.memory_space<vmem>>, vector<128x128xbf16>
    %cst = arith.constant dense<0.000000e+00> : vector<64x128xf32>
    %2 = tpu.matmul %0, %1, %cst {dimension_numbers = #tpu.dot_dimension_numbers<[1], [0], [0], [1], [0, 0, 1, 1], [], []>} : vector<64x128xbf16>, vector<128x128xbf16>, vector<64x128xf32> -> vector<64x128xf32>
    %cst_3 = arith.constant dense<0.000000e+00> : vector<128xf32>
    %3 = vector.multi_reduction <add>, %2, %cst_3 [0] : vector<64x128xf32> to vector<128xf32>
    %4 = vector.shape_cast %3 : vector<128xf32> to vector<1x128xf32>
    %cst_4 = arith.constant 6.400000e+01 : f32
    %5 = vector.broadcast %cst_4 : f32 to vector<1x128xf32>
    %6 = arith.divf %4, %5 : vector<1x128xf32>
    %7 = vector.broadcast %6 : vector<1x128xf32> to vector<64x128xf32>
    %8 = arith.subf %2, %7 : vector<64x128xf32>
    %9 = arith.mulf %8, %8 : vector<64x128xf32>
    %cst_5 = arith.constant dense<0.000000e+00> : vector<128xf32>
    %10 = vector.multi_reduction <add>, %9, %cst_5 [0] : vector<64x128xf32> to vector<128xf32>
    %11 = vector.shape_cast %10 : vector<128xf32> to vector<1x128xf32>
    %cst_6 = arith.constant 6.400000e+01 : f32
    %12 = vector.broadcast %cst_6 : f32 to vector<1x128xf32>
    %13 = arith.divf %11, %12 : vector<1x128xf32>
    %14 = vector.broadcast %6 : vector<1x128xf32> to vector<64x128xf32>
    %15 = arith.subf %2, %14 : vector<64x128xf32>
    %cst_7 = arith.constant 9.99999974E-6 : f32
    %16 = vector.broadcast %cst_7 : f32 to vector<1x128xf32>
    %17 = arith.addf %13, %16 : vector<1x128xf32>
    %18 = math.rsqrt %17 : vector<1x128xf32>
    %19 = vector.broadcast %18 : vector<1x128xf32> to vector<64x128xf32>
    %20 = arith.mulf %15, %19 : vector<64x128xf32>
    %cst_8 = arith.constant dense<0.000000e+00> : vector<128xf32>
    %21 = vector.multi_reduction <add>, %20, %cst_8 [0] : vector<64x128xf32> to vector<128xf32>
    %22 = vector.shape_cast %21 : vector<128xf32> to vector<1x128xf32>
    %cst_9 = arith.constant 6.400000e+01 : f32
    %23 = vector.broadcast %cst_9 : f32 to vector<1x128xf32>
    %24 = arith.divf %22, %23 : vector<1x128xf32>
    %25 = vector.broadcast %24 : vector<1x128xf32> to vector<64x128xf32>
    %26 = arith.subf %20, %25 : vector<64x128xf32>
    %27 = arith.mulf %26, %26 : vector<64x128xf32>
    %cst_10 = arith.constant dense<0.000000e+00> : vector<128xf32>
    %28 = vector.multi_reduction <add>, %27, %cst_10 [0] : vector<64x128xf32> to vector<128xf32>
    %29 = vector.shape_cast %28 : vector<128xf32> to vector<1x128xf32>
    %cst_11 = arith.constant 6.400000e+01 : f32
    %30 = vector.broadcast %cst_11 : f32 to vector<1x128xf32>
    %31 = arith.divf %29, %30 : vector<1x128xf32>
    %32 = vector.broadcast %24 : vector<1x128xf32> to vector<64x128xf32>
    %33 = arith.subf %20, %32 : vector<64x128xf32>
    %cst_12 = arith.constant 9.99999974E-6 : f32
    %34 = vector.broadcast %cst_12 : f32 to vector<1x128xf32>
    %35 = arith.addf %31, %34 : vector<1x128xf32>
    %36 = math.rsqrt %35 : vector<1x128xf32>
    %37 = vector.broadcast %36 : vector<1x128xf32> to vector<64x128xf32>
    %38 = arith.mulf %33, %37 : vector<64x128xf32>
    %39 = arith.truncf %38 : vector<64x128xf32> to vector<64x128xbf16>
    %c0_13 = arith.constant 0 : index
    %c0_14 = arith.constant 0 : index
    %40 = vector.load %arg2[%c0_13, %c0_14] : memref<128x128xbf16, #tpu.memory_space<vmem>>, vector<128x128xbf16>
    %cst_15 = arith.constant dense<0.000000e+00> : vector<64x128xf32>
    %41 = tpu.matmul %39, %40, %cst_15 {dimension_numbers = #tpu.dot_dimension_numbers<[1], [0], [0], [1], [0, 0, 1, 1], [], []>} : vector<64x128xbf16>, vector<128x128xbf16>, vector<64x128xf32> -> vector<64x128xf32>
    %cst_16 = arith.constant dense<0.000000e+00> : vector<128xf32>
    %42 = vector.multi_reduction <add>, %41, %cst_16 [0] : vector<64x128xf32> to vector<128xf32>
    %43 = vector.shape_cast %42 : vector<128xf32> to vector<1x128xf32>
    %cst_17 = arith.constant 6.400000e+01 : f32
    %44 = vector.broadcast %cst_17 : f32 to vector<1x128xf32>
    %45 = arith.divf %43, %44 : vector<1x128xf32>
    %46 = vector.broadcast %45 : vector<1x128xf32> to vector<64x128xf32>
    %47 = arith.subf %41, %46 : vector<64x128xf32>
    %48 = arith.mulf %47, %47 : vector<64x128xf32>
    %cst_18 = arith.constant dense<0.000000e+00> : vector<128xf32>
    %49 = vector.multi_reduction <add>, %48, %cst_18 [0] : vector<64x128xf32> to vector<128xf32>
    %50 = vector.shape_cast %49 : vector<128xf32> to vector<1x128xf32>
    %cst_19 = arith.constant 6.400000e+01 : f32
    %51 = vector.broadcast %cst_19 : f32 to vector<1x128xf32>
    %52 = arith.divf %50, %51 : vector<1x128xf32>
    %53 = vector.broadcast %45 : vector<1x128xf32> to vector<64x128xf32>
    %54 = arith.subf %41, %53 : vector<64x128xf32>
    %cst_20 = arith.constant 9.99999974E-6 : f32
    %55 = vector.broadcast %cst_20 : f32 to vector<1x128xf32>
    %56 = arith.addf %52, %55 : vector<1x128xf32>
    %57 = math.rsqrt %56 : vector<1x128xf32>
    %58 = vector.broadcast %57 : vector<1x128xf32> to vector<64x128xf32>
    %59 = arith.mulf %54, %58 : vector<64x128xf32>
    %cst_21 = arith.constant 0.000000e+00 : f32
    %60 = vector.broadcast %cst_21 : f32 to vector<64x128xf32>
    %61 = arith.maximumf %59, %60 : vector<64x128xf32>
    %c0_22 = arith.constant 0 : index
    %c0_23 = arith.constant 0 : index
    %62 = vector.load %arg3[%c0_22, %c0_23] : memref<64x128xf32, #tpu.memory_space<vmem>>, vector<64x128xf32>
    tpu.vector_store %arg3[%c0_22, %c0_23], %61 {strides = array<i32>} : memref<64x128xf32, #tpu.memory_space<vmem>>, vector<64x128xf32>,
    return
  }
}

module attributes {stable_mosaic.version = 11 : i64} {
  func.func @kernel(%arg0: memref<96x128xf32, #tpu.memory_space<vmem>>, %arg1: memref<27x128x128xbf16, #tpu.memory_space<vmem>>, %arg2: memref<128x128xbf16, #tpu.memory_space<vmem>>, %arg3: memref<128x384xbf16, #tpu.memory_space<vmem>>, %arg4: memref<1x384xf32, #tpu.memory_space<vmem>>, %arg5: memref<64x1xf32, #tpu.memory_space<vmem>>, %arg6: memref<64x1xf32, #tpu.memory_space<vmem>>, %arg7: memref<2x64xf32, #tpu.memory_space<vmem>>, %arg8: memref<64x2xf32, #tpu.memory_space<vmem>>, %arg9: memref<64x64xf32, #tpu.memory_space<vmem>>, %arg10: memref<32x64xf32, #tpu.memory_space<vmem>>, %arg11: memref<64x128xbf16, #tpu.memory_space<vmem>>) attributes {dimension_semantics = [], scalar_prefetch = 0 : i64, scratch_operands = 0 : i64, tpu.core_type = #tpu.core_type<tc>} {
    %c0 = arith.constant 0 : index
    %c0_0 = arith.constant 0 : index
    %0 = vector.load %arg5[%c0, %c0_0] : memref<64x1xf32, #tpu.memory_space<vmem>>, vector<64x1xf32>
    %c0_1 = arith.constant 0 : index
    %c0_2 = arith.constant 0 : index
    %1 = vector.load %arg6[%c0_1, %c0_2] : memref<64x1xf32, #tpu.memory_space<vmem>>, vector<64x1xf32>
    %c11 = arith.constant 11 : index
    %c0_3 = arith.constant 0 : index
    %2 = vector.load %arg0[%c11, %c0_3] : memref<96x128xf32, #tpu.memory_space<vmem>>, vector<64x128xf32>
    %cst = arith.constant 1.000000e+00 : f32
    %3 = vector.broadcast %cst : f32 to vector<64x1xf32>
    %4 = arith.cmpf oge, %0, %3 : vector<64x1xf32>
    %5 = arith.extui %4 : vector<64x1xi1> to vector<64x1xi32>
    %6 = arith.sitofp %5 : vector<64x1xi32> to vector<64x1xf32>
    %cst_4 = arith.constant 1.000000e+00 : f32
    %7 = vector.broadcast %cst_4 : f32 to vector<64x1xf32>
    %8 = arith.cmpf oge, %1, %7 : vector<64x1xf32>
    %9 = arith.extui %8 : vector<64x1xi1> to vector<64x1xi32>
    %10 = arith.sitofp %9 : vector<64x1xi32> to vector<64x1xf32>
    %11 = arith.mulf %6, %10 : vector<64x1xf32>
    %12 = vector.broadcast %11 : vector<64x1xf32> to vector<64x128xf32>
    %13 = arith.mulf %2, %12 : vector<64x128xf32>
    %14 = arith.truncf %13 : vector<64x128xf32> to vector<64x128xbf16>
    %c0_5 = arith.constant 0 : index
    %c0_6 = arith.constant 0 : index
    %c0_7 = arith.constant 0 : index
    %15 = vector.load %arg1[%c0_5, %c0_6, %c0_7] : memref<27x128x128xbf16, #tpu.memory_space<vmem>>, vector<1x128x128xbf16>
    %16 = vector.shape_cast %15 : vector<1x128x128xbf16> to vector<128x128xbf16>
    %cst_8 = arith.constant dense<0.000000e+00> : vector<64x128xf32>
    %17 = tpu.matmul %14, %16, %cst_8 {dimension_numbers = #tpu.dot_dimension_numbers<[1], [0], [0], [1], [0, 0, 1, 1], [], []>} : vector<64x128xbf16>, vector<128x128xbf16>, vector<64x128xf32> -> vector<64x128xf32>
    %c12 = arith.constant 12 : index
    %c0_9 = arith.constant 0 : index
    %18 = vector.load %arg0[%c12, %c0_9] : memref<96x128xf32, #tpu.memory_space<vmem>>, vector<64x128xf32>
    %cst_10 = arith.constant 1.000000e+00 : f32
    %19 = vector.broadcast %cst_10 : f32 to vector<64x1xf32>
    %20 = arith.cmpf oge, %0, %19 : vector<64x1xf32>
    %21 = arith.extui %20 : vector<64x1xi1> to vector<64x1xi32>
    %22 = arith.sitofp %21 : vector<64x1xi32> to vector<64x1xf32>
    %23 = vector.broadcast %22 : vector<64x1xf32> to vector<64x128xf32>
    %24 = arith.mulf %18, %23 : vector<64x128xf32>
    %25 = arith.truncf %24 : vector<64x128xf32> to vector<64x128xbf16>
    %c1 = arith.constant 1 : index
    %c0_11 = arith.constant 0 : index
    %c0_12 = arith.constant 0 : index
    %26 = vector.load %arg1[%c1, %c0_11, %c0_12] : memref<27x128x128xbf16, #tpu.memory_space<vmem>>, vector<1x128x128xbf16>
    %27 = vector.shape_cast %26 : vector<1x128x128xbf16> to vector<128x128xbf16>
    %cst_13 = arith.constant dense<0.000000e+00> : vector<64x128xf32>
    %28 = tpu.matmul %25, %27, %cst_13 {dimension_numbers = #tpu.dot_dimension_numbers<[1], [0], [0], [1], [0, 0, 1, 1], [], []>} : vector<64x128xbf16>, vector<128x128xbf16>, vector<64x128xf32> -> vector<64x128xf32>
    %29 = arith.addf %17, %28 : vector<64x128xf32>
    %c13 = arith.constant 13 : index
    %c0_14 = arith.constant 0 : index
    %30 = vector.load %arg0[%c13, %c0_14] : memref<96x128xf32, #tpu.memory_space<vmem>>, vector<64x128xf32>
    %cst_15 = arith.constant 1.000000e+00 : f32
    %31 = vector.broadcast %cst_15 : f32 to vector<64x1xf32>
    %32 = arith.cmpf oge, %0, %31 : vector<64x1xf32>
    %33 = arith.extui %32 : vector<64x1xi1> to vector<64x1xi32>
    %34 = arith.sitofp %33 : vector<64x1xi32> to vector<64x1xf32>
    %cst_16 = arith.constant 3.000000e+00 : f32
    %35 = vector.broadcast %cst_16 : f32 to vector<64x1xf32>
    %36 = arith.cmpf olt, %1, %35 : vector<64x1xf32>
    %37 = arith.extui %36 : vector<64x1xi1> to vector<64x1xi32>
    %38 = arith.sitofp %37 : vector<64x1xi32> to vector<64x1xf32>
    %39 = arith.mulf %34, %38 : vector<64x1xf32>
    %40 = vector.broadcast %39 : vector<64x1xf32> to vector<64x128xf32>
    %41 = arith.mulf %30, %40 : vector<64x128xf32>
    %42 = arith.truncf %41 : vector<64x128xf32> to vector<64x128xbf16>
    %c2 = arith.constant 2 : index
    %c0_17 = arith.constant 0 : index
    %c0_18 = arith.constant 0 : index
    %43 = vector.load %arg1[%c2, %c0_17, %c0_18] : memref<27x128x128xbf16, #tpu.memory_space<vmem>>, vector<1x128x128xbf16>
    %44 = vector.shape_cast %43 : vector<1x128x128xbf16> to vector<128x128xbf16>
    %cst_19 = arith.constant dense<0.000000e+00> : vector<64x128xf32>
    %45 = tpu.matmul %42, %44, %cst_19 {dimension_numbers = #tpu.dot_dimension_numbers<[1], [0], [0], [1], [0, 0, 1, 1], [], []>} : vector<64x128xbf16>, vector<128x128xbf16>, vector<64x128xf32> -> vector<64x128xf32>
    %46 = arith.addf %29, %45 : vector<64x128xf32>
    %c15 = arith.constant 15 : index
    %c0_20 = arith.constant 0 : index
    %47 = vector.load %arg0[%c15, %c0_20] : memref<96x128xf32, #tpu.memory_space<vmem>>, vector<64x128xf32>
    %cst_21 = arith.constant 1.000000e+00 : f32
    %48 = vector.broadcast %cst_21 : f32 to vector<64x1xf32>
    %49 = arith.cmpf oge, %1, %48 : vector<64x1xf32>
    %50 = arith.extui %49 : vector<64x1xi1> to vector<64x1xi32>
    %51 = arith.sitofp %50 : vector<64x1xi32> to vector<64x1xf32>
    %52 = vector.broadcast %51 : vector<64x1xf32> to vector<64x128xf32>
    %53 = arith.mulf %47, %52 : vector<64x128xf32>
    %54 = arith.truncf %53 : vector<64x128xf32> to vector<64x128xbf16>
    %c3 = arith.constant 3 : index
    %c0_22 = arith.constant 0 : index
    %c0_23 = arith.constant 0 : index
    %55 = vector.load %arg1[%c3, %c0_22, %c0_23] : memref<27x128x128xbf16, #tpu.memory_space<vmem>>, vector<1x128x128xbf16>
    %56 = vector.shape_cast %55 : vector<1x128x128xbf16> to vector<128x128xbf16>
    %cst_24 = arith.constant dense<0.000000e+00> : vector<64x128xf32>
    %57 = tpu.matmul %54, %56, %cst_24 {dimension_numbers = #tpu.dot_dimension_numbers<[1], [0], [0], [1], [0, 0, 1, 1], [], []>} : vector<64x128xbf16>, vector<128x128xbf16>, vector<64x128xf32> -> vector<64x128xf32>
    %58 = arith.addf %46, %57 : vector<64x128xf32>
    %c16 = arith.constant 16 : index
    %c0_25 = arith.constant 0 : index
    %59 = vector.load %arg0[%c16, %c0_25] : memref<96x128xf32, #tpu.memory_space<vmem>>, vector<64x128xf32>
    %60 = arith.truncf %59 : vector<64x128xf32> to vector<64x128xbf16>
    %c4 = arith.constant 4 : index
    %c0_26 = arith.constant 0 : index
    %c0_27 = arith.constant 0 : index
    %61 = vector.load %arg1[%c4, %c0_26, %c0_27] : memref<27x128x128xbf16, #tpu.memory_space<vmem>>, vector<1x128x128xbf16>
    %62 = vector.shape_cast %61 : vector<1x128x128xbf16> to vector<128x128xbf16>
    %cst_28 = arith.constant dense<0.000000e+00> : vector<64x128xf32>
    %63 = tpu.matmul %60, %62, %cst_28 {dimension_numbers = #tpu.dot_dimension_numbers<[1], [0], [0], [1], [0, 0, 1, 1], [], []>} : vector<64x128xbf16>, vector<128x128xbf16>, vector<64x128xf32> -> vector<64x128xf32>
    %64 = arith.addf %58, %63 : vector<64x128xf32>
    %c17 = arith.constant 17 : index
    %c0_29 = arith.constant 0 : index
    %65 = vector.load %arg0[%c17, %c0_29] : memref<96x128xf32, #tpu.memory_space<vmem>>, vector<64x128xf32>
    %cst_30 = arith.constant 3.000000e+00 : f32
    %66 = vector.broadcast %cst_30 : f32 to vector<64x1xf32>
    %67 = arith.cmpf olt, %1, %66 : vector<64x1xf32>
    %68 = arith.extui %67 : vector<64x1xi1> to vector<64x1xi32>
    %69 = arith.sitofp %68 : vector<64x1xi32> to vector<64x1xf32>
    %70 = vector.broadcast %69 : vector<64x1xf32> to vector<64x128xf32>
    %71 = arith.mulf %65, %70 : vector<64x128xf32>
    %72 = arith.truncf %71 : vector<64x128xf32> to vector<64x128xbf16>
    %c5 = arith.constant 5 : index
    %c0_31 = arith.constant 0 : index
    %c0_32 = arith.constant 0 : index
    %73 = vector.load %arg1[%c5, %c0_31, %c0_32] : memref<27x128x128xbf16, #tpu.memory_space<vmem>>, vector<1x128x128xbf16>
    %74 = vector.shape_cast %73 : vector<1x128x128xbf16> to vector<128x128xbf16>
    %cst_33 = arith.constant dense<0.000000e+00> : vector<64x128xf32>
    %75 = tpu.matmul %72, %74, %cst_33 {dimension_numbers = #tpu.dot_dimension_numbers<[1], [0], [0], [1], [0, 0, 1, 1], [], []>} : vector<64x128xbf16>, vector<128x128xbf16>, vector<64x128xf32> -> vector<64x128xf32>
    %76 = arith.addf %64, %75 : vector<64x128xf32>
    %c19 = arith.constant 19 : index
    %c0_34 = arith.constant 0 : index
    %77 = vector.load %arg0[%c19, %c0_34] : memref<96x128xf32, #tpu.memory_space<vmem>>, vector<64x128xf32>
    %cst_35 = arith.constant 7.000000e+00 : f32
    %78 = vector.broadcast %cst_35 : f32 to vector<64x1xf32>
    %79 = arith.cmpf olt, %0, %78 : vector<64x1xf32>
    %80 = arith.extui %79 : vector<64x1xi1> to vector<64x1xi32>
    %81 = arith.sitofp %80 : vector<64x1xi32> to vector<64x1xf32>
    %cst_36 = arith.constant 1.000000e+00 : f32
    %82 = vector.broadcast %cst_36 : f32 to vector<64x1xf32>
    %83 = arith.cmpf oge, %1, %82 : vector<64x1xf32>
    %84 = arith.extui %83 : vector<64x1xi1> to vector<64x1xi32>
    %85 = arith.sitofp %84 : vector<64x1xi32> to vector<64x1xf32>
    %86 = arith.mulf %81, %85 : vector<64x1xf32>
    %87 = vector.broadcast %86 : vector<64x1xf32> to vector<64x128xf32>
    %88 = arith.mulf %77, %87 : vector<64x128xf32>
    %89 = arith.truncf %88 : vector<64x128xf32> to vector<64x128xbf16>
    %c6 = arith.constant 6 : index
    %c0_37 = arith.constant 0 : index
    %c0_38 = arith.constant 0 : index
    %90 = vector.load %arg1[%c6, %c0_37, %c0_38] : memref<27x128x128xbf16, #tpu.memory_space<vmem>>, vector<1x128x128xbf16>
    %91 = vector.shape_cast %90 : vector<1x128x128xbf16> to vector<128x128xbf16>
    %cst_39 = arith.constant dense<0.000000e+00> : vector<64x128xf32>
    %92 = tpu.matmul %89, %91, %cst_39 {dimension_numbers = #tpu.dot_dimension_numbers<[1], [0], [0], [1], [0, 0, 1, 1], [], []>} : vector<64x128xbf16>, vector<128x128xbf16>, vector<64x128xf32> -> vector<64x128xf32>
    %93 = arith.addf %76, %92 : vector<64x128xf32>
    %c20 = arith.constant 20 : index
    %c0_40 = arith.constant 0 : index
    %94 = vector.load %arg0[%c20, %c0_40] : memref<96x128xf32, #tpu.memory_space<vmem>>, vector<64x128xf32>
    %cst_41 = arith.constant 7.000000e+00 : f32
    %95 = vector.broadcast %cst_41 : f32 to vector<64x1xf32>
    %96 = arith.cmpf olt, %0, %95 : vector<64x1xf32>
    %97 = arith.extui %96 : vector<64x1xi1> to vector<64x1xi32>
    %98 = arith.sitofp %97 : vector<64x1xi32> to vector<64x1xf32>
    %99 = vector.broadcast %98 : vector<64x1xf32> to vector<64x128xf32>
    %100 = arith.mulf %94, %99 : vector<64x128xf32>
    %101 = arith.truncf %100 : vector<64x128xf32> to vector<64x128xbf16>
    %c7 = arith.constant 7 : index
    %c0_42 = arith.constant 0 : index
    %c0_43 = arith.constant 0 : index
    %102 = vector.load %arg1[%c7, %c0_42, %c0_43] : memref<27x128x128xbf16, #tpu.memory_space<vmem>>, vector<1x128x128xbf16>
    %103 = vector.shape_cast %102 : vector<1x128x128xbf16> to vector<128x128xbf16>
    %cst_44 = arith.constant dense<0.000000e+00> : vector<64x128xf32>
    %104 = tpu.matmul %101, %103, %cst_44 {dimension_numbers = #tpu.dot_dimension_numbers<[1], [0], [0], [1], [0, 0, 1, 1], [], []>} : vector<64x128xbf16>, vector<128x128xbf16>, vector<64x128xf32> -> vector<64x128xf32>
    %105 = arith.addf %93, %104 : vector<64x128xf32>
    %c21 = arith.constant 21 : index
    %c0_45 = arith.constant 0 : index
    %106 = vector.load %arg0[%c21, %c0_45] : memref<96x128xf32, #tpu.memory_space<vmem>>, vector<64x128xf32>
    %cst_46 = arith.constant 7.000000e+00 : f32
    %107 = vector.broadcast %cst_46 : f32 to vector<64x1xf32>
    %108 = arith.cmpf olt, %0, %107 : vector<64x1xf32>
    %109 = arith.extui %108 : vector<64x1xi1> to vector<64x1xi32>
    %110 = arith.sitofp %109 : vector<64x1xi32> to vector<64x1xf32>
    %cst_47 = arith.constant 3.000000e+00 : f32
    %111 = vector.broadcast %cst_47 : f32 to vector<64x1xf32>
    %112 = arith.cmpf olt, %1, %111 : vector<64x1xf32>
    %113 = arith.extui %112 : vector<64x1xi1> to vector<64x1xi32>
    %114 = arith.sitofp %113 : vector<64x1xi32> to vector<64x1xf32>
    %115 = arith.mulf %110, %114 : vector<64x1xf32>
    %116 = vector.broadcast %115 : vector<64x1xf32> to vector<64x128xf32>
    %117 = arith.mulf %106, %116 : vector<64x128xf32>
    %118 = arith.truncf %117 : vector<64x128xf32> to vector<64x128xbf16>
    %c8 = arith.constant 8 : index
    %c0_48 = arith.constant 0 : index
    %c0_49 = arith.constant 0 : index
    %119 = vector.load %arg1[%c8, %c0_48, %c0_49] : memref<27x128x128xbf16, #tpu.memory_space<vmem>>, vector<1x128x128xbf16>
    %120 = vector.shape_cast %119 : vector<1x128x128xbf16> to vector<128x128xbf16>
    %cst_50 = arith.constant dense<0.000000e+00> : vector<64x128xf32>
    %121 = tpu.matmul %118, %120, %cst_50 {dimension_numbers = #tpu.dot_dimension_numbers<[1], [0], [0], [1], [0, 0, 1, 1], [], []>} : vector<64x128xbf16>, vector<128x128xbf16>, vector<64x128xf32> -> vector<64x128xf32>
    %122 = arith.addf %105, %121 : vector<64x128xf32>
    %cst_51 = arith.constant dense<0.000000e+00> : vector<128xf32>
    %123 = vector.multi_reduction <add>, %122, %cst_51 [0] : vector<64x128xf32> to vector<128xf32>
    %124 = vector.shape_cast %123 : vector<128xf32> to vector<1x128xf32>
    %cst_52 = arith.constant 6.400000e+01 : f32
    %125 = vector.broadcast %cst_52 : f32 to vector<1x128xf32>
    %126 = arith.divf %124, %125 : vector<1x128xf32>
    %127 = vector.broadcast %126 : vector<1x128xf32> to vector<64x128xf32>
    %128 = arith.subf %122, %127 : vector<64x128xf32>
    %129 = arith.mulf %128, %128 : vector<64x128xf32>
    %cst_53 = arith.constant dense<0.000000e+00> : vector<128xf32>
    %130 = vector.multi_reduction <add>, %129, %cst_53 [0] : vector<64x128xf32> to vector<128xf32>
    %131 = vector.shape_cast %130 : vector<128xf32> to vector<1x128xf32>
    %cst_54 = arith.constant 6.400000e+01 : f32
    %132 = vector.broadcast %cst_54 : f32 to vector<1x128xf32>
    %133 = arith.divf %131, %132 : vector<1x128xf32>
    %134 = vector.broadcast %126 : vector<1x128xf32> to vector<64x128xf32>
    %135 = arith.subf %122, %134 : vector<64x128xf32>
    %cst_55 = arith.constant 9.99999974E-6 : f32
    %136 = vector.broadcast %cst_55 : f32 to vector<1x128xf32>
    %137 = arith.addf %133, %136 : vector<1x128xf32>
    %138 = math.rsqrt %137 : vector<1x128xf32>
    %139 = vector.broadcast %138 : vector<1x128xf32> to vector<64x128xf32>
    %140 = arith.mulf %135, %139 : vector<64x128xf32>
    %cst_56 = arith.constant 0.000000e+00 : f32
    %141 = vector.broadcast %cst_56 : f32 to vector<64x128xf32>
    %142 = arith.maximumf %140, %141 : vector<64x128xf32>
    %c6_57 = arith.constant 6 : index
    %c0_58 = arith.constant 0 : index
    %143 = vector.load %arg0[%c6_57, %c0_58] : memref<96x128xf32, #tpu.memory_space<vmem>>, vector<64x128xf32>
    %cst_59 = arith.constant 2.000000e+00 : f32
    %144 = vector.broadcast %cst_59 : f32 to vector<64x1xf32>
    %145 = arith.cmpf oge, %0, %144 : vector<64x1xf32>
    %146 = arith.extui %145 : vector<64x1xi1> to vector<64x1xi32>
    %147 = arith.sitofp %146 : vector<64x1xi32> to vector<64x1xf32>
    %cst_60 = arith.constant 2.000000e+00 : f32
    %148 = vector.broadcast %cst_60 : f32 to vector<64x1xf32>
    %149 = arith.cmpf oge, %1, %148 : vector<64x1xf32>
    %150 = arith.extui %149 : vector<64x1xi1> to vector<64x1xi32>
    %151 = arith.sitofp %150 : vector<64x1xi32> to vector<64x1xf32>
    %152 = arith.mulf %147, %151 : vector<64x1xf32>
    %153 = vector.broadcast %152 : vector<64x1xf32> to vector<64x128xf32>
    %154 = arith.mulf %143, %153 : vector<64x128xf32>
    %155 = arith.truncf %154 : vector<64x128xf32> to vector<64x128xbf16>
    %c9 = arith.constant 9 : index
    %c0_61 = arith.constant 0 : index
    %c0_62 = arith.constant 0 : index
    %156 = vector.load %arg1[%c9, %c0_61, %c0_62] : memref<27x128x128xbf16, #tpu.memory_space<vmem>>, vector<1x128x128xbf16>
    %157 = vector.shape_cast %156 : vector<1x128x128xbf16> to vector<128x128xbf16>
    %cst_63 = arith.constant dense<0.000000e+00> : vector<64x128xf32>
    %158 = tpu.matmul %155, %157, %cst_63 {dimension_numbers = #tpu.dot_dimension_numbers<[1], [0], [0], [1], [0, 0, 1, 1], [], []>} : vector<64x128xbf16>, vector<128x128xbf16>, vector<64x128xf32> -> vector<64x128xf32>
    %c8_64 = arith.constant 8 : index
    %c0_65 = arith.constant 0 : index
    %159 = vector.load %arg0[%c8_64, %c0_65] : memref<96x128xf32, #tpu.memory_space<vmem>>, vector<64x128xf32>
    %cst_66 = arith.constant 2.000000e+00 : f32
    %160 = vector.broadcast %cst_66 : f32 to vector<64x1xf32>
    %161 = arith.cmpf oge, %0, %160 : vector<64x1xf32>
    %162 = arith.extui %161 : vector<64x1xi1> to vector<64x1xi32>
    %163 = arith.sitofp %162 : vector<64x1xi32> to vector<64x1xf32>
    %164 = vector.broadcast %163 : vector<64x1xf32> to vector<64x128xf32>
    %165 = arith.mulf %159, %164 : vector<64x128xf32>
    %166 = arith.truncf %165 : vector<64x128xf32> to vector<64x128xbf16>
    %c10 = arith.constant 10 : index
    %c0_67 = arith.constant 0 : index
    %c0_68 = arith.constant 0 : index
    %167 = vector.load %arg1[%c10, %c0_67, %c0_68] : memref<27x128x128xbf16, #tpu.memory_space<vmem>>, vector<1x128x128xbf16>
    %168 = vector.shape_cast %167 : vector<1x128x128xbf16> to vector<128x128xbf16>
    %cst_69 = arith.constant dense<0.000000e+00> : vector<64x128xf32>
    %169 = tpu.matmul %166, %168, %cst_69 {dimension_numbers = #tpu.dot_dimension_numbers<[1], [0], [0], [1], [0, 0, 1, 1], [], []>} : vector<64x128xbf16>, vector<128x128xbf16>, vector<64x128xf32> -> vector<64x128xf32>
    %170 = arith.addf %158, %169 : vector<64x128xf32>
    %c10_70 = arith.constant 10 : index
    %c0_71 = arith.constant 0 : index
    %171 = vector.load %arg0[%c10_70, %c0_71] : memref<96x128xf32, #tpu.memory_space<vmem>>, vector<64x128xf32>
    %cst_72 = arith.constant 2.000000e+00 : f32
    %172 = vector.broadcast %cst_72 : f32 to vector<64x1xf32>
    %173 = arith.cmpf oge, %0, %172 : vector<64x1xf32>
    %174 = arith.extui %173 : vector<64x1xi1> to vector<64x1xi32>
    %175 = arith.sitofp %174 : vector<64x1xi32> to vector<64x1xf32>
    %cst_73 = arith.constant 2.000000e+00 : f32
    %176 = vector.broadcast %cst_73 : f32 to vector<64x1xf32>
    %177 = arith.cmpf olt, %1, %176 : vector<64x1xf32>
    %178 = arith.extui %177 : vector<64x1xi1> to vector<64x1xi32>
    %179 = arith.sitofp %178 : vector<64x1xi32> to vector<64x1xf32>
    %180 = arith.mulf %175, %179 : vector<64x1xf32>
    %181 = vector.broadcast %180 : vector<64x1xf32> to vector<64x128xf32>
    %182 = arith.mulf %171, %181 : vector<64x128xf32>
    %183 = arith.truncf %182 : vector<64x128xf32> to vector<64x128xbf16>
    %c11_74 = arith.constant 11 : index
    %c0_75 = arith.constant 0 : index
    %c0_76 = arith.constant 0 : index
    %184 = vector.load %arg1[%c11_74, %c0_75, %c0_76] : memref<27x128x128xbf16, #tpu.memory_space<vmem>>, vector<1x128x128xbf16>
    %185 = vector.shape_cast %184 : vector<1x128x128xbf16> to vector<128x128xbf16>
    %cst_77 = arith.constant dense<0.000000e+00> : vector<64x128xf32>
    %186 = tpu.matmul %183, %185, %cst_77 {dimension_numbers = #tpu.dot_dimension_numbers<[1], [0], [0], [1], [0, 0, 1, 1], [], []>} : vector<64x128xbf16>, vector<128x128xbf16>, vector<64x128xf32> -> vector<64x128xf32>
    %187 = arith.addf %170, %186 : vector<64x128xf32>
    %c14 = arith.constant 14 : index
    %c0_78 = arith.constant 0 : index
    %188 = vector.load %arg0[%c14, %c0_78] : memref<96x128xf32, #tpu.memory_space<vmem>>, vector<64x128xf32>
    %cst_79 = arith.constant 2.000000e+00 : f32
    %189 = vector.broadcast %cst_79 : f32 to vector<64x1xf32>
    %190 = arith.cmpf oge, %1, %189 : vector<64x1xf32>
    %191 = arith.extui %190 : vector<64x1xi1> to vector<64x1xi32>
    %192 = arith.sitofp %191 : vector<64x1xi32> to vector<64x1xf32>
    %193 = vector.broadcast %192 : vector<64x1xf32> to vector<64x128xf32>
    %194 = arith.mulf %188, %193 : vector<64x128xf32>
    %195 = arith.truncf %194 : vector<64x128xf32> to vector<64x128xbf16>
    %c12_80 = arith.constant 12 : index
    %c0_81 = arith.constant 0 : index
    %c0_82 = arith.constant 0 : index
    %196 = vector.load %arg1[%c12_80, %c0_81, %c0_82] : memref<27x128x128xbf16, #tpu.memory_space<vmem>>, vector<1x128x128xbf16>
    %197 = vector.shape_cast %196 : vector<1x128x128xbf16> to vector<128x128xbf16>
    %cst_83 = arith.constant dense<0.000000e+00> : vector<64x128xf32>
    %198 = tpu.matmul %195, %197, %cst_83 {dimension_numbers = #tpu.dot_dimension_numbers<[1], [0], [0], [1], [0, 0, 1, 1], [], []>} : vector<64x128xbf16>, vector<128x128xbf16>, vector<64x128xf32> -> vector<64x128xf32>
    %199 = arith.addf %187, %198 : vector<64x128xf32>
    %c16_84 = arith.constant 16 : index
    %c0_85 = arith.constant 0 : index
    %200 = vector.load %arg0[%c16_84, %c0_85] : memref<96x128xf32, #tpu.memory_space<vmem>>, vector<64x128xf32>
    %201 = arith.truncf %200 : vector<64x128xf32> to vector<64x128xbf16>
    %c13_86 = arith.constant 13 : index
    %c0_87 = arith.constant 0 : index
    %c0_88 = arith.constant 0 : index
    %202 = vector.load %arg1[%c13_86, %c0_87, %c0_88] : memref<27x128x128xbf16, #tpu.memory_space<vmem>>, vector<1x128x128xbf16>
    %203 = vector.shape_cast %202 : vector<1x128x128xbf16> to vector<128x128xbf16>
    %cst_89 = arith.constant dense<0.000000e+00> : vector<64x128xf32>
    %204 = tpu.matmul %201, %203, %cst_89 {dimension_numbers = #tpu.dot_dimension_numbers<[1], [0], [0], [1], [0, 0, 1, 1], [], []>} : vector<64x128xbf16>, vector<128x128xbf16>, vector<64x128xf32> -> vector<64x128xf32>
    %205 = arith.addf %199, %204 : vector<64x128xf32>
    %c18 = arith.constant 18 : index
    %c0_90 = arith.constant 0 : index
    %206 = vector.load %arg0[%c18, %c0_90] : memref<96x128xf32, #tpu.memory_space<vmem>>, vector<64x128xf32>
    %cst_91 = arith.constant 2.000000e+00 : f32
    %207 = vector.broadcast %cst_91 : f32 to vector<64x1xf32>
    %208 = arith.cmpf olt, %1, %207 : vector<64x1xf32>
    %209 = arith.extui %208 : vector<64x1xi1> to vector<64x1xi32>
    %210 = arith.sitofp %209 : vector<64x1xi32> to vector<64x1xf32>
    %211 = vector.broadcast %210 : vector<64x1xf32> to vector<64x128xf32>
    %212 = arith.mulf %206, %211 : vector<64x128xf32>
    %213 = arith.truncf %212 : vector<64x128xf32> to vector<64x128xbf16>
    %c14_92 = arith.constant 14 : index
    %c0_93 = arith.constant 0 : index
    %c0_94 = arith.constant 0 : index
    %214 = vector.load %arg1[%c14_92, %c0_93, %c0_94] : memref<27x128x128xbf16, #tpu.memory_space<vmem>>, vector<1x128x128xbf16>
    %215 = vector.shape_cast %214 : vector<1x128x128xbf16> to vector<128x128xbf16>
    %cst_95 = arith.constant dense<0.000000e+00> : vector<64x128xf32>
    %216 = tpu.matmul %213, %215, %cst_95 {dimension_numbers = #tpu.dot_dimension_numbers<[1], [0], [0], [1], [0, 0, 1, 1], [], []>} : vector<64x128xbf16>, vector<128x128xbf16>, vector<64x128xf32> -> vector<64x128xf32>
    %217 = arith.addf %205, %216 : vector<64x128xf32>
    %c22 = arith.constant 22 : index
    %c0_96 = arith.constant 0 : index
    %218 = vector.load %arg0[%c22, %c0_96] : memref<96x128xf32, #tpu.memory_space<vmem>>, vector<64x128xf32>
    %cst_97 = arith.constant 6.000000e+00 : f32
    %219 = vector.broadcast %cst_97 : f32 to vector<64x1xf32>
    %220 = arith.cmpf olt, %0, %219 : vector<64x1xf32>
    %221 = arith.extui %220 : vector<64x1xi1> to vector<64x1xi32>
    %222 = arith.sitofp %221 : vector<64x1xi32> to vector<64x1xf32>
    %cst_98 = arith.constant 2.000000e+00 : f32
    %223 = vector.broadcast %cst_98 : f32 to vector<64x1xf32>
    %224 = arith.cmpf oge, %1, %223 : vector<64x1xf32>
    %225 = arith.extui %224 : vector<64x1xi1> to vector<64x1xi32>
    %226 = arith.sitofp %225 : vector<64x1xi32> to vector<64x1xf32>
    %227 = arith.mulf %222, %226 : vector<64x1xf32>
    %228 = vector.broadcast %227 : vector<64x1xf32> to vector<64x128xf32>
    %229 = arith.mulf %218, %228 : vector<64x128xf32>
    %230 = arith.truncf %229 : vector<64x128xf32> to vector<64x128xbf16>
    %c15_99 = arith.constant 15 : index
    %c0_100 = arith.constant 0 : index
    %c0_101 = arith.constant 0 : index
    %231 = vector.load %arg1[%c15_99, %c0_100, %c0_101] : memref<27x128x128xbf16, #tpu.memory_space<vmem>>, vector<1x128x128xbf16>
    %232 = vector.shape_cast %231 : vector<1x128x128xbf16> to vector<128x128xbf16>
    %cst_102 = arith.constant dense<0.000000e+00> : vector<64x128xf32>
    %233 = tpu.matmul %230, %232, %cst_102 {dimension_numbers = #tpu.dot_dimension_numbers<[1], [0], [0], [1], [0, 0, 1, 1], [], []>} : vector<64x128xbf16>, vector<128x128xbf16>, vector<64x128xf32> -> vector<64x128xf32>
    %234 = arith.addf %217, %233 : vector<64x128xf32>
    %c24 = arith.constant 24 : index
    %c0_103 = arith.constant 0 : index
    %235 = vector.load %arg0[%c24, %c0_103] : memref<96x128xf32, #tpu.memory_space<vmem>>, vector<64x128xf32>
    %cst_104 = arith.constant 6.000000e+00 : f32
    %236 = vector.broadcast %cst_104 : f32 to vector<64x1xf32>
    %237 = arith.cmpf olt, %0, %236 : vector<64x1xf32>
    %238 = arith.extui %237 : vector<64x1xi1> to vector<64x1xi32>
    %239 = arith.sitofp %238 : vector<64x1xi32> to vector<64x1xf32>
    %240 = vector.broadcast %239 : vector<64x1xf32> to vector<64x128xf32>
    %241 = arith.mulf %235, %240 : vector<64x128xf32>
    %242 = arith.truncf %241 : vector<64x128xf32> to vector<64x128xbf16>
    %c16_105 = arith.constant 16 : index
    %c0_106 = arith.constant 0 : index
    %c0_107 = arith.constant 0 : index
    %243 = vector.load %arg1[%c16_105, %c0_106, %c0_107] : memref<27x128x128xbf16, #tpu.memory_space<vmem>>, vector<1x128x128xbf16>
    %244 = vector.shape_cast %243 : vector<1x128x128xbf16> to vector<128x128xbf16>
    %cst_108 = arith.constant dense<0.000000e+00> : vector<64x128xf32>
    %245 = tpu.matmul %242, %244, %cst_108 {dimension_numbers = #tpu.dot_dimension_numbers<[1], [0], [0], [1], [0, 0, 1, 1], [], []>} : vector<64x128xbf16>, vector<128x128xbf16>, vector<64x128xf32> -> vector<64x128xf32>
    %246 = arith.addf %234, %245 : vector<64x128xf32>
    %c26 = arith.constant 26 : index
    %c0_109 = arith.constant 0 : index
    %247 = vector.load %arg0[%c26, %c0_109] : memref<96x128xf32, #tpu.memory_space<vmem>>, vector<64x128xf32>
    %cst_110 = arith.constant 6.000000e+00 : f32
    %248 = vector.broadcast %cst_110 : f32 to vector<64x1xf32>
    %249 = arith.cmpf olt, %0, %248 : vector<64x1xf32>
    %250 = arith.extui %249 : vector<64x1xi1> to vector<64x1xi32>
    %251 = arith.sitofp %250 : vector<64x1xi32> to vector<64x1xf32>
    %cst_111 = arith.constant 2.000000e+00 : f32
    %252 = vector.broadcast %cst_111 : f32 to vector<64x1xf32>
    %253 = arith.cmpf olt, %1, %252 : vector<64x1xf32>
    %254 = arith.extui %253 : vector<64x1xi1> to vector<64x1xi32>
    %255 = arith.sitofp %254 : vector<64x1xi32> to vector<64x1xf32>
    %256 = arith.mulf %251, %255 : vector<64x1xf32>
    %257 = vector.broadcast %256 : vector<64x1xf32> to vector<64x128xf32>
    %258 = arith.mulf %247, %257 : vector<64x128xf32>
    %259 = arith.truncf %258 : vector<64x128xf32> to vector<64x128xbf16>
    %c17_112 = arith.constant 17 : index
    %c0_113 = arith.constant 0 : index
    %c0_114 = arith.constant 0 : index
    %260 = vector.load %arg1[%c17_112, %c0_113, %c0_114] : memref<27x128x128xbf16, #tpu.memory_space<vmem>>, vector<1x128x128xbf16>
    %261 = vector.shape_cast %260 : vector<1x128x128xbf16> to vector<128x128xbf16>
    %cst_115 = arith.constant dense<0.000000e+00> : vector<64x128xf32>
    %262 = tpu.matmul %259, %261, %cst_115 {dimension_numbers = #tpu.dot_dimension_numbers<[1], [0], [0], [1], [0, 0, 1, 1], [], []>} : vector<64x128xbf16>, vector<128x128xbf16>, vector<64x128xf32> -> vector<64x128xf32>
    %263 = arith.addf %246, %262 : vector<64x128xf32>
    %cst_116 = arith.constant dense<0.000000e+00> : vector<128xf32>
    %264 = vector.multi_reduction <add>, %263, %cst_116 [0] : vector<64x128xf32> to vector<128xf32>
    %265 = vector.shape_cast %264 : vector<128xf32> to vector<1x128xf32>
    %cst_117 = arith.constant 6.400000e+01 : f32
    %266 = vector.broadcast %cst_117 : f32 to vector<1x128xf32>
    %267 = arith.divf %265, %266 : vector<1x128xf32>
    %268 = vector.broadcast %267 : vector<1x128xf32> to vector<64x128xf32>
    %269 = arith.subf %263, %268 : vector<64x128xf32>
    %270 = arith.mulf %269, %269 : vector<64x128xf32>
    %cst_118 = arith.constant dense<0.000000e+00> : vector<128xf32>
    %271 = vector.multi_reduction <add>, %270, %cst_118 [0] : vector<64x128xf32> to vector<128xf32>
    %272 = vector.shape_cast %271 : vector<128xf32> to vector<1x128xf32>
    %cst_119 = arith.constant 6.400000e+01 : f32
    %273 = vector.broadcast %cst_119 : f32 to vector<1x128xf32>
    %274 = arith.divf %272, %273 : vector<1x128xf32>
    %275 = vector.broadcast %267 : vector<1x128xf32> to vector<64x128xf32>
    %276 = arith.subf %263, %275 : vector<64x128xf32>
    %cst_120 = arith.constant 9.99999974E-6 : f32
    %277 = vector.broadcast %cst_120 : f32 to vector<1x128xf32>
    %278 = arith.addf %274, %277 : vector<1x128xf32>
    %279 = math.rsqrt %278 : vector<1x128xf32>
    %280 = vector.broadcast %279 : vector<1x128xf32> to vector<64x128xf32>
    %281 = arith.mulf %276, %280 : vector<64x128xf32>
    %cst_121 = arith.constant 0.000000e+00 : f32
    %282 = vector.broadcast %cst_121 : f32 to vector<64x128xf32>
    %283 = arith.maximumf %281, %282 : vector<64x128xf32>
    %c1_122 = arith.constant 1 : index
    %c0_123 = arith.constant 0 : index
    %284 = vector.load %arg0[%c1_122, %c0_123] : memref<96x128xf32, #tpu.memory_space<vmem>>, vector<64x128xf32>
    %cst_124 = arith.constant 3.000000e+00 : f32
    %285 = vector.broadcast %cst_124 : f32 to vector<64x1xf32>
    %286 = arith.cmpf oge, %0, %285 : vector<64x1xf32>
    %287 = arith.extui %286 : vector<64x1xi1> to vector<64x1xi32>
    %288 = arith.sitofp %287 : vector<64x1xi32> to vector<64x1xf32>
    %cst_125 = arith.constant 3.000000e+00 : f32
    %289 = vector.broadcast %cst_125 : f32 to vector<64x1xf32>
    %290 = arith.cmpf oge, %1, %289 : vector<64x1xf32>
    %291 = arith.extui %290 : vector<64x1xi1> to vector<64x1xi32>
    %292 = arith.sitofp %291 : vector<64x1xi32> to vector<64x1xf32>
    %293 = arith.mulf %288, %292 : vector<64x1xf32>
    %294 = vector.broadcast %293 : vector<64x1xf32> to vector<64x128xf32>
    %295 = arith.mulf %284, %294 : vector<64x128xf32>
    %296 = arith.truncf %295 : vector<64x128xf32> to vector<64x128xbf16>
    %c18_126 = arith.constant 18 : index
    %c0_127 = arith.constant 0 : index
    %c0_128 = arith.constant 0 : index
    %297 = vector.load %arg1[%c18_126, %c0_127, %c0_128] : memref<27x128x128xbf16, #tpu.memory_space<vmem>>, vector<1x128x128xbf16>
    %298 = vector.shape_cast %297 : vector<1x128x128xbf16> to vector<128x128xbf16>
    %cst_129 = arith.constant dense<0.000000e+00> : vector<64x128xf32>
    %299 = tpu.matmul %296, %298, %cst_129 {dimension_numbers = #tpu.dot_dimension_numbers<[1], [0], [0], [1], [0, 0, 1, 1], [], []>} : vector<64x128xbf16>, vector<128x128xbf16>, vector<64x128xf32> -> vector<64x128xf32>
    %c4_130 = arith.constant 4 : index
    %c0_131 = arith.constant 0 : index
    %300 = vector.load %arg0[%c4_130, %c0_131] : memref<96x128xf32, #tpu.memory_space<vmem>>, vector<64x128xf32>
    %cst_132 = arith.constant 3.000000e+00 : f32
    %301 = vector.broadcast %cst_132 : f32 to vector<64x1xf32>
    %302 = arith.cmpf oge, %0, %301 : vector<64x1xf32>
    %303 = arith.extui %302 : vector<64x1xi1> to vector<64x1xi32>
    %304 = arith.sitofp %303 : vector<64x1xi32> to vector<64x1xf32>
    %305 = vector.broadcast %304 : vector<64x1xf32> to vector<64x128xf32>
    %306 = arith.mulf %300, %305 : vector<64x128xf32>
    %307 = arith.truncf %306 : vector<64x128xf32> to vector<64x128xbf16>
    %c19_133 = arith.constant 19 : index
    %c0_134 = arith.constant 0 : index
    %c0_135 = arith.constant 0 : index
    %308 = vector.load %arg1[%c19_133, %c0_134, %c0_135] : memref<27x128x128xbf16, #tpu.memory_space<vmem>>, vector<1x128x128xbf16>
    %309 = vector.shape_cast %308 : vector<1x128x128xbf16> to vector<128x128xbf16>
    %cst_136 = arith.constant dense<0.000000e+00> : vector<64x128xf32>
    %310 = tpu.matmul %307, %309, %cst_136 {dimension_numbers = #tpu.dot_dimension_numbers<[1], [0], [0], [1], [0, 0, 1, 1], [], []>} : vector<64x128xbf16>, vector<128x128xbf16>, vector<64x128xf32> -> vector<64x128xf32>
    %311 = arith.addf %299, %310 : vector<64x128xf32>
    %c7_137 = arith.constant 7 : index
    %c0_138 = arith.constant 0 : index
    %312 = vector.load %arg0[%c7_137, %c0_138] : memref<96x128xf32, #tpu.memory_space<vmem>>, vector<64x128xf32>
    %cst_139 = arith.constant 3.000000e+00 : f32
    %313 = vector.broadcast %cst_139 : f32 to vector<64x1xf32>
    %314 = arith.cmpf oge, %0, %313 : vector<64x1xf32>
    %315 = arith.extui %314 : vector<64x1xi1> to vector<64x1xi32>
    %316 = arith.sitofp %315 : vector<64x1xi32> to vector<64x1xf32>
    %cst_140 = arith.constant 1.000000e+00 : f32
    %317 = vector.broadcast %cst_140 : f32 to vector<64x1xf32>
    %318 = arith.cmpf olt, %1, %317 : vector<64x1xf32>
    %319 = arith.extui %318 : vector<64x1xi1> to vector<64x1xi32>
    %320 = arith.sitofp %319 : vector<64x1xi32> to vector<64x1xf32>
    %321 = arith.mulf %316, %320 : vector<64x1xf32>
    %322 = vector.broadcast %321 : vector<64x1xf32> to vector<64x128xf32>
    %323 = arith.mulf %312, %322 : vector<64x128xf32>
    %324 = arith.truncf %323 : vector<64x128xf32> to vector<64x128xbf16>
    %c20_141 = arith.constant 20 : index
    %c0_142 = arith.constant 0 : index
    %c0_143 = arith.constant 0 : index
    %325 = vector.load %arg1[%c20_141, %c0_142, %c0_143] : memref<27x128x128xbf16, #tpu.memory_space<vmem>>, vector<1x128x128xbf16>
    %326 = vector.shape_cast %325 : vector<1x128x128xbf16> to vector<128x128xbf16>
    %cst_144 = arith.constant dense<0.000000e+00> : vector<64x128xf32>
    %327 = tpu.matmul %324, %326, %cst_144 {dimension_numbers = #tpu.dot_dimension_numbers<[1], [0], [0], [1], [0, 0, 1, 1], [], []>} : vector<64x128xbf16>, vector<128x128xbf16>, vector<64x128xf32> -> vector<64x128xf32>
    %328 = arith.addf %311, %327 : vector<64x128xf32>
    %c13_145 = arith.constant 13 : index
    %c0_146 = arith.constant 0 : index
    %329 = vector.load %arg0[%c13_145, %c0_146] : memref<96x128xf32, #tpu.memory_space<vmem>>, vector<64x128xf32>
    %cst_147 = arith.constant 3.000000e+00 : f32
    %330 = vector.broadcast %cst_147 : f32 to vector<64x1xf32>
    %331 = arith.cmpf oge, %1, %330 : vector<64x1xf32>
    %332 = arith.extui %331 : vector<64x1xi1> to vector<64x1xi32>
    %333 = arith.sitofp %332 : vector<64x1xi32> to vector<64x1xf32>
    %334 = vector.broadcast %333 : vector<64x1xf32> to vector<64x128xf32>
    %335 = arith.mulf %329, %334 : vector<64x128xf32>
    %336 = arith.truncf %335 : vector<64x128xf32> to vector<64x128xbf16>
    %c21_148 = arith.constant 21 : index
    %c0_149 = arith.constant 0 : index
    %c0_150 = arith.constant 0 : index
    %337 = vector.load %arg1[%c21_148, %c0_149, %c0_150] : memref<27x128x128xbf16, #tpu.memory_space<vmem>>, vector<1x128x128xbf16>
    %338 = vector.shape_cast %337 : vector<1x128x128xbf16> to vector<128x128xbf16>
    %cst_151 = arith.constant dense<0.000000e+00> : vector<64x128xf32>
    %339 = tpu.matmul %336, %338, %cst_151 {dimension_numbers = #tpu.dot_dimension_numbers<[1], [0], [0], [1], [0, 0, 1, 1], [], []>} : vector<64x128xbf16>, vector<128x128xbf16>, vector<64x128xf32> -> vector<64x128xf32>
    %340 = arith.addf %328, %339 : vector<64x128xf32>
    %c16_152 = arith.constant 16 : index
    %c0_153 = arith.constant 0 : index
    %341 = vector.load %arg0[%c16_152, %c0_153] : memref<96x128xf32, #tpu.memory_space<vmem>>, vector<64x128xf32>
    %342 = arith.truncf %341 : vector<64x128xf32> to vector<64x128xbf16>
    %c22_154 = arith.constant 22 : index
    %c0_155 = arith.constant 0 : index
    %c0_156 = arith.constant 0 : index
    %343 = vector.load %arg1[%c22_154, %c0_155, %c0_156] : memref<27x128x128xbf16, #tpu.memory_space<vmem>>, vector<1x128x128xbf16>
    %344 = vector.shape_cast %343 : vector<1x128x128xbf16> to vector<128x128xbf16>
    %cst_157 = arith.constant dense<0.000000e+00> : vector<64x128xf32>
    %345 = tpu.matmul %342, %344, %cst_157 {dimension_numbers = #tpu.dot_dimension_numbers<[1], [0], [0], [1], [0, 0, 1, 1], [], []>} : vector<64x128xbf16>, vector<128x128xbf16>, vector<64x128xf32> -> vector<64x128xf32>
    %346 = arith.addf %340, %345 : vector<64x128xf32>
    %c19_158 = arith.constant 19 : index
    %c0_159 = arith.constant 0 : index
    %347 = vector.load %arg0[%c19_158, %c0_159] : memref<96x128xf32, #tpu.memory_space<vmem>>, vector<64x128xf32>
    %cst_160 = arith.constant 1.000000e+00 : f32
    %348 = vector.broadcast %cst_160 : f32 to vector<64x1xf32>
    %349 = arith.cmpf olt, %1, %348 : vector<64x1xf32>
    %350 = arith.extui %349 : vector<64x1xi1> to vector<64x1xi32>
    %351 = arith.sitofp %350 : vector<64x1xi32> to vector<64x1xf32>
    %352 = vector.broadcast %351 : vector<64x1xf32> to vector<64x128xf32>
    %353 = arith.mulf %347, %352 : vector<64x128xf32>
    %354 = arith.truncf %353 : vector<64x128xf32> to vector<64x128xbf16>
    %c23 = arith.constant 23 : index
    %c0_161 = arith.constant 0 : index
    %c0_162 = arith.constant 0 : index
    %355 = vector.load %arg1[%c23, %c0_161, %c0_162] : memref<27x128x128xbf16, #tpu.memory_space<vmem>>, vector<1x128x128xbf16>
    %356 = vector.shape_cast %355 : vector<1x128x128xbf16> to vector<128x128xbf16>
    %cst_163 = arith.constant dense<0.000000e+00> : vector<64x128xf32>
    %357 = tpu.matmul %354, %356, %cst_163 {dimension_numbers = #tpu.dot_dimension_numbers<[1], [0], [0], [1], [0, 0, 1, 1], [], []>} : vector<64x128xbf16>, vector<128x128xbf16>, vector<64x128xf32> -> vector<64x128xf32>
    %358 = arith.addf %346, %357 : vector<64x128xf32>
    %c25 = arith.constant 25 : index
    %c0_164 = arith.constant 0 : index
    %359 = vector.load %arg0[%c25, %c0_164] : memref<96x128xf32, #tpu.memory_space<vmem>>, vector<64x128xf32>
    %cst_165 = arith.constant 5.000000e+00 : f32
    %360 = vector.broadcast %cst_165 : f32 to vector<64x1xf32>
    %361 = arith.cmpf olt, %0, %360 : vector<64x1xf32>
    %362 = arith.extui %361 : vector<64x1xi1> to vector<64x1xi32>
    %363 = arith.sitofp %362 : vector<64x1xi32> to vector<64x1xf32>
    %cst_166 = arith.constant 3.000000e+00 : f32
    %364 = vector.broadcast %cst_166 : f32 to vector<64x1xf32>
    %365 = arith.cmpf oge, %1, %364 : vector<64x1xf32>
    %366 = arith.extui %365 : vector<64x1xi1> to vector<64x1xi32>
    %367 = arith.sitofp %366 : vector<64x1xi32> to vector<64x1xf32>
    %368 = arith.mulf %363, %367 : vector<64x1xf32>
    %369 = vector.broadcast %368 : vector<64x1xf32> to vector<64x128xf32>
    %370 = arith.mulf %359, %369 : vector<64x128xf32>
    %371 = arith.truncf %370 : vector<64x128xf32> to vector<64x128xbf16>
    %c24_167 = arith.constant 24 : index
    %c0_168 = arith.constant 0 : index
    %c0_169 = arith.constant 0 : index
    %372 = vector.load %arg1[%c24_167, %c0_168, %c0_169] : memref<27x128x128xbf16, #tpu.memory_space<vmem>>, vector<1x128x128xbf16>
    %373 = vector.shape_cast %372 : vector<1x128x128xbf16> to vector<128x128xbf16>
    %cst_170 = arith.constant dense<0.000000e+00> : vector<64x128xf32>
    %374 = tpu.matmul %371, %373, %cst_170 {dimension_numbers = #tpu.dot_dimension_numbers<[1], [0], [0], [1], [0, 0, 1, 1], [], []>} : vector<64x128xbf16>, vector<128x128xbf16>, vector<64x128xf32> -> vector<64x128xf32>
    %375 = arith.addf %358, %374 : vector<64x128xf32>
    %c28 = arith.constant 28 : index
    %c0_171 = arith.constant 0 : index
    %376 = vector.load %arg0[%c28, %c0_171] : memref<96x128xf32, #tpu.memory_space<vmem>>, vector<64x128xf32>
    %cst_172 = arith.constant 5.000000e+00 : f32
    %377 = vector.broadcast %cst_172 : f32 to vector<64x1xf32>
    %378 = arith.cmpf olt, %0, %377 : vector<64x1xf32>
    %379 = arith.extui %378 : vector<64x1xi1> to vector<64x1xi32>
    %380 = arith.sitofp %379 : vector<64x1xi32> to vector<64x1xf32>
    %381 = vector.broadcast %380 : vector<64x1xf32> to vector<64x128xf32>
    %382 = arith.mulf %376, %381 : vector<64x128xf32>
    %383 = arith.truncf %382 : vector<64x128xf32> to vector<64x128xbf16>
    %c25_173 = arith.constant 25 : index
    %c0_174 = arith.constant 0 : index
    %c0_175 = arith.constant 0 : index
    %384 = vector.load %arg1[%c25_173, %c0_174, %c0_175] : memref<27x128x128xbf16, #tpu.memory_space<vmem>>, vector<1x128x128xbf16>
    %385 = vector.shape_cast %384 : vector<1x128x128xbf16> to vector<128x128xbf16>
    %cst_176 = arith.constant dense<0.000000e+00> : vector<64x128xf32>
    %386 = tpu.matmul %383, %385, %cst_176 {dimension_numbers = #tpu.dot_dimension_numbers<[1], [0], [0], [1], [0, 0, 1, 1], [], []>} : vector<64x128xbf16>, vector<128x128xbf16>, vector<64x128xf32> -> vector<64x128xf32>
    %387 = arith.addf %375, %386 : vector<64x128xf32>
    %c31 = arith.constant 31 : index
    %c0_177 = arith.constant 0 : index
    %388 = vector.load %arg0[%c31, %c0_177] : memref<96x128xf32, #tpu.memory_space<vmem>>, vector<64x128xf32>
    %cst_178 = arith.constant 5.000000e+00 : f32
    %389 = vector.broadcast %cst_178 : f32 to vector<64x1xf32>
    %390 = arith.cmpf olt, %0, %389 : vector<64x1xf32>
    %391 = arith.extui %390 : vector<64x1xi1> to vector<64x1xi32>
    %392 = arith.sitofp %391 : vector<64x1xi32> to vector<64x1xf32>
    %cst_179 = arith.constant 1.000000e+00 : f32
    %393 = vector.broadcast %cst_179 : f32 to vector<64x1xf32>
    %394 = arith.cmpf olt, %1, %393 : vector<64x1xf32>
    %395 = arith.extui %394 : vector<64x1xi1> to vector<64x1xi32>
    %396 = arith.sitofp %395 : vector<64x1xi32> to vector<64x1xf32>
    %397 = arith.mulf %392, %396 : vector<64x1xf32>
    %398 = vector.broadcast %397 : vector<64x1xf32> to vector<64x128xf32>
    %399 = arith.mulf %388, %398 : vector<64x128xf32>
    %400 = arith.truncf %399 : vector<64x128xf32> to vector<64x128xbf16>
    %c26_180 = arith.constant 26 : index
    %c0_181 = arith.constant 0 : index
    %c0_182 = arith.constant 0 : index
    %401 = vector.load %arg1[%c26_180, %c0_181, %c0_182] : memref<27x128x128xbf16, #tpu.memory_space<vmem>>, vector<1x128x128xbf16>
    %402 = vector.shape_cast %401 : vector<1x128x128xbf16> to vector<128x128xbf16>
    %cst_183 = arith.constant dense<0.000000e+00> : vector<64x128xf32>
    %403 = tpu.matmul %400, %402, %cst_183 {dimension_numbers = #tpu.dot_dimension_numbers<[1], [0], [0], [1], [0, 0, 1, 1], [], []>} : vector<64x128xbf16>, vector<128x128xbf16>, vector<64x128xf32> -> vector<64x128xf32>
    %404 = arith.addf %387, %403 : vector<64x128xf32>
    %cst_184 = arith.constant dense<0.000000e+00> : vector<128xf32>
    %405 = vector.multi_reduction <add>, %404, %cst_184 [0] : vector<64x128xf32> to vector<128xf32>
    %406 = vector.shape_cast %405 : vector<128xf32> to vector<1x128xf32>
    %cst_185 = arith.constant 6.400000e+01 : f32
    %407 = vector.broadcast %cst_185 : f32 to vector<1x128xf32>
    %408 = arith.divf %406, %407 : vector<1x128xf32>
    %409 = vector.broadcast %408 : vector<1x128xf32> to vector<64x128xf32>
    %410 = arith.subf %404, %409 : vector<64x128xf32>
    %411 = arith.mulf %410, %410 : vector<64x128xf32>
    %cst_186 = arith.constant dense<0.000000e+00> : vector<128xf32>
    %412 = vector.multi_reduction <add>, %411, %cst_186 [0] : vector<64x128xf32> to vector<128xf32>
    %413 = vector.shape_cast %412 : vector<128xf32> to vector<1x128xf32>
    %cst_187 = arith.constant 6.400000e+01 : f32
    %414 = vector.broadcast %cst_187 : f32 to vector<1x128xf32>
    %415 = arith.divf %413, %414 : vector<1x128xf32>
    %416 = vector.broadcast %408 : vector<1x128xf32> to vector<64x128xf32>
    %417 = arith.subf %404, %416 : vector<64x128xf32>
    %cst_188 = arith.constant 9.99999974E-6 : f32
    %418 = vector.broadcast %cst_188 : f32 to vector<1x128xf32>
    %419 = arith.addf %415, %418 : vector<1x128xf32>
    %420 = math.rsqrt %419 : vector<1x128xf32>
    %421 = vector.broadcast %420 : vector<1x128xf32> to vector<64x128xf32>
    %422 = arith.mulf %417, %421 : vector<64x128xf32>
    %cst_189 = arith.constant 0.000000e+00 : f32
    %423 = vector.broadcast %cst_189 : f32 to vector<64x128xf32>
    %424 = arith.maximumf %422, %423 : vector<64x128xf32>
    %425 = arith.addf %142, %283 : vector<64x128xf32>
    %426 = arith.addf %425, %424 : vector<64x128xf32>
    %c0_190 = arith.constant 0 : index
    %c0_191 = arith.constant 0 : index
    %427 = vector.load %arg7[%c0_190, %c0_191] : memref<2x64xf32, #tpu.memory_space<vmem>>, vector<2x64xf32>
    %cst_192 = arith.constant dense<0.000000e+00> : vector<2x128xf32>
    %428 = tpu.matmul %427, %426, %cst_192 {dimension_numbers = #tpu.dot_dimension_numbers<[1], [0], [0], [1], [0, 0, 1, 1], [], []>} : vector<2x64xf32>, vector<64x128xf32>, vector<2x128xf32> -> vector<2x128xf32>
    %429 = arith.truncf %428 : vector<2x128xf32> to vector<2x128xbf16>
    %c0_193 = arith.constant 0 : index
    %c0_194 = arith.constant 0 : index
    %430 = vector.load %arg2[%c0_193, %c0_194] : memref<128x128xbf16, #tpu.memory_space<vmem>>, vector<128x128xbf16>
    %cst_195 = arith.constant dense<0.000000e+00> : vector<2x128xf32>
    %431 = tpu.matmul %429, %430, %cst_195 {dimension_numbers = #tpu.dot_dimension_numbers<[1], [0], [0], [1], [0, 0, 1, 1], [], []>} : vector<2x128xbf16>, vector<128x128xbf16>, vector<2x128xf32> -> vector<2x128xf32>
    %cst_196 = arith.constant dense<0.000000e+00> : vector<128xf32>
    %432 = vector.multi_reduction <add>, %431, %cst_196 [0] : vector<2x128xf32> to vector<128xf32>
    %433 = vector.shape_cast %432 : vector<128xf32> to vector<1x128xf32>
    %cst_197 = arith.constant 2.000000e+00 : f32
    %434 = vector.broadcast %cst_197 : f32 to vector<1x128xf32>
    %435 = arith.divf %433, %434 : vector<1x128xf32>
    %436 = vector.broadcast %435 : vector<1x128xf32> to vector<2x128xf32>
    %437 = arith.subf %431, %436 : vector<2x128xf32>
    %438 = arith.mulf %437, %437 : vector<2x128xf32>
    %cst_198 = arith.constant dense<0.000000e+00> : vector<128xf32>
    %439 = vector.multi_reduction <add>, %438, %cst_198 [0] : vector<2x128xf32> to vector<128xf32>
    %440 = vector.shape_cast %439 : vector<128xf32> to vector<1x128xf32>
    %cst_199 = arith.constant 2.000000e+00 : f32
    %441 = vector.broadcast %cst_199 : f32 to vector<1x128xf32>
    %442 = arith.divf %440, %441 : vector<1x128xf32>
    %443 = vector.broadcast %435 : vector<1x128xf32> to vector<2x128xf32>
    %444 = arith.subf %431, %443 : vector<2x128xf32>
    %cst_200 = arith.constant 9.99999974E-6 : f32
    %445 = vector.broadcast %cst_200 : f32 to vector<1x128xf32>
    %446 = arith.addf %442, %445 : vector<1x128xf32>
    %447 = math.rsqrt %446 : vector<1x128xf32>
    %448 = vector.broadcast %447 : vector<1x128xf32> to vector<2x128xf32>
    %449 = arith.mulf %444, %448 : vector<2x128xf32>
    %cst_201 = arith.constant 0.000000e+00 : f32
    %450 = vector.broadcast %cst_201 : f32 to vector<2x128xf32>
    %451 = arith.maximumf %449, %450 : vector<2x128xf32>
    %452 = arith.truncf %451 : vector<2x128xf32> to vector<2x128xbf16>
    %c0_202 = arith.constant 0 : index
    %c0_203 = arith.constant 0 : index
    %453 = vector.load %arg3[%c0_202, %c0_203] : memref<128x384xbf16, #tpu.memory_space<vmem>>, vector<128x384xbf16>
    %cst_204 = arith.constant dense<0.000000e+00> : vector<2x384xf32>
    %454 = tpu.matmul %452, %453, %cst_204 {dimension_numbers = #tpu.dot_dimension_numbers<[1], [0], [0], [1], [0, 0, 1, 1], [], []>} : vector<2x128xbf16>, vector<128x384xbf16>, vector<2x384xf32> -> vector<2x384xf32>
    %c0_205 = arith.constant 0 : index
    %c0_206 = arith.constant 0 : index
    %455 = vector.load %arg4[%c0_205, %c0_206] : memref<1x384xf32, #tpu.memory_space<vmem>>, vector<1x384xf32>
    %456 = vector.broadcast %455 : vector<1x384xf32> to vector<2x384xf32>
    %457 = arith.addf %454, %456 : vector<2x384xf32>
    %458 = vector.extract_strided_slice %457 {offsets = [0, 0], sizes = [2, 128], strides = [1, 1]} : vector<2x384xf32> to vector<2x128xf32>
    %459 = vector.extract_strided_slice %457 {offsets = [0, 128], sizes = [2, 128], strides = [1, 1]} : vector<2x384xf32> to vector<2x128xf32>
    %460 = vector.extract_strided_slice %457 {offsets = [0, 256], sizes = [2, 128], strides = [1, 1]} : vector<2x384xf32> to vector<2x128xf32>
    %461 = arith.maximumf %458, %459 : vector<2x128xf32>
    %462 = arith.maximumf %461, %460 : vector<2x128xf32>
    %463 = arith.subf %458, %462 : vector<2x128xf32>
    %464 = math.exp %463 : vector<2x128xf32>
    %465 = arith.subf %459, %462 : vector<2x128xf32>
    %466 = math.exp %465 : vector<2x128xf32>
    %467 = arith.subf %460, %462 : vector<2x128xf32>
    %468 = math.exp %467 : vector<2x128xf32>
    %469 = arith.addf %464, %466 : vector<2x128xf32>
    %470 = arith.addf %469, %468 : vector<2x128xf32>
    %471 = tpu.reciprocal %470 {approx = true} : vector<2x128xf32> -> vector<2x128xf32>
    %472 = arith.mulf %464, %471 : vector<2x128xf32>
    %473 = arith.mulf %466, %471 : vector<2x128xf32>
    %474 = arith.mulf %468, %471 : vector<2x128xf32>
    %c0_207 = arith.constant 0 : index
    %c0_208 = arith.constant 0 : index
    %475 = vector.load %arg9[%c0_207, %c0_208] : memref<64x64xf32, #tpu.memory_space<vmem>>, vector<64x64xf32>
    %cst_209 = arith.constant dense<0.000000e+00> : vector<64x128xf32>
    %476 = tpu.matmul %475, %142, %cst_209 {dimension_numbers = #tpu.dot_dimension_numbers<[1], [0], [0], [1], [0, 0, 1, 1], [], []>} : vector<64x64xf32>, vector<64x128xf32>, vector<64x128xf32> -> vector<64x128xf32>
    %cst_210 = arith.constant dense<0.000000e+00> : vector<64xf32>
    %477 = vector.multi_reduction <add>, %476, %cst_210 [1] : vector<64x128xf32> to vector<64xf32>
    %478 = vector.shape_cast %477 : vector<64xf32> to vector<64x1xf32>
    %cst_211 = arith.constant dense<0.000000e+00> : vector<64x128xf32>
    %479 = tpu.matmul %475, %283, %cst_211 {dimension_numbers = #tpu.dot_dimension_numbers<[1], [0], [0], [1], [0, 0, 1, 1], [], []>} : vector<64x64xf32>, vector<64x128xf32>, vector<64x128xf32> -> vector<64x128xf32>
    %cst_212 = arith.constant dense<0.000000e+00> : vector<64xf32>
    %480 = vector.multi_reduction <add>, %479, %cst_212 [1] : vector<64x128xf32> to vector<64xf32>
    %481 = vector.shape_cast %480 : vector<64xf32> to vector<64x1xf32>
    %cst_213 = arith.constant dense<0.000000e+00> : vector<64x128xf32>
    %482 = tpu.matmul %475, %424, %cst_213 {dimension_numbers = #tpu.dot_dimension_numbers<[1], [0], [0], [1], [0, 0, 1, 1], [], []>} : vector<64x64xf32>, vector<64x128xf32>, vector<64x128xf32> -> vector<64x128xf32>
    %cst_214 = arith.constant dense<0.000000e+00> : vector<64xf32>
    %483 = vector.multi_reduction <add>, %482, %cst_214 [1] : vector<64x128xf32> to vector<64xf32>
    %484 = vector.shape_cast %483 : vector<64xf32> to vector<64x1xf32>
    %485 = arith.maximumf %478, %481 : vector<64x1xf32>
    %486 = arith.maximumf %485, %484 : vector<64x1xf32>
    %487 = arith.subf %478, %486 : vector<64x1xf32>
    %488 = math.exp %487 : vector<64x1xf32>
    %489 = arith.subf %481, %486 : vector<64x1xf32>
    %490 = math.exp %489 : vector<64x1xf32>
    %491 = arith.subf %484, %486 : vector<64x1xf32>
    %492 = math.exp %491 : vector<64x1xf32>
    %493 = arith.addf %488, %490 : vector<64x1xf32>
    %494 = arith.addf %493, %492 : vector<64x1xf32>
    %495 = tpu.reciprocal %494 {approx = true} : vector<64x1xf32> -> vector<64x1xf32>
    %496 = arith.mulf %488, %495 : vector<64x1xf32>
    %497 = arith.mulf %490, %495 : vector<64x1xf32>
    %498 = arith.mulf %492, %495 : vector<64x1xf32>
    %c0_215 = arith.constant 0 : index
    %c0_216 = arith.constant 0 : index
    %499 = vector.load %arg8[%c0_215, %c0_216] : memref<64x2xf32, #tpu.memory_space<vmem>>, vector<64x2xf32>
    %500 = vector.extract_strided_slice %499 {offsets = [0, 0], sizes = [64, 1], strides = [1, 1]} : vector<64x2xf32> to vector<64x1xf32>
    %501 = vector.extract_strided_slice %472 {offsets = [0, 0], sizes = [1, 128], strides = [1, 1]} : vector<2x128xf32> to vector<1x128xf32>
    %502 = vector.broadcast %500 : vector<64x1xf32> to vector<64x128xf32>
    %503 = vector.broadcast %501 : vector<1x128xf32> to vector<64x128xf32>
    %504 = arith.mulf %502, %503 : vector<64x128xf32>
    %505 = vector.extract_strided_slice %499 {offsets = [0, 1], sizes = [64, 1], strides = [1, 1]} : vector<64x2xf32> to vector<64x1xf32>
    %506 = vector.extract_strided_slice %472 {offsets = [1, 0], sizes = [1, 128], strides = [1, 1]} : vector<2x128xf32> to vector<1x128xf32>
    %507 = vector.broadcast %505 : vector<64x1xf32> to vector<64x128xf32>
    %508 = vector.broadcast %506 : vector<1x128xf32> to vector<64x128xf32>
    %509 = arith.mulf %507, %508 : vector<64x128xf32>
    %510 = arith.addf %504, %509 : vector<64x128xf32>
    %511 = arith.mulf %142, %510 : vector<64x128xf32>
    %512 = vector.broadcast %496 : vector<64x1xf32> to vector<64x128xf32>
    %513 = arith.mulf %142, %512 : vector<64x128xf32>
    %514 = vector.extract_strided_slice %499 {offsets = [0, 0], sizes = [64, 1], strides = [1, 1]} : vector<64x2xf32> to vector<64x1xf32>
    %515 = vector.extract_strided_slice %473 {offsets = [0, 0], sizes = [1, 128], strides = [1, 1]} : vector<2x128xf32> to vector<1x128xf32>
    %516 = vector.broadcast %514 : vector<64x1xf32> to vector<64x128xf32>
    %517 = vector.broadcast %515 : vector<1x128xf32> to vector<64x128xf32>
    %518 = arith.mulf %516, %517 : vector<64x128xf32>
    %519 = vector.extract_strided_slice %499 {offsets = [0, 1], sizes = [64, 1], strides = [1, 1]} : vector<64x2xf32> to vector<64x1xf32>
    %520 = vector.extract_strided_slice %473 {offsets = [1, 0], sizes = [1, 128], strides = [1, 1]} : vector<2x128xf32> to vector<1x128xf32>
    %521 = vector.broadcast %519 : vector<64x1xf32> to vector<64x128xf32>
    %522 = vector.broadcast %520 : vector<1x128xf32> to vector<64x128xf32>
    %523 = arith.mulf %521, %522 : vector<64x128xf32>
    %524 = arith.addf %518, %523 : vector<64x128xf32>
    %525 = arith.mulf %283, %524 : vector<64x128xf32>
    %526 = vector.broadcast %497 : vector<64x1xf32> to vector<64x128xf32>
    %527 = arith.mulf %283, %526 : vector<64x128xf32>
    %528 = arith.addf %511, %525 : vector<64x128xf32>
    %529 = arith.addf %513, %527 : vector<64x128xf32>
    %530 = vector.extract_strided_slice %499 {offsets = [0, 0], sizes = [64, 1], strides = [1, 1]} : vector<64x2xf32> to vector<64x1xf32>
    %531 = vector.extract_strided_slice %474 {offsets = [0, 0], sizes = [1, 128], strides = [1, 1]} : vector<2x128xf32> to vector<1x128xf32>
    %532 = vector.broadcast %530 : vector<64x1xf32> to vector<64x128xf32>
    %533 = vector.broadcast %531 : vector<1x128xf32> to vector<64x128xf32>
    %534 = arith.mulf %532, %533 : vector<64x128xf32>
    %535 = vector.extract_strided_slice %499 {offsets = [0, 1], sizes = [64, 1], strides = [1, 1]} : vector<64x2xf32> to vector<64x1xf32>
    %536 = vector.extract_strided_slice %474 {offsets = [1, 0], sizes = [1, 128], strides = [1, 1]} : vector<2x128xf32> to vector<1x128xf32>
    %537 = vector.broadcast %535 : vector<64x1xf32> to vector<64x128xf32>
    %538 = vector.broadcast %536 : vector<1x128xf32> to vector<64x128xf32>
    %539 = arith.mulf %537, %538 : vector<64x128xf32>
    %540 = arith.addf %534, %539 : vector<64x128xf32>
    %541 = arith.mulf %424, %540 : vector<64x128xf32>
    %542 = vector.broadcast %498 : vector<64x1xf32> to vector<64x128xf32>
    %543 = arith.mulf %424, %542 : vector<64x128xf32>
    %544 = arith.addf %528, %541 : vector<64x128xf32>
    %545 = arith.addf %529, %543 : vector<64x128xf32>
    %cst_217 = arith.constant dense<0.000000e+00> : vector<128xf32>
    %546 = vector.multi_reduction <add>, %544, %cst_217 [0] : vector<64x128xf32> to vector<128xf32>
    %547 = vector.shape_cast %546 : vector<128xf32> to vector<1x128xf32>
    %cst_218 = arith.constant dense<0.000000e+00> : vector<128xf32>
    %548 = vector.multi_reduction <add>, %545, %cst_218 [0] : vector<64x128xf32> to vector<128xf32>
    %549 = vector.shape_cast %548 : vector<128xf32> to vector<1x128xf32>
    %550 = arith.addf %547, %549 : vector<1x128xf32>
    %cst_219 = arith.constant 1.280000e+02 : f32
    %551 = vector.broadcast %cst_219 : f32 to vector<1x128xf32>
    %552 = arith.divf %550, %551 : vector<1x128xf32>
    %553 = vector.broadcast %552 : vector<1x128xf32> to vector<64x128xf32>
    %554 = arith.subf %544, %553 : vector<64x128xf32>
    %555 = arith.mulf %554, %554 : vector<64x128xf32>
    %cst_220 = arith.constant dense<0.000000e+00> : vector<128xf32>
    %556 = vector.multi_reduction <add>, %555, %cst_220 [0] : vector<64x128xf32> to vector<128xf32>
    %557 = vector.shape_cast %556 : vector<128xf32> to vector<1x128xf32>
    %558 = vector.broadcast %552 : vector<1x128xf32> to vector<64x128xf32>
    %559 = arith.subf %545, %558 : vector<64x128xf32>
    %560 = arith.mulf %559, %559 : vector<64x128xf32>
    %cst_221 = arith.constant dense<0.000000e+00> : vector<128xf32>
    %561 = vector.multi_reduction <add>, %560, %cst_221 [0] : vector<64x128xf32> to vector<128xf32>
    %562 = vector.shape_cast %561 : vector<128xf32> to vector<1x128xf32>
    %563 = arith.addf %557, %562 : vector<1x128xf32>
    %cst_222 = arith.constant 1.280000e+02 : f32
    %564 = vector.broadcast %cst_222 : f32 to vector<1x128xf32>
    %565 = arith.divf %563, %564 : vector<1x128xf32>
    %cst_223 = arith.constant 9.99999974E-6 : f32
    %566 = vector.broadcast %cst_223 : f32 to vector<1x128xf32>
    %567 = arith.addf %565, %566 : vector<1x128xf32>
    %568 = math.rsqrt %567 : vector<1x128xf32>
    %c0_224 = arith.constant 0 : index
    %c0_225 = arith.constant 0 : index
    %569 = vector.load %arg10[%c0_224, %c0_225] : memref<32x64xf32, #tpu.memory_space<vmem>>, vector<32x64xf32>
    %cst_226 = arith.constant dense<0.000000e+00> : vector<32x128xf32>
    %570 = tpu.matmul %569, %544, %cst_226 {dimension_numbers = #tpu.dot_dimension_numbers<[1], [0], [0], [1], [0, 0, 1, 1], [], []>} : vector<32x64xf32>, vector<64x128xf32>, vector<32x128xf32> -> vector<32x128xf32>
    %571 = vector.broadcast %552 : vector<1x128xf32> to vector<32x128xf32>
    %572 = arith.subf %570, %571 : vector<32x128xf32>
    %573 = vector.broadcast %568 : vector<1x128xf32> to vector<32x128xf32>
    %574 = arith.mulf %572, %573 : vector<32x128xf32>
    %cst_227 = arith.constant dense<0.000000e+00> : vector<32x128xf32>
    %575 = tpu.matmul %569, %545, %cst_227 {dimension_numbers = #tpu.dot_dimension_numbers<[1], [0], [0], [1], [0, 0, 1, 1], [], []>} : vector<32x64xf32>, vector<64x128xf32>, vector<32x128xf32> -> vector<32x128xf32>
    %576 = vector.broadcast %552 : vector<1x128xf32> to vector<32x128xf32>
    %577 = arith.subf %575, %576 : vector<32x128xf32>
    %578 = vector.broadcast %568 : vector<1x128xf32> to vector<32x128xf32>
    %579 = arith.mulf %577, %578 : vector<32x128xf32>
    %cst_228 = arith.constant dense<0.000000e+00> : vector<128xf32>
    %580 = vector.multi_reduction <add>, %574, %cst_228 [0] : vector<32x128xf32> to vector<128xf32>
    %581 = vector.shape_cast %580 : vector<128xf32> to vector<1x128xf32>
    %cst_229 = arith.constant dense<0.000000e+00> : vector<128xf32>
    %582 = vector.multi_reduction <add>, %579, %cst_229 [0] : vector<32x128xf32> to vector<128xf32>
    %583 = vector.shape_cast %582 : vector<128xf32> to vector<1x128xf32>
    %584 = arith.addf %581, %583 : vector<1x128xf32>
    %cst_230 = arith.constant 6.400000e+01 : f32
    %585 = vector.broadcast %cst_230 : f32 to vector<1x128xf32>
    %586 = arith.divf %584, %585 : vector<1x128xf32>
    %587 = vector.broadcast %586 : vector<1x128xf32> to vector<32x128xf32>
    %588 = arith.subf %574, %587 : vector<32x128xf32>
    %589 = arith.mulf %588, %588 : vector<32x128xf32>
    %cst_231 = arith.constant dense<0.000000e+00> : vector<128xf32>
    %590 = vector.multi_reduction <add>, %589, %cst_231 [0] : vector<32x128xf32> to vector<128xf32>
    %591 = vector.shape_cast %590 : vector<128xf32> to vector<1x128xf32>
    %592 = vector.broadcast %586 : vector<1x128xf32> to vector<32x128xf32>
    %593 = arith.subf %579, %592 : vector<32x128xf32>
    %594 = arith.mulf %593, %593 : vector<32x128xf32>
    %cst_232 = arith.constant dense<0.000000e+00> : vector<128xf32>
    %595 = vector.multi_reduction <add>, %594, %cst_232 [0] : vector<32x128xf32> to vector<128xf32>
    %596 = vector.shape_cast %595 : vector<128xf32> to vector<1x128xf32>
    %597 = arith.addf %591, %596 : vector<1x128xf32>
    %cst_233 = arith.constant 6.400000e+01 : f32
    %598 = vector.broadcast %cst_233 : f32 to vector<1x128xf32>
    %599 = arith.divf %597, %598 : vector<1x128xf32>
    %cst_234 = arith.constant 9.99999974E-6 : f32
    %600 = vector.broadcast %cst_234 : f32 to vector<1x128xf32>
    %601 = arith.addf %599, %600 : vector<1x128xf32>
    %602 = math.rsqrt %601 : vector<1x128xf32>
    %603 = vector.broadcast %586 : vector<1x128xf32> to vector<32x128xf32>
    %604 = arith.subf %574, %603 : vector<32x128xf32>
    %605 = vector.broadcast %602 : vector<1x128xf32> to vector<32x128xf32>
    %606 = arith.mulf %604, %605 : vector<32x128xf32>
    %607 = arith.truncf %606 : vector<32x128xf32> to vector<32x128xbf16>
    %c0_235 = arith.constant 0 : index
    %c0_236 = arith.constant 0 : index
    %608 = vector.load %arg11[%c0_235, %c0_236] : memref<64x128xbf16, #tpu.memory_space<vmem>>, vector<32x128xbf16>
    tpu.vector_store %arg11[%c0_235, %c0_236], %607 {strides = array<i32>} : memref<64x128xbf16, #tpu.memory_space<vmem>>, vector<32x128xbf16>,
    %609 = vector.broadcast %586 : vector<1x128xf32> to vector<32x128xf32>
    %610 = arith.subf %579, %609 : vector<32x128xf32>
    %611 = vector.broadcast %602 : vector<1x128xf32> to vector<32x128xf32>
    %612 = arith.mulf %610, %611 : vector<32x128xf32>
    %613 = arith.truncf %612 : vector<32x128xf32> to vector<32x128xbf16>
    %c32 = arith.constant 32 : index
    %c0_237 = arith.constant 0 : index
    %614 = vector.load %arg11[%c32, %c0_237] : memref<64x128xbf16, #tpu.memory_space<vmem>>, vector<32x128xbf16>
    tpu.vector_store %arg11[%c32, %c0_237], %613 {strides = array<i32>} : memref<64x128xbf16, #tpu.memory_space<vmem>>, vector<32x128xbf16>,
    return
  }
}

module attributes {stable_mosaic.version = 11 : i64} {
  func.func @kernel(%arg0: memref<16x128xbf16, #tpu.memory_space<vmem>>, %arg1: memref<128x128xbf16, #tpu.memory_space<vmem>>, %arg2: memref<4x16xf32, #tpu.memory_space<vmem>>, %arg3: memref<2x4xf32, #tpu.memory_space<vmem>>, %arg4: memref<2x4xf32, #tpu.memory_space<vmem>>, %arg5: memref<128x128xbf16, #tpu.memory_space<vmem>>, %arg6: memref<128x128xbf16, #tpu.memory_space<vmem>>, %arg7: memref<1x128xf32, #tpu.memory_space<vmem>>, %arg8: memref<128x128xbf16, #tpu.memory_space<vmem>>, %arg9: memref<1x128xf32, #tpu.memory_space<vmem>>, %arg10: memref<2x128xf32, #tpu.memory_space<vmem>>) attributes {dimension_semantics = [], scalar_prefetch = 0 : i64, scratch_operands = 0 : i64, tpu.core_type = #tpu.core_type<tc>} {
    %c0 = arith.constant 0 : index
    %c0_0 = arith.constant 0 : index
    %0 = vector.load %arg0[%c0, %c0_0] : memref<16x128xbf16, #tpu.memory_space<vmem>>, vector<16x128xbf16>
    %c0_1 = arith.constant 0 : index
    %c0_2 = arith.constant 0 : index
    %1 = vector.load %arg1[%c0_1, %c0_2] : memref<128x128xbf16, #tpu.memory_space<vmem>>, vector<128x128xbf16>
    %cst = arith.constant dense<0.000000e+00> : vector<16x128xf32>
    %2 = tpu.matmul %0, %1, %cst {dimension_numbers = #tpu.dot_dimension_numbers<[1], [0], [0], [1], [0, 0, 1, 1], [], []>} : vector<16x128xbf16>, vector<128x128xbf16>, vector<16x128xf32> -> vector<16x128xf32>
    %cst_3 = arith.constant dense<0.000000e+00> : vector<128xf32>
    %3 = vector.multi_reduction <add>, %2, %cst_3 [0] : vector<16x128xf32> to vector<128xf32>
    %4 = vector.shape_cast %3 : vector<128xf32> to vector<1x128xf32>
    %cst_4 = arith.constant 1.600000e+01 : f32
    %5 = vector.broadcast %cst_4 : f32 to vector<1x128xf32>
    %6 = arith.divf %4, %5 : vector<1x128xf32>
    %7 = vector.broadcast %6 : vector<1x128xf32> to vector<16x128xf32>
    %8 = arith.subf %2, %7 : vector<16x128xf32>
    %9 = arith.mulf %8, %8 : vector<16x128xf32>
    %cst_5 = arith.constant dense<0.000000e+00> : vector<128xf32>
    %10 = vector.multi_reduction <add>, %9, %cst_5 [0] : vector<16x128xf32> to vector<128xf32>
    %11 = vector.shape_cast %10 : vector<128xf32> to vector<1x128xf32>
    %cst_6 = arith.constant 1.600000e+01 : f32
    %12 = vector.broadcast %cst_6 : f32 to vector<1x128xf32>
    %13 = arith.divf %11, %12 : vector<1x128xf32>
    %14 = vector.broadcast %6 : vector<1x128xf32> to vector<16x128xf32>
    %15 = arith.subf %2, %14 : vector<16x128xf32>
    %cst_7 = arith.constant 9.99999974E-6 : f32
    %16 = vector.broadcast %cst_7 : f32 to vector<1x128xf32>
    %17 = arith.addf %13, %16 : vector<1x128xf32>
    %18 = math.rsqrt %17 : vector<1x128xf32>
    %19 = vector.broadcast %18 : vector<1x128xf32> to vector<16x128xf32>
    %20 = arith.mulf %15, %19 : vector<16x128xf32>
    %c0_8 = arith.constant 0 : index
    %c0_9 = arith.constant 0 : index
    %21 = vector.load %arg2[%c0_8, %c0_9] : memref<4x16xf32, #tpu.memory_space<vmem>>, vector<4x16xf32>
    %cst_10 = arith.constant dense<0.000000e+00> : vector<4x128xf32>
    %22 = tpu.matmul %21, %20, %cst_10 {dimension_numbers = #tpu.dot_dimension_numbers<[1], [0], [0], [1], [0, 0, 1, 1], [], []>} : vector<4x16xf32>, vector<16x128xf32>, vector<4x128xf32> -> vector<4x128xf32>
    %23 = arith.truncf %22 : vector<4x128xf32> to vector<4x128xbf16>
    %c0_11 = arith.constant 0 : index
    %c0_12 = arith.constant 0 : index
    %24 = vector.load %arg5[%c0_11, %c0_12] : memref<128x128xbf16, #tpu.memory_space<vmem>>, vector<128x128xbf16>
    %cst_13 = arith.constant dense<0.000000e+00> : vector<4x128xf32>
    %25 = tpu.matmul %23, %24, %cst_13 {dimension_numbers = #tpu.dot_dimension_numbers<[1], [0], [0], [1], [0, 0, 1, 1], [], []>} : vector<4x128xbf16>, vector<128x128xbf16>, vector<4x128xf32> -> vector<4x128xf32>
    %c0_14 = arith.constant 0 : index
    %c0_15 = arith.constant 0 : index
    %26 = vector.load %arg6[%c0_14, %c0_15] : memref<128x128xbf16, #tpu.memory_space<vmem>>, vector<128x128xbf16>
    %cst_16 = arith.constant dense<0.000000e+00> : vector<4x128xf32>
    %27 = tpu.matmul %23, %26, %cst_16 {dimension_numbers = #tpu.dot_dimension_numbers<[1], [0], [0], [1], [0, 0, 1, 1], [], []>} : vector<4x128xbf16>, vector<128x128xbf16>, vector<4x128xf32> -> vector<4x128xf32>
    %c0_17 = arith.constant 0 : index
    %c0_18 = arith.constant 0 : index
    %28 = vector.load %arg3[%c0_17, %c0_18] : memref<2x4xf32, #tpu.memory_space<vmem>>, vector<2x4xf32>
    %cst_19 = arith.constant dense<0.000000e+00> : vector<2x128xf32>
    %29 = tpu.matmul %28, %25, %cst_19 {dimension_numbers = #tpu.dot_dimension_numbers<[1], [0], [0], [1], [0, 0, 1, 1], [], []>} : vector<2x4xf32>, vector<4x128xf32>, vector<2x128xf32> -> vector<2x128xf32>
    %c0_20 = arith.constant 0 : index
    %c0_21 = arith.constant 0 : index
    %30 = vector.load %arg4[%c0_20, %c0_21] : memref<2x4xf32, #tpu.memory_space<vmem>>, vector<2x4xf32>
    %cst_22 = arith.constant dense<0.000000e+00> : vector<2x128xf32>
    %31 = tpu.matmul %30, %27, %cst_22 {dimension_numbers = #tpu.dot_dimension_numbers<[1], [0], [0], [1], [0, 0, 1, 1], [], []>} : vector<2x4xf32>, vector<4x128xf32>, vector<2x128xf32> -> vector<2x128xf32>
    %32 = arith.addf %29, %31 : vector<2x128xf32>
    %c0_23 = arith.constant 0 : index
    %c0_24 = arith.constant 0 : index
    %33 = vector.load %arg7[%c0_23, %c0_24] : memref<1x128xf32, #tpu.memory_space<vmem>>, vector<1x128xf32>
    %34 = vector.broadcast %33 : vector<1x128xf32> to vector<2x128xf32>
    %35 = arith.addf %32, %34 : vector<2x128xf32>
    %cst_25 = arith.constant 0.000000e+00 : f32
    %36 = vector.broadcast %cst_25 : f32 to vector<2x128xf32>
    %37 = arith.maximumf %35, %36 : vector<2x128xf32>
    %38 = arith.truncf %37 : vector<2x128xf32> to vector<2x128xbf16>
    %c0_26 = arith.constant 0 : index
    %c0_27 = arith.constant 0 : index
    %39 = vector.load %arg8[%c0_26, %c0_27] : memref<128x128xbf16, #tpu.memory_space<vmem>>, vector<128x128xbf16>
    %cst_28 = arith.constant dense<0.000000e+00> : vector<2x128xf32>
    %40 = tpu.matmul %38, %39, %cst_28 {dimension_numbers = #tpu.dot_dimension_numbers<[1], [0], [0], [1], [0, 0, 1, 1], [], []>} : vector<2x128xbf16>, vector<128x128xbf16>, vector<2x128xf32> -> vector<2x128xf32>
    %c0_29 = arith.constant 0 : index
    %c0_30 = arith.constant 0 : index
    %41 = vector.load %arg9[%c0_29, %c0_30] : memref<1x128xf32, #tpu.memory_space<vmem>>, vector<1x128xf32>
    %42 = vector.broadcast %41 : vector<1x128xf32> to vector<2x128xf32>
    %43 = arith.addf %40, %42 : vector<2x128xf32>
    %c0_31 = arith.constant 0 : index
    %c0_32 = arith.constant 0 : index
    %44 = vector.load %arg10[%c0_31, %c0_32] : memref<2x128xf32, #tpu.memory_space<vmem>>, vector<2x128xf32>
    tpu.vector_store %arg10[%c0_31, %c0_32], %43 {strides = array<i32>} : memref<2x128xf32, #tpu.memory_space<vmem>>, vector<2x128xf32>,
    return
  }
}

module attributes {stable_mosaic.version = 11 : i64} {
  func.func @kernel(%arg0: memref<48x128xf32, #tpu.memory_space<vmem>>, %arg1: memref<27x128x128xbf16, #tpu.memory_space<vmem>>, %arg2: memref<128x128xbf16, #tpu.memory_space<vmem>>, %arg3: memref<128x384xbf16, #tpu.memory_space<vmem>>, %arg4: memref<1x384xf32, #tpu.memory_space<vmem>>, %arg5: memref<16x1xf32, #tpu.memory_space<vmem>>, %arg6: memref<16x1xf32, #tpu.memory_space<vmem>>, %arg7: memref<2x16xf32, #tpu.memory_space<vmem>>, %arg8: memref<16x2xf32, #tpu.memory_space<vmem>>, %arg9: memref<16x16xf32, #tpu.memory_space<vmem>>, %arg10: memref<8x16xf32, #tpu.memory_space<vmem>>, %arg11: memref<16x128xbf16, #tpu.memory_space<vmem>>) attributes {dimension_semantics = [], scalar_prefetch = 0 : i64, scratch_operands = 0 : i64, tpu.core_type = #tpu.core_type<tc>} {
    %c0 = arith.constant 0 : index
    %c0_0 = arith.constant 0 : index
    %0 = vector.load %arg5[%c0, %c0_0] : memref<16x1xf32, #tpu.memory_space<vmem>>, vector<16x1xf32>
    %c0_1 = arith.constant 0 : index
    %c0_2 = arith.constant 0 : index
    %1 = vector.load %arg6[%c0_1, %c0_2] : memref<16x1xf32, #tpu.memory_space<vmem>>, vector<16x1xf32>
    %c13 = arith.constant 13 : index
    %c0_3 = arith.constant 0 : index
    %2 = vector.load %arg0[%c13, %c0_3] : memref<48x128xf32, #tpu.memory_space<vmem>>, vector<16x128xf32>
    %cst = arith.constant 1.000000e+00 : f32
    %3 = vector.broadcast %cst : f32 to vector<16x1xf32>
    %4 = arith.cmpf oge, %0, %3 : vector<16x1xf32>
    %5 = arith.extui %4 : vector<16x1xi1> to vector<16x1xi32>
    %6 = arith.sitofp %5 : vector<16x1xi32> to vector<16x1xf32>
    %cst_4 = arith.constant 1.000000e+00 : f32
    %7 = vector.broadcast %cst_4 : f32 to vector<16x1xf32>
    %8 = arith.cmpf oge, %1, %7 : vector<16x1xf32>
    %9 = arith.extui %8 : vector<16x1xi1> to vector<16x1xi32>
    %10 = arith.sitofp %9 : vector<16x1xi32> to vector<16x1xf32>
    %11 = arith.mulf %6, %10 : vector<16x1xf32>
    %12 = vector.broadcast %11 : vector<16x1xf32> to vector<16x128xf32>
    %13 = arith.mulf %2, %12 : vector<16x128xf32>
    %14 = arith.truncf %13 : vector<16x128xf32> to vector<16x128xbf16>
    %c0_5 = arith.constant 0 : index
    %c0_6 = arith.constant 0 : index
    %c0_7 = arith.constant 0 : index
    %15 = vector.load %arg1[%c0_5, %c0_6, %c0_7] : memref<27x128x128xbf16, #tpu.memory_space<vmem>>, vector<1x128x128xbf16>
    %16 = vector.shape_cast %15 : vector<1x128x128xbf16> to vector<128x128xbf16>
    %cst_8 = arith.constant dense<0.000000e+00> : vector<16x128xf32>
    %17 = tpu.matmul %14, %16, %cst_8 {dimension_numbers = #tpu.dot_dimension_numbers<[1], [0], [0], [1], [0, 0, 1, 1], [], []>} : vector<16x128xbf16>, vector<128x128xbf16>, vector<16x128xf32> -> vector<16x128xf32>
    %c14 = arith.constant 14 : index
    %c0_9 = arith.constant 0 : index
    %18 = vector.load %arg0[%c14, %c0_9] : memref<48x128xf32, #tpu.memory_space<vmem>>, vector<16x128xf32>
    %cst_10 = arith.constant 1.000000e+00 : f32
    %19 = vector.broadcast %cst_10 : f32 to vector<16x1xf32>
    %20 = arith.cmpf oge, %0, %19 : vector<16x1xf32>
    %21 = arith.extui %20 : vector<16x1xi1> to vector<16x1xi32>
    %22 = arith.sitofp %21 : vector<16x1xi32> to vector<16x1xf32>
    %23 = vector.broadcast %22 : vector<16x1xf32> to vector<16x128xf32>
    %24 = arith.mulf %18, %23 : vector<16x128xf32>
    %25 = arith.truncf %24 : vector<16x128xf32> to vector<16x128xbf16>
    %c1 = arith.constant 1 : index
    %c0_11 = arith.constant 0 : index
    %c0_12 = arith.constant 0 : index
    %26 = vector.load %arg1[%c1, %c0_11, %c0_12] : memref<27x128x128xbf16, #tpu.memory_space<vmem>>, vector<1x128x128xbf16>
    %27 = vector.shape_cast %26 : vector<1x128x128xbf16> to vector<128x128xbf16>
    %cst_13 = arith.constant dense<0.000000e+00> : vector<16x128xf32>
    %28 = tpu.matmul %25, %27, %cst_13 {dimension_numbers = #tpu.dot_dimension_numbers<[1], [0], [0], [1], [0, 0, 1, 1], [], []>} : vector<16x128xbf16>, vector<128x128xbf16>, vector<16x128xf32> -> vector<16x128xf32>
    %29 = arith.addf %17, %28 : vector<16x128xf32>
    %c15 = arith.constant 15 : index
    %c0_14 = arith.constant 0 : index
    %30 = vector.load %arg0[%c15, %c0_14] : memref<48x128xf32, #tpu.memory_space<vmem>>, vector<16x128xf32>
    %cst_15 = arith.constant 1.000000e+00 : f32
    %31 = vector.broadcast %cst_15 : f32 to vector<16x1xf32>
    %32 = arith.cmpf oge, %0, %31 : vector<16x1xf32>
    %33 = arith.extui %32 : vector<16x1xi1> to vector<16x1xi32>
    %34 = arith.sitofp %33 : vector<16x1xi32> to vector<16x1xf32>
    %cst_16 = arith.constant 1.000000e+00 : f32
    %35 = vector.broadcast %cst_16 : f32 to vector<16x1xf32>
    %36 = arith.cmpf olt, %1, %35 : vector<16x1xf32>
    %37 = arith.extui %36 : vector<16x1xi1> to vector<16x1xi32>
    %38 = arith.sitofp %37 : vector<16x1xi32> to vector<16x1xf32>
    %39 = arith.mulf %34, %38 : vector<16x1xf32>
    %40 = vector.broadcast %39 : vector<16x1xf32> to vector<16x128xf32>
    %41 = arith.mulf %30, %40 : vector<16x128xf32>
    %42 = arith.truncf %41 : vector<16x128xf32> to vector<16x128xbf16>
    %c2 = arith.constant 2 : index
    %c0_17 = arith.constant 0 : index
    %c0_18 = arith.constant 0 : index
    %43 = vector.load %arg1[%c2, %c0_17, %c0_18] : memref<27x128x128xbf16, #tpu.memory_space<vmem>>, vector<1x128x128xbf16>
    %44 = vector.shape_cast %43 : vector<1x128x128xbf16> to vector<128x128xbf16>
    %cst_19 = arith.constant dense<0.000000e+00> : vector<16x128xf32>
    %45 = tpu.matmul %42, %44, %cst_19 {dimension_numbers = #tpu.dot_dimension_numbers<[1], [0], [0], [1], [0, 0, 1, 1], [], []>} : vector<16x128xbf16>, vector<128x128xbf16>, vector<16x128xf32> -> vector<16x128xf32>
    %46 = arith.addf %29, %45 : vector<16x128xf32>
    %c15_20 = arith.constant 15 : index
    %c0_21 = arith.constant 0 : index
    %47 = vector.load %arg0[%c15_20, %c0_21] : memref<48x128xf32, #tpu.memory_space<vmem>>, vector<16x128xf32>
    %cst_22 = arith.constant 1.000000e+00 : f32
    %48 = vector.broadcast %cst_22 : f32 to vector<16x1xf32>
    %49 = arith.cmpf oge, %1, %48 : vector<16x1xf32>
    %50 = arith.extui %49 : vector<16x1xi1> to vector<16x1xi32>
    %51 = arith.sitofp %50 : vector<16x1xi32> to vector<16x1xf32>
    %52 = vector.broadcast %51 : vector<16x1xf32> to vector<16x128xf32>
    %53 = arith.mulf %47, %52 : vector<16x128xf32>
    %54 = arith.truncf %53 : vector<16x128xf32> to vector<16x128xbf16>
    %c3 = arith.constant 3 : index
    %c0_23 = arith.constant 0 : index
    %c0_24 = arith.constant 0 : index
    %55 = vector.load %arg1[%c3, %c0_23, %c0_24] : memref<27x128x128xbf16, #tpu.memory_space<vmem>>, vector<1x128x128xbf16>
    %56 = vector.shape_cast %55 : vector<1x128x128xbf16> to vector<128x128xbf16>
    %cst_25 = arith.constant dense<0.000000e+00> : vector<16x128xf32>
    %57 = tpu.matmul %54, %56, %cst_25 {dimension_numbers = #tpu.dot_dimension_numbers<[1], [0], [0], [1], [0, 0, 1, 1], [], []>} : vector<16x128xbf16>, vector<128x128xbf16>, vector<16x128xf32> -> vector<16x128xf32>
    %58 = arith.addf %46, %57 : vector<16x128xf32>
    %c16 = arith.constant 16 : index
    %c0_26 = arith.constant 0 : index
    %59 = vector.load %arg0[%c16, %c0_26] : memref<48x128xf32, #tpu.memory_space<vmem>>, vector<16x128xf32>
    %60 = arith.truncf %59 : vector<16x128xf32> to vector<16x128xbf16>
    %c4 = arith.constant 4 : index
    %c0_27 = arith.constant 0 : index
    %c0_28 = arith.constant 0 : index
    %61 = vector.load %arg1[%c4, %c0_27, %c0_28] : memref<27x128x128xbf16, #tpu.memory_space<vmem>>, vector<1x128x128xbf16>
    %62 = vector.shape_cast %61 : vector<1x128x128xbf16> to vector<128x128xbf16>
    %cst_29 = arith.constant dense<0.000000e+00> : vector<16x128xf32>
    %63 = tpu.matmul %60, %62, %cst_29 {dimension_numbers = #tpu.dot_dimension_numbers<[1], [0], [0], [1], [0, 0, 1, 1], [], []>} : vector<16x128xbf16>, vector<128x128xbf16>, vector<16x128xf32> -> vector<16x128xf32>
    %64 = arith.addf %58, %63 : vector<16x128xf32>
    %c17 = arith.constant 17 : index
    %c0_30 = arith.constant 0 : index
    %65 = vector.load %arg0[%c17, %c0_30] : memref<48x128xf32, #tpu.memory_space<vmem>>, vector<16x128xf32>
    %cst_31 = arith.constant 1.000000e+00 : f32
    %66 = vector.broadcast %cst_31 : f32 to vector<16x1xf32>
    %67 = arith.cmpf olt, %1, %66 : vector<16x1xf32>
    %68 = arith.extui %67 : vector<16x1xi1> to vector<16x1xi32>
    %69 = arith.sitofp %68 : vector<16x1xi32> to vector<16x1xf32>
    %70 = vector.broadcast %69 : vector<16x1xf32> to vector<16x128xf32>
    %71 = arith.mulf %65, %70 : vector<16x128xf32>
    %72 = arith.truncf %71 : vector<16x128xf32> to vector<16x128xbf16>
    %c5 = arith.constant 5 : index
    %c0_32 = arith.constant 0 : index
    %c0_33 = arith.constant 0 : index
    %73 = vector.load %arg1[%c5, %c0_32, %c0_33] : memref<27x128x128xbf16, #tpu.memory_space<vmem>>, vector<1x128x128xbf16>
    %74 = vector.shape_cast %73 : vector<1x128x128xbf16> to vector<128x128xbf16>
    %cst_34 = arith.constant dense<0.000000e+00> : vector<16x128xf32>
    %75 = tpu.matmul %72, %74, %cst_34 {dimension_numbers = #tpu.dot_dimension_numbers<[1], [0], [0], [1], [0, 0, 1, 1], [], []>} : vector<16x128xbf16>, vector<128x128xbf16>, vector<16x128xf32> -> vector<16x128xf32>
    %76 = arith.addf %64, %75 : vector<16x128xf32>
    %c17_35 = arith.constant 17 : index
    %c0_36 = arith.constant 0 : index
    %77 = vector.load %arg0[%c17_35, %c0_36] : memref<48x128xf32, #tpu.memory_space<vmem>>, vector<16x128xf32>
    %cst_37 = arith.constant 3.000000e+00 : f32
    %78 = vector.broadcast %cst_37 : f32 to vector<16x1xf32>
    %79 = arith.cmpf olt, %0, %78 : vector<16x1xf32>
    %80 = arith.extui %79 : vector<16x1xi1> to vector<16x1xi32>
    %81 = arith.sitofp %80 : vector<16x1xi32> to vector<16x1xf32>
    %cst_38 = arith.constant 1.000000e+00 : f32
    %82 = vector.broadcast %cst_38 : f32 to vector<16x1xf32>
    %83 = arith.cmpf oge, %1, %82 : vector<16x1xf32>
    %84 = arith.extui %83 : vector<16x1xi1> to vector<16x1xi32>
    %85 = arith.sitofp %84 : vector<16x1xi32> to vector<16x1xf32>
    %86 = arith.mulf %81, %85 : vector<16x1xf32>
    %87 = vector.broadcast %86 : vector<16x1xf32> to vector<16x128xf32>
    %88 = arith.mulf %77, %87 : vector<16x128xf32>
    %89 = arith.truncf %88 : vector<16x128xf32> to vector<16x128xbf16>
    %c6 = arith.constant 6 : index
    %c0_39 = arith.constant 0 : index
    %c0_40 = arith.constant 0 : index
    %90 = vector.load %arg1[%c6, %c0_39, %c0_40] : memref<27x128x128xbf16, #tpu.memory_space<vmem>>, vector<1x128x128xbf16>
    %91 = vector.shape_cast %90 : vector<1x128x128xbf16> to vector<128x128xbf16>
    %cst_41 = arith.constant dense<0.000000e+00> : vector<16x128xf32>
    %92 = tpu.matmul %89, %91, %cst_41 {dimension_numbers = #tpu.dot_dimension_numbers<[1], [0], [0], [1], [0, 0, 1, 1], [], []>} : vector<16x128xbf16>, vector<128x128xbf16>, vector<16x128xf32> -> vector<16x128xf32>
    %93 = arith.addf %76, %92 : vector<16x128xf32>
    %c18 = arith.constant 18 : index
    %c0_42 = arith.constant 0 : index
    %94 = vector.load %arg0[%c18, %c0_42] : memref<48x128xf32, #tpu.memory_space<vmem>>, vector<16x128xf32>
    %cst_43 = arith.constant 3.000000e+00 : f32
    %95 = vector.broadcast %cst_43 : f32 to vector<16x1xf32>
    %96 = arith.cmpf olt, %0, %95 : vector<16x1xf32>
    %97 = arith.extui %96 : vector<16x1xi1> to vector<16x1xi32>
    %98 = arith.sitofp %97 : vector<16x1xi32> to vector<16x1xf32>
    %99 = vector.broadcast %98 : vector<16x1xf32> to vector<16x128xf32>
    %100 = arith.mulf %94, %99 : vector<16x128xf32>
    %101 = arith.truncf %100 : vector<16x128xf32> to vector<16x128xbf16>
    %c7 = arith.constant 7 : index
    %c0_44 = arith.constant 0 : index
    %c0_45 = arith.constant 0 : index
    %102 = vector.load %arg1[%c7, %c0_44, %c0_45] : memref<27x128x128xbf16, #tpu.memory_space<vmem>>, vector<1x128x128xbf16>
    %103 = vector.shape_cast %102 : vector<1x128x128xbf16> to vector<128x128xbf16>
    %cst_46 = arith.constant dense<0.000000e+00> : vector<16x128xf32>
    %104 = tpu.matmul %101, %103, %cst_46 {dimension_numbers = #tpu.dot_dimension_numbers<[1], [0], [0], [1], [0, 0, 1, 1], [], []>} : vector<16x128xbf16>, vector<128x128xbf16>, vector<16x128xf32> -> vector<16x128xf32>
    %105 = arith.addf %93, %104 : vector<16x128xf32>
    %c19 = arith.constant 19 : index
    %c0_47 = arith.constant 0 : index
    %106 = vector.load %arg0[%c19, %c0_47] : memref<48x128xf32, #tpu.memory_space<vmem>>, vector<16x128xf32>
    %cst_48 = arith.constant 3.000000e+00 : f32
    %107 = vector.broadcast %cst_48 : f32 to vector<16x1xf32>
    %108 = arith.cmpf olt, %0, %107 : vector<16x1xf32>
    %109 = arith.extui %108 : vector<16x1xi1> to vector<16x1xi32>
    %110 = arith.sitofp %109 : vector<16x1xi32> to vector<16x1xf32>
    %cst_49 = arith.constant 1.000000e+00 : f32
    %111 = vector.broadcast %cst_49 : f32 to vector<16x1xf32>
    %112 = arith.cmpf olt, %1, %111 : vector<16x1xf32>
    %113 = arith.extui %112 : vector<16x1xi1> to vector<16x1xi32>
    %114 = arith.sitofp %113 : vector<16x1xi32> to vector<16x1xf32>
    %115 = arith.mulf %110, %114 : vector<16x1xf32>
    %116 = vector.broadcast %115 : vector<16x1xf32> to vector<16x128xf32>
    %117 = arith.mulf %106, %116 : vector<16x128xf32>
    %118 = arith.truncf %117 : vector<16x128xf32> to vector<16x128xbf16>
    %c8 = arith.constant 8 : index
    %c0_50 = arith.constant 0 : index
    %c0_51 = arith.constant 0 : index
    %119 = vector.load %arg1[%c8, %c0_50, %c0_51] : memref<27x128x128xbf16, #tpu.memory_space<vmem>>, vector<1x128x128xbf16>
    %120 = vector.shape_cast %119 : vector<1x128x128xbf16> to vector<128x128xbf16>
    %cst_52 = arith.constant dense<0.000000e+00> : vector<16x128xf32>
    %121 = tpu.matmul %118, %120, %cst_52 {dimension_numbers = #tpu.dot_dimension_numbers<[1], [0], [0], [1], [0, 0, 1, 1], [], []>} : vector<16x128xbf16>, vector<128x128xbf16>, vector<16x128xf32> -> vector<16x128xf32>
    %122 = arith.addf %105, %121 : vector<16x128xf32>
    %cst_53 = arith.constant dense<0.000000e+00> : vector<128xf32>
    %123 = vector.multi_reduction <add>, %122, %cst_53 [0] : vector<16x128xf32> to vector<128xf32>
    %124 = vector.shape_cast %123 : vector<128xf32> to vector<1x128xf32>
    %cst_54 = arith.constant 1.600000e+01 : f32
    %125 = vector.broadcast %cst_54 : f32 to vector<1x128xf32>
    %126 = arith.divf %124, %125 : vector<1x128xf32>
    %127 = vector.broadcast %126 : vector<1x128xf32> to vector<16x128xf32>
    %128 = arith.subf %122, %127 : vector<16x128xf32>
    %129 = arith.mulf %128, %128 : vector<16x128xf32>
    %cst_55 = arith.constant dense<0.000000e+00> : vector<128xf32>
    %130 = vector.multi_reduction <add>, %129, %cst_55 [0] : vector<16x128xf32> to vector<128xf32>
    %131 = vector.shape_cast %130 : vector<128xf32> to vector<1x128xf32>
    %cst_56 = arith.constant 1.600000e+01 : f32
    %132 = vector.broadcast %cst_56 : f32 to vector<1x128xf32>
    %133 = arith.divf %131, %132 : vector<1x128xf32>
    %134 = vector.broadcast %126 : vector<1x128xf32> to vector<16x128xf32>
    %135 = arith.subf %122, %134 : vector<16x128xf32>
    %cst_57 = arith.constant 9.99999974E-6 : f32
    %136 = vector.broadcast %cst_57 : f32 to vector<1x128xf32>
    %137 = arith.addf %133, %136 : vector<1x128xf32>
    %138 = math.rsqrt %137 : vector<1x128xf32>
    %139 = vector.broadcast %138 : vector<1x128xf32> to vector<16x128xf32>
    %140 = arith.mulf %135, %139 : vector<16x128xf32>
    %cst_58 = arith.constant 0.000000e+00 : f32
    %141 = vector.broadcast %cst_58 : f32 to vector<16x128xf32>
    %142 = arith.maximumf %140, %141 : vector<16x128xf32>
    %c10 = arith.constant 10 : index
    %c0_59 = arith.constant 0 : index
    %143 = vector.load %arg0[%c10, %c0_59] : memref<48x128xf32, #tpu.memory_space<vmem>>, vector<16x128xf32>
    %cst_60 = arith.constant 2.000000e+00 : f32
    %144 = vector.broadcast %cst_60 : f32 to vector<16x1xf32>
    %145 = arith.cmpf oge, %0, %144 : vector<16x1xf32>
    %146 = arith.extui %145 : vector<16x1xi1> to vector<16x1xi32>
    %147 = arith.sitofp %146 : vector<16x1xi32> to vector<16x1xf32>
    %cst_61 = arith.constant 2.000000e+00 : f32
    %148 = vector.broadcast %cst_61 : f32 to vector<16x1xf32>
    %149 = arith.cmpf oge, %1, %148 : vector<16x1xf32>
    %150 = arith.extui %149 : vector<16x1xi1> to vector<16x1xi32>
    %151 = arith.sitofp %150 : vector<16x1xi32> to vector<16x1xf32>
    %152 = arith.mulf %147, %151 : vector<16x1xf32>
    %153 = vector.broadcast %152 : vector<16x1xf32> to vector<16x128xf32>
    %154 = arith.mulf %143, %153 : vector<16x128xf32>
    %155 = arith.truncf %154 : vector<16x128xf32> to vector<16x128xbf16>
    %c9 = arith.constant 9 : index
    %c0_62 = arith.constant 0 : index
    %c0_63 = arith.constant 0 : index
    %156 = vector.load %arg1[%c9, %c0_62, %c0_63] : memref<27x128x128xbf16, #tpu.memory_space<vmem>>, vector<1x128x128xbf16>
    %157 = vector.shape_cast %156 : vector<1x128x128xbf16> to vector<128x128xbf16>
    %cst_64 = arith.constant dense<0.000000e+00> : vector<16x128xf32>
    %158 = tpu.matmul %155, %157, %cst_64 {dimension_numbers = #tpu.dot_dimension_numbers<[1], [0], [0], [1], [0, 0, 1, 1], [], []>} : vector<16x128xbf16>, vector<128x128xbf16>, vector<16x128xf32> -> vector<16x128xf32>
    %c12 = arith.constant 12 : index
    %c0_65 = arith.constant 0 : index
    %159 = vector.load %arg0[%c12, %c0_65] : memref<48x128xf32, #tpu.memory_space<vmem>>, vector<16x128xf32>
    %cst_66 = arith.constant 2.000000e+00 : f32
    %160 = vector.broadcast %cst_66 : f32 to vector<16x1xf32>
    %161 = arith.cmpf oge, %0, %160 : vector<16x1xf32>
    %162 = arith.extui %161 : vector<16x1xi1> to vector<16x1xi32>
    %163 = arith.sitofp %162 : vector<16x1xi32> to vector<16x1xf32>
    %164 = vector.broadcast %163 : vector<16x1xf32> to vector<16x128xf32>
    %165 = arith.mulf %159, %164 : vector<16x128xf32>
    %166 = arith.truncf %165 : vector<16x128xf32> to vector<16x128xbf16>
    %c10_67 = arith.constant 10 : index
    %c0_68 = arith.constant 0 : index
    %c0_69 = arith.constant 0 : index
    %167 = vector.load %arg1[%c10_67, %c0_68, %c0_69] : memref<27x128x128xbf16, #tpu.memory_space<vmem>>, vector<1x128x128xbf16>
    %168 = vector.shape_cast %167 : vector<1x128x128xbf16> to vector<128x128xbf16>
    %cst_70 = arith.constant dense<0.000000e+00> : vector<16x128xf32>
    %169 = tpu.matmul %166, %168, %cst_70 {dimension_numbers = #tpu.dot_dimension_numbers<[1], [0], [0], [1], [0, 0, 1, 1], [], []>} : vector<16x128xbf16>, vector<128x128xbf16>, vector<16x128xf32> -> vector<16x128xf32>
    %170 = arith.addf %158, %169 : vector<16x128xf32>
    %c14_71 = arith.constant 14 : index
    %c0_72 = arith.constant 0 : index
    %171 = vector.load %arg0[%c14_71, %c0_72] : memref<48x128xf32, #tpu.memory_space<vmem>>, vector<16x128xf32>
    %cst_73 = arith.constant 2.000000e+00 : f32
    %172 = vector.broadcast %cst_73 : f32 to vector<16x1xf32>
    %173 = arith.cmpf oge, %0, %172 : vector<16x1xf32>
    %174 = arith.extui %173 : vector<16x1xi1> to vector<16x1xi32>
    %175 = arith.sitofp %174 : vector<16x1xi32> to vector<16x1xf32>
    %cst_74 = arith.constant 0.000000e+00 : f32
    %176 = vector.broadcast %cst_74 : f32 to vector<16x1xf32>
    %177 = arith.cmpf olt, %1, %176 : vector<16x1xf32>
    %178 = arith.extui %177 : vector<16x1xi1> to vector<16x1xi32>
    %179 = arith.sitofp %178 : vector<16x1xi32> to vector<16x1xf32>
    %180 = arith.mulf %175, %179 : vector<16x1xf32>
    %181 = vector.broadcast %180 : vector<16x1xf32> to vector<16x128xf32>
    %182 = arith.mulf %171, %181 : vector<16x128xf32>
    %183 = arith.truncf %182 : vector<16x128xf32> to vector<16x128xbf16>
    %c11 = arith.constant 11 : index
    %c0_75 = arith.constant 0 : index
    %c0_76 = arith.constant 0 : index
    %184 = vector.load %arg1[%c11, %c0_75, %c0_76] : memref<27x128x128xbf16, #tpu.memory_space<vmem>>, vector<1x128x128xbf16>
    %185 = vector.shape_cast %184 : vector<1x128x128xbf16> to vector<128x128xbf16>
    %cst_77 = arith.constant dense<0.000000e+00> : vector<16x128xf32>
    %186 = tpu.matmul %183, %185, %cst_77 {dimension_numbers = #tpu.dot_dimension_numbers<[1], [0], [0], [1], [0, 0, 1, 1], [], []>} : vector<16x128xbf16>, vector<128x128xbf16>, vector<16x128xf32> -> vector<16x128xf32>
    %187 = arith.addf %170, %186 : vector<16x128xf32>
    %c14_78 = arith.constant 14 : index
    %c0_79 = arith.constant 0 : index
    %188 = vector.load %arg0[%c14_78, %c0_79] : memref<48x128xf32, #tpu.memory_space<vmem>>, vector<16x128xf32>
    %cst_80 = arith.constant 2.000000e+00 : f32
    %189 = vector.broadcast %cst_80 : f32 to vector<16x1xf32>
    %190 = arith.cmpf oge, %1, %189 : vector<16x1xf32>
    %191 = arith.extui %190 : vector<16x1xi1> to vector<16x1xi32>
    %192 = arith.sitofp %191 : vector<16x1xi32> to vector<16x1xf32>
    %193 = vector.broadcast %192 : vector<16x1xf32> to vector<16x128xf32>
    %194 = arith.mulf %188, %193 : vector<16x128xf32>
    %195 = arith.truncf %194 : vector<16x128xf32> to vector<16x128xbf16>
    %c12_81 = arith.constant 12 : index
    %c0_82 = arith.constant 0 : index
    %c0_83 = arith.constant 0 : index
    %196 = vector.load %arg1[%c12_81, %c0_82, %c0_83] : memref<27x128x128xbf16, #tpu.memory_space<vmem>>, vector<1x128x128xbf16>
    %197 = vector.shape_cast %196 : vector<1x128x128xbf16> to vector<128x128xbf16>
    %cst_84 = arith.constant dense<0.000000e+00> : vector<16x128xf32>
    %198 = tpu.matmul %195, %197, %cst_84 {dimension_numbers = #tpu.dot_dimension_numbers<[1], [0], [0], [1], [0, 0, 1, 1], [], []>} : vector<16x128xbf16>, vector<128x128xbf16>, vector<16x128xf32> -> vector<16x128xf32>
    %199 = arith.addf %187, %198 : vector<16x128xf32>
    %c16_85 = arith.constant 16 : index
    %c0_86 = arith.constant 0 : index
    %200 = vector.load %arg0[%c16_85, %c0_86] : memref<48x128xf32, #tpu.memory_space<vmem>>, vector<16x128xf32>
    %201 = arith.truncf %200 : vector<16x128xf32> to vector<16x128xbf16>
    %c13_87 = arith.constant 13 : index
    %c0_88 = arith.constant 0 : index
    %c0_89 = arith.constant 0 : index
    %202 = vector.load %arg1[%c13_87, %c0_88, %c0_89] : memref<27x128x128xbf16, #tpu.memory_space<vmem>>, vector<1x128x128xbf16>
    %203 = vector.shape_cast %202 : vector<1x128x128xbf16> to vector<128x128xbf16>
    %cst_90 = arith.constant dense<0.000000e+00> : vector<16x128xf32>
    %204 = tpu.matmul %201, %203, %cst_90 {dimension_numbers = #tpu.dot_dimension_numbers<[1], [0], [0], [1], [0, 0, 1, 1], [], []>} : vector<16x128xbf16>, vector<128x128xbf16>, vector<16x128xf32> -> vector<16x128xf32>
    %205 = arith.addf %199, %204 : vector<16x128xf32>
    %c18_91 = arith.constant 18 : index
    %c0_92 = arith.constant 0 : index
    %206 = vector.load %arg0[%c18_91, %c0_92] : memref<48x128xf32, #tpu.memory_space<vmem>>, vector<16x128xf32>
    %cst_93 = arith.constant 0.000000e+00 : f32
    %207 = vector.broadcast %cst_93 : f32 to vector<16x1xf32>
    %208 = arith.cmpf olt, %1, %207 : vector<16x1xf32>
    %209 = arith.extui %208 : vector<16x1xi1> to vector<16x1xi32>
    %210 = arith.sitofp %209 : vector<16x1xi32> to vector<16x1xf32>
    %211 = vector.broadcast %210 : vector<16x1xf32> to vector<16x128xf32>
    %212 = arith.mulf %206, %211 : vector<16x128xf32>
    %213 = arith.truncf %212 : vector<16x128xf32> to vector<16x128xbf16>
    %c14_94 = arith.constant 14 : index
    %c0_95 = arith.constant 0 : index
    %c0_96 = arith.constant 0 : index
    %214 = vector.load %arg1[%c14_94, %c0_95, %c0_96] : memref<27x128x128xbf16, #tpu.memory_space<vmem>>, vector<1x128x128xbf16>
    %215 = vector.shape_cast %214 : vector<1x128x128xbf16> to vector<128x128xbf16>
    %cst_97 = arith.constant dense<0.000000e+00> : vector<16x128xf32>
    %216 = tpu.matmul %213, %215, %cst_97 {dimension_numbers = #tpu.dot_dimension_numbers<[1], [0], [0], [1], [0, 0, 1, 1], [], []>} : vector<16x128xbf16>, vector<128x128xbf16>, vector<16x128xf32> -> vector<16x128xf32>
    %217 = arith.addf %205, %216 : vector<16x128xf32>
    %c18_98 = arith.constant 18 : index
    %c0_99 = arith.constant 0 : index
    %218 = vector.load %arg0[%c18_98, %c0_99] : memref<48x128xf32, #tpu.memory_space<vmem>>, vector<16x128xf32>
    %cst_100 = arith.constant 2.000000e+00 : f32
    %219 = vector.broadcast %cst_100 : f32 to vector<16x1xf32>
    %220 = arith.cmpf olt, %0, %219 : vector<16x1xf32>
    %221 = arith.extui %220 : vector<16x1xi1> to vector<16x1xi32>
    %222 = arith.sitofp %221 : vector<16x1xi32> to vector<16x1xf32>
    %cst_101 = arith.constant 2.000000e+00 : f32
    %223 = vector.broadcast %cst_101 : f32 to vector<16x1xf32>
    %224 = arith.cmpf oge, %1, %223 : vector<16x1xf32>
    %225 = arith.extui %224 : vector<16x1xi1> to vector<16x1xi32>
    %226 = arith.sitofp %225 : vector<16x1xi32> to vector<16x1xf32>
    %227 = arith.mulf %222, %226 : vector<16x1xf32>
    %228 = vector.broadcast %227 : vector<16x1xf32> to vector<16x128xf32>
    %229 = arith.mulf %218, %228 : vector<16x128xf32>
    %230 = arith.truncf %229 : vector<16x128xf32> to vector<16x128xbf16>
    %c15_102 = arith.constant 15 : index
    %c0_103 = arith.constant 0 : index
    %c0_104 = arith.constant 0 : index
    %231 = vector.load %arg1[%c15_102, %c0_103, %c0_104] : memref<27x128x128xbf16, #tpu.memory_space<vmem>>, vector<1x128x128xbf16>
    %232 = vector.shape_cast %231 : vector<1x128x128xbf16> to vector<128x128xbf16>
    %cst_105 = arith.constant dense<0.000000e+00> : vector<16x128xf32>
    %233 = tpu.matmul %230, %232, %cst_105 {dimension_numbers = #tpu.dot_dimension_numbers<[1], [0], [0], [1], [0, 0, 1, 1], [], []>} : vector<16x128xbf16>, vector<128x128xbf16>, vector<16x128xf32> -> vector<16x128xf32>
    %234 = arith.addf %217, %233 : vector<16x128xf32>
    %c20 = arith.constant 20 : index
    %c0_106 = arith.constant 0 : index
    %235 = vector.load %arg0[%c20, %c0_106] : memref<48x128xf32, #tpu.memory_space<vmem>>, vector<16x128xf32>
    %cst_107 = arith.constant 2.000000e+00 : f32
    %236 = vector.broadcast %cst_107 : f32 to vector<16x1xf32>
    %237 = arith.cmpf olt, %0, %236 : vector<16x1xf32>
    %238 = arith.extui %237 : vector<16x1xi1> to vector<16x1xi32>
    %239 = arith.sitofp %238 : vector<16x1xi32> to vector<16x1xf32>
    %240 = vector.broadcast %239 : vector<16x1xf32> to vector<16x128xf32>
    %241 = arith.mulf %235, %240 : vector<16x128xf32>
    %242 = arith.truncf %241 : vector<16x128xf32> to vector<16x128xbf16>
    %c16_108 = arith.constant 16 : index
    %c0_109 = arith.constant 0 : index
    %c0_110 = arith.constant 0 : index
    %243 = vector.load %arg1[%c16_108, %c0_109, %c0_110] : memref<27x128x128xbf16, #tpu.memory_space<vmem>>, vector<1x128x128xbf16>
    %244 = vector.shape_cast %243 : vector<1x128x128xbf16> to vector<128x128xbf16>
    %cst_111 = arith.constant dense<0.000000e+00> : vector<16x128xf32>
    %245 = tpu.matmul %242, %244, %cst_111 {dimension_numbers = #tpu.dot_dimension_numbers<[1], [0], [0], [1], [0, 0, 1, 1], [], []>} : vector<16x128xbf16>, vector<128x128xbf16>, vector<16x128xf32> -> vector<16x128xf32>
    %246 = arith.addf %234, %245 : vector<16x128xf32>
    %c22 = arith.constant 22 : index
    %c0_112 = arith.constant 0 : index
    %247 = vector.load %arg0[%c22, %c0_112] : memref<48x128xf32, #tpu.memory_space<vmem>>, vector<16x128xf32>
    %cst_113 = arith.constant 2.000000e+00 : f32
    %248 = vector.broadcast %cst_113 : f32 to vector<16x1xf32>
    %249 = arith.cmpf olt, %0, %248 : vector<16x1xf32>
    %250 = arith.extui %249 : vector<16x1xi1> to vector<16x1xi32>
    %251 = arith.sitofp %250 : vector<16x1xi32> to vector<16x1xf32>
    %cst_114 = arith.constant 0.000000e+00 : f32
    %252 = vector.broadcast %cst_114 : f32 to vector<16x1xf32>
    %253 = arith.cmpf olt, %1, %252 : vector<16x1xf32>
    %254 = arith.extui %253 : vector<16x1xi1> to vector<16x1xi32>
    %255 = arith.sitofp %254 : vector<16x1xi32> to vector<16x1xf32>
    %256 = arith.mulf %251, %255 : vector<16x1xf32>
    %257 = vector.broadcast %256 : vector<16x1xf32> to vector<16x128xf32>
    %258 = arith.mulf %247, %257 : vector<16x128xf32>
    %259 = arith.truncf %258 : vector<16x128xf32> to vector<16x128xbf16>
    %c17_115 = arith.constant 17 : index
    %c0_116 = arith.constant 0 : index
    %c0_117 = arith.constant 0 : index
    %260 = vector.load %arg1[%c17_115, %c0_116, %c0_117] : memref<27x128x128xbf16, #tpu.memory_space<vmem>>, vector<1x128x128xbf16>
    %261 = vector.shape_cast %260 : vector<1x128x128xbf16> to vector<128x128xbf16>
    %cst_118 = arith.constant dense<0.000000e+00> : vector<16x128xf32>
    %262 = tpu.matmul %259, %261, %cst_118 {dimension_numbers = #tpu.dot_dimension_numbers<[1], [0], [0], [1], [0, 0, 1, 1], [], []>} : vector<16x128xbf16>, vector<128x128xbf16>, vector<16x128xf32> -> vector<16x128xf32>
    %263 = arith.addf %246, %262 : vector<16x128xf32>
    %cst_119 = arith.constant dense<0.000000e+00> : vector<128xf32>
    %264 = vector.multi_reduction <add>, %263, %cst_119 [0] : vector<16x128xf32> to vector<128xf32>
    %265 = vector.shape_cast %264 : vector<128xf32> to vector<1x128xf32>
    %cst_120 = arith.constant 1.600000e+01 : f32
    %266 = vector.broadcast %cst_120 : f32 to vector<1x128xf32>
    %267 = arith.divf %265, %266 : vector<1x128xf32>
    %268 = vector.broadcast %267 : vector<1x128xf32> to vector<16x128xf32>
    %269 = arith.subf %263, %268 : vector<16x128xf32>
    %270 = arith.mulf %269, %269 : vector<16x128xf32>
    %cst_121 = arith.constant dense<0.000000e+00> : vector<128xf32>
    %271 = vector.multi_reduction <add>, %270, %cst_121 [0] : vector<16x128xf32> to vector<128xf32>
    %272 = vector.shape_cast %271 : vector<128xf32> to vector<1x128xf32>
    %cst_122 = arith.constant 1.600000e+01 : f32
    %273 = vector.broadcast %cst_122 : f32 to vector<1x128xf32>
    %274 = arith.divf %272, %273 : vector<1x128xf32>
    %275 = vector.broadcast %267 : vector<1x128xf32> to vector<16x128xf32>
    %276 = arith.subf %263, %275 : vector<16x128xf32>
    %cst_123 = arith.constant 9.99999974E-6 : f32
    %277 = vector.broadcast %cst_123 : f32 to vector<1x128xf32>
    %278 = arith.addf %274, %277 : vector<1x128xf32>
    %279 = math.rsqrt %278 : vector<1x128xf32>
    %280 = vector.broadcast %279 : vector<1x128xf32> to vector<16x128xf32>
    %281 = arith.mulf %276, %280 : vector<16x128xf32>
    %cst_124 = arith.constant 0.000000e+00 : f32
    %282 = vector.broadcast %cst_124 : f32 to vector<16x128xf32>
    %283 = arith.maximumf %281, %282 : vector<16x128xf32>
    %c7_125 = arith.constant 7 : index
    %c0_126 = arith.constant 0 : index
    %284 = vector.load %arg0[%c7_125, %c0_126] : memref<48x128xf32, #tpu.memory_space<vmem>>, vector<16x128xf32>
    %cst_127 = arith.constant 3.000000e+00 : f32
    %285 = vector.broadcast %cst_127 : f32 to vector<16x1xf32>
    %286 = arith.cmpf oge, %0, %285 : vector<16x1xf32>
    %287 = arith.extui %286 : vector<16x1xi1> to vector<16x1xi32>
    %288 = arith.sitofp %287 : vector<16x1xi32> to vector<16x1xf32>
    %cst_128 = arith.constant 3.000000e+00 : f32
    %289 = vector.broadcast %cst_128 : f32 to vector<16x1xf32>
    %290 = arith.cmpf oge, %1, %289 : vector<16x1xf32>
    %291 = arith.extui %290 : vector<16x1xi1> to vector<16x1xi32>
    %292 = arith.sitofp %291 : vector<16x1xi32> to vector<16x1xf32>
    %293 = arith.mulf %288, %292 : vector<16x1xf32>
    %294 = vector.broadcast %293 : vector<16x1xf32> to vector<16x128xf32>
    %295 = arith.mulf %284, %294 : vector<16x128xf32>
    %296 = arith.truncf %295 : vector<16x128xf32> to vector<16x128xbf16>
    %c18_129 = arith.constant 18 : index
    %c0_130 = arith.constant 0 : index
    %c0_131 = arith.constant 0 : index
    %297 = vector.load %arg1[%c18_129, %c0_130, %c0_131] : memref<27x128x128xbf16, #tpu.memory_space<vmem>>, vector<1x128x128xbf16>
    %298 = vector.shape_cast %297 : vector<1x128x128xbf16> to vector<128x128xbf16>
    %cst_132 = arith.constant dense<0.000000e+00> : vector<16x128xf32>
    %299 = tpu.matmul %296, %298, %cst_132 {dimension_numbers = #tpu.dot_dimension_numbers<[1], [0], [0], [1], [0, 0, 1, 1], [], []>} : vector<16x128xbf16>, vector<128x128xbf16>, vector<16x128xf32> -> vector<16x128xf32>
    %c10_133 = arith.constant 10 : index
    %c0_134 = arith.constant 0 : index
    %300 = vector.load %arg0[%c10_133, %c0_134] : memref<48x128xf32, #tpu.memory_space<vmem>>, vector<16x128xf32>
    %cst_135 = arith.constant 3.000000e+00 : f32
    %301 = vector.broadcast %cst_135 : f32 to vector<16x1xf32>
    %302 = arith.cmpf oge, %0, %301 : vector<16x1xf32>
    %303 = arith.extui %302 : vector<16x1xi1> to vector<16x1xi32>
    %304 = arith.sitofp %303 : vector<16x1xi32> to vector<16x1xf32>
    %305 = vector.broadcast %304 : vector<16x1xf32> to vector<16x128xf32>
    %306 = arith.mulf %300, %305 : vector<16x128xf32>
    %307 = arith.truncf %306 : vector<16x128xf32> to vector<16x128xbf16>
    %c19_136 = arith.constant 19 : index
    %c0_137 = arith.constant 0 : index
    %c0_138 = arith.constant 0 : index
    %308 = vector.load %arg1[%c19_136, %c0_137, %c0_138] : memref<27x128x128xbf16, #tpu.memory_space<vmem>>, vector<1x128x128xbf16>
    %309 = vector.shape_cast %308 : vector<1x128x128xbf16> to vector<128x128xbf16>
    %cst_139 = arith.constant dense<0.000000e+00> : vector<16x128xf32>
    %310 = tpu.matmul %307, %309, %cst_139 {dimension_numbers = #tpu.dot_dimension_numbers<[1], [0], [0], [1], [0, 0, 1, 1], [], []>} : vector<16x128xbf16>, vector<128x128xbf16>, vector<16x128xf32> -> vector<16x128xf32>
    %311 = arith.addf %299, %310 : vector<16x128xf32>
    %c13_140 = arith.constant 13 : index
    %c0_141 = arith.constant 0 : index
    %312 = vector.load %arg0[%c13_140, %c0_141] : memref<48x128xf32, #tpu.memory_space<vmem>>, vector<16x128xf32>
    %cst_142 = arith.constant 3.000000e+00 : f32
    %313 = vector.broadcast %cst_142 : f32 to vector<16x1xf32>
    %314 = arith.cmpf oge, %0, %313 : vector<16x1xf32>
    %315 = arith.extui %314 : vector<16x1xi1> to vector<16x1xi32>
    %316 = arith.sitofp %315 : vector<16x1xi32> to vector<16x1xf32>
    %cst_143 = arith.constant -1.000000e+00 : f32
    %317 = vector.broadcast %cst_143 : f32 to vector<16x1xf32>
    %318 = arith.cmpf olt, %1, %317 : vector<16x1xf32>
    %319 = arith.extui %318 : vector<16x1xi1> to vector<16x1xi32>
    %320 = arith.sitofp %319 : vector<16x1xi32> to vector<16x1xf32>
    %321 = arith.mulf %316, %320 : vector<16x1xf32>
    %322 = vector.broadcast %321 : vector<16x1xf32> to vector<16x128xf32>
    %323 = arith.mulf %312, %322 : vector<16x128xf32>
    %324 = arith.truncf %323 : vector<16x128xf32> to vector<16x128xbf16>
    %c20_144 = arith.constant 20 : index
    %c0_145 = arith.constant 0 : index
    %c0_146 = arith.constant 0 : index
    %325 = vector.load %arg1[%c20_144, %c0_145, %c0_146] : memref<27x128x128xbf16, #tpu.memory_space<vmem>>, vector<1x128x128xbf16>
    %326 = vector.shape_cast %325 : vector<1x128x128xbf16> to vector<128x128xbf16>
    %cst_147 = arith.constant dense<0.000000e+00> : vector<16x128xf32>
    %327 = tpu.matmul %324, %326, %cst_147 {dimension_numbers = #tpu.dot_dimension_numbers<[1], [0], [0], [1], [0, 0, 1, 1], [], []>} : vector<16x128xbf16>, vector<128x128xbf16>, vector<16x128xf32> -> vector<16x128xf32>
    %328 = arith.addf %311, %327 : vector<16x128xf32>
    %c13_148 = arith.constant 13 : index
    %c0_149 = arith.constant 0 : index
    %329 = vector.load %arg0[%c13_148, %c0_149] : memref<48x128xf32, #tpu.memory_space<vmem>>, vector<16x128xf32>
    %cst_150 = arith.constant 3.000000e+00 : f32
    %330 = vector.broadcast %cst_150 : f32 to vector<16x1xf32>
    %331 = arith.cmpf oge, %1, %330 : vector<16x1xf32>
    %332 = arith.extui %331 : vector<16x1xi1> to vector<16x1xi32>
    %333 = arith.sitofp %332 : vector<16x1xi32> to vector<16x1xf32>
    %334 = vector.broadcast %333 : vector<16x1xf32> to vector<16x128xf32>
    %335 = arith.mulf %329, %334 : vector<16x128xf32>
    %336 = arith.truncf %335 : vector<16x128xf32> to vector<16x128xbf16>
    %c21 = arith.constant 21 : index
    %c0_151 = arith.constant 0 : index
    %c0_152 = arith.constant 0 : index
    %337 = vector.load %arg1[%c21, %c0_151, %c0_152] : memref<27x128x128xbf16, #tpu.memory_space<vmem>>, vector<1x128x128xbf16>
    %338 = vector.shape_cast %337 : vector<1x128x128xbf16> to vector<128x128xbf16>
    %cst_153 = arith.constant dense<0.000000e+00> : vector<16x128xf32>
    %339 = tpu.matmul %336, %338, %cst_153 {dimension_numbers = #tpu.dot_dimension_numbers<[1], [0], [0], [1], [0, 0, 1, 1], [], []>} : vector<16x128xbf16>, vector<128x128xbf16>, vector<16x128xf32> -> vector<16x128xf32>
    %340 = arith.addf %328, %339 : vector<16x128xf32>
    %c16_154 = arith.constant 16 : index
    %c0_155 = arith.constant 0 : index
    %341 = vector.load %arg0[%c16_154, %c0_155] : memref<48x128xf32, #tpu.memory_space<vmem>>, vector<16x128xf32>
    %342 = arith.truncf %341 : vector<16x128xf32> to vector<16x128xbf16>
    %c22_156 = arith.constant 22 : index
    %c0_157 = arith.constant 0 : index
    %c0_158 = arith.constant 0 : index
    %343 = vector.load %arg1[%c22_156, %c0_157, %c0_158] : memref<27x128x128xbf16, #tpu.memory_space<vmem>>, vector<1x128x128xbf16>
    %344 = vector.shape_cast %343 : vector<1x128x128xbf16> to vector<128x128xbf16>
    %cst_159 = arith.constant dense<0.000000e+00> : vector<16x128xf32>
    %345 = tpu.matmul %342, %344, %cst_159 {dimension_numbers = #tpu.dot_dimension_numbers<[1], [0], [0], [1], [0, 0, 1, 1], [], []>} : vector<16x128xbf16>, vector<128x128xbf16>, vector<16x128xf32> -> vector<16x128xf32>
    %346 = arith.addf %340, %345 : vector<16x128xf32>
    %c19_160 = arith.constant 19 : index
    %c0_161 = arith.constant 0 : index
    %347 = vector.load %arg0[%c19_160, %c0_161] : memref<48x128xf32, #tpu.memory_space<vmem>>, vector<16x128xf32>
    %cst_162 = arith.constant -1.000000e+00 : f32
    %348 = vector.broadcast %cst_162 : f32 to vector<16x1xf32>
    %349 = arith.cmpf olt, %1, %348 : vector<16x1xf32>
    %350 = arith.extui %349 : vector<16x1xi1> to vector<16x1xi32>
    %351 = arith.sitofp %350 : vector<16x1xi32> to vector<16x1xf32>
    %352 = vector.broadcast %351 : vector<16x1xf32> to vector<16x128xf32>
    %353 = arith.mulf %347, %352 : vector<16x128xf32>
    %354 = arith.truncf %353 : vector<16x128xf32> to vector<16x128xbf16>
    %c23 = arith.constant 23 : index
    %c0_163 = arith.constant 0 : index
    %c0_164 = arith.constant 0 : index
    %355 = vector.load %arg1[%c23, %c0_163, %c0_164] : memref<27x128x128xbf16, #tpu.memory_space<vmem>>, vector<1x128x128xbf16>
    %356 = vector.shape_cast %355 : vector<1x128x128xbf16> to vector<128x128xbf16>
    %cst_165 = arith.constant dense<0.000000e+00> : vector<16x128xf32>
    %357 = tpu.matmul %354, %356, %cst_165 {dimension_numbers = #tpu.dot_dimension_numbers<[1], [0], [0], [1], [0, 0, 1, 1], [], []>} : vector<16x128xbf16>, vector<128x128xbf16>, vector<16x128xf32> -> vector<16x128xf32>
    %358 = arith.addf %346, %357 : vector<16x128xf32>
    %c19_166 = arith.constant 19 : index
    %c0_167 = arith.constant 0 : index
    %359 = vector.load %arg0[%c19_166, %c0_167] : memref<48x128xf32, #tpu.memory_space<vmem>>, vector<16x128xf32>
    %cst_168 = arith.constant 1.000000e+00 : f32
    %360 = vector.broadcast %cst_168 : f32 to vector<16x1xf32>
    %361 = arith.cmpf olt, %0, %360 : vector<16x1xf32>
    %362 = arith.extui %361 : vector<16x1xi1> to vector<16x1xi32>
    %363 = arith.sitofp %362 : vector<16x1xi32> to vector<16x1xf32>
    %cst_169 = arith.constant 3.000000e+00 : f32
    %364 = vector.broadcast %cst_169 : f32 to vector<16x1xf32>
    %365 = arith.cmpf oge, %1, %364 : vector<16x1xf32>
    %366 = arith.extui %365 : vector<16x1xi1> to vector<16x1xi32>
    %367 = arith.sitofp %366 : vector<16x1xi32> to vector<16x1xf32>
    %368 = arith.mulf %363, %367 : vector<16x1xf32>
    %369 = vector.broadcast %368 : vector<16x1xf32> to vector<16x128xf32>
    %370 = arith.mulf %359, %369 : vector<16x128xf32>
    %371 = arith.truncf %370 : vector<16x128xf32> to vector<16x128xbf16>
    %c24 = arith.constant 24 : index
    %c0_170 = arith.constant 0 : index
    %c0_171 = arith.constant 0 : index
    %372 = vector.load %arg1[%c24, %c0_170, %c0_171] : memref<27x128x128xbf16, #tpu.memory_space<vmem>>, vector<1x128x128xbf16>
    %373 = vector.shape_cast %372 : vector<1x128x128xbf16> to vector<128x128xbf16>
    %cst_172 = arith.constant dense<0.000000e+00> : vector<16x128xf32>
    %374 = tpu.matmul %371, %373, %cst_172 {dimension_numbers = #tpu.dot_dimension_numbers<[1], [0], [0], [1], [0, 0, 1, 1], [], []>} : vector<16x128xbf16>, vector<128x128xbf16>, vector<16x128xf32> -> vector<16x128xf32>
    %375 = arith.addf %358, %374 : vector<16x128xf32>
    %c22_173 = arith.constant 22 : index
    %c0_174 = arith.constant 0 : index
    %376 = vector.load %arg0[%c22_173, %c0_174] : memref<48x128xf32, #tpu.memory_space<vmem>>, vector<16x128xf32>
    %cst_175 = arith.constant 1.000000e+00 : f32
    %377 = vector.broadcast %cst_175 : f32 to vector<16x1xf32>
    %378 = arith.cmpf olt, %0, %377 : vector<16x1xf32>
    %379 = arith.extui %378 : vector<16x1xi1> to vector<16x1xi32>
    %380 = arith.sitofp %379 : vector<16x1xi32> to vector<16x1xf32>
    %381 = vector.broadcast %380 : vector<16x1xf32> to vector<16x128xf32>
    %382 = arith.mulf %376, %381 : vector<16x128xf32>
    %383 = arith.truncf %382 : vector<16x128xf32> to vector<16x128xbf16>
    %c25 = arith.constant 25 : index
    %c0_176 = arith.constant 0 : index
    %c0_177 = arith.constant 0 : index
    %384 = vector.load %arg1[%c25, %c0_176, %c0_177] : memref<27x128x128xbf16, #tpu.memory_space<vmem>>, vector<1x128x128xbf16>
    %385 = vector.shape_cast %384 : vector<1x128x128xbf16> to vector<128x128xbf16>
    %cst_178 = arith.constant dense<0.000000e+00> : vector<16x128xf32>
    %386 = tpu.matmul %383, %385, %cst_178 {dimension_numbers = #tpu.dot_dimension_numbers<[1], [0], [0], [1], [0, 0, 1, 1], [], []>} : vector<16x128xbf16>, vector<128x128xbf16>, vector<16x128xf32> -> vector<16x128xf32>
    %387 = arith.addf %375, %386 : vector<16x128xf32>
    %c25_179 = arith.constant 25 : index
    %c0_180 = arith.constant 0 : index
    %388 = vector.load %arg0[%c25_179, %c0_180] : memref<48x128xf32, #tpu.memory_space<vmem>>, vector<16x128xf32>
    %cst_181 = arith.constant 1.000000e+00 : f32
    %389 = vector.broadcast %cst_181 : f32 to vector<16x1xf32>
    %390 = arith.cmpf olt, %0, %389 : vector<16x1xf32>
    %391 = arith.extui %390 : vector<16x1xi1> to vector<16x1xi32>
    %392 = arith.sitofp %391 : vector<16x1xi32> to vector<16x1xf32>
    %cst_182 = arith.constant -1.000000e+00 : f32
    %393 = vector.broadcast %cst_182 : f32 to vector<16x1xf32>
    %394 = arith.cmpf olt, %1, %393 : vector<16x1xf32>
    %395 = arith.extui %394 : vector<16x1xi1> to vector<16x1xi32>
    %396 = arith.sitofp %395 : vector<16x1xi32> to vector<16x1xf32>
    %397 = arith.mulf %392, %396 : vector<16x1xf32>
    %398 = vector.broadcast %397 : vector<16x1xf32> to vector<16x128xf32>
    %399 = arith.mulf %388, %398 : vector<16x128xf32>
    %400 = arith.truncf %399 : vector<16x128xf32> to vector<16x128xbf16>
    %c26 = arith.constant 26 : index
    %c0_183 = arith.constant 0 : index
    %c0_184 = arith.constant 0 : index
    %401 = vector.load %arg1[%c26, %c0_183, %c0_184] : memref<27x128x128xbf16, #tpu.memory_space<vmem>>, vector<1x128x128xbf16>
    %402 = vector.shape_cast %401 : vector<1x128x128xbf16> to vector<128x128xbf16>
    %cst_185 = arith.constant dense<0.000000e+00> : vector<16x128xf32>
    %403 = tpu.matmul %400, %402, %cst_185 {dimension_numbers = #tpu.dot_dimension_numbers<[1], [0], [0], [1], [0, 0, 1, 1], [], []>} : vector<16x128xbf16>, vector<128x128xbf16>, vector<16x128xf32> -> vector<16x128xf32>
    %404 = arith.addf %387, %403 : vector<16x128xf32>
    %cst_186 = arith.constant dense<0.000000e+00> : vector<128xf32>
    %405 = vector.multi_reduction <add>, %404, %cst_186 [0] : vector<16x128xf32> to vector<128xf32>
    %406 = vector.shape_cast %405 : vector<128xf32> to vector<1x128xf32>
    %cst_187 = arith.constant 1.600000e+01 : f32
    %407 = vector.broadcast %cst_187 : f32 to vector<1x128xf32>
    %408 = arith.divf %406, %407 : vector<1x128xf32>
    %409 = vector.broadcast %408 : vector<1x128xf32> to vector<16x128xf32>
    %410 = arith.subf %404, %409 : vector<16x128xf32>
    %411 = arith.mulf %410, %410 : vector<16x128xf32>
    %cst_188 = arith.constant dense<0.000000e+00> : vector<128xf32>
    %412 = vector.multi_reduction <add>, %411, %cst_188 [0] : vector<16x128xf32> to vector<128xf32>
    %413 = vector.shape_cast %412 : vector<128xf32> to vector<1x128xf32>
    %cst_189 = arith.constant 1.600000e+01 : f32
    %414 = vector.broadcast %cst_189 : f32 to vector<1x128xf32>
    %415 = arith.divf %413, %414 : vector<1x128xf32>
    %416 = vector.broadcast %408 : vector<1x128xf32> to vector<16x128xf32>
    %417 = arith.subf %404, %416 : vector<16x128xf32>
    %cst_190 = arith.constant 9.99999974E-6 : f32
    %418 = vector.broadcast %cst_190 : f32 to vector<1x128xf32>
    %419 = arith.addf %415, %418 : vector<1x128xf32>
    %420 = math.rsqrt %419 : vector<1x128xf32>
    %421 = vector.broadcast %420 : vector<1x128xf32> to vector<16x128xf32>
    %422 = arith.mulf %417, %421 : vector<16x128xf32>
    %cst_191 = arith.constant 0.000000e+00 : f32
    %423 = vector.broadcast %cst_191 : f32 to vector<16x128xf32>
    %424 = arith.maximumf %422, %423 : vector<16x128xf32>
    %425 = arith.addf %142, %283 : vector<16x128xf32>
    %426 = arith.addf %425, %424 : vector<16x128xf32>
    %c0_192 = arith.constant 0 : index
    %c0_193 = arith.constant 0 : index
    %427 = vector.load %arg7[%c0_192, %c0_193] : memref<2x16xf32, #tpu.memory_space<vmem>>, vector<2x16xf32>
    %cst_194 = arith.constant dense<0.000000e+00> : vector<2x128xf32>
    %428 = tpu.matmul %427, %426, %cst_194 {dimension_numbers = #tpu.dot_dimension_numbers<[1], [0], [0], [1], [0, 0, 1, 1], [], []>} : vector<2x16xf32>, vector<16x128xf32>, vector<2x128xf32> -> vector<2x128xf32>
    %429 = arith.truncf %428 : vector<2x128xf32> to vector<2x128xbf16>
    %c0_195 = arith.constant 0 : index
    %c0_196 = arith.constant 0 : index
    %430 = vector.load %arg2[%c0_195, %c0_196] : memref<128x128xbf16, #tpu.memory_space<vmem>>, vector<128x128xbf16>
    %cst_197 = arith.constant dense<0.000000e+00> : vector<2x128xf32>
    %431 = tpu.matmul %429, %430, %cst_197 {dimension_numbers = #tpu.dot_dimension_numbers<[1], [0], [0], [1], [0, 0, 1, 1], [], []>} : vector<2x128xbf16>, vector<128x128xbf16>, vector<2x128xf32> -> vector<2x128xf32>
    %cst_198 = arith.constant dense<0.000000e+00> : vector<128xf32>
    %432 = vector.multi_reduction <add>, %431, %cst_198 [0] : vector<2x128xf32> to vector<128xf32>
    %433 = vector.shape_cast %432 : vector<128xf32> to vector<1x128xf32>
    %cst_199 = arith.constant 2.000000e+00 : f32
    %434 = vector.broadcast %cst_199 : f32 to vector<1x128xf32>
    %435 = arith.divf %433, %434 : vector<1x128xf32>
    %436 = vector.broadcast %435 : vector<1x128xf32> to vector<2x128xf32>
    %437 = arith.subf %431, %436 : vector<2x128xf32>
    %438 = arith.mulf %437, %437 : vector<2x128xf32>
    %cst_200 = arith.constant dense<0.000000e+00> : vector<128xf32>
    %439 = vector.multi_reduction <add>, %438, %cst_200 [0] : vector<2x128xf32> to vector<128xf32>
    %440 = vector.shape_cast %439 : vector<128xf32> to vector<1x128xf32>
    %cst_201 = arith.constant 2.000000e+00 : f32
    %441 = vector.broadcast %cst_201 : f32 to vector<1x128xf32>
    %442 = arith.divf %440, %441 : vector<1x128xf32>
    %443 = vector.broadcast %435 : vector<1x128xf32> to vector<2x128xf32>
    %444 = arith.subf %431, %443 : vector<2x128xf32>
    %cst_202 = arith.constant 9.99999974E-6 : f32
    %445 = vector.broadcast %cst_202 : f32 to vector<1x128xf32>
    %446 = arith.addf %442, %445 : vector<1x128xf32>
    %447 = math.rsqrt %446 : vector<1x128xf32>
    %448 = vector.broadcast %447 : vector<1x128xf32> to vector<2x128xf32>
    %449 = arith.mulf %444, %448 : vector<2x128xf32>
    %cst_203 = arith.constant 0.000000e+00 : f32
    %450 = vector.broadcast %cst_203 : f32 to vector<2x128xf32>
    %451 = arith.maximumf %449, %450 : vector<2x128xf32>
    %452 = arith.truncf %451 : vector<2x128xf32> to vector<2x128xbf16>
    %c0_204 = arith.constant 0 : index
    %c0_205 = arith.constant 0 : index
    %453 = vector.load %arg3[%c0_204, %c0_205] : memref<128x384xbf16, #tpu.memory_space<vmem>>, vector<128x384xbf16>
    %cst_206 = arith.constant dense<0.000000e+00> : vector<2x384xf32>
    %454 = tpu.matmul %452, %453, %cst_206 {dimension_numbers = #tpu.dot_dimension_numbers<[1], [0], [0], [1], [0, 0, 1, 1], [], []>} : vector<2x128xbf16>, vector<128x384xbf16>, vector<2x384xf32> -> vector<2x384xf32>
    %c0_207 = arith.constant 0 : index
    %c0_208 = arith.constant 0 : index
    %455 = vector.load %arg4[%c0_207, %c0_208] : memref<1x384xf32, #tpu.memory_space<vmem>>, vector<1x384xf32>
    %456 = vector.broadcast %455 : vector<1x384xf32> to vector<2x384xf32>
    %457 = arith.addf %454, %456 : vector<2x384xf32>
    %458 = vector.extract_strided_slice %457 {offsets = [0, 0], sizes = [2, 128], strides = [1, 1]} : vector<2x384xf32> to vector<2x128xf32>
    %459 = vector.extract_strided_slice %457 {offsets = [0, 128], sizes = [2, 128], strides = [1, 1]} : vector<2x384xf32> to vector<2x128xf32>
    %460 = vector.extract_strided_slice %457 {offsets = [0, 256], sizes = [2, 128], strides = [1, 1]} : vector<2x384xf32> to vector<2x128xf32>
    %461 = arith.maximumf %458, %459 : vector<2x128xf32>
    %462 = arith.maximumf %461, %460 : vector<2x128xf32>
    %463 = arith.subf %458, %462 : vector<2x128xf32>
    %464 = math.exp %463 : vector<2x128xf32>
    %465 = arith.subf %459, %462 : vector<2x128xf32>
    %466 = math.exp %465 : vector<2x128xf32>
    %467 = arith.subf %460, %462 : vector<2x128xf32>
    %468 = math.exp %467 : vector<2x128xf32>
    %469 = arith.addf %464, %466 : vector<2x128xf32>
    %470 = arith.addf %469, %468 : vector<2x128xf32>
    %471 = tpu.reciprocal %470 {approx = true} : vector<2x128xf32> -> vector<2x128xf32>
    %472 = arith.mulf %464, %471 : vector<2x128xf32>
    %473 = arith.mulf %466, %471 : vector<2x128xf32>
    %474 = arith.mulf %468, %471 : vector<2x128xf32>
    %c0_209 = arith.constant 0 : index
    %c0_210 = arith.constant 0 : index
    %475 = vector.load %arg9[%c0_209, %c0_210] : memref<16x16xf32, #tpu.memory_space<vmem>>, vector<16x16xf32>
    %cst_211 = arith.constant dense<0.000000e+00> : vector<16x128xf32>
    %476 = tpu.matmul %475, %142, %cst_211 {dimension_numbers = #tpu.dot_dimension_numbers<[1], [0], [0], [1], [0, 0, 1, 1], [], []>} : vector<16x16xf32>, vector<16x128xf32>, vector<16x128xf32> -> vector<16x128xf32>
    %cst_212 = arith.constant dense<0.000000e+00> : vector<16xf32>
    %477 = vector.multi_reduction <add>, %476, %cst_212 [1] : vector<16x128xf32> to vector<16xf32>
    %478 = vector.shape_cast %477 : vector<16xf32> to vector<16x1xf32>
    %cst_213 = arith.constant dense<0.000000e+00> : vector<16x128xf32>
    %479 = tpu.matmul %475, %283, %cst_213 {dimension_numbers = #tpu.dot_dimension_numbers<[1], [0], [0], [1], [0, 0, 1, 1], [], []>} : vector<16x16xf32>, vector<16x128xf32>, vector<16x128xf32> -> vector<16x128xf32>
    %cst_214 = arith.constant dense<0.000000e+00> : vector<16xf32>
    %480 = vector.multi_reduction <add>, %479, %cst_214 [1] : vector<16x128xf32> to vector<16xf32>
    %481 = vector.shape_cast %480 : vector<16xf32> to vector<16x1xf32>
    %cst_215 = arith.constant dense<0.000000e+00> : vector<16x128xf32>
    %482 = tpu.matmul %475, %424, %cst_215 {dimension_numbers = #tpu.dot_dimension_numbers<[1], [0], [0], [1], [0, 0, 1, 1], [], []>} : vector<16x16xf32>, vector<16x128xf32>, vector<16x128xf32> -> vector<16x128xf32>
    %cst_216 = arith.constant dense<0.000000e+00> : vector<16xf32>
    %483 = vector.multi_reduction <add>, %482, %cst_216 [1] : vector<16x128xf32> to vector<16xf32>
    %484 = vector.shape_cast %483 : vector<16xf32> to vector<16x1xf32>
    %485 = arith.maximumf %478, %481 : vector<16x1xf32>
    %486 = arith.maximumf %485, %484 : vector<16x1xf32>
    %487 = arith.subf %478, %486 : vector<16x1xf32>
    %488 = math.exp %487 : vector<16x1xf32>
    %489 = arith.subf %481, %486 : vector<16x1xf32>
    %490 = math.exp %489 : vector<16x1xf32>
    %491 = arith.subf %484, %486 : vector<16x1xf32>
    %492 = math.exp %491 : vector<16x1xf32>
    %493 = arith.addf %488, %490 : vector<16x1xf32>
    %494 = arith.addf %493, %492 : vector<16x1xf32>
    %495 = tpu.reciprocal %494 {approx = true} : vector<16x1xf32> -> vector<16x1xf32>
    %496 = arith.mulf %488, %495 : vector<16x1xf32>
    %497 = arith.mulf %490, %495 : vector<16x1xf32>
    %498 = arith.mulf %492, %495 : vector<16x1xf32>
    %c0_217 = arith.constant 0 : index
    %c0_218 = arith.constant 0 : index
    %499 = vector.load %arg8[%c0_217, %c0_218] : memref<16x2xf32, #tpu.memory_space<vmem>>, vector<16x2xf32>
    %500 = vector.extract_strided_slice %499 {offsets = [0, 0], sizes = [16, 1], strides = [1, 1]} : vector<16x2xf32> to vector<16x1xf32>
    %501 = vector.extract_strided_slice %472 {offsets = [0, 0], sizes = [1, 128], strides = [1, 1]} : vector<2x128xf32> to vector<1x128xf32>
    %502 = vector.broadcast %500 : vector<16x1xf32> to vector<16x128xf32>
    %503 = vector.broadcast %501 : vector<1x128xf32> to vector<16x128xf32>
    %504 = arith.mulf %502, %503 : vector<16x128xf32>
    %505 = vector.extract_strided_slice %499 {offsets = [0, 1], sizes = [16, 1], strides = [1, 1]} : vector<16x2xf32> to vector<16x1xf32>
    %506 = vector.extract_strided_slice %472 {offsets = [1, 0], sizes = [1, 128], strides = [1, 1]} : vector<2x128xf32> to vector<1x128xf32>
    %507 = vector.broadcast %505 : vector<16x1xf32> to vector<16x128xf32>
    %508 = vector.broadcast %506 : vector<1x128xf32> to vector<16x128xf32>
    %509 = arith.mulf %507, %508 : vector<16x128xf32>
    %510 = arith.addf %504, %509 : vector<16x128xf32>
    %511 = arith.mulf %142, %510 : vector<16x128xf32>
    %512 = vector.broadcast %496 : vector<16x1xf32> to vector<16x128xf32>
    %513 = arith.mulf %142, %512 : vector<16x128xf32>
    %514 = vector.extract_strided_slice %499 {offsets = [0, 0], sizes = [16, 1], strides = [1, 1]} : vector<16x2xf32> to vector<16x1xf32>
    %515 = vector.extract_strided_slice %473 {offsets = [0, 0], sizes = [1, 128], strides = [1, 1]} : vector<2x128xf32> to vector<1x128xf32>
    %516 = vector.broadcast %514 : vector<16x1xf32> to vector<16x128xf32>
    %517 = vector.broadcast %515 : vector<1x128xf32> to vector<16x128xf32>
    %518 = arith.mulf %516, %517 : vector<16x128xf32>
    %519 = vector.extract_strided_slice %499 {offsets = [0, 1], sizes = [16, 1], strides = [1, 1]} : vector<16x2xf32> to vector<16x1xf32>
    %520 = vector.extract_strided_slice %473 {offsets = [1, 0], sizes = [1, 128], strides = [1, 1]} : vector<2x128xf32> to vector<1x128xf32>
    %521 = vector.broadcast %519 : vector<16x1xf32> to vector<16x128xf32>
    %522 = vector.broadcast %520 : vector<1x128xf32> to vector<16x128xf32>
    %523 = arith.mulf %521, %522 : vector<16x128xf32>
    %524 = arith.addf %518, %523 : vector<16x128xf32>
    %525 = arith.mulf %283, %524 : vector<16x128xf32>
    %526 = vector.broadcast %497 : vector<16x1xf32> to vector<16x128xf32>
    %527 = arith.mulf %283, %526 : vector<16x128xf32>
    %528 = arith.addf %511, %525 : vector<16x128xf32>
    %529 = arith.addf %513, %527 : vector<16x128xf32>
    %530 = vector.extract_strided_slice %499 {offsets = [0, 0], sizes = [16, 1], strides = [1, 1]} : vector<16x2xf32> to vector<16x1xf32>
    %531 = vector.extract_strided_slice %474 {offsets = [0, 0], sizes = [1, 128], strides = [1, 1]} : vector<2x128xf32> to vector<1x128xf32>
    %532 = vector.broadcast %530 : vector<16x1xf32> to vector<16x128xf32>
    %533 = vector.broadcast %531 : vector<1x128xf32> to vector<16x128xf32>
    %534 = arith.mulf %532, %533 : vector<16x128xf32>
    %535 = vector.extract_strided_slice %499 {offsets = [0, 1], sizes = [16, 1], strides = [1, 1]} : vector<16x2xf32> to vector<16x1xf32>
    %536 = vector.extract_strided_slice %474 {offsets = [1, 0], sizes = [1, 128], strides = [1, 1]} : vector<2x128xf32> to vector<1x128xf32>
    %537 = vector.broadcast %535 : vector<16x1xf32> to vector<16x128xf32>
    %538 = vector.broadcast %536 : vector<1x128xf32> to vector<16x128xf32>
    %539 = arith.mulf %537, %538 : vector<16x128xf32>
    %540 = arith.addf %534, %539 : vector<16x128xf32>
    %541 = arith.mulf %424, %540 : vector<16x128xf32>
    %542 = vector.broadcast %498 : vector<16x1xf32> to vector<16x128xf32>
    %543 = arith.mulf %424, %542 : vector<16x128xf32>
    %544 = arith.addf %528, %541 : vector<16x128xf32>
    %545 = arith.addf %529, %543 : vector<16x128xf32>
    %cst_219 = arith.constant dense<0.000000e+00> : vector<128xf32>
    %546 = vector.multi_reduction <add>, %544, %cst_219 [0] : vector<16x128xf32> to vector<128xf32>
    %547 = vector.shape_cast %546 : vector<128xf32> to vector<1x128xf32>
    %cst_220 = arith.constant dense<0.000000e+00> : vector<128xf32>
    %548 = vector.multi_reduction <add>, %545, %cst_220 [0] : vector<16x128xf32> to vector<128xf32>
    %549 = vector.shape_cast %548 : vector<128xf32> to vector<1x128xf32>
    %550 = arith.addf %547, %549 : vector<1x128xf32>
    %cst_221 = arith.constant 3.200000e+01 : f32
    %551 = vector.broadcast %cst_221 : f32 to vector<1x128xf32>
    %552 = arith.divf %550, %551 : vector<1x128xf32>
    %553 = vector.broadcast %552 : vector<1x128xf32> to vector<16x128xf32>
    %554 = arith.subf %544, %553 : vector<16x128xf32>
    %555 = arith.mulf %554, %554 : vector<16x128xf32>
    %cst_222 = arith.constant dense<0.000000e+00> : vector<128xf32>
    %556 = vector.multi_reduction <add>, %555, %cst_222 [0] : vector<16x128xf32> to vector<128xf32>
    %557 = vector.shape_cast %556 : vector<128xf32> to vector<1x128xf32>
    %558 = vector.broadcast %552 : vector<1x128xf32> to vector<16x128xf32>
    %559 = arith.subf %545, %558 : vector<16x128xf32>
    %560 = arith.mulf %559, %559 : vector<16x128xf32>
    %cst_223 = arith.constant dense<0.000000e+00> : vector<128xf32>
    %561 = vector.multi_reduction <add>, %560, %cst_223 [0] : vector<16x128xf32> to vector<128xf32>
    %562 = vector.shape_cast %561 : vector<128xf32> to vector<1x128xf32>
    %563 = arith.addf %557, %562 : vector<1x128xf32>
    %cst_224 = arith.constant 3.200000e+01 : f32
    %564 = vector.broadcast %cst_224 : f32 to vector<1x128xf32>
    %565 = arith.divf %563, %564 : vector<1x128xf32>
    %cst_225 = arith.constant 9.99999974E-6 : f32
    %566 = vector.broadcast %cst_225 : f32 to vector<1x128xf32>
    %567 = arith.addf %565, %566 : vector<1x128xf32>
    %568 = math.rsqrt %567 : vector<1x128xf32>
    %c0_226 = arith.constant 0 : index
    %c0_227 = arith.constant 0 : index
    %569 = vector.load %arg10[%c0_226, %c0_227] : memref<8x16xf32, #tpu.memory_space<vmem>>, vector<8x16xf32>
    %cst_228 = arith.constant dense<0.000000e+00> : vector<8x128xf32>
    %570 = tpu.matmul %569, %544, %cst_228 {dimension_numbers = #tpu.dot_dimension_numbers<[1], [0], [0], [1], [0, 0, 1, 1], [], []>} : vector<8x16xf32>, vector<16x128xf32>, vector<8x128xf32> -> vector<8x128xf32>
    %571 = vector.broadcast %552 : vector<1x128xf32> to vector<8x128xf32>
    %572 = arith.subf %570, %571 : vector<8x128xf32>
    %573 = vector.broadcast %568 : vector<1x128xf32> to vector<8x128xf32>
    %574 = arith.mulf %572, %573 : vector<8x128xf32>
    %cst_229 = arith.constant dense<0.000000e+00> : vector<8x128xf32>
    %575 = tpu.matmul %569, %545, %cst_229 {dimension_numbers = #tpu.dot_dimension_numbers<[1], [0], [0], [1], [0, 0, 1, 1], [], []>} : vector<8x16xf32>, vector<16x128xf32>, vector<8x128xf32> -> vector<8x128xf32>
    %576 = vector.broadcast %552 : vector<1x128xf32> to vector<8x128xf32>
    %577 = arith.subf %575, %576 : vector<8x128xf32>
    %578 = vector.broadcast %568 : vector<1x128xf32> to vector<8x128xf32>
    %579 = arith.mulf %577, %578 : vector<8x128xf32>
    %cst_230 = arith.constant dense<0.000000e+00> : vector<128xf32>
    %580 = vector.multi_reduction <add>, %574, %cst_230 [0] : vector<8x128xf32> to vector<128xf32>
    %581 = vector.shape_cast %580 : vector<128xf32> to vector<1x128xf32>
    %cst_231 = arith.constant dense<0.000000e+00> : vector<128xf32>
    %582 = vector.multi_reduction <add>, %579, %cst_231 [0] : vector<8x128xf32> to vector<128xf32>
    %583 = vector.shape_cast %582 : vector<128xf32> to vector<1x128xf32>
    %584 = arith.addf %581, %583 : vector<1x128xf32>
    %cst_232 = arith.constant 1.600000e+01 : f32
    %585 = vector.broadcast %cst_232 : f32 to vector<1x128xf32>
    %586 = arith.divf %584, %585 : vector<1x128xf32>
    %587 = vector.broadcast %586 : vector<1x128xf32> to vector<8x128xf32>
    %588 = arith.subf %574, %587 : vector<8x128xf32>
    %589 = arith.mulf %588, %588 : vector<8x128xf32>
    %cst_233 = arith.constant dense<0.000000e+00> : vector<128xf32>
    %590 = vector.multi_reduction <add>, %589, %cst_233 [0] : vector<8x128xf32> to vector<128xf32>
    %591 = vector.shape_cast %590 : vector<128xf32> to vector<1x128xf32>
    %592 = vector.broadcast %586 : vector<1x128xf32> to vector<8x128xf32>
    %593 = arith.subf %579, %592 : vector<8x128xf32>
    %594 = arith.mulf %593, %593 : vector<8x128xf32>
    %cst_234 = arith.constant dense<0.000000e+00> : vector<128xf32>
    %595 = vector.multi_reduction <add>, %594, %cst_234 [0] : vector<8x128xf32> to vector<128xf32>
    %596 = vector.shape_cast %595 : vector<128xf32> to vector<1x128xf32>
    %597 = arith.addf %591, %596 : vector<1x128xf32>
    %cst_235 = arith.constant 1.600000e+01 : f32
    %598 = vector.broadcast %cst_235 : f32 to vector<1x128xf32>
    %599 = arith.divf %597, %598 : vector<1x128xf32>
    %cst_236 = arith.constant 9.99999974E-6 : f32
    %600 = vector.broadcast %cst_236 : f32 to vector<1x128xf32>
    %601 = arith.addf %599, %600 : vector<1x128xf32>
    %602 = math.rsqrt %601 : vector<1x128xf32>
    %603 = vector.broadcast %586 : vector<1x128xf32> to vector<8x128xf32>
    %604 = arith.subf %574, %603 : vector<8x128xf32>
    %605 = vector.broadcast %602 : vector<1x128xf32> to vector<8x128xf32>
    %606 = arith.mulf %604, %605 : vector<8x128xf32>
    %607 = arith.truncf %606 : vector<8x128xf32> to vector<8x128xbf16>
    %c0_237 = arith.constant 0 : index
    %c0_238 = arith.constant 0 : index
    %608 = vector.load %arg11[%c0_237, %c0_238] : memref<16x128xbf16, #tpu.memory_space<vmem>>, vector<8x128xbf16>
    tpu.vector_store %arg11[%c0_237, %c0_238], %607 {strides = array<i32>} : memref<16x128xbf16, #tpu.memory_space<vmem>>, vector<8x128xbf16>,
    %609 = vector.broadcast %586 : vector<1x128xf32> to vector<8x128xf32>
    %610 = arith.subf %579, %609 : vector<8x128xf32>
    %611 = vector.broadcast %602 : vector<1x128xf32> to vector<8x128xf32>
    %612 = arith.mulf %610, %611 : vector<8x128xf32>
    %613 = arith.truncf %612 : vector<8x128xf32> to vector<8x128xbf16>
    %c8_239 = arith.constant 8 : index
    %c0_240 = arith.constant 0 : index
    %614 = vector.load %arg11[%c8_239, %c0_240] : memref<16x128xbf16, #tpu.memory_space<vmem>>, vector<8x128xbf16>
    tpu.vector_store %arg11[%c8_239, %c0_240], %613 {strides = array<i32>} : memref<16x128xbf16, #tpu.memory_space<vmem>>, vector<8x128xbf16>,
    return
  }
}

</mosaic_0001>

<bundles_post_ra>
// kernel: dsknet_forward.5
= control target key start
LH: loop header
LB: loop body
LE: loop exit
PB: predicated region body
PF: predicated region fallthrough
CT: control target
= control target key end

     0   :  { %s714_s1 = inlined_call_operand.vmem [shape: bf16[128,128], index: 1, kind: input, shape index: {}]   ;;  %s715_s0 = inlined_call_operand.vmem [shape: bf16[64,128], index: 0, kind: input, shape index: {}]   ;;  %s716_s2 = inlined_call_operand.vmem [shape: bf16[128,128], index: 2, kind: input, shape index: {}]   ;;  %s717_s3 = inlined_call_operand.vmem [shape: f32[64,128], index: 3, kind: output, shape index: {}]  }
   0x1   :  { %v584_v0 = vld [vmem:[%s714_s1] sm:$0xff]   ;;  %v585_v1 = vld [vmem:[%s714_s1 + $0x8] sm:$0xff]   ;;  %v586_v2 = vld [vmem:[%s714_s1 + $0x10] sm:$0xff]  }
   0x2   :  { %536 = vmatprep.subr.bf16.mxu0 %v584_v0  ;;  %v587_v3 = vld [vmem:[%s714_s1 + $0x18] sm:$0xff]   ;;  %v592_v4 = vld [vmem:[%s715_s0] sm:$0xff]   ;;  %v589_v6 = vld [vmem:[%s714_s1 + $0x28] sm:$0xff]  }
   0x3   :  { %537 = vmatpush3.bf16.msra.mxu0 %v584_v0  ;;  %552 = vmatprep.mubr.bf16.mxu0 %v592_v4  ;;  %v588_v5 = vld [vmem:[%s714_s1 + $0x20] sm:$0xff]   ;;  %v590_v7 = vld [vmem:[%s714_s1 + $0x30] sm:$0xff]   ;;  %v591_v8 = vld [vmem:[%s714_s1 + $0x38] sm:$0xff]  }
   0x4   :  { %538 = vmatprep.subr.bf16.mxu0 %v585_v1  ;;  %v593_v9 = vld [vmem:[%s715_s0 + $0x8] sm:$0xff]   ;;  %v594_v10 = vld [vmem:[%s715_s0 + $0x10] sm:$0xff]   ;;  %v595_v11 = vld [vmem:[%s715_s0 + $0x18] sm:$0xff]  }
   0x5   :  { %v596_v12 = vld [vmem:[%s716_s2] sm:$0xff]   ;;  %v597_v13 = vld [vmem:[%s716_s2 + $0x8] sm:$0xff]   ;;  %v598_v14 = vld [vmem:[%s716_s2 + $0x10] sm:$0xff]  }
   0x6   :  { %560 = vmatprep.subr.bf16.mxu1 %v596_v12  ;;  %v599_v15 = vld [vmem:[%s716_s2 + $0x18] sm:$0xff]   ;;  %v600_v16 = vld [vmem:[%s716_s2 + $0x20] sm:$0xff]   ;;  %v601_v17 = vld [vmem:[%s716_s2 + $0x28] sm:$0xff]  }
   0x7   :  { %539 = vmatpush3.bf16.msra.mxu0 %v585_v1  ;;  %561 = vmatpush3.bf16.msra.mxu1 %v596_v12  ;;  %v602_v22 = vld [vmem:[%s716_s2 + $0x30] sm:$0xff]   ;;  %v603_v25 = vld [vmem:[%s716_s2 + $0x38] sm:$0xff]  }
   0x8   :  { %540 = vmatprep.subr.bf16.mxu0 %v586_v2  ;;  %562 = vmatprep.subr.bf16.mxu1 %v597_v13 }
   0xb   :  { %541 = vmatpush3.bf16.msra.mxu0 %v586_v2  ;;  %563 = vmatpush3.bf16.msra.mxu1 %v597_v13 }
   0xc   :  { %542 = vmatprep.subr.bf16.mxu0 %v587_v3  ;;  %564 = vmatprep.subr.bf16.mxu1 %v598_v14 }
   0xf   :  { %543 = vmatpush3.bf16.msra.mxu0 %v587_v3  ;;  %565 = vmatpush3.bf16.msra.mxu1 %v598_v14 }
  0x10   :  { %544 = vmatprep.subr.bf16.mxu0 %v588_v5  ;;  %566 = vmatprep.subr.bf16.mxu1 %v599_v15 }
  0x13   :  { %545 = vmatpush3.bf16.msra.mxu0 %v588_v5  ;;  %567 = vmatpush3.bf16.msra.mxu1 %v599_v15 }
  0x14   :  { %546 = vmatprep.subr.bf16.mxu0 %v589_v6  ;;  %568 = vmatprep.subr.bf16.mxu1 %v600_v16 }
  0x17   :  { %547 = vmatpush3.bf16.msra.mxu0 %v589_v6  ;;  %569 = vmatpush3.bf16.msra.mxu1 %v600_v16 }
  0x18   :  { %548 = vmatprep.subr.bf16.mxu0 %v590_v7  ;;  %570 = vmatprep.subr.bf16.mxu1 %v601_v17 }
  0x1b   :  { %549 = vmatpush3.bf16.msra.mxu0 %v590_v7  ;;  %571 = vmatpush3.bf16.msra.mxu1 %v601_v17 }
  0x1c   :  { %550 = vmatprep.subr.bf16.mxu0 %v591_v8  ;;  %572 = vmatprep.subr.bf16.mxu1 %v602_v22 }
  0x1f   :  { %551 = vmatpush3.bf16.msra.mxu0 %v591_v8  ;;  %573 = vmatpush3.bf16.msra.mxu1 %v602_v22 }
  0x20   :  { %574 = vmatprep.subr.bf16.mxu1 %v603_v25 }
  0x22   :  { %553 = vmatmul.mubr.bf16.vlgmr.msra.gmra.mrb[0].mxu0 %v593_v9 }
  0x23   :  { %556 = vmatprep.mubr.bf16.mxu0 %v594_v10  ;;  %575 = vmatpush3.bf16.msra.mxu1 %v603_v25 }
  0x2a   :  { %557 = vmatmul.mubr.bf16.gmra.mrb[4].mxu0 %v595_v11 }
  0xf5   :  { %v554_v18 = vpop.f32.mrb[0].mxu0 }
  0xf6   :  { %v145_v19 = vpop.f32.mrb[1].mxu0 }
  0xf7   :  { %v555_v20 = vpop.f32.mrb[2].mxu0 }
  0xf8   :  { %v148_v21 = vpop.f32.mrb[3].mxu0 }
  0xf9   :  { %v176_v23 = vadd.f32 %v148_v21, %v145_v19 }
  0xfb   :  { %v177_v24 = vadd.f32 %v554_v18, %v176_v23 }
  0xfd   :  { %v558_v26 = vpop.f32.mrb[4].mxu0  ;;  %v178_v27 = vadd.f32 %v555_v20, %v177_v24 }
  0xfe   :  { %v161_v28 = vpop.f32.mrb[5].mxu0 }
  0xff   :  { %v179_v29 = vadd.f32 %v178_v27, %v161_v28  ;;  %v559_v30 = vpop.f32.mrb[6].mxu0 }
 0x100   :  { %v164_v31 = vpop.f32.mrb[7].mxu0 }
 0x101   :  { %v180_v32 = vadd.f32 %v179_v29, %v164_v31 }
 0x103   :  { %v181_v33 = vadd.f32 %v558_v26, %v180_v32 }
 0x105   :  { %v182_v34 = vadd.f32 %v559_v30, %v181_v33 }
 0x107   :  { %v183_v35 = vrot.slane %v182_v34, 4 }
 0x109   :  { %v184_v36 = vadd.f32 %v183_v35, %v182_v34 }
 0x10b   :  { %v185_v37 = vrot.slane %v184_v36, 2 }
 0x10d   :  { %v186_v38 = vadd.f32 %v185_v37, %v184_v36 }
 0x10f   :  { %v187_v39 = vrot.slane %v186_v38, 1 }
 0x111   :  { %v188_v40 = vadd.f32 %v187_v39, %v186_v38 }
 0x113   :  { %v190_v41 = vmul.f32 0.015625, %v188_v40 }
 0x115   :  { %v191_v42 = vsub.f32 %v145_v19, %v190_v41  ;;  %v192_v43 = vsub.f32 %v148_v21, %v190_v41  ;;  %v193_v44 = vsub.f32 %v554_v18, %v190_v41  ;;  %v194_v45 = vsub.f32 %v555_v20, %v190_v41 }
 0x116   :  { %v195_v46 = vsub.f32 %v161_v28, %v190_v41  ;;  %v196_v47 = vsub.f32 %v164_v31, %v190_v41  ;;  %v197_v48 = vsub.f32 %v558_v26, %v190_v41  ;;  %v198_v49 = vsub.f32 %v559_v30, %v190_v41 }
 0x117   :  { %v199_v50 = vmul.f32 %v191_v42, %v191_v42  ;;  %v200_v51 = vmul.f32 %v192_v43, %v192_v43  ;;  %v201_v52 = vmul.f32 %v193_v44, %v193_v44  ;;  %v202_v54 = vmul.f32 %v194_v45, %v194_v45 }
 0x118   :  { %v203_v56 = vmul.f32 %v195_v46, %v195_v46  ;;  %v204_v58 = vmul.f32 %v196_v47, %v196_v47  ;;  %v205_v60 = vmul.f32 %v197_v48, %v197_v48  ;;  %v206_v62 = vmul.f32 %v198_v49, %v198_v49 }
 0x119   :  { %v207_v53 = vadd.f32 %v200_v51, %v199_v50 }
 0x11b   :  { %v208_v55 = vadd.f32 %v207_v53, %v201_v52 }
 0x11d   :  { %v209_v57 = vadd.f32 %v208_v55, %v202_v54 }
 0x11f   :  { %v210_v59 = vadd.f32 %v209_v57, %v203_v56 }
 0x121   :  { %v211_v61 = vadd.f32 %v210_v59, %v204_v58 }
 0x123   :  { %v212_v63 = vadd.f32 %v211_v61, %v205_v60 }
 0x125   :  { %v213_v0 = vadd.f32 %v212_v63, %v206_v62 }
 0x127   :  { %v214_v1 = vrot.slane %v213_v0, 4 }
 0x129   :  { %v215_v2 = vadd.f32 %v214_v1, %v213_v0 }
 0x12b   :  { %v216_v3 = vrot.slane %v215_v2, 2 }
 0x12d   :  { %v217_v4 = vadd.f32 %v216_v3, %v215_v2 }
 0x12f   :  { %v218_v5 = vrot.slane %v217_v4, 1 }
 0x131   :  { %v219_v6 = vadd.f32 %v218_v5, %v217_v4 }
 0x133   :  { %v220_v7 = vmul.f32 0.015625, %v219_v6 }
 0x135   :  { %v221_v8 = vadd.f32 1e-05, %v220_v7 }
 0x137   :  { %604 = vrsqrt.f32 %v221_v8 }
 0x141   :  { %v605_v9 = vpop.eup %604 }
 0x142   :  { %v223_v10 = vmul.f32 %v605_v9, %v191_v42  ;;  %v224_v11 = vmul.f32 %v605_v9, %v192_v43  ;;  %v225_v12 = vmul.f32 %v605_v9, %v193_v44  ;;  %v226_v13 = vmul.f32 %v605_v9, %v194_v45 }
 0x143   :  { %v227_v14 = vmul.f32 %v605_v9, %v195_v46  ;;  %v228_v15 = vmul.f32 %v605_v9, %v196_v47  ;;  %v229_v16 = vmul.f32 %v605_v9, %v197_v48  ;;  %v230_v17 = vmul.f32 %v605_v9, %v198_v49 }
 0x144   :  { %v231_v18 = vadd.f32 %v224_v11, %v223_v10 }
 0x146   :  { %v232_v19 = vadd.f32 %v231_v18, %v225_v12 }
 0x148   :  { %v233_v20 = vadd.f32 %v232_v19, %v226_v13 }
 0x14a   :  { %v234_v21 = vadd.f32 %v233_v20, %v227_v14 }
 0x14c   :  { %v235_v22 = vadd.f32 %v234_v21, %v228_v15 }
 0x14e   :  { %v236_v23 = vadd.f32 %v235_v22, %v229_v16 }
 0x150   :  { %v237_v24 = vadd.f32 %v236_v23, %v230_v17 }
 0x152   :  { %v238_v25 = vrot.slane %v237_v24, 4 }
 0x154   :  { %v239_v26 = vadd.f32 %v238_v25, %v237_v24 }
 0x156   :  { %v240_v27 = vrot.slane %v239_v26, 2 }
 0x158   :  { %v241_v28 = vadd.f32 %v240_v27, %v239_v26 }
 0x15a   :  { %v242_v29 = vrot.slane %v241_v28, 1 }
 0x15c   :  { %v243_v30 = vadd.f32 %v242_v29, %v241_v28 }
 0x15e   :  { %v244_v31 = vmul.f32 0.015625, %v243_v30 }
 0x160   :  { %v248_v32 = vsub.f32 %v226_v13, %v244_v31  ;;  %v249_v33 = vsub.f32 %v227_v14, %v244_v31  ;;  %v250_v34 = vsub.f32 %v228_v15, %v244_v31  ;;  %v251_v35 = vsub.f32 %v229_v16, %v244_v31 }
 0x161   :  { %v252_v36 = vsub.f32 %v230_v17, %v244_v31  ;;  %v245_v37 = vsub.f32 %v223_v10, %v244_v31  ;;  %v246_v38 = vsub.f32 %v224_v11, %v244_v31  ;;  %v247_v39 = vsub.f32 %v225_v12, %v244_v31 }
 0x162   :  { %v256_v44 = vmul.f32 %v248_v32, %v248_v32  ;;  %v257_v46 = vmul.f32 %v249_v33, %v249_v33  ;;  %v258_v48 = vmul.f32 %v250_v34, %v250_v34  ;;  %v259_v50 = vmul.f32 %v251_v35, %v251_v35 }
 0x163   :  { %v253_v40 = vmul.f32 %v245_v37, %v245_v37  ;;  %v254_v41 = vmul.f32 %v246_v38, %v246_v38  ;;  %v255_v42 = vmul.f32 %v247_v39, %v247_v39  ;;  %v260_v52 = vmul.f32 %v252_v36, %v252_v36 }
 0x165   :  { %v261_v43 = vadd.f32 %v254_v41, %v253_v40 }
 0x167   :  { %v262_v45 = vadd.f32 %v261_v43, %v255_v42 }
 0x169   :  { %v263_v47 = vadd.f32 %v262_v45, %v256_v44 }
 0x16b   :  { %v264_v49 = vadd.f32 %v263_v47, %v257_v46 }
 0x16d   :  { %v265_v51 = vadd.f32 %v264_v49, %v258_v48 }
 0x16f   :  { %v266_v53 = vadd.f32 %v265_v51, %v259_v50 }
 0x171   :  { %v267_v54 = vadd.f32 %v266_v53, %v260_v52 }
 0x173   :  { %v268_v55 = vrot.slane %v267_v54, 4 }
 0x175   :  { %v269_v56 = vadd.f32 %v268_v55, %v267_v54 }
 0x177   :  { %v270_v57 = vrot.slane %v269_v56, 2 }
 0x179   :  { %v271_v58 = vadd.f32 %v270_v57, %v269_v56 }
 0x17b   :  { %v272_v59 = vrot.slane %v271_v58, 1 }
 0x17d   :  { %v273_v60 = vadd.f32 %v272_v59, %v271_v58 }
 0x17f   :  { %v274_v61 = vmul.f32 0.015625, %v273_v60 }
 0x181   :  { %v275_v62 = vadd.f32 1e-05, %v274_v61 }
 0x183   :  { %606 = vrsqrt.f32 %v275_v62 }
 0x18d   :  { %v607_v63 = vpop.eup %606 }
 0x18e   :  { %v277_v0 = vmul.f32 %v607_v63, %v245_v37  ;;  %v278_v1 = vmul.f32 %v607_v63, %v246_v38  ;;  %v279_v2 = vmul.f32 %v607_v63, %v247_v39  ;;  %v280_v3 = vmul.f32 %v607_v63, %v248_v32 }
 0x18f   :  { %v281_v4 = vmul.f32 %v607_v63, %v249_v33  ;;  %v282_v5 = vmul.f32 %v607_v63, %v250_v34  ;;  %v283_v6 = vmul.f32 %v607_v63, %v251_v35  ;;  %v284_v7 = vmul.f32 %v607_v63, %v252_v36 }
 0x190   :  { %v285_v8 = vpack.c.bf16 %v278_v1, %v277_v0  ;;  %v286_v9 = vpack.c.bf16 %v280_v3, %v279_v2 }
 0x191   :  { %v287_v10 = vpack.c.bf16 %v282_v5, %v281_v4  ;;  %v288_v11 = vpack.c.bf16 %v284_v7, %v283_v6 }
 0x192   :  { %576 = vmatprep.mubr.bf16.mxu1 %v285_v8 }
 0x193   :  { %577 = vmatmul.mubr.bf16.vlgmr.msra.gmra.mrb[0].mxu1 %v286_v9 }
 0x194   :  { %580 = vmatprep.mubr.bf16.mxu1 %v287_v10 }
 0x19b   :  { %581 = vmatmul.mubr.bf16.gmra.mrb[4].mxu1 %v288_v11 }
 0x266   :  { %v578_v12 = vpop.f32.mrb[0].mxu1 }
 0x267   :  { %v387_v13 = vpop.f32.mrb[1].mxu1 }
 0x268   :  { %v579_v14 = vpop.f32.mrb[2].mxu1 }
 0x269   :  { %v390_v15 = vpop.f32.mrb[3].mxu1 }
 0x26a   :  { %v418_v16 = vadd.f32 %v390_v15, %v387_v13 }
 0x26c   :  { %v419_v17 = vadd.f32 %v578_v12, %v418_v16 }
 0x26e   :  { %v582_v18 = vpop.f32.mrb[4].mxu1  ;;  %v420_v19 = vadd.f32 %v579_v14, %v419_v17 }
 0x26f   :  { %v403_v20 = vpop.f32.mrb[5].mxu1 }
 0x270   :  { %v421_v21 = vadd.f32 %v420_v19, %v403_v20  ;;  %v583_v22 = vpop.f32.mrb[6].mxu1 }
 0x271   :  { %v406_v23 = vpop.f32.mrb[7].mxu1 }
 0x272   :  { %v422_v24 = vadd.f32 %v421_v21, %v406_v23 }
 0x274   :  { %v423_v25 = vadd.f32 %v582_v18, %v422_v24 }
 0x276   :  { %v424_v26 = vadd.f32 %v583_v22, %v423_v25 }
 0x278   :  { %v425_v27 = vrot.slane %v424_v26, 4 }
 0x27a   :  { %v426_v28 = vadd.f32 %v425_v27, %v424_v26 }
 0x27c   :  { %v427_v29 = vrot.slane %v426_v28, 2 }
 0x27e   :  { %v428_v30 = vadd.f32 %v427_v29, %v426_v28 }
 0x280   :  { %v429_v31 = vrot.slane %v428_v30, 1 }
 0x282   :  { %v430_v32 = vadd.f32 %v429_v31, %v428_v30 }
 0x284   :  { %v431_v33 = vmul.f32 0.015625, %v430_v32 }
 0x286   :  { %v432_v34 = vsub.f32 %v387_v13, %v431_v33  ;;  %v433_v35 = vsub.f32 %v390_v15, %v431_v33  ;;  %v434_v36 = vsub.f32 %v578_v12, %v431_v33  ;;  %v435_v37 = vsub.f32 %v579_v14, %v431_v33 }
 0x287   :  { %v436_v38 = vsub.f32 %v403_v20, %v431_v33  ;;  %v437_v39 = vsub.f32 %v406_v23, %v431_v33  ;;  %v438_v40 = vsub.f32 %v582_v18, %v431_v33  ;;  %v439_v41 = vsub.f32 %v583_v22, %v431_v33 }
 0x288   :  { %v440_v42 = vmul.f32 %v432_v34, %v432_v34  ;;  %v441_v43 = vmul.f32 %v433_v35, %v433_v35  ;;  %v442_v44 = vmul.f32 %v434_v36, %v434_v36  ;;  %v443_v46 = vmul.f32 %v435_v37, %v435_v37 }
 0x289   :  { %v444_v48 = vmul.f32 %v436_v38, %v436_v38  ;;  %v445_v50 = vmul.f32 %v437_v39, %v437_v39  ;;  %v446_v52 = vmul.f32 %v438_v40, %v438_v40  ;;  %v447_v54 = vmul.f32 %v439_v41, %v439_v41 }
 0x28a   :  { %v448_v45 = vadd.f32 %v441_v43, %v440_v42 }
 0x28c   :  { %v449_v47 = vadd.f32 %v448_v45, %v442_v44 }
 0x28e   :  { %v450_v49 = vadd.f32 %v449_v47, %v443_v46 }
 0x290   :  { %v451_v51 = vadd.f32 %v450_v49, %v444_v48 }
 0x292   :  { %v452_v53 = vadd.f32 %v451_v51, %v445_v50 }
 0x294   :  { %v453_v55 = vadd.f32 %v452_v53, %v446_v52 }
 0x296   :  { %v454_v56 = vadd.f32 %v453_v55, %v447_v54 }
 0x298   :  { %v455_v57 = vrot.slane %v454_v56, 4 }
 0x29a   :  { %v456_v58 = vadd.f32 %v455_v57, %v454_v56 }
 0x29c   :  { %v457_v59 = vrot.slane %v456_v58, 2 }
 0x29e   :  { %v458_v60 = vadd.f32 %v457_v59, %v456_v58 }
 0x2a0   :  { %v459_v61 = vrot.slane %v458_v60, 1 }
 0x2a2   :  { %v460_v62 = vadd.f32 %v459_v61, %v458_v60 }
 0x2a4   :  { %v461_v63 = vmul.f32 0.015625, %v460_v62 }
 0x2a6   :  { %v462_v0 = vadd.f32 1e-05, %v461_v63 }
 0x2a8   :  { %608 = vrsqrt.f32 %v462_v0 }
 0x2b2   :  { %v609_v1 = vpop.eup %608 }
 0x2b3   :  { %v464_v2 = vmul.f32 %v609_v1, %v432_v34  ;;  %v465_v3 = vmul.f32 %v609_v1, %v433_v35  ;;  %v466_v4 = vmul.f32 %v609_v1, %v434_v36  ;;  %v467_v5 = vmul.f32 %v609_v1, %v435_v37 }
 0x2b4   :  { %v468_v6 = vmul.f32 %v609_v1, %v436_v38  ;;  %v469_v7 = vmul.f32 %v609_v1, %v437_v39  ;;  %v470_v8 = vmul.f32 %v609_v1, %v438_v40  ;;  %v471_v9 = vmul.f32 %v609_v1, %v439_v41 }
 0x2b5   :  { %v472_v10 = vmax.f32 %v464_v2, 0.0  ;;  %v473_v11 = vmax.f32 %v465_v3, 0.0  ;;  %v474_v12 = vmax.f32 %v466_v4, 0.0  ;;  %v475_v13 = vmax.f32 %v467_v5, 0.0 }
 0x2b6   :  { %v476_v14 = vmax.f32 %v468_v6, 0.0  ;;  %v477_v15 = vmax.f32 %v469_v7, 0.0  ;;  %v478_v16 = vmax.f32 %v470_v8, 0.0  ;;  %v479_v17 = vmax.f32 %v471_v9, 0.0 }
 0x2b7   :  { %480 = vst [vmem:[%s717_s3] sm:$0xff] %v472_v10  ;;  %481 = vst [vmem:[%s717_s3 + $0x8] sm:$0xff] %v473_v11 }
 0x2b8   :  { %482 = vst [vmem:[%s717_s3 + $0x10] sm:$0xff] %v474_v12  ;;  %483 = vst [vmem:[%s717_s3 + $0x18] sm:$0xff] %v475_v13 }
 0x2b9   :  { %484 = vst [vmem:[%s717_s3 + $0x20] sm:$0xff] %v476_v14  ;;  %485 = vst [vmem:[%s717_s3 + $0x28] sm:$0xff] %v477_v15 }
 0x2ba   :  { %486 = vst [vmem:[%s717_s3 + $0x30] sm:$0xff] %v478_v16  ;;  %487 = vst [vmem:[%s717_s3 + $0x38] sm:$0xff] %v479_v17 }

// kernel: dsknet_forward.7
= control target key start
LH: loop header
LB: loop body
LE: loop exit
PB: predicated region body
PF: predicated region fallthrough
CT: control target
= control target key end

     0   :  { %v961_v0 = vmov 0.0   ;;  %vm962_vm0 = vmmov 0   ;;  %v963_v10 = vmov 0.0|0.0   ;;  %vm175_vm1 = vcmask 130048   ;;  %s1186_s1 = inlined_call_operand.vmem [shape: bf16[128,128], index: 1, kind: input, shape index: {}]   ;;  %s1187_s0 = inlined_call_operand.vmem [shape: bf16[16,128], index: 0, kind: input, shape index: {}]   ;;  %s1188_s5 = inlined_call_operand.vmem [shape: bf16[128,128], index: 5, kind: input, shape index: {}]   ;;  %s1189_s6 = inlined_call_operand.vmem [shape: bf16[128,128], index: 6, kind: input, shape index: {}]   ;;  %s1190_s2 = inlined_call_operand.vmem [shape: f32[4,16], index: 2, kind: input, shape index: {}]   ;;  %s1191_s8 = inlined_call_operand.vmem [shape: bf16[128,128], index: 8, kind: input, shape index: {}]   ;;  %s1192_s4 = inlined_call_operand.vmem [shape: f32[2,4], index: 4, kind: input, shape index: {}]   ;;  %s1193_s3 = inlined_call_operand.vmem [shape: f32[2,4], index: 3, kind: input, shape index: {}]   ;;  %s1194_s7 = inlined_call_operand.vmem [shape: f32[1,128], index: 7, kind: input, shape index: {}]   ;;  %s1195_s9 = inlined_call_operand.vmem [shape: f32[1,128], index: 9, kind: input, shape index: {}]   ;;  %s1196_s10 = inlined_call_operand.vmem [shape: f32[2,128], index: 10, kind: output, shape index: {}]  }
   0x1   :  { %823 = vmatprep.subr.bf16.mxu0 %v961_v0  ;;  %v926_v1 = vld [vmem:[%s1186_s1] sm:$0xff]   ;;  %839 = vmatprep.mubr.msk.bf16.mxu0 %vm962_vm0, %v961_v0  ;;  %v927_v2 = vld [vmem:[%s1186_s1 + $0x8] sm:$0xff]   ;;  %v928_v3 = vld [vmem:[%s1186_s1 + $0x10] sm:$0xff]   ;;  %vm464_vm2 = vcmask 1043456   ;;  %vm460_vm3 = vcmask 31744  }
   0x2   :  { %850 = vmatprep.subr.bf16.mxu1 %v961_v0  ;;  %866 = vmatprep.mubr.msk.bf16.mxu1 %vm962_vm0, %v961_v0  ;;  %v929_v4 = vld [vmem:[%s1186_s1 + $0x18] sm:$0xff]   ;;  %v930_v5 = vld [vmem:[%s1186_s1 + $0x20] sm:$0xff]   ;;  %v931_v6 = vld [vmem:[%s1186_s1 + $0x28] sm:$0xff]  }
   0x3   :  { %824 = vmatpush3.bf16.msra.mxu0 %v926_v1  ;;  %v932_v7 = vld [vmem:[%s1186_s1 + $0x30] sm:$0xff]   ;;  %v933_v8 = vld [vmem:[%s1186_s1 + $0x38] sm:$0xff]   ;;  %v934_v9 = vld [vmem:[%s1187_s0] sm:$0xff]  }
   0x4   :  { %825 = vmatprep.subr.bf16.mxu0 %v961_v0  ;;  %v935_v11 = vld [vmem:[%s1188_s5] sm:$0xff]   ;;  %v937_v12 = vld [vmem:[%s1188_s5 + $0x8] sm:$0xff]   ;;  %v939_v13 = vld [vmem:[%s1188_s5 + $0x10] sm:$0xff]  }
   0x5   :  { %851 = vmatpush3.bf16.msra.mxu1 %v935_v11  ;;  %v941_v14 = vld [vmem:[%s1188_s5 + $0x18] sm:$0xff]   ;;  %v943_v15 = vld [vmem:[%s1188_s5 + $0x20] sm:$0xff]   ;;  %v945_v16 = vld [vmem:[%s1188_s5 + $0x28] sm:$0xff]  }
   0x6   :  { %852 = vmatprep.subr.bf16.mxu1 %v961_v0  ;;  %v947_v17 = vld [vmem:[%s1188_s5 + $0x30] sm:$0xff]   ;;  %v174_v47 = vld [vmem:[%s1190_s2] sm:$0xf]  ;;  %v938_v49 = vld [vmem:[%s1189_s6 + $0x8] sm:$0xff]  }
   0x7   :  { %826 = vmatpush3.bf16.msra.mxu0 %v927_v2  ;;  %v936_v48 = vld [vmem:[%s1189_s6] sm:$0xff]   ;;  %v940_v50 = vld [vmem:[%s1189_s6 + $0x10] sm:$0xff]   ;;  %v942_v51 = vld [vmem:[%s1189_s6 + $0x18] sm:$0xff]  }
   0x8   :  { %827 = vmatprep.subr.bf16.mxu0 %v961_v0  ;;  %v944_v52 = vld [vmem:[%s1189_s6 + $0x20] sm:$0xff]   ;;  %v946_v53 = vld [vmem:[%s1189_s6 + $0x28] sm:$0xff]   ;;  %v948_v54 = vld [vmem:[%s1189_s6 + $0x30] sm:$0xff]  }
   0x9   :  { %853 = vmatpush3.bf16.msra.mxu1 %v937_v12  ;;  %v949_v55 = vld [vmem:[%s1188_s5 + $0x38] sm:$0xff]   ;;  %v459_v60 = vld [vmem:[%s1192_s4] sm:$0x3]  ;;  %v956_v12 = vld [vmem:[%s1191_s8 + $0x28] sm:$0xff]  }
   0xa   :  { %854 = vmatprep.subr.bf16.mxu1 %v961_v0  ;;  %v950_v56 = vld [vmem:[%s1189_s6 + $0x38] sm:$0xff]   ;;  %v955_v11 = vld [vmem:[%s1191_s8 + $0x20] sm:$0xff]  }
   0xb   :  { %828 = vmatpush3.bf16.msra.mxu0 %v928_v3 }
   0xc   :  { %829 = vmatprep.subr.bf16.mxu0 %v961_v0 }
   0xd   :  { %855 = vmatpush3.bf16.msra.mxu1 %v939_v13  ;;  %v957_v13 = vld [vmem:[%s1191_s8 + $0x30] sm:$0xff]  }
   0xe   :  { %856 = vmatprep.subr.bf16.mxu1 %v961_v0 }
   0xf   :  { %830 = vmatpush3.bf16.msra.mxu0 %v929_v4 }
  0x10   :  { %831 = vmatprep.subr.bf16.mxu0 %v961_v0 }
  0x11   :  { %857 = vmatpush3.bf16.msra.mxu1 %v941_v14  ;;  %v958_v14 = vld [vmem:[%s1191_s8 + $0x38] sm:$0xff]  }
  0x12   :  { %858 = vmatprep.subr.bf16.mxu1 %v961_v0 }
  0x13   :  { %832 = vmatpush3.bf16.msra.mxu0 %v930_v5 }
  0x14   :  { %833 = vmatprep.subr.bf16.mxu0 %v961_v0 }
  0x15   :  { %859 = vmatpush3.bf16.msra.mxu1 %v943_v15 }
  0x16   :  { %860 = vmatprep.subr.bf16.mxu1 %v961_v0 }
  0x17   :  { %834 = vmatpush3.bf16.msra.mxu0 %v931_v6  ;;  %v458_v6 = vld [vmem:[%s1193_s3] sm:$0x3] }
  0x18   :  { %835 = vmatprep.subr.bf16.mxu0 %v961_v0 }
  0x19   :  { %861 = vmatpush3.bf16.msra.mxu1 %v945_v16 }
  0x1a   :  { %862 = vmatprep.subr.bf16.mxu1 %v961_v0 }
  0x1b   :  { %836 = vmatpush3.bf16.msra.mxu0 %v932_v7  ;;  %v951_v7 = vld [vmem:[%s1191_s8] sm:$0xff]  }
  0x1c   :  { %837 = vmatprep.subr.bf16.mxu0 %v961_v0 }
  0x1d   :  { %863 = vmatpush3.bf16.msra.mxu1 %v947_v17 }
  0x1e   :  { %864 = vmatprep.subr.bf16.mxu1 %v961_v0 }
  0x1f   :  { %838 = vmatpush3.bf16.msra.mxu0 %v933_v8  ;;  %v952_v8 = vld [vmem:[%s1191_s8 + $0x8] sm:$0xff]  }
  0x20   :  { %920 = vmatprep.subr.bf16.mxu0 %v963_v10  ;;  %v954_v10 = vld [vmem:[%s1191_s8 + $0x18] sm:$0xff]  }
  0x21   :  { %865 = vmatpush3.bf16.msra.mxu1 %v949_v55 }
  0x22   :  { %840 = vmatmul.mubr.bf16.vlgmr.msra.gmra.mrb[0].mxu0 %v934_v9  ;;  %890 = vmatprep.subr.mxu1 %v961_v0  ;;  %v953_v9 = vld [vmem:[%s1191_s8 + $0x10] sm:$0xff]  }
  0x23   :  { %847 = vmatprep.mubr.msk.f32.mxu0 %vm962_vm0, %v961_v0 }
  0xf5   :  { %v142_v18 = vpop.f32.mrb[0].mxu0 }
  0xf6   :  { %v841_v19 = vpop.f32.mrb[1].mxu0 }
  0xf7   :  { %v145_v20 = vpop.f32.mrb[2].mxu0 }
  0xf8   :  { %v149_v21 = vadd.f32 %v145_v20, %v142_v18  ;;  %v842_v22 = vpop.f32.mrb[3].mxu0 }
  0xfa   :  { %v150_v23 = vrot.slane %v149_v21, 4 }
  0xfc   :  { %v151_v24 = vadd.f32 %v150_v23, %v149_v21 }
  0xfe   :  { %v152_v25 = vrot.slane %v151_v24, 2 }
 0x100   :  { %v153_v26 = vadd.f32 %v152_v25, %v151_v24 }
 0x102   :  { %v154_v27 = vrot.slane %v153_v26, 1 }
 0x104   :  { %v155_v28 = vadd.f32 %v154_v27, %v153_v26 }
 0x106   :  { %v157_v29 = vmul.f32 0.0625, %v155_v28 }
 0x108   :  { %v158_v30 = vsub.f32 %v142_v18, %v157_v29  ;;  %v159_v31 = vsub.f32 %v145_v20, %v157_v29  ;;  %v770_v18 = vld [vmem:[%s1194_s7] ss:$0 sm:$0xff] }
 0x10a   :  { %v160_v32 = vmul.f32 %v158_v30, %v158_v30  ;;  %v161_v33 = vmul.f32 %v159_v31, %v159_v31 }
 0x10c   :  { %v162_v34 = vadd.f32 %v161_v33, %v160_v32 }
 0x10e   :  { %v163_v35 = vrot.slane %v162_v34, 4 }
 0x110   :  { %v164_v36 = vadd.f32 %v163_v35, %v162_v34 }
 0x112   :  { %v165_v37 = vrot.slane %v164_v36, 2 }
 0x114   :  { %v166_v38 = vadd.f32 %v165_v37, %v164_v36 }
 0x116   :  { %v167_v39 = vrot.slane %v166_v38, 1 }
 0x118   :  { %v168_v40 = vadd.f32 %v167_v39, %v166_v38 }
 0x11a   :  { %v169_v41 = vmul.f32 0.0625, %v168_v40 }
 0x11c   :  { %v170_v42 = vadd.f32 1e-05, %v169_v41 }
 0x11e   :  { %959 = vrsqrt.f32 %v170_v42 }
 0x128   :  { %v960_v43 = vpop.eup %959 }
 0x129   :  { %v172_v44 = vmul.f32 %v960_v43, %v158_v30  ;;  %v173_v45 = vmul.f32 %v960_v43, %v159_v31 }
 0x12b   :  { %v921_v46 = vpack.c.bf16 %v173_v45, %v172_v44 }
 0x12d   :  { %922 = vmatpush3.bf16.msra.mxu0 %v921_v46 }
 0x12e   :  { %870 = vmatprep.subr.bf16.mxu0 %v961_v0 }
 0x130   :  { %848 = vmatmul.mubr.msk.f32.vlgmr.msra.gmra.mrb[4].mxu0 %vm175_vm1, %v174_v47 }
 0x131   :  { %871 = vmatpush3.bf16.msra.mxu0 %v936_v48  ;;  %886 = vmatprep.mubr.msk.bf16.mxu0 %vm962_vm0, %v961_v0 }
 0x132   :  { %872 = vmatprep.subr.bf16.mxu0 %v961_v0 }
 0x135   :  { %873 = vmatpush3.bf16.msra.mxu0 %v938_v49 }
 0x136   :  { %874 = vmatprep.subr.bf16.mxu0 %v961_v0 }
 0x139   :  { %875 = vmatpush3.bf16.msra.mxu0 %v940_v50 }
 0x13a   :  { %876 = vmatprep.subr.bf16.mxu0 %v961_v0 }
 0x13d   :  { %877 = vmatpush3.bf16.msra.mxu0 %v942_v51 }
 0x13e   :  { %878 = vmatprep.subr.bf16.mxu0 %v961_v0 }
 0x141   :  { %879 = vmatpush3.bf16.msra.mxu0 %v944_v52 }
 0x142   :  { %880 = vmatprep.subr.bf16.mxu0 %v961_v0 }
 0x145   :  { %881 = vmatpush3.bf16.msra.mxu0 %v946_v53 }
 0x146   :  { %882 = vmatprep.subr.bf16.mxu0 %v961_v0 }
 0x149   :  { %883 = vmatpush3.bf16.msra.mxu0 %v948_v54 }
 0x14a   :  { %884 = vmatprep.subr.bf16.mxu0 %v961_v0 }
 0x14d   :  { %885 = vmatpush3.bf16.msra.mxu0 %v950_v56 }
 0x203   :  { %v245_v57 = vpop.f32.mrb[4].mxu0 }
 0x204   :  { %v249_v58 = vpack.c.bf16 %v245_v57, %v245_v57  ;;  %v849_v59 = vpop.f32.mrb[5].mxu0 }
 0x206   :  { %867 = vmatmul.mubr.bf16.vlgmr.msra.gmra.mrb[0].mxu1 %v249_v58  ;;  %887 = vmatmul.mubr.bf16.vlgmr.msra.gmra.mrb[8].mxu0 %v249_v58 }
 0x207   :  { %892 = vmatprep.mubr.msk.f32.mxu1 %vm962_vm0, %v961_v0 }
 0x2d9   :  { %v348_v61 = vpop.f32.mrb[0].mxu1  ;;  %v452_v62 = vpop.f32.mrb[8].mxu0 }
 0x2da   :  { %v868_v63 = vpop.f32.mrb[1].mxu1  ;;  %v888_v1 = vpop.f32.mrb[9].mxu0  ;;  %891 = vmatpush3.msk.msra.mxu1 %vm464_vm2, %v452_v62 }
 0x2db   :  { %v351_v2 = vpop.f32.mrb[2].mxu1  ;;  %v455_v3 = vpop.f32.mrb[10].mxu0  ;;  %893 = vmatmul.mubr.msk.f32.vlgmr.msra.gmra.mrb[4].mxu1 %vm460_vm3, %v459_v60  ;;  %895 = vmatprep.subr.mxu1 %v961_v0 }
 0x2dc   :  { %v869_v4 = vpop.f32.mrb[3].mxu1  ;;  %v889_v5 = vpop.f32.mrb[11].mxu0  ;;  %896 = vmatpush3.msk.msra.mxu1 %vm464_vm2, %v348_v61  ;;  %897 = vmatprep.mubr.msk.f32.mxu1 %vm962_vm0, %v961_v0 }
 0x2dd   :  { %900 = vmatprep.subr.bf16.mxu1 %v961_v0 }
 0x2df   :  { %898 = vmatmul.mubr.msk.f32.vlgmr.msra.gmra.mrb[6].mxu1 %vm460_vm3, %v458_v6 }
 0x2e0   :  { %901 = vmatpush3.bf16.msra.mxu1 %v951_v7  ;;  %916 = vmatprep.mubr.msk.bf16.mxu1 %vm962_vm0, %v961_v0 }
 0x2e1   :  { %902 = vmatprep.subr.bf16.mxu1 %v961_v0 }
 0x2e4   :  { %903 = vmatpush3.bf16.msra.mxu1 %v952_v8 }
 0x2e5   :  { %904 = vmatprep.subr.bf16.mxu1 %v961_v0 }
 0x2e8   :  { %905 = vmatpush3.bf16.msra.mxu1 %v953_v9 }
 0x2e9   :  { %906 = vmatprep.subr.bf16.mxu1 %v961_v0 }
 0x2ec   :  { %907 = vmatpush3.bf16.msra.mxu1 %v954_v10 }
 0x2ed   :  { %908 = vmatprep.subr.bf16.mxu1 %v961_v0 }
 0x2f0   :  { %909 = vmatpush3.bf16.msra.mxu1 %v955_v11 }
 0x2f1   :  { %910 = vmatprep.subr.bf16.mxu1 %v961_v0 }
 0x2f4   :  { %911 = vmatpush3.bf16.msra.mxu1 %v956_v12 }
 0x2f5   :  { %912 = vmatprep.subr.bf16.mxu1 %v961_v0 }
 0x2f8   :  { %913 = vmatpush3.bf16.msra.mxu1 %v957_v13 }
 0x2f9   :  { %914 = vmatprep.subr.bf16.mxu1 %v961_v0  ;;  %v771_v0 = vld [vmem:[%s1195_s9] ss:$0 sm:$0xff] }
 0x2fc   :  { %915 = vmatpush3.bf16.msra.mxu1 %v958_v14 }
 0x3ae   :  { %v534_v15 = vpop.f32.mrb[4].mxu1 }
 0x3af   :  { %v894_v16 = vpop.f32.mrb[5].mxu1 }
 0x3b2   :  { %v610_v17 = vpop.f32.mrb[6].mxu1 }
 0x3b3   :  { %v611_v19 = vadd.f32 %v610_v17, %v534_v15  ;;  %v899_v20 = vpop.f32.mrb[7].mxu1 }
 0x3b5   :  { %v621_v21 = vadd.f32 %v770_v18, %v611_v19 }
 0x3b7   :  { %v622_v22 = vmax.f32 %v621_v21, 0.0 }
 0x3b9   :  { %v623_v23 = vpack.c.bf16 %v622_v22, %v622_v22 }
 0x3bb   :  { %917 = vmatmul.mubr.bf16.vlgmr.msra.gmra.mrb[8].mxu1 %v623_v23 }
 0x48e   :  { %v729_v24 = vpop.f32.mrb[8].mxu1 }
 0x48f   :  { %v730_v25 = vadd.f32 %v771_v0, %v729_v24  ;;  %v918_v26 = vpop.f32.mrb[9].mxu1 }
 0x490   :  { %v732_v27 = vpop.f32.mrb[10].mxu1 }
 0x491   :  { %735 = vst [vmem:[%s1196_s10] sm:$0x3] %v730_v25  ;;  %v919_v28 = vpop.f32.mrb[11].mxu1 }

// kernel: dsknet_forward.6
= control target key start
LH: loop header
LB: loop body
LE: loop exit
PB: predicated region body
PF: predicated region fallthrough
CT: control target
= control target key end

     0   :  { %v8227_v0 = vmov 0   ;;  %v6623_v5 = vmov 0.0   ;;  %vm6624_vm14 = vmmov 0   ;;  %s8215_s6 = inlined_call_operand.vmem [shape: f32[16,1], index: 6, kind: input, shape index: {}]   ;;  %s8216_s5 = inlined_call_operand.vmem [shape: f32[16,1], index: 5, kind: input, shape index: {}]   ;;  %s8217_s1 = inlined_call_operand.vmem [shape: bf16[27,128,128], index: 1, kind: input, shape index: {}]   ;;  %s8218_s0 = inlined_call_operand.vmem [shape: f32[48,128], index: 0, kind: input, shape index: {}]   ;;  %s8219_s2 = inlined_call_operand.vmem [shape: bf16[128,128], index: 2, kind: input, shape index: {}]   ;;  %s8220_s7 = inlined_call_operand.vmem [shape: f32[2,16], index: 7, kind: input, shape index: {}]   ;;  %s8221_s9 = inlined_call_operand.vmem [shape: f32[16,16], index: 9, kind: input, shape index: {}]   ;;  %s8222_s8 = inlined_call_operand.vmem [shape: f32[16,2], index: 8, kind: input, shape index: {}]   ;;  %s8223_s3 = inlined_call_operand.vmem [shape: bf16[128,384], index: 3, kind: input, shape index: {}]   ;;  %s8224_s4 = inlined_call_operand.vmem [shape: f32[1,384], index: 4, kind: input, shape index: {}]   ;;  %s8225_s10 = inlined_call_operand.vmem [shape: f32[8,16], index: 10, kind: input, shape index: {}]   ;;  %s8226_s11 = inlined_call_operand.vmem [shape: bf16[16,128], index: 11, kind: output, shape index: {}]  }
   0x1   :  { %6277 = vset.pattern.permute.xlu1 %v8227_v0  ;;  %6266 = vset.pattern.permute.xlu0 %v8227_v0  ;;  %v6692_v1 = vld [vmem:[%s8215_s6] sm:$0xff]  ;;  %v6697_v2 = vld [vmem:[%s8215_s6 + $0x8] sm:$0xff]  ;;  %v6334_v22 = vld [vmem:[%s8217_s1 + $0x50] sm:$0xff]  }
   0x2   :  { %v6702_v3 = vld [vmem:[%s8216_s5] sm:$0xff]  ;;  %vm51_vm0 = vcmp.ge.f32.partialorder %v6692_v1, 1.0  ;;  %vm52_vm1 = vcmp.ge.f32.partialorder %v6697_v2, 1.0  ;;  %v6709_v4 = vld [vmem:[%s8216_s5 + $0x8] sm:$0xff]  ;;  %vm300_vm3 = vcmp.lt.f32.partialorder %v6692_v1, 1.0  ;;  %5524 = vmatprep.subr.bf16.mxu1 %v6623_v5  ;;  %5584 = vmatprep.subr.bf16.mxu0 %v6623_v5  ;;  %vm301_vm5 = vcmp.lt.f32.partialorder %v6697_v2, 1.0 }
   0x3   :  { %vm45_vm2 = vcmp.ge.f32.partialorder %v6702_v3, 1.0  ;;  %v6330_v6 = vld [vmem:[%s8217_s1 + $0x40] sm:$0xff]   ;;  %v4542_v7 = vsel %vm51_vm0, 1.0, %v6623_v5  ;;  %v4543_v8 = vsel %vm52_vm1, 1.0, %v6623_v5  ;;  %vm46_vm4 = vcmp.ge.f32.partialorder %v6709_v4, 1.0  ;;  %v6332_v16 = vld [vmem:[%s8217_s1 + $0x48] sm:$0xff]   ;;  %5540 = vmatprep.mubr.msk.bf16.mxu1 %vm6624_vm14, %v6623_v5  ;;  %5600 = vmatprep.mubr.msk.bf16.mxu0 %vm6624_vm14, %v6623_v5 }
   0x4   :  { %v4540_v9 = vsel %vm45_vm2, 1.0, %v6623_v5  ;;  %v6267_v10 = vpack.i.bf16 %v4543_v8, %v4542_v7  ;;  %v4541_v11 = vsel %vm46_vm4, 1.0, %v6623_v5  ;;  %v4576_v12 = vsel %vm300_vm3, 1.0, %v6623_v5  ;;  %5525 = vmatpush3.bf16.msra.mxu1 %v6330_v6  ;;  %v6331_v13 = vld [vmem:[%s8217_s1 + $0xc0] sm:$0xff]   ;;  %v6333_v21 = vld [vmem:[%s8217_s1 + $0xc8] sm:$0xff]   ;;  %v6335_v24 = vld [vmem:[%s8217_s1 + $0xd0] sm:$0xff]  }
   0x5   :  { %v6278_v14 = vpack.i.bf16 %v4541_v11, %v4540_v9  ;;  %v4577_v15 = vsel %vm301_vm5, 1.0, %v6623_v5  ;;  %vm784_vm6 = vcmp.lt.f32.partialorder %v6702_v3, 3.0  ;;  %vm785_vm7 = vcmp.lt.f32.partialorder %v6709_v4, 3.0  ;;  %5526 = vmatprep.subr.bf16.mxu1 %v6623_v5  ;;  %5585 = vmatpush3.bf16.msra.mxu0 %v6331_v13  ;;  %v6336_v26 = vld [vmem:[%s8217_s1 + $0x58] sm:$0xff]   ;;  %v6338_v30 = vld [vmem:[%s8217_s1 + $0x60] sm:$0xff]   ;;  %v6340_v34 = vld [vmem:[%s8217_s1 + $0x68] sm:$0xff]  }
   0x6   :  { %6268 = vperm.xlu0 %6266, %v6267_v10   ;;  %v6272_v17 = vpack.i.bf16 %v4577_v15, %v4576_v12  ;;  %v4674_v18 = vsel %vm784_vm6, 1.0, %v6623_v5  ;;  %v4675_v19 = vsel %vm785_vm7, 1.0, %v6623_v5  ;;  %5586 = vmatprep.subr.bf16.mxu0 %v6623_v5  ;;  %v57_v25 = vmul.f32 %v4542_v7, %v4540_v9  ;;  %v6337_v28 = vld [vmem:[%s8217_s1 + $0xd8] sm:$0xff]   ;;  %v6339_v33 = vld [vmem:[%s8217_s1 + $0xe0] sm:$0xff]   ;;  %v6341_v40 = vld [vmem:[%s8217_s1 + $0xe8] sm:$0xff]  }
   0x7   :  { %6279 = vperm.xlu1 %6277, %v6278_v14   ;;  %v790_v20 = vmul.f32 %v4674_v18, %v4542_v7  ;;  %v791_v23 = vmul.f32 %v4675_v19, %v4543_v8  ;;  %v58_v27 = vmul.f32 %v4543_v8, %v4541_v11  ;;  %v6283_v29 = vpack.i.bf16 %v4675_v19, %v4674_v18  ;;  %v6342_v42 = vld [vmem:[%s8217_s1 + $0x70] sm:$0xff]   ;;  %v6344_v48 = vld [vmem:[%s8217_s1 + $0x78] sm:$0xff]  }
   0x8   :  { %5527 = vmatpush3.bf16.msra.mxu1 %v6332_v16  ;;  %v306_v31 = vmul.f32 %v4576_v12, %v4540_v9  ;;  %v307_v32 = vmul.f32 %v4577_v15, %v4541_v11  ;;  %vm1190_vm8 = vcmp.ge.f32.partialorder %v6702_v3, 2.0  ;;  %vm1191_vm9 = vcmp.ge.f32.partialorder %v6709_v4, 2.0  ;;  %v6343_v46 = vld [vmem:[%s8217_s1 + $0xf0] sm:$0xff]   ;;  %v6345_v52 = vld [vmem:[%s8217_s1 + $0xf8] sm:$0xff]  }
   0x9   :  { %5587 = vmatpush3.bf16.msra.mxu0 %v6333_v21  ;;  %5528 = vmatprep.subr.bf16.mxu1 %v6623_v5  ;;  %vm2328_vm10 = vcmp.ge.f32.partialorder %v6702_v3, 3.0  ;;  %vm2329_vm11 = vcmp.ge.f32.partialorder %v6709_v4, 3.0  ;;  %v1038_v35 = vmul.f32 %v4674_v18, %v4576_v12  ;;  %v4748_v36 = vsel %vm1190_vm8, 1.0, %v6623_v5  ;;  %v299_v21 = vld [vmem:[%s8218_s0 + $0x17] sm:$0xff] }
   0xa   :  { %6273 = vperm.xlu0 %6266, %v6272_v17   ;;  %5588 = vmatprep.subr.bf16.mxu0 %v6623_v5  ;;  %v1039_v37 = vmul.f32 %v4675_v19, %v4577_v15  ;;  %v4749_v38 = vsel %vm1191_vm9, 1.0, %v6623_v5  ;;  %v4972_v39 = vsel %vm2328_vm10, 1.0, %v6623_v5  ;;  %v4973_v41 = vsel %vm2329_vm11, 1.0, %v6623_v5 }
   0xb   :  { %794 = vperm.xlu1 %6277, %v790_v20   ;;  %vm1196_vm12 = vcmp.ge.f32.partialorder %v6692_v1, 2.0  ;;  %vm1197_vm13 = vcmp.ge.f32.partialorder %v6697_v2, 2.0  ;;  %v6288_v43 = vpack.i.bf16 %v4749_v38, %v4748_v36  ;;  %v6293_v44 = vpack.i.bf16 %v4973_v41, %v4972_v39  ;;  %v6830_v20 = vld [vmem:[%s8218_s0 + $0xf] sm:$0xff] }
   0xc   :  { %5529 = vmatpush3.bf16.msra.mxu1 %v6334_v22  ;;  %v4750_v45 = vsel %vm1196_vm12, 1.0, %v6623_v5  ;;  %v4751_v47 = vsel %vm1197_vm13, 1.0, %v6623_v5  ;;  %vm2334_vm15 = vcmp.ge.f32.partialorder %v6692_v1, 3.0  ;;  %vm2335_vm0 = vcmp.ge.f32.partialorder %v6697_v2, 3.0  ;;  %v6838_v22 = vld [vmem:[%s8218_s0 + $0xe] sm:$0xff] }
   0xd   :  { %5589 = vmatpush3.bf16.msra.mxu0 %v6335_v24  ;;  %5530 = vmatprep.subr.bf16.mxu1 %v6623_v5  ;;  %v1202_v49 = vmul.f32 %v4750_v45, %v4748_v36  ;;  %v1203_v50 = vmul.f32 %v4751_v47, %v4749_v38  ;;  %v4974_v51 = vsel %vm2334_vm15, 1.0, %v6623_v5  ;;  %v4975_v53 = vsel %vm2335_vm0, 1.0, %v6623_v5 }
   0xe   :  { %799 = vperm.xlu0 %6266, %v791_v23   ;;  %5590 = vmatprep.subr.bf16.mxu0 %v6623_v5  ;;  %vm1444_vm1 = vcmp.lt.f32.partialorder %v6692_v1, 0.0  ;;  %vm1445_vm2 = vcmp.lt.f32.partialorder %v6697_v2, 0.0  ;;  %v2340_v54 = vmul.f32 %v4974_v51, %v4972_v39  ;;  %v2341_v55 = vmul.f32 %v4975_v53, %v4973_v41  ;;  %v6843_v23 = vld [vmem:[%s8218_s0 + $0x16] sm:$0xff] }
   0xf   :  { %61 = vperm.xlu1 %6277, %v57_v25   ;;  %v4800_v56 = vsel %vm1444_vm1, 1.0, %v6623_v5  ;;  %v4801_v57 = vsel %vm1445_vm2, 1.0, %v6623_v5  ;;  %vm2580_vm3 = vcmp.lt.f32.partialorder %v6692_v1, -1.0  ;;  %vm2581_vm4 = vcmp.lt.f32.partialorder %v6697_v2, -1.0 }
  0x10   :  { %5531 = vmatpush3.bf16.msra.mxu1 %v6336_v26  ;;  %v1450_v58 = vmul.f32 %v4800_v56, %v4748_v36  ;;  %v1451_v59 = vmul.f32 %v4801_v57, %v4749_v38  ;;  %v5024_v60 = vsel %vm2580_vm3, 1.0, %v6623_v5  ;;  %v5025_v61 = vsel %vm2581_vm4, 1.0, %v6623_v5 }
  0x11   :  { %5591 = vmatpush3.bf16.msra.mxu0 %v6337_v28  ;;  %5532 = vmatprep.subr.bf16.mxu1 %v6623_v5  ;;  %v2586_v62 = vmul.f32 %v5024_v60, %v4972_v39  ;;  %v2587_v63 = vmul.f32 %v5025_v61, %v4973_v41  ;;  %v6298_v6 = vpack.i.bf16 %v4751_v47, %v4750_v45  ;;  %vm1923_vm5 = vcmp.lt.f32.partialorder %v6702_v3, 2.0 }
  0x12   :  { %66 = vperm.xlu0 %6266, %v58_v27   ;;  %5592 = vmatprep.subr.bf16.mxu0 %v6623_v5  ;;  %v6303_v1 = vpack.i.bf16 %v4975_v53, %v4974_v51  ;;  %vm1924_vm6 = vcmp.lt.f32.partialorder %v6709_v4, 2.0  ;;  %v4898_v2 = vsel %vm1923_vm5, 1.0, %v6623_v5  ;;  %vm3059_vm7 = vcmp.lt.f32.partialorder %v6702_v3, 1.0 }
  0x13   :  { %6284 = vperm.xlu1 %6277, %v6283_v29   ;;  %v6308_v7 = vpack.i.bf16 %v4801_v57, %v4800_v56  ;;  %v6313_v8 = vpack.i.bf16 %v5025_v61, %v5024_v60  ;;  %v4899_v9 = vsel %vm1924_vm6, 1.0, %v6623_v5  ;;  %v5122_v10 = vsel %vm3059_vm7, 1.0, %v6623_v5 }
  0x14   :  { %5533 = vmatpush3.bf16.msra.mxu1 %v6338_v30  ;;  %vm3060_vm8 = vcmp.lt.f32.partialorder %v6709_v4, 1.0  ;;  %v1929_v11 = vmul.f32 %v4898_v2, %v4750_v45  ;;  %v1930_v12 = vmul.f32 %v4899_v9, %v4751_v47  ;;  %v3065_v14 = vmul.f32 %v5122_v10, %v4974_v51 }
  0x15   :  { %5593 = vmatpush3.bf16.msra.mxu0 %v6339_v33  ;;  %5534 = vmatprep.subr.bf16.mxu1 %v6623_v5  ;;  %v5123_v13 = vsel %vm3060_vm8, 1.0, %v6623_v5  ;;  %v6318_v15 = vpack.i.bf16 %v4899_v9, %v4898_v2  ;;  %v2177_v17 = vmul.f32 %v4898_v2, %v4800_v56  ;;  %v2178_v18 = vmul.f32 %v4899_v9, %v4801_v57  ;;  %v6346_v33 = vld [vmem:[%s8217_s1] sm:$0xff]   ;;  %v6904_v56 = vld [vmem:[%s8218_s0 + $0x12] sm:$0xff] }
  0x16   :  { %310 = vperm.xlu0 %6266, %v306_v31   ;;  %5594 = vmatprep.subr.bf16.mxu0 %v6623_v5  ;;  %v3066_v3 = vmul.f32 %v5123_v13, %v4975_v53  ;;  %v6323_v16 = vpack.i.bf16 %v5123_v13, %v5122_v10  ;;  %v3311_v4 = vmul.f32 %v5122_v10, %v5024_v60  ;;  %v6352_v57 = vld [vmem:[%s8217_s1 + $0x18] sm:$0xff]   ;;  %v6355_v9 = vld [vmem:[%s8217_s1 + $0x120] sm:$0xff]   ;;  %vm3465_vm9 = vcmask 130048  }
  0x17   :  { %315 = vperm.xlu1 %6277, %v307_v32   ;;  %v3312_v19 = vmul.f32 %v5123_v13, %v5025_v61  ;;  %v6849_v32 = vld [vmem:[%s8218_s0 + $0x11] sm:$0xff]  ;;  %v6935_v2 = vld [vmem:[%s8218_s0 + $0x1b] sm:$0xff]  ;;  %vm3644_vm10 = vcmask 1041408  }
  0x18   :  { %5535 = vmatpush3.bf16.msra.mxu1 %v6340_v34  ;;  %v6347_v34 = vld [vmem:[%s8217_s1 + $0x100] sm:$0xff]   ;;  %v6917_v60 = vld [vmem:[%s8218_s0 + $0x13] sm:$0xff] }
  0x19   :  { %5536 = vmatprep.subr.bf16.mxu1 %v6623_v5  ;;  %5595 = vmatpush3.bf16.msra.mxu0 %v6341_v40 }
  0x1a   :  { %1042 = vperm.xlu0 %6266, %v1038_v35   ;;  %5596 = vmatprep.subr.bf16.mxu0 %v6623_v5 }
  0x1b   :  { %1047 = vperm.xlu1 %6277, %v1039_v37  }
  0x1c   :  { %5537 = vmatpush3.bf16.msra.mxu1 %v6342_v42  ;;  %v6867_v42 = vld [vmem:[%s8218_s0 + $0x19] sm:$0xff] }
  0x1d   :  { %5538 = vmatprep.subr.bf16.mxu1 %v6623_v5  ;;  %5597 = vmatpush3.bf16.msra.mxu0 %v6343_v46 }
  0x1e   :  { %6289 = vperm.xlu0 %6266, %v6288_v43   ;;  %5598 = vmatprep.subr.bf16.mxu0 %v6623_v5  ;;  %v6348_v43 = vld [vmem:[%s8217_s1 + $0x8] sm:$0xff]  }
  0x1f   :  { %6294 = vperm.xlu1 %6277, %v6293_v44   ;;  %v6349_v44 = vld [vmem:[%s8217_s1 + $0x108] sm:$0xff]  }
  0x20   :  { %5539 = vmatpush3.bf16.msra.mxu1 %v6344_v48 }
  0x21   :  { %5544 = vmatprep.subr.bf16.mxu1 %v6623_v5  ;;  %5599 = vmatpush3.bf16.msra.mxu0 %v6345_v52 }
  0x22   :  { %1206 = vperm.xlu0 %6266, %v1202_v49   ;;  %5604 = vmatprep.subr.bf16.mxu0 %v6623_v5  ;;  %v6350_v49 = vld [vmem:[%s8217_s1 + $0x10] sm:$0xff]  }
  0x23   :  { %1211 = vperm.xlu1 %6277, %v1203_v50   ;;  %v6351_v50 = vld [vmem:[%s8217_s1 + $0x110] sm:$0xff]  }
  0x26   :  { %2344 = vperm.xlu0 %6266, %v2340_v54  }
  0x27   :  { %2349 = vperm.xlu1 %6277, %v2341_v55   ;;  %v6353_v55 = vld [vmem:[%s8217_s1 + $0x118] sm:$0xff]  }
  0x2a   :  { %1454 = vperm.xlu0 %6266, %v1450_v58   ;;  %v6912_v58 = vld [vmem:[%s8218_s0 + $0x1a] sm:$0xff] }
  0x2b   :  { %1459 = vperm.xlu1 %6277, %v1451_v59  }
  0x2e   :  { %2590 = vperm.xlu0 %6266, %v2586_v62  }
  0x2f   :  { %2595 = vperm.xlu1 %6277, %v2587_v63  }
  0x32   :  { %6299 = vperm.xlu0 %6266, %v6298_v6  }
  0x33   :  { %6304 = vperm.xlu1 %6277, %v6303_v1  }
  0x36   :  { %6309 = vperm.xlu0 %6266, %v6308_v7  }
  0x37   :  { %6314 = vperm.xlu1 %6277, %v6313_v8   ;;  %v6354_v8 = vld [vmem:[%s8217_s1 + $0x20] sm:$0xff]  }
  0x3a   :  { %1933 = vperm.xlu0 %6266, %v1929_v11  }
  0x3b   :  { %1938 = vperm.xlu1 %6277, %v1930_v12  }
  0x3e   :  { %3069 = vperm.xlu0 %6266, %v3065_v14  }
  0x3f   :  { %3074 = vperm.xlu1 %6277, %v3066_v3   ;;  %v6356_v3 = vld [vmem:[%s8217_s1 + $0x28] sm:$0xff]  }
  0x42   :  { %6319 = vperm.xlu0 %6266, %v6318_v15   ;;  %v6357_v15 = vld [vmem:[%s8217_s1 + $0x128] sm:$0xff]  }
  0x43   :  { %6324 = vperm.xlu1 %6277, %v6323_v16  }
  0x46   :  { %2181 = vperm.xlu0 %6266, %v2177_v17  }
  0x47   :  { %2186 = vperm.xlu1 %6277, %v2178_v18  }
  0x4a   :  { %3315 = vperm.xlu0 %6266, %v3311_v4  }
  0x4b   :  { %3320 = vperm.xlu1 %6277, %v3312_v19  }
  0x85   :  { %v6269_v24 = vpop.permute.xlu0 %6268 }
  0x86   :  { %v6271_v25 = vunpack.i.h.bf16 %v6269_v24  ;;  %v6270_v26 = vunpack.i.l.bf16 %v6269_v24  ;;  %v6280_v27 = vpop.permute.xlu1 %6279  ;;  %v6358_v24 = vld [vmem:[%s8217_s1 + $0x30] sm:$0xff]  }
  0x87   :  { %v6282_v28 = vunpack.i.h.bf16 %v6280_v27  ;;  %v6281_v29 = vunpack.i.l.bf16 %v6280_v27 }
  0x88   :  { %v439_v30 = vmul.f32 %v6270_v26, %v6830_v20  ;;  %v440_v31 = vmul.f32 %v6271_v25, %v299_v21  ;;  %v6359_v25 = vld [vmem:[%s8217_s1 + $0x130] sm:$0xff]  }
  0x89   :  { %v100_v35 = vmul.f32 %v6281_v29, %v6838_v22  ;;  %v101_v36 = vmul.f32 %v6282_v28, %v6843_v23  ;;  %v6859_v37 = vpop.permute.xlu0 %6273  ;;  %v2326_v29 = vld [vmem:[%s8218_s0 + $0x7] sm:$0xff] }
  0x8a   :  { %v795_v38 = vpop.permute.xlu1 %794  ;;  %v441_v39 = vpack.c.bf16 %v440_v31, %v439_v30  ;;  %v6992_v30 = vld [vmem:[%s8218_s0 + $0xd] sm:$0xff]  ;;  %v6997_v31 = vld [vmem:[%s8218_s0 + $0x15] sm:$0xff] }
  0x8b   :  { %v6862_v40 = vmul.f32 %v795_v38, %v6849_v32  ;;  %v102_v41 = vpack.c.bf16 %v101_v36, %v100_v35  ;;  %v6361_v35 = vld [vmem:[%s8217_s1 + $0x138] sm:$0xff]   ;;  %v550_v36 = vld [vmem:[%s8218_s0 + $0x10] sm:$0xff] }
  0x8c   :  { %5601 = vmatmul.mubr.bf16.vlgmr.msra.gmra.mrb[0].mxu0 %v441_v39  ;;  %v6360_v38 = vld [vmem:[%s8217_s1 + $0x38] sm:$0xff]  }
  0x8d   :  { %5541 = vmatmul.mubr.bf16.vlgmr.msra.gmra.mrb[0].mxu1 %v102_v41  ;;  %5605 = vmatpush3.bf16.msra.mxu0 %v6347_v34  ;;  %v800_v45 = vpop.permute.xlu0 %799  ;;  %v551_v39 = vld [vmem:[%s8218_s0 + $0x18] sm:$0xff] }
  0x8e   :  { %5545 = vmatpush3.bf16.msra.mxu1 %v6346_v33  ;;  %v6876_v46 = vmul.f32 %v800_v45, %v6867_v42  ;;  %v6878_v47 = vpop.permute.xlu1 %61  ;;  %5606 = vmatprep.subr.bf16.mxu0 %v6623_v5 }
  0x8f   :  { %5546 = vmatprep.subr.bf16.mxu1 %v6623_v5  ;;  %5560 = vmatprep.mubr.msk.bf16.mxu1 %vm6624_vm14, %v6623_v5  ;;  %v69_v45 = vmul.f32 %v6878_v47, %v6992_v30 }
  0x90   :  { %v804_v48 = vpack.c.bf16 %v6876_v46, %v6862_v40  ;;  %5620 = vmatprep.mubr.msk.bf16.mxu0 %vm6624_vm14, %v6623_v5  ;;  %v6398_v40 = vld [vmem:[%s8217_s1 + $0x1d0] sm:$0xff]  }
  0x91   :  { %5607 = vmatpush3.bf16.msra.mxu0 %v6349_v44  ;;  %v6894_v51 = vpop.permute.xlu0 %66  ;;  %v6399_v46 = vld [vmem:[%s8217_s1 + $0x250] sm:$0xff]  }
  0x92   :  { %5547 = vmatpush3.bf16.msra.mxu1 %v6348_v43  ;;  %v6285_v52 = vpop.permute.xlu1 %6284  ;;  %5608 = vmatprep.subr.bf16.mxu0 %v6623_v5 }
  0x93   :  { %v6287_v53 = vunpack.i.h.bf16 %v6285_v52  ;;  %v6286_v54 = vunpack.i.l.bf16 %v6285_v52  ;;  %5548 = vmatprep.subr.bf16.mxu1 %v6623_v5  ;;  %v6362_v52 = vld [vmem:[%s8217_s1 + $0x80] sm:$0xff]  }
  0x95   :  { %5609 = vmatpush3.bf16.msra.mxu0 %v6351_v50  ;;  %v311_v59 = vpop.permute.xlu0 %310  ;;  %v6920_v61 = vmul.f32 %v6286_v54, %v6904_v56  ;;  %v6923_v62 = vmul.f32 %v6287_v53, %v6912_v58  ;;  %v7031_v53 = vpack.c.bf16 %v551_v39, %v550_v36  ;;  %v6363_v54 = vld [vmem:[%s8217_s1 + $0x140] sm:$0xff]  }
  0x96   :  { %5549 = vmatpush3.bf16.msra.mxu1 %v6350_v49  ;;  %v6926_v63 = vmul.f32 %v311_v59, %v6830_v20  ;;  %v316_v6 = vpop.permute.xlu1 %315  ;;  %5610 = vmatprep.subr.bf16.mxu0 %v6623_v5  ;;  %v70_v49 = vmul.f32 %v6894_v51, %v6997_v31 }
  0x97   :  { %v6929_v1 = vmul.f32 %v316_v6, %v299_v21  ;;  %5550 = vmatprep.subr.bf16.mxu1 %v6623_v5  ;;  %v927_v7 = vpack.c.bf16 %v6923_v62, %v6920_v61  ;;  %v6970_v21 = vld [vmem:[%s8218_s0 + $0xa] sm:$0xff] }
  0x98   :  { %v6364_v6 = vld [vmem:[%s8217_s1 + $0x88] sm:$0xff]   ;;  %v6414_v61 = vld [vmem:[%s8217_s1 + $0x210] sm:$0xff]  }
  0x99   :  { %v320_v10 = vpack.c.bf16 %v6929_v1, %v6926_v63  ;;  %5611 = vmatpush3.bf16.msra.mxu0 %v6353_v55  ;;  %v1043_v11 = vpop.permute.xlu0 %1042  ;;  %v6382_v63 = vld [vmem:[%s8217_s1 + $0x190] sm:$0xff]  }
  0x9a   :  { %5551 = vmatpush3.bf16.msra.mxu1 %v6352_v57  ;;  %v6948_v12 = vmul.f32 %v1043_v11, %v6917_v60  ;;  %v1048_v13 = vpop.permute.xlu1 %1047  ;;  %5612 = vmatprep.subr.bf16.mxu0 %v6623_v5  ;;  %v71_v57 = vpack.c.bf16 %v70_v49, %v69_v45  ;;  %v6369_v45 = vld [vmem:[%s8217_s1 + $0x158] sm:$0xff]   ;;  %v6383_v1 = vld [vmem:[%s8217_s1 + $0x290] sm:$0xff]  }
  0x9b   :  { %v6952_v14 = vmul.f32 %v1048_v13, %v6935_v2  ;;  %5552 = vmatprep.subr.bf16.mxu1 %v6623_v5  ;;  %v6415_v62 = vld [vmem:[%s8217_s1 + $0x2d0] sm:$0xff]  }
  0x9d   :  { %v1052_v16 = vpack.c.bf16 %v6952_v14, %v6948_v12  ;;  %5613 = vmatpush3.bf16.msra.mxu0 %v6355_v9  ;;  %v6963_v17 = vpop.permute.xlu0 %6289  ;;  %v6431_v12 = vld [vmem:[%s8217_s1 + $0x4d0] sm:$0xff]  }
  0x9e   :  { %5553 = vmatpush3.bf16.msra.mxu1 %v6354_v8  ;;  %v6295_v18 = vpop.permute.xlu1 %6294  ;;  %5614 = vmatprep.subr.bf16.mxu0 %v6623_v5  ;;  %v6365_v8 = vld [vmem:[%s8217_s1 + $0x148] sm:$0xff]   ;;  %v6430_v14 = vld [vmem:[%s8217_s1 + $0x310] sm:$0xff]  }
  0x9f   :  { %v6297_v4 = vunpack.i.h.bf16 %v6295_v18  ;;  %v6296_v19 = vunpack.i.l.bf16 %v6295_v18  ;;  %5554 = vmatprep.subr.bf16.mxu1 %v6623_v5  ;;  %v6366_v18 = vld [vmem:[%s8217_s1 + $0x90] sm:$0xff]  }
  0xa1   :  { %5615 = vmatpush3.bf16.msra.mxu0 %v6357_v15  ;;  %v6978_v26 = vpop.permute.xlu0 %1206  ;;  %v6981_v27 = vmul.f32 %v6296_v19, %v6970_v21  ;;  %v6984_v28 = vmul.f32 %v6297_v4, %v6904_v56  ;;  %v6367_v4 = vld [vmem:[%s8217_s1 + $0x150] sm:$0xff]  }
  0xa2   :  { %5555 = vmatpush3.bf16.msra.mxu1 %v6356_v3  ;;  %v6999_v33 = vpop.permute.xlu1 %1211  ;;  %5616 = vmatprep.subr.bf16.mxu0 %v6623_v5 }
  0xa3   :  { %v2384_v34 = vpack.c.bf16 %v6984_v28, %v6981_v27  ;;  %5556 = vmatprep.subr.bf16.mxu1 %v6623_v5  ;;  %v6447_v27 = vld [vmem:[%s8217_s1 + $0x490] sm:$0xff]  }
  0xa4   :  { %v6446_v28 = vld [vmem:[%s8217_s1 + $0x350] sm:$0xff]  }
  0xa5   :  { %5617 = vmatpush3.bf16.msra.mxu0 %v6359_v25  ;;  %v2345_v41 = vpop.permute.xlu0 %2344 }
  0xa6   :  { %5557 = vmatpush3.bf16.msra.mxu1 %v6358_v24  ;;  %v7017_v43 = vmul.f32 %v2345_v41, %v2326_v29  ;;  %v2350_v44 = vpop.permute.xlu1 %2349  ;;  %5618 = vmatprep.subr.bf16.mxu0 %v6623_v5 }
  0xa7   :  { %v7025_v50 = vmul.f32 %v2350_v44, %v6830_v20  ;;  %5558 = vmatprep.subr.bf16.mxu1 %v6623_v5  ;;  %v6368_v44 = vld [vmem:[%s8217_s1 + $0x98] sm:$0xff]  }
  0xa9   :  { %v2354_v47 = vpack.c.bf16 %v7025_v50, %v7017_v43  ;;  %5619 = vmatpush3.bf16.msra.mxu0 %v6361_v35  ;;  %v1455_v51 = vpop.permute.xlu0 %1454  ;;  %v6463_v43 = vld [vmem:[%s8217_s1 + $0x510] sm:$0xff]  }
  0xaa   :  { %5559 = vmatpush3.bf16.msra.mxu1 %v6360_v38  ;;  %v7039_v20 = vmul.f32 %v1455_v51, %v6838_v22  ;;  %v1460_v55 = vpop.permute.xlu1 %1459  ;;  %5624 = vmatprep.subr.bf16.mxu0 %v6623_v5  ;;  %v6462_v50 = vld [vmem:[%s8217_s1 + $0x390] sm:$0xff]  }
  0xab   :  { %v7043_v59 = vmul.f32 %v1460_v55, %v6843_v23  ;;  %5564 = vmatprep.subr.bf16.mxu1 %v6623_v5 }
  0xac   :  { %5621 = vmatmul.mubr.bf16.vlgmr.msra.gmra.mrb[0].mxu0 %v7031_v53 }
  0xad   :  { %v1464_v9 = vpack.c.bf16 %v7043_v59, %v7039_v20  ;;  %5561 = vmatmul.mubr.bf16.vlgmr.msra.gmra.mrb[0].mxu1 %v71_v57  ;;  %5625 = vmatpush3.bf16.msra.mxu0 %v6363_v54  ;;  %v2591_v11 = vpop.permute.xlu0 %2590  ;;  %v6432_v20 = vld [vmem:[%s8217_s1 + $0x318] sm:$0xff]   ;;  %v6435_v59 = vld [vmem:[%s8217_s1 + $0x4e0] sm:$0xff]  }
  0xae   :  { %5565 = vmatpush3.bf16.msra.mxu1 %v6362_v52  ;;  %v7056_v13 = vmul.f32 %v2591_v11, %v6992_v30  ;;  %v2596_v3 = vpop.permute.xlu1 %2595  ;;  %5626 = vmatprep.subr.bf16.mxu0 %v6623_v5 }
  0xaf   :  { %v7060_v15 = vmul.f32 %v2596_v3, %v6997_v31  ;;  %5566 = vmatprep.subr.bf16.mxu1 %v6623_v5  ;;  %5580 = vmatprep.mubr.msk.bf16.mxu1 %vm6624_vm14, %v6623_v5  ;;  %v6370_v3 = vld [vmem:[%s8217_s1 + $0xa0] sm:$0xff]  }
  0xb0   :  { %5640 = vmatprep.mubr.msk.bf16.mxu0 %vm6624_vm14, %v6623_v5 }
  0xb1   :  { %5627 = vmatpush3.bf16.msra.mxu0 %v6365_v8  ;;  %v6300_v24 = vpop.permute.xlu0 %6299 }
  0xb2   :  { %5567 = vmatpush3.bf16.msra.mxu1 %v6364_v6  ;;  %v6302_v25 = vunpack.i.h.bf16 %v6300_v24  ;;  %v6301_v29 = vunpack.i.l.bf16 %v6300_v24  ;;  %v6305_v35 = vpop.permute.xlu1 %6304  ;;  %5628 = vmatprep.subr.bf16.mxu0 %v6623_v5 }
  0xb3   :  { %v6307_v36 = vunpack.i.h.bf16 %v6305_v35  ;;  %v6306_v38 = vunpack.i.l.bf16 %v6305_v35  ;;  %5568 = vmatprep.subr.bf16.mxu1 %v6623_v5 }
  0xb4   :  { %v7078_v39 = vmul.f32 %v6301_v29, %v6838_v22  ;;  %v7081_v41 = vmul.f32 %v6302_v25, %v6843_v23 }
  0xb5   :  { %v7090_v49 = vmul.f32 %v6306_v38, %v6992_v30  ;;  %v7093_v52 = vmul.f32 %v6307_v36, %v6997_v31  ;;  %5629 = vmatpush3.bf16.msra.mxu0 %v6367_v4  ;;  %v6310_v22 = vpop.permute.xlu0 %6309  ;;  %v7164_v38 = vld [vmem:[%s8218_s0 + $0x14] sm:$0xff] }
  0xb6   :  { %v1585_v54 = vpack.c.bf16 %v7081_v41, %v7078_v39  ;;  %5569 = vmatpush3.bf16.msra.mxu1 %v6366_v18  ;;  %v6312_v51 = vunpack.i.h.bf16 %v6310_v22  ;;  %v6311_v55 = vunpack.i.l.bf16 %v6310_v22  ;;  %v6315_v57 = vpop.permute.xlu1 %6314  ;;  %5630 = vmatprep.subr.bf16.mxu0 %v6623_v5  ;;  %v6371_v18 = vld [vmem:[%s8217_s1 + $0x160] sm:$0xff]   ;;  %v6448_v39 = vld [vmem:[%s8217_s1 + $0x358] sm:$0xff]  }
  0xb7   :  { %v6317_v8 = vunpack.i.h.bf16 %v6315_v57  ;;  %v6316_v30 = vunpack.i.l.bf16 %v6315_v57  ;;  %5570 = vmatprep.subr.bf16.mxu1 %v6623_v5  ;;  %v6451_v41 = vld [vmem:[%s8217_s1 + $0x4a0] sm:$0xff]  }
  0xb8   :  { %v7102_v31 = vmul.f32 %v6311_v55, %v6904_v56  ;;  %v7105_v11 = vmul.f32 %v6312_v51, %v6912_v58 }
  0xb9   :  { %v7114_v4 = vmul.f32 %v6316_v30, %v6917_v60  ;;  %v7117_v24 = vmul.f32 %v6317_v8, %v6935_v2  ;;  %5631 = vmatpush3.bf16.msra.mxu0 %v6369_v45  ;;  %v1934_v25 = vpop.permute.xlu0 %1933  ;;  %v6373_v45 = vld [vmem:[%s8217_s1 + $0x168] sm:$0xff]   ;;  %v2053_v30 = vld [vmem:[%s8218_s0 + $0x1c] sm:$0xff] }
  0xba   :  { %5571 = vmatpush3.bf16.msra.mxu1 %v6368_v44  ;;  %v7120_v29 = vmul.f32 %v1934_v25, %v6904_v56  ;;  %v1939_v35 = vpop.permute.xlu1 %1938  ;;  %5632 = vmatprep.subr.bf16.mxu0 %v6623_v5  ;;  %v6372_v44 = vld [vmem:[%s8217_s1 + $0xa8] sm:$0xff]  }
  0xbb   :  { %v7128_v22 = vmul.f32 %v1939_v35, %v6912_v58  ;;  %5572 = vmatprep.subr.bf16.mxu1 %v6623_v5  ;;  %v6276_v35 = vunpack.i.h.bf16 %v6859_v37 }
  0xbd   :  { %5633 = vmatpush3.bf16.msra.mxu0 %v6371_v18  ;;  %v3070_v55 = vpop.permute.xlu0 %3069  ;;  %v6374_v18 = vld [vmem:[%s8217_s1 + $0xb0] sm:$0xff]  }
  0xbe   :  { %5573 = vmatpush3.bf16.msra.mxu1 %v6370_v3  ;;  %v7140_v57 = vmul.f32 %v3070_v55, %v6917_v60  ;;  %v3075_v58 = vpop.permute.xlu1 %3074  ;;  %5634 = vmatprep.subr.bf16.mxu0 %v6623_v5  ;;  %v6375_v60 = vld [vmem:[%s8217_s1 + $0x170] sm:$0xff]   ;;  %v6275_v3 = vunpack.i.l.bf16 %v6859_v37  ;;  %v2176_v37 = vld [vmem:[%s8218_s0 + $0x1e] sm:$0xff] }
  0xbf   :  { %v7144_v8 = vmul.f32 %v3075_v58, %v6935_v2  ;;  %5574 = vmatprep.subr.bf16.mxu1 %v6623_v5 }
  0xc1   :  { %5635 = vmatpush3.bf16.msra.mxu0 %v6373_v45  ;;  %v6320_v25 = vpop.permute.xlu0 %6319 }
  0xc2   :  { %5575 = vmatpush3.bf16.msra.mxu1 %v6372_v44  ;;  %v6322_v55 = vunpack.i.h.bf16 %v6320_v25  ;;  %v6321_v58 = vunpack.i.l.bf16 %v6320_v25  ;;  %v6325_v0 = vpop.permute.xlu1 %6324  ;;  %5636 = vmatprep.subr.bf16.mxu0 %v6623_v5  ;;  %v673_v44 = vmul.f32 %v6275_v3, %v6849_v32 }
  0xc3   :  { %v6327_v51 = vunpack.i.h.bf16 %v6325_v0  ;;  %v6326_v6 = vunpack.i.l.bf16 %v6325_v0  ;;  %5576 = vmatprep.subr.bf16.mxu1 %v6623_v5  ;;  %v6377_v0 = vld [vmem:[%s8217_s1 + $0x178] sm:$0xff]  }
  0xc4   :  { %v7168_v45 = vmul.f32 %v6321_v58, %v7164_v38  ;;  %v7170_v2 = vmul.f32 %v6322_v55, %v2053_v30  ;;  %v674_v30 = vmul.f32 %v6276_v35, %v6867_v42  ;;  %v6378_v35 = vld [vmem:[%s8217_s1 + $0x180] sm:$0xff]  }
  0xc5   :  { %5637 = vmatpush3.bf16.msra.mxu0 %v6375_v60  ;;  %v2182_v25 = vpop.permute.xlu0 %2181  ;;  %v7177_v36 = vmul.f32 %v6326_v6, %v6843_v23  ;;  %v7179_v19 = vmul.f32 %v6327_v51, %v2176_v37  ;;  %v6376_v6 = vld [vmem:[%s8217_s1 + $0xb8] sm:$0xff]   ;;  %v6379_v60 = vld [vmem:[%s8217_s1 + $0x280] sm:$0xff]  }
  0xc6   :  { %5577 = vmatpush3.bf16.msra.mxu1 %v6374_v18  ;;  %v7188_v58 = vmul.f32 %v2182_v25, %v6843_v23  ;;  %v2187_v32 = vpop.permute.xlu1 %2186  ;;  %5638 = vmatprep.subr.bf16.mxu0 %v6623_v5  ;;  %v3310_v18 = vld [vmem:[%s8218_s0 + $0x21] sm:$0xff] }
  0xc7   :  { %v7194_v51 = vmul.f32 %v2187_v32, %v2176_v37  ;;  %5578 = vmatprep.subr.bf16.mxu1 %v6623_v5  ;;  %v675_v37 = vpack.c.bf16 %v674_v30, %v673_v44  ;;  %v6381_v44 = vld [vmem:[%s8217_s1 + $0x288] sm:$0xff]   ;;  %v6385_v30 = vld [vmem:[%s8217_s1 + $0x298] sm:$0xff]  }
  0xc9   :  { %v2191_v23 = vpack.c.bf16 %v7194_v51, %v7188_v58  ;;  %5639 = vmatpush3.bf16.msra.mxu0 %v6377_v0  ;;  %v3316_v3 = vpop.permute.xlu0 %3315  ;;  %v6526_v58 = vld [vmem:[%s8217_s1 + $0x620] sm:$0xff]   ;;  %v6527_v51 = vld [vmem:[%s8217_s1 + $0x628] sm:$0xff]  }
  0xca   :  { %5579 = vmatpush3.bf16.msra.mxu1 %v6376_v6  ;;  %v7208_v25 = vmul.f32 %v3316_v3, %v6867_v42  ;;  %v3321_v32 = vpop.permute.xlu1 %3320  ;;  %5644 = vmatprep.subr.bf16.mxu0 %v6623_v5  ;;  %v6380_v42 = vld [vmem:[%s8217_s1 + $0x188] sm:$0xff]   ;;  %v6386_v6 = vld [vmem:[%s8217_s1 + $0x1a0] sm:$0xff]  }
  0xcb   :  { %v7214_v55 = vmul.f32 %v3321_v32, %v3310_v18  ;;  %5704 = vmatprep.subr.bf16.mxu1 %v6623_v5  ;;  %v6388_v18 = vld [vmem:[%s8217_s1 + $0x1a8] sm:$0xff]   ;;  %v6292_v32 = vunpack.i.h.bf16 %v6963_v17 }
  0xcc   :  { %5641 = vmatmul.mubr.bf16.vlgmr.msra.gmra.mrb[0].mxu0 %v675_v37  ;;  %v6389_v3 = vld [vmem:[%s8217_s1 + $0x2a8] sm:$0xff]   ;;  %v6391_v37 = vld [vmem:[%s8217_s1 + $0x2b0] sm:$0xff]  }
  0xcd   :  { %v3325_v0 = vpack.c.bf16 %v7214_v55, %v7208_v25  ;;  %5581 = vmatmul.mubr.bf16.vlgmr.msra.gmra.mrb[0].mxu1 %v320_v10  ;;  %5645 = vmatpush3.bf16.msra.mxu0 %v6378_v35  ;;  %v6384_v10 = vld [vmem:[%s8217_s1 + $0x198] sm:$0xff]   ;;  %v6390_v35 = vld [vmem:[%s8217_s1 + $0x1b0] sm:$0xff]   ;;  %v6625_v25 = vmov 0.0|0.0  }
  0xce   :  { %5705 = vmatpush3.bf16.msra.mxu1 %v6379_v60  ;;  %5646 = vmatprep.subr.bf16.mxu0 %v6623_v5  ;;  %v6387_v60 = vld [vmem:[%s8217_s1 + $0x2a0] sm:$0xff]  }
  0xcf   :  { %5706 = vmatprep.subr.bf16.mxu1 %v6623_v5  ;;  %5660 = vmatprep.mubr.msk.bf16.mxu0 %vm6624_vm14, %v6623_v5 }
  0xd0   :  { %5720 = vmatprep.mubr.msk.bf16.mxu1 %vm6624_vm14, %v6623_v5 }
  0xd1   :  { %5647 = vmatpush3.bf16.msra.mxu0 %v6380_v42  ;;  %v6291_v42 = vunpack.i.l.bf16 %v6963_v17  ;;  %v1247_v17 = vmul.f32 %v6292_v32, %v7164_v38  ;;  %v6396_v38 = vld [vmem:[%s8217_s1 + $0x1c8] sm:$0xff]  }
  0xd2   :  { %5707 = vmatpush3.bf16.msra.mxu1 %v6381_v44  ;;  %5648 = vmatprep.subr.bf16.mxu0 %v6623_v5  ;;  %v1234_v44 = vld [vmem:[%s8218_s0 + $0xc] sm:$0xff] }
  0xd3   :  { %5708 = vmatprep.subr.bf16.mxu1 %v6623_v5  ;;  %v6404_v32 = vld [vmem:[%s8217_s1 + $0x1e8] sm:$0xff]  }
  0xd5   :  { %5649 = vmatpush3.bf16.msra.mxu0 %v6382_v63  ;;  %v6392_v63 = vld [vmem:[%s8217_s1 + $0x1b8] sm:$0xff]  }
  0xd6   :  { %5709 = vmatpush3.bf16.msra.mxu1 %v6383_v1  ;;  %5650 = vmatprep.subr.bf16.mxu0 %v6623_v5  ;;  %v6393_v1 = vld [vmem:[%s8217_s1 + $0x2b8] sm:$0xff]  }
  0xd7   :  { %5710 = vmatprep.subr.bf16.mxu1 %v6623_v5 }
  0xd9   :  { %5651 = vmatpush3.bf16.msra.mxu0 %v6384_v10  ;;  %v1246_v10 = vmul.f32 %v6291_v42, %v1234_v44  ;;  %v6405_v42 = vld [vmem:[%s8217_s1 + $0x268] sm:$0xff]   ;;  %v6406_v44 = vld [vmem:[%s8217_s1 + $0x1f0] sm:$0xff]  }
  0xda   :  { %5711 = vmatpush3.bf16.msra.mxu1 %v6385_v30  ;;  %5652 = vmatprep.subr.bf16.mxu0 %v6623_v5  ;;  %v6394_v30 = vld [vmem:[%s8217_s1 + $0x1c0] sm:$0xff]  }
  0xdb   :  { %5712 = vmatprep.subr.bf16.mxu1 %v6623_v5 }
  0xdd   :  { %5653 = vmatpush3.bf16.msra.mxu0 %v6386_v6  ;;  %v6395_v6 = vld [vmem:[%s8217_s1 + $0x240] sm:$0xff]  }
  0xde   :  { %5713 = vmatpush3.bf16.msra.mxu1 %v6387_v60  ;;  %5654 = vmatprep.subr.bf16.mxu0 %v6623_v5  ;;  %v1248_v60 = vpack.c.bf16 %v1247_v17, %v1246_v10  ;;  %v6409_v10 = vld [vmem:[%s8217_s1 + $0x278] sm:$0xff]   ;;  %v1214_v17 = vmul.f32 %v6978_v26, %v6970_v21  ;;  %v6413_v21 = vld [vmem:[%s8217_s1 + $0x2c8] sm:$0xff]  }
  0xdf   :  { %5714 = vmatprep.subr.bf16.mxu1 %v6623_v5  ;;  %v6417_v26 = vld [vmem:[%s8217_s1 + $0x2d8] sm:$0xff]  }
  0xe1   :  { %5655 = vmatpush3.bf16.msra.mxu0 %v6388_v18  ;;  %v6397_v18 = vld [vmem:[%s8217_s1 + $0x248] sm:$0xff]  }
  0xe2   :  { %5715 = vmatpush3.bf16.msra.mxu1 %v6389_v3  ;;  %5656 = vmatprep.subr.bf16.mxu0 %v6623_v5  ;;  %v6401_v3 = vld [vmem:[%s8217_s1 + $0x258] sm:$0xff]  }
  0xe3   :  { %5716 = vmatprep.subr.bf16.mxu1 %v6623_v5 }
  0xe5   :  { %5657 = vmatpush3.bf16.msra.mxu0 %v6390_v35  ;;  %v6402_v35 = vld [vmem:[%s8217_s1 + $0x1e0] sm:$0xff]  }
  0xe6   :  { %5717 = vmatpush3.bf16.msra.mxu1 %v6391_v37  ;;  %5658 = vmatprep.subr.bf16.mxu0 %v6623_v5  ;;  %v6403_v37 = vld [vmem:[%s8217_s1 + $0x260] sm:$0xff]  }
  0xe7   :  { %5718 = vmatprep.subr.bf16.mxu1 %v6623_v5 }
  0xe9   :  { %5659 = vmatpush3.bf16.msra.mxu0 %v6392_v63  ;;  %v6407_v63 = vld [vmem:[%s8217_s1 + $0x270] sm:$0xff]  }
  0xea   :  { %5719 = vmatpush3.bf16.msra.mxu1 %v6393_v1  ;;  %5664 = vmatprep.subr.bf16.mxu0 %v6623_v5  ;;  %v6408_v1 = vld [vmem:[%s8217_s1 + $0x1f8] sm:$0xff]  }
  0xeb   :  { %5724 = vmatprep.subr.bf16.mxu1 %v6623_v5 }
  0xec   :  { %5661 = vmatmul.mubr.bf16.vlgmr.msra.gmra.mrb[0].mxu0 %v804_v48  ;;  %v6400_v48 = vld [vmem:[%s8217_s1 + $0x1d8] sm:$0xff]  }
  0xed   :  { %5721 = vmatmul.mubr.bf16.vlgmr.msra.gmra.mrb[4].mxu1 %v1248_v60  ;;  %5665 = vmatpush3.bf16.msra.mxu0 %v6394_v30  ;;  %v1215_v30 = vmul.f32 %v6999_v33, %v6904_v56  ;;  %v6411_v60 = vld [vmem:[%s8217_s1 + $0x2c0] sm:$0xff]   ;;  %v6412_v56 = vld [vmem:[%s8217_s1 + $0x208] sm:$0xff]  }
  0xee   :  { %5725 = vmatpush3.bf16.msra.mxu1 %v6395_v6  ;;  %5666 = vmatprep.subr.bf16.mxu0 %v6623_v5  ;;  %v6410_v6 = vld [vmem:[%s8217_s1 + $0x200] sm:$0xff]  }
  0xef   :  { %5726 = vmatprep.subr.bf16.mxu1 %v6623_v5  ;;  %5680 = vmatprep.mubr.msk.bf16.mxu0 %vm6624_vm14, %v6623_v5  ;;  %v6418_v33 = vld [vmem:[%s8217_s1 + $0x220] sm:$0xff]  }
  0xf0   :  { %5740 = vmatprep.mubr.msk.bf16.mxu1 %vm6624_vm14, %v6623_v5 }
  0xf1   :  { %5667 = vmatpush3.bf16.msra.mxu0 %v6396_v38  ;;  %v1216_v38 = vpack.c.bf16 %v1215_v30, %v1214_v17  ;;  %v6439_v17 = vld [vmem:[%s8217_s1 + $0x4f0] sm:$0xff]  }
  0xf2   :  { %5727 = vmatpush3.bf16.msra.mxu1 %v6397_v18  ;;  %5668 = vmatprep.subr.bf16.mxu0 %v6623_v5  ;;  %v6419_v18 = vld [vmem:[%s8217_s1 + $0x2e0] sm:$0xff]   ;;  %v6438_v30 = vld [vmem:[%s8217_s1 + $0x330] sm:$0xff]  }
  0xf3   :  { %5728 = vmatprep.subr.bf16.mxu1 %v6623_v5 }
  0xf5   :  { %5669 = vmatpush3.bf16.msra.mxu0 %v6398_v40  ;;  %v6420_v40 = vld [vmem:[%s8217_s1 + $0x228] sm:$0xff]  }
  0xf6   :  { %5729 = vmatpush3.bf16.msra.mxu1 %v6399_v46  ;;  %5670 = vmatprep.subr.bf16.mxu0 %v6623_v5  ;;  %v6421_v46 = vld [vmem:[%s8217_s1 + $0x2e8] sm:$0xff]  }
  0xf7   :  { %5730 = vmatprep.subr.bf16.mxu1 %v6623_v5 }
  0xf9   :  { %5671 = vmatpush3.bf16.msra.mxu0 %v6400_v48  ;;  %v6422_v48 = vld [vmem:[%s8217_s1 + $0x230] sm:$0xff]  }
  0xfa   :  { %5731 = vmatpush3.bf16.msra.mxu1 %v6401_v3  ;;  %5672 = vmatprep.subr.bf16.mxu0 %v6623_v5  ;;  %v6423_v3 = vld [vmem:[%s8217_s1 + $0x2f0] sm:$0xff]  }
  0xfb   :  { %5732 = vmatprep.subr.bf16.mxu1 %v6623_v5 }
  0xfd   :  { %5673 = vmatpush3.bf16.msra.mxu0 %v6402_v35  ;;  %v6424_v35 = vld [vmem:[%s8217_s1 + $0x238] sm:$0xff]  }
  0xfe   :  { %5733 = vmatpush3.bf16.msra.mxu1 %v6403_v37  ;;  %5674 = vmatprep.subr.bf16.mxu0 %v6623_v5  ;;  %v6425_v37 = vld [vmem:[%s8217_s1 + $0x2f8] sm:$0xff]  }
  0xff   :  { %5734 = vmatprep.subr.bf16.mxu1 %v6623_v5 }
 0x101   :  { %5675 = vmatpush3.bf16.msra.mxu0 %v6404_v32  ;;  %v6427_v32 = vld [vmem:[%s8217_s1 + $0x4c0] sm:$0xff]  }
 0x102   :  { %5735 = vmatpush3.bf16.msra.mxu1 %v6405_v42  ;;  %5676 = vmatprep.subr.bf16.mxu0 %v6623_v5  ;;  %v6426_v42 = vld [vmem:[%s8217_s1 + $0x300] sm:$0xff]  }
 0x103   :  { %5736 = vmatprep.subr.bf16.mxu1 %v6623_v5 }
 0x105   :  { %5677 = vmatpush3.bf16.msra.mxu0 %v6406_v44  ;;  %v6429_v44 = vld [vmem:[%s8217_s1 + $0x4c8] sm:$0xff]  }
 0x106   :  { %5737 = vmatpush3.bf16.msra.mxu1 %v6407_v63  ;;  %5678 = vmatprep.subr.bf16.mxu0 %v6623_v5  ;;  %v6428_v63 = vld [vmem:[%s8217_s1 + $0x308] sm:$0xff]  }
 0x107   :  { %5738 = vmatprep.subr.bf16.mxu1 %v6623_v5 }
 0x109   :  { %5679 = vmatpush3.bf16.msra.mxu0 %v6408_v1  ;;  %v6437_v1 = vld [vmem:[%s8217_s1 + $0x4e8] sm:$0xff]  }
 0x10a   :  { %5739 = vmatpush3.bf16.msra.mxu1 %v6409_v10  ;;  %5684 = vmatprep.subr.bf16.mxu0 %v6623_v5  ;;  %v6436_v10 = vld [vmem:[%s8217_s1 + $0x328] sm:$0xff]  }
 0x10b   :  { %5744 = vmatprep.subr.bf16.mxu1 %v6623_v5 }
 0x10c   :  { %5681 = vmatmul.mubr.bf16.vlgmr.msra.gmra.mrb[0].mxu0 %v927_v7  ;;  %v6416_v7 = vld [vmem:[%s8217_s1 + $0x218] sm:$0xff]  }
 0x10d   :  { %5741 = vmatmul.mubr.bf16.vlgmr.msra.gmra.mrb[4].mxu1 %v1216_v38  ;;  %5685 = vmatpush3.bf16.msra.mxu0 %v6410_v6  ;;  %v6441_v6 = vld [vmem:[%s8217_s1 + $0x4f8] sm:$0xff]   ;;  %v6443_v38 = vld [vmem:[%s8217_s1 + $0x480] sm:$0xff]  }
 0x10e   :  { %5745 = vmatpush3.bf16.msra.mxu1 %v6411_v60  ;;  %5686 = vmatprep.subr.bf16.mxu0 %v6623_v5  ;;  %v6440_v60 = vld [vmem:[%s8217_s1 + $0x338] sm:$0xff]  }
 0x10f   :  { %5746 = vmatprep.subr.bf16.mxu1 %v6623_v5  ;;  %5700 = vmatprep.mubr.msk.bf16.mxu0 %vm6624_vm14, %v6623_v5 }
 0x110   :  { %5760 = vmatprep.mubr.msk.bf16.mxu1 %vm6624_vm14, %v6623_v5 }
 0x111   :  { %5687 = vmatpush3.bf16.msra.mxu0 %v6412_v56  ;;  %v6442_v56 = vld [vmem:[%s8217_s1 + $0x340] sm:$0xff]  }
 0x112   :  { %5747 = vmatpush3.bf16.msra.mxu1 %v6413_v21  ;;  %5688 = vmatprep.subr.bf16.mxu0 %v6623_v5  ;;  %v6445_v21 = vld [vmem:[%s8217_s1 + $0x488] sm:$0xff]  }
 0x113   :  { %5748 = vmatprep.subr.bf16.mxu1 %v6623_v5 }
 0x115   :  { %5689 = vmatpush3.bf16.msra.mxu0 %v6414_v61  ;;  %v6444_v61 = vld [vmem:[%s8217_s1 + $0x348] sm:$0xff]  }
 0x116   :  { %5749 = vmatpush3.bf16.msra.mxu1 %v6415_v62  ;;  %5690 = vmatprep.subr.bf16.mxu0 %v6623_v5  ;;  %v6453_v62 = vld [vmem:[%s8217_s1 + $0x4a8] sm:$0xff]  }
 0x117   :  { %5750 = vmatprep.subr.bf16.mxu1 %v6623_v5 }
 0x119   :  { %5691 = vmatpush3.bf16.msra.mxu0 %v6416_v7  ;;  %v6452_v7 = vld [vmem:[%s8217_s1 + $0x368] sm:$0xff]  }
 0x11a   :  { %5751 = vmatpush3.bf16.msra.mxu1 %v6417_v26  ;;  %5692 = vmatprep.subr.bf16.mxu0 %v6623_v5  ;;  %v6455_v26 = vld [vmem:[%s8217_s1 + $0x4b0] sm:$0xff]  }
 0x11b   :  { %5752 = vmatprep.subr.bf16.mxu1 %v6623_v5 }
 0x11d   :  { %5693 = vmatpush3.bf16.msra.mxu0 %v6418_v33  ;;  %v6454_v33 = vld [vmem:[%s8217_s1 + $0x370] sm:$0xff]  }
 0x11e   :  { %5753 = vmatpush3.bf16.msra.mxu1 %v6419_v18  ;;  %5694 = vmatprep.subr.bf16.mxu0 %v6623_v5  ;;  %v6457_v18 = vld [vmem:[%s8217_s1 + $0x4b8] sm:$0xff]  }
 0x11f   :  { %5754 = vmatprep.subr.bf16.mxu1 %v6623_v5 }
 0x121   :  { %5695 = vmatpush3.bf16.msra.mxu0 %v6420_v40  ;;  %v6456_v40 = vld [vmem:[%s8217_s1 + $0x378] sm:$0xff]  }
 0x122   :  { %5755 = vmatpush3.bf16.msra.mxu1 %v6421_v46  ;;  %5696 = vmatprep.subr.bf16.mxu0 %v6623_v5  ;;  %v6459_v46 = vld [vmem:[%s8217_s1 + $0x500] sm:$0xff]  }
 0x123   :  { %5756 = vmatprep.subr.bf16.mxu1 %v6623_v5 }
 0x125   :  { %5697 = vmatpush3.bf16.msra.mxu0 %v6422_v48  ;;  %v6458_v48 = vld [vmem:[%s8217_s1 + $0x380] sm:$0xff]  }
 0x126   :  { %5757 = vmatpush3.bf16.msra.mxu1 %v6423_v3  ;;  %5698 = vmatprep.subr.bf16.mxu0 %v6623_v5  ;;  %v6461_v3 = vld [vmem:[%s8217_s1 + $0x508] sm:$0xff]  }
 0x127   :  { %5758 = vmatprep.subr.bf16.mxu1 %v6623_v5 }
 0x129   :  { %5699 = vmatpush3.bf16.msra.mxu0 %v6424_v35  ;;  %v6460_v35 = vld [vmem:[%s8217_s1 + $0x388] sm:$0xff]  }
 0x12a   :  { %5759 = vmatpush3.bf16.msra.mxu1 %v6425_v37  ;;  %5884 = vmatprep.subr.bf16.mxu0 %v6623_v5  ;;  %v6464_v37 = vld [vmem:[%s8217_s1 + $0x398] sm:$0xff]  }
 0x12b   :  { %5764 = vmatprep.subr.bf16.mxu1 %v6623_v5 }
 0x12c   :  { %5701 = vmatmul.mubr.bf16.vlgmr.msra.gmra.mrb[0].mxu0 %v1052_v16  ;;  %v6433_v16 = vld [vmem:[%s8217_s1 + $0x4d8] sm:$0xff]  }
 0x12d   :  { %5761 = vmatmul.mubr.bf16.vlgmr.msra.gmra.mrb[4].mxu1 %v1464_v9  ;;  %5885 = vmatpush3.bf16.msra.mxu0 %v6427_v32  ;;  %v6434_v9 = vld [vmem:[%s8217_s1 + $0x320] sm:$0xff]  }
 0x12e   :  { %5765 = vmatpush3.bf16.msra.mxu1 %v6426_v42  ;;  %5886 = vmatprep.subr.bf16.mxu0 %v6623_v5  ;;  %v6467_v32 = vld [vmem:[%s8217_s1 + $0x520] sm:$0xff]  }
 0x12f   :  { %5766 = vmatprep.subr.bf16.mxu1 %v6623_v5  ;;  %5780 = vmatprep.mubr.msk.bf16.mxu1 %vm6624_vm14, %v6623_v5  ;;  %v6466_v42 = vld [vmem:[%s8217_s1 + $0x3a0] sm:$0xff]  }
 0x130   :  { %5900 = vmatprep.mubr.msk.bf16.mxu0 %vm6624_vm14, %v6623_v5 }
 0x131   :  { %5887 = vmatpush3.bf16.msra.mxu0 %v6429_v44  ;;  %v6469_v44 = vld [vmem:[%s8217_s1 + $0x528] sm:$0xff]  }
 0x132   :  { %5767 = vmatpush3.bf16.msra.mxu1 %v6428_v63  ;;  %5888 = vmatprep.subr.bf16.mxu0 %v6623_v5  ;;  %v6468_v63 = vld [vmem:[%s8217_s1 + $0x3a8] sm:$0xff]  }
 0x133   :  { %5768 = vmatprep.subr.bf16.mxu1 %v6623_v5 }
 0x135   :  { %5889 = vmatpush3.bf16.msra.mxu0 %v6431_v12  ;;  %v6471_v12 = vld [vmem:[%s8217_s1 + $0x530] sm:$0xff]  }
 0x136   :  { %5769 = vmatpush3.bf16.msra.mxu1 %v6430_v14  ;;  %5890 = vmatprep.subr.bf16.mxu0 %v6623_v5  ;;  %v6470_v14 = vld [vmem:[%s8217_s1 + $0x3b0] sm:$0xff]  }
 0x137   :  { %5770 = vmatprep.subr.bf16.mxu1 %v6623_v5 }
 0x139   :  { %5891 = vmatpush3.bf16.msra.mxu0 %v6433_v16  ;;  %v6473_v16 = vld [vmem:[%s8217_s1 + $0x538] sm:$0xff]  }
 0x13a   :  { %5771 = vmatpush3.bf16.msra.mxu1 %v6432_v20  ;;  %5892 = vmatprep.subr.bf16.mxu0 %v6623_v5  ;;  %v6472_v20 = vld [vmem:[%s8217_s1 + $0x3b8] sm:$0xff]  }
 0x13b   :  { %5772 = vmatprep.subr.bf16.mxu1 %v6623_v5 }
 0x13d   :  { %5893 = vmatpush3.bf16.msra.mxu0 %v6435_v59  ;;  %v6475_v59 = vld [vmem:[%s8217_s1 + $0x540] sm:$0xff]  }
 0x13e   :  { %5773 = vmatpush3.bf16.msra.mxu1 %v6434_v9  ;;  %5894 = vmatprep.subr.bf16.mxu0 %v6623_v5  ;;  %v6474_v9 = vld [vmem:[%s8217_s1 + $0x3c0] sm:$0xff]  }
 0x13f   :  { %5774 = vmatprep.subr.bf16.mxu1 %v6623_v5 }
 0x141   :  { %5895 = vmatpush3.bf16.msra.mxu0 %v6437_v1  ;;  %v8228_v1 = vpack.c.bf16 %v7060_v15, %v7056_v13  ;;  %v6479_v13 = vld [vmem:[%s8217_s1 + $0x550] sm:$0xff]  }
 0x142   :  { %5775 = vmatpush3.bf16.msra.mxu1 %v6436_v10  ;;  %5896 = vmatprep.subr.bf16.mxu0 %v6623_v5  ;;  %v8229_v10 = vpack.c.bf16 %v7105_v11, %v7102_v31  ;;  %v6478_v15 = vld [vmem:[%s8217_s1 + $0x3d0] sm:$0xff]   ;;  %v6481_v31 = vld [vmem:[%s8217_s1 + $0x558] sm:$0xff]  }
 0x143   :  { %5776 = vmatprep.subr.bf16.mxu1 %v6623_v5  ;;  %v6480_v11 = vld [vmem:[%s8217_s1 + $0x3d8] sm:$0xff]  }
 0x145   :  { %5897 = vmatpush3.bf16.msra.mxu0 %v6439_v17  ;;  %v6477_v17 = vld [vmem:[%s8217_s1 + $0x548] sm:$0xff]  }
 0x146   :  { %5777 = vmatpush3.bf16.msra.mxu1 %v6438_v30  ;;  %5898 = vmatprep.subr.bf16.mxu0 %v6623_v5  ;;  %v6476_v30 = vld [vmem:[%s8217_s1 + $0x3c8] sm:$0xff]  }
 0x147   :  { %5778 = vmatprep.subr.bf16.mxu1 %v6623_v5 }
 0x149   :  { %5899 = vmatpush3.bf16.msra.mxu0 %v6441_v6  ;;  %v6483_v6 = vld [vmem:[%s8217_s1 + $0x560] sm:$0xff]  }
 0x14a   :  { %5779 = vmatpush3.bf16.msra.mxu1 %v6440_v60  ;;  %5904 = vmatprep.subr.bf16.mxu0 %v6623_v5  ;;  %v6482_v60 = vld [vmem:[%s8217_s1 + $0x3e0] sm:$0xff]  }
 0x14b   :  { %5784 = vmatprep.subr.bf16.mxu1 %v6623_v5 }
 0x14c   :  { %5901 = vmatmul.mubr.bf16.vlgmr.msra.gmra.mrb[4].mxu0 %v2384_v34  ;;  %v6449_v34 = vld [vmem:[%s8217_s1 + $0x498] sm:$0xff]  }
 0x14d   :  { %5781 = vmatmul.mubr.bf16.vlgmr.msra.gmra.mrb[4].mxu1 %v1585_v54  ;;  %5905 = vmatpush3.bf16.msra.mxu0 %v6443_v38  ;;  %v6450_v54 = vld [vmem:[%s8217_s1 + $0x360] sm:$0xff]   ;;  %v6485_v38 = vld [vmem:[%s8217_s1 + $0x568] sm:$0xff]  }
 0x14e   :  { %5785 = vmatpush3.bf16.msra.mxu1 %v6442_v56  ;;  %5906 = vmatprep.subr.bf16.mxu0 %v6623_v5  ;;  %v6484_v56 = vld [vmem:[%s8217_s1 + $0x3e8] sm:$0xff]  }
 0x14f   :  { %5786 = vmatprep.subr.bf16.mxu1 %v6623_v5  ;;  %5920 = vmatprep.mubr.msk.bf16.mxu0 %vm6624_vm14, %v6623_v5 }
 0x150   :  { %5800 = vmatprep.mubr.msk.bf16.mxu1 %vm6624_vm14, %v6623_v5 }
 0x151   :  { %5907 = vmatpush3.bf16.msra.mxu0 %v6445_v21 }
 0x152   :  { %5787 = vmatpush3.bf16.msra.mxu1 %v6444_v61  ;;  %5908 = vmatprep.subr.bf16.mxu0 %v6623_v5 }
 0x153   :  { %5788 = vmatprep.subr.bf16.mxu1 %v6623_v5 }
 0x155   :  { %5909 = vmatpush3.bf16.msra.mxu0 %v6447_v27  ;;  %v6487_v27 = vld [vmem:[%s8217_s1 + $0x570] sm:$0xff]  }
 0x156   :  { %5789 = vmatpush3.bf16.msra.mxu1 %v6446_v28  ;;  %5910 = vmatprep.subr.bf16.mxu0 %v6623_v5 }
 0x157   :  { %5790 = vmatprep.subr.bf16.mxu1 %v6623_v5 }
 0x159   :  { %5911 = vmatpush3.bf16.msra.mxu0 %v6449_v34  ;;  %v6486_v34 = vld [vmem:[%s8217_s1 + $0x3f0] sm:$0xff]  }
 0x15a   :  { %5791 = vmatpush3.bf16.msra.mxu1 %v6448_v39  ;;  %5912 = vmatprep.subr.bf16.mxu0 %v6623_v5 }
 0x15b   :  { %5792 = vmatprep.subr.bf16.mxu1 %v6623_v5 }
 0x15d   :  { %5913 = vmatpush3.bf16.msra.mxu0 %v6451_v41  ;;  %v6489_v41 = vld [vmem:[%s8217_s1 + $0x578] sm:$0xff]  }
 0x15e   :  { %5793 = vmatpush3.bf16.msra.mxu1 %v6450_v54  ;;  %5914 = vmatprep.subr.bf16.mxu0 %v6623_v5  ;;  %v6488_v54 = vld [vmem:[%s8217_s1 + $0x3f8] sm:$0xff]  }
 0x15f   :  { %5794 = vmatprep.subr.bf16.mxu1 %v6623_v5 }
 0x161   :  { %5915 = vmatpush3.bf16.msra.mxu0 %v6453_v62  ;;  %v6491_v62 = vld [vmem:[%s8217_s1 + $0x580] sm:$0xff]  }
 0x162   :  { %5795 = vmatpush3.bf16.msra.mxu1 %v6452_v7  ;;  %5916 = vmatprep.subr.bf16.mxu0 %v6623_v5  ;;  %v6490_v7 = vld [vmem:[%s8217_s1 + $0x400] sm:$0xff]  }
 0x163   :  { %5796 = vmatprep.subr.bf16.mxu1 %v6623_v5 }
 0x165   :  { %5917 = vmatpush3.bf16.msra.mxu0 %v6455_v26  ;;  %v8230_v26 = vpack.c.bf16 %v7093_v52, %v7090_v49  ;;  %v6495_v49 = vld [vmem:[%s8217_s1 + $0x590] sm:$0xff]  }
 0x166   :  { %5797 = vmatpush3.bf16.msra.mxu1 %v6454_v33  ;;  %5918 = vmatprep.subr.bf16.mxu0 %v6623_v5  ;;  %v8231_v33 = vpack.c.bf16 %v7128_v22, %v7120_v29  ;;  %v6494_v52 = vld [vmem:[%s8217_s1 + $0x410] sm:$0xff]   ;;  %v6497_v29 = vld [vmem:[%s8217_s1 + $0x598] sm:$0xff]  }
 0x167   :  { %5798 = vmatprep.subr.bf16.mxu1 %v6623_v5  ;;  %v6496_v22 = vld [vmem:[%s8217_s1 + $0x418] sm:$0xff]  }
 0x169   :  { %5919 = vmatpush3.bf16.msra.mxu0 %v6457_v18  ;;  %v6493_v18 = vld [vmem:[%s8217_s1 + $0x588] sm:$0xff]  }
 0x16a   :  { %5799 = vmatpush3.bf16.msra.mxu1 %v6456_v40  ;;  %5924 = vmatprep.subr.bf16.mxu0 %v6623_v5  ;;  %v6492_v40 = vld [vmem:[%s8217_s1 + $0x408] sm:$0xff]  }
 0x16b   :  { %5804 = vmatprep.subr.bf16.mxu1 %v6623_v5 }
 0x16c   :  { %5921 = vmatmul.mubr.bf16.vlgmr.msra.gmra.mrb[4].mxu0 %v2354_v47  ;;  %v6465_v47 = vld [vmem:[%s8217_s1 + $0x518] sm:$0xff]  }
 0x16d   :  { %5801 = vmatmul.mubr.bf16.vlgmr.msra.gmra.mrb[4].mxu1 %v7031_v53  ;;  %5925 = vmatpush3.bf16.msra.mxu0 %v6459_v46  ;;  %v6499_v46 = vld [vmem:[%s8217_s1 + $0x5a0] sm:$0xff]  }
 0x16e   :  { %5805 = vmatpush3.bf16.msra.mxu1 %v6458_v48  ;;  %5926 = vmatprep.subr.bf16.mxu0 %v6623_v5  ;;  %v6498_v48 = vld [vmem:[%s8217_s1 + $0x420] sm:$0xff]  }
 0x16f   :  { %5806 = vmatprep.subr.bf16.mxu1 %v6623_v5  ;;  %5820 = vmatprep.mubr.msk.bf16.mxu1 %vm6624_vm14, %v6623_v5 }
 0x170   :  { %5940 = vmatprep.mubr.msk.bf16.mxu0 %vm6624_vm14, %v6623_v5 }
 0x171   :  { %5927 = vmatpush3.bf16.msra.mxu0 %v6461_v3  ;;  %v6501_v3 = vld [vmem:[%s8217_s1 + $0x5a8] sm:$0xff]  }
 0x172   :  { %5807 = vmatpush3.bf16.msra.mxu1 %v6460_v35  ;;  %5928 = vmatprep.subr.bf16.mxu0 %v6623_v5  ;;  %v6500_v35 = vld [vmem:[%s8217_s1 + $0x428] sm:$0xff]  }
 0x173   :  { %5808 = vmatprep.subr.bf16.mxu1 %v6623_v5 }
 0x175   :  { %5929 = vmatpush3.bf16.msra.mxu0 %v6463_v43  ;;  %v6503_v43 = vld [vmem:[%s8217_s1 + $0x5b0] sm:$0xff]  }
 0x176   :  { %5809 = vmatpush3.bf16.msra.mxu1 %v6462_v50  ;;  %5930 = vmatprep.subr.bf16.mxu0 %v6623_v5  ;;  %v6502_v50 = vld [vmem:[%s8217_s1 + $0x430] sm:$0xff]  }
 0x177   :  { %5810 = vmatprep.subr.bf16.mxu1 %v6623_v5 }
 0x179   :  { %5931 = vmatpush3.bf16.msra.mxu0 %v6465_v47  ;;  %v6505_v47 = vld [vmem:[%s8217_s1 + $0x5b8] sm:$0xff]  }
 0x17a   :  { %5811 = vmatpush3.bf16.msra.mxu1 %v6464_v37  ;;  %5932 = vmatprep.subr.bf16.mxu0 %v6623_v5  ;;  %v6504_v37 = vld [vmem:[%s8217_s1 + $0x438] sm:$0xff]  }
 0x17b   :  { %5812 = vmatprep.subr.bf16.mxu1 %v6623_v5 }
 0x17d   :  { %5933 = vmatpush3.bf16.msra.mxu0 %v6467_v32  ;;  %v6507_v32 = vld [vmem:[%s8217_s1 + $0x5c0] sm:$0xff]  }
 0x17e   :  { %5813 = vmatpush3.bf16.msra.mxu1 %v6466_v42  ;;  %5934 = vmatprep.subr.bf16.mxu0 %v6623_v5  ;;  %v6506_v42 = vld [vmem:[%s8217_s1 + $0x440] sm:$0xff]  }
 0x17f   :  { %5814 = vmatprep.subr.bf16.mxu1 %v6623_v5 }
 0x181   :  { %5935 = vmatpush3.bf16.msra.mxu0 %v6469_v44  ;;  %v8232_v44 = vpack.c.bf16 %v7170_v2, %v7168_v45  ;;  %v6510_v2 = vld [vmem:[%s8217_s1 + $0x450] sm:$0xff]   ;;  %v6513_v45 = vld [vmem:[%s8217_s1 + $0x5d8] sm:$0xff]  }
 0x182   :  { %5815 = vmatpush3.bf16.msra.mxu1 %v6468_v63  ;;  %5936 = vmatprep.subr.bf16.mxu0 %v6623_v5  ;;  %v6509_v63 = vld [vmem:[%s8217_s1 + $0x5c8] sm:$0xff]  }
 0x183   :  { %5816 = vmatprep.subr.bf16.mxu1 %v6623_v5 }
 0x185   :  { %5937 = vmatpush3.bf16.msra.mxu0 %v6471_v12  ;;  %v6508_v12 = vld [vmem:[%s8217_s1 + $0x448] sm:$0xff]  }
 0x186   :  { %5817 = vmatpush3.bf16.msra.mxu1 %v6470_v14  ;;  %5938 = vmatprep.subr.bf16.mxu0 %v6623_v5  ;;  %v6512_v14 = vld [vmem:[%s8217_s1 + $0x458] sm:$0xff]  }
 0x187   :  { %5818 = vmatprep.subr.bf16.mxu1 %v6623_v5 }
 0x189   :  { %5939 = vmatpush3.bf16.msra.mxu0 %v6473_v16  ;;  %v6515_v16 = vld [vmem:[%s8217_s1 + $0x5e0] sm:$0xff]  }
 0x18a   :  { %5819 = vmatpush3.bf16.msra.mxu1 %v6472_v20  ;;  %5944 = vmatprep.subr.bf16.mxu0 %v6623_v5  ;;  %v6514_v20 = vld [vmem:[%s8217_s1 + $0x460] sm:$0xff]  }
 0x18b   :  { %5824 = vmatprep.subr.bf16.mxu1 %v6623_v5 }
 0x18c   :  { %5941 = vmatmul.mubr.bf16.vlgmr.msra.gmra.mrb[4].mxu0 %v8228_v1  ;;  %v6519_v1 = vld [vmem:[%s8217_s1 + $0x5f0] sm:$0xff]  }
 0x18d   :  { %5821 = vmatmul.mubr.bf16.vlgmr.msra.gmra.mrb[4].mxu1 %v8229_v10  ;;  %5945 = vmatpush3.bf16.msra.mxu0 %v6475_v59  ;;  %v6517_v59 = vld [vmem:[%s8217_s1 + $0x5e8] sm:$0xff]   ;;  %v6518_v10 = vld [vmem:[%s8217_s1 + $0x470] sm:$0xff]  }
 0x18e   :  { %5825 = vmatpush3.bf16.msra.mxu1 %v6474_v9  ;;  %5946 = vmatprep.subr.bf16.mxu0 %v6623_v5  ;;  %v6516_v9 = vld [vmem:[%s8217_s1 + $0x468] sm:$0xff]  }
 0x18f   :  { %5826 = vmatprep.subr.bf16.mxu1 %v6623_v5  ;;  %5840 = vmatprep.mubr.msk.bf16.mxu1 %vm6624_vm14, %v6623_v5 }
 0x190   :  { %5960 = vmatprep.mubr.msk.bf16.mxu0 %vm6624_vm14, %v6623_v5 }
 0x191   :  { %5947 = vmatpush3.bf16.msra.mxu0 %v6477_v17  ;;  %v6521_v17 = vld [vmem:[%s8217_s1 + $0x5f8] sm:$0xff]  }
 0x192   :  { %5827 = vmatpush3.bf16.msra.mxu1 %v6476_v30  ;;  %5948 = vmatprep.subr.bf16.mxu0 %v6623_v5  ;;  %v6520_v30 = vld [vmem:[%s8217_s1 + $0x478] sm:$0xff]  }
 0x193   :  { %5828 = vmatprep.subr.bf16.mxu1 %v6623_v5 }
 0x195   :  { %5949 = vmatpush3.bf16.msra.mxu0 %v6479_v13  ;;  %v6522_v13 = vld [vmem:[%s8217_s1 + $0x600] sm:$0xff]  }
 0x196   :  { %5829 = vmatpush3.bf16.msra.mxu1 %v6478_v15  ;;  %5950 = vmatprep.subr.bf16.mxu0 %v6623_v5  ;;  %v8233_v15 = vpack.c.bf16 %v7117_v24, %v7114_v4  ;;  %v6524_v4 = vld [vmem:[%s8217_s1 + $0x610] sm:$0xff]   ;;  %v6525_v24 = vld [vmem:[%s8217_s1 + $0x618] sm:$0xff]  }
 0x197   :  { %5830 = vmatprep.subr.bf16.mxu1 %v6623_v5 }
 0x199   :  { %5951 = vmatpush3.bf16.msra.mxu0 %v6481_v31  ;;  %v6523_v31 = vld [vmem:[%s8217_s1 + $0x608] sm:$0xff]  }
 0x19a   :  { %5831 = vmatpush3.bf16.msra.mxu1 %v6480_v11  ;;  %5952 = vmatprep.subr.bf16.mxu0 %v6623_v5 }
 0x19b   :  { %5832 = vmatprep.subr.bf16.mxu1 %v6623_v5 }
 0x19d   :  { %5953 = vmatpush3.bf16.msra.mxu0 %v6483_v6 }
 0x19e   :  { %5833 = vmatpush3.bf16.msra.mxu1 %v6482_v60  ;;  %5954 = vmatprep.subr.bf16.mxu0 %v6623_v5 }
 0x19f   :  { %5834 = vmatprep.subr.bf16.mxu1 %v6623_v5 }
 0x1a0   :  { %v7712_v21 = vpop.f32.mrb[0].mxu1 }
 0x1a1   :  { %v5582_v61 = vpop.f32.mrb[1].mxu1  ;;  %5955 = vmatpush3.bf16.msra.mxu0 %v6485_v38  ;;  %v6528_v38 = vld [vmem:[%s8217_s1 + $0x630] sm:$0xff]  }
 0x1a2   :  { %v7717_v28 = vpop.f32.mrb[2].mxu1  ;;  %5835 = vmatpush3.bf16.msra.mxu1 %v6484_v56  ;;  %5956 = vmatprep.subr.bf16.mxu0 %v6623_v5 }
 0x1a3   :  { %v5583_v39 = vpop.f32.mrb[3].mxu1  ;;  %5836 = vmatprep.subr.bf16.mxu1 %v6623_v5 }
 0x1a5   :  { %5957 = vmatpush3.bf16.msra.mxu0 %v6487_v27 }
 0x1a6   :  { %5837 = vmatpush3.bf16.msra.mxu1 %v6486_v34  ;;  %5958 = vmatprep.subr.bf16.mxu0 %v6623_v5  ;;  %v6529_v34 = vld [vmem:[%s8217_s1 + $0x638] sm:$0xff]  }
 0x1a7   :  { %5838 = vmatprep.subr.bf16.mxu1 %v6623_v5 }
 0x1a9   :  { %5959 = vmatpush3.bf16.msra.mxu0 %v6489_v41  ;;  %v6530_v41 = vld [vmem:[%s8217_s1 + $0x640] sm:$0xff]  }
 0x1aa   :  { %5839 = vmatpush3.bf16.msra.mxu1 %v6488_v54  ;;  %5964 = vmatprep.subr.bf16.mxu0 %v6623_v5 }
 0x1ab   :  { %5844 = vmatprep.subr.bf16.mxu1 %v6623_v5 }
 0x1ac   :  { %5961 = vmatmul.mubr.bf16.vlgmr.msra.gmra.mrb[4].mxu0 %v8230_v26 }
 0x1ad   :  { %5841 = vmatmul.mubr.bf16.vlgmr.msra.gmra.mrb[4].mxu1 %v8231_v33  ;;  %5965 = vmatpush3.bf16.msra.mxu0 %v6491_v62  ;;  %v8234_v62 = vpack.c.bf16 %v7144_v8, %v7140_v57 }
 0x1ae   :  { %5845 = vmatpush3.bf16.msra.mxu1 %v6490_v7  ;;  %5966 = vmatprep.subr.bf16.mxu0 %v6623_v5  ;;  %v6531_v7 = vld [vmem:[%s8217_s1 + $0x648] sm:$0xff]  }
 0x1af   :  { %5846 = vmatprep.subr.bf16.mxu1 %v6623_v5  ;;  %5860 = vmatprep.mubr.msk.bf16.mxu1 %vm6624_vm14, %v6623_v5 }
 0x1b0   :  { %5980 = vmatprep.mubr.msk.bf16.mxu0 %vm6624_vm14, %v6623_v5 }
 0x1b1   :  { %5967 = vmatpush3.bf16.msra.mxu0 %v6493_v18  ;;  %v6532_v18 = vld [vmem:[%s8217_s1 + $0x650] sm:$0xff]  }
 0x1b2   :  { %5847 = vmatpush3.bf16.msra.mxu1 %v6492_v40  ;;  %5968 = vmatprep.subr.bf16.mxu0 %v6623_v5 }
 0x1b3   :  { %5848 = vmatprep.subr.bf16.mxu1 %v6623_v5 }
 0x1b5   :  { %5969 = vmatpush3.bf16.msra.mxu0 %v6495_v49  ;;  %v6533_v49 = vld [vmem:[%s8217_s1 + $0x658] sm:$0xff]  }
 0x1b6   :  { %5849 = vmatpush3.bf16.msra.mxu1 %v6494_v52  ;;  %5970 = vmatprep.subr.bf16.mxu0 %v6623_v5 }
 0x1b7   :  { %5850 = vmatprep.subr.bf16.mxu1 %v6623_v5 }
 0x1b9   :  { %5971 = vmatpush3.bf16.msra.mxu0 %v6497_v29 }
 0x1ba   :  { %5851 = vmatpush3.bf16.msra.mxu1 %v6496_v22  ;;  %5972 = vmatprep.subr.bf16.mxu0 %v6623_v5 }
 0x1bb   :  { %5852 = vmatprep.subr.bf16.mxu1 %v6623_v5 }
 0x1bd   :  { %5973 = vmatpush3.bf16.msra.mxu0 %v6499_v46  ;;  %v6534_v46 = vld [vmem:[%s8217_s1 + $0x660] sm:$0xff]  }
 0x1be   :  { %5853 = vmatpush3.bf16.msra.mxu1 %v6498_v48  ;;  %5974 = vmatprep.subr.bf16.mxu0 %v6623_v5 }
 0x1bf   :  { %5854 = vmatprep.subr.bf16.mxu1 %v6623_v5 }
 0x1c1   :  { %5975 = vmatpush3.bf16.msra.mxu0 %v6501_v3 }
 0x1c2   :  { %5855 = vmatpush3.bf16.msra.mxu1 %v6500_v35  ;;  %5976 = vmatprep.subr.bf16.mxu0 %v6623_v5  ;;  %v6535_v35 = vld [vmem:[%s8217_s1 + $0x668] sm:$0xff]  }
 0x1c3   :  { %5856 = vmatprep.subr.bf16.mxu1 %v6623_v5 }
 0x1c5   :  { %5977 = vmatpush3.bf16.msra.mxu0 %v6503_v43 }
 0x1c6   :  { %5857 = vmatpush3.bf16.msra.mxu1 %v6502_v50  ;;  %5978 = vmatprep.subr.bf16.mxu0 %v6623_v5 }
 0x1c7   :  { %5858 = vmatprep.subr.bf16.mxu1 %v6623_v5 }
 0x1c9   :  { %5979 = vmatpush3.bf16.msra.mxu0 %v6505_v47  ;;  %v6536_v47 = vld [vmem:[%s8217_s1 + $0x670] sm:$0xff]  }
 0x1ca   :  { %5859 = vmatpush3.bf16.msra.mxu1 %v6504_v37  ;;  %5984 = vmatprep.subr.bf16.mxu0 %v6623_v5 }
 0x1cb   :  { %5864 = vmatprep.subr.bf16.mxu1 %v6623_v5 }
 0x1cc   :  { %5981 = vmatmul.mubr.bf16.vlgmr.msra.gmra.mrb[4].mxu0 %v7031_v53  ;;  %v6511_v53 = vld [vmem:[%s8217_s1 + $0x5d0] sm:$0xff]  }
 0x1cd   :  { %5861 = vmatmul.mubr.bf16.vlgmr.msra.gmra.mrb[4].mxu1 %v8232_v44  ;;  %5985 = vmatpush3.bf16.msra.mxu0 %v6507_v32 }
 0x1ce   :  { %5865 = vmatpush3.bf16.msra.mxu1 %v6506_v42  ;;  %5986 = vmatprep.subr.bf16.mxu0 %v6623_v5  ;;  %v6537_v42 = vld [vmem:[%s8217_s1 + $0x678] sm:$0xff]  }
 0x1cf   :  { %5866 = vmatprep.subr.bf16.mxu1 %v6623_v5  ;;  %5880 = vmatprep.mubr.msk.bf16.mxu1 %vm6624_vm14, %v6623_v5 }
 0x1d0   :  { %6000 = vmatprep.mubr.msk.bf16.mxu0 %vm6624_vm14, %v6623_v5 }
 0x1d1   :  { %5987 = vmatpush3.bf16.msra.mxu0 %v6509_v63 }
 0x1d2   :  { %5867 = vmatpush3.bf16.msra.mxu1 %v6508_v12  ;;  %5988 = vmatprep.subr.bf16.mxu0 %v6623_v5  ;;  %v6538_v12 = vld [vmem:[%s8217_s1 + $0x680] sm:$0xff]  }
 0x1d3   :  { %5868 = vmatprep.subr.bf16.mxu1 %v6623_v5 }
 0x1d5   :  { %5989 = vmatpush3.bf16.msra.mxu0 %v6511_v53  ;;  %v8235_v53 = vpack.c.bf16 %v7179_v19, %v7177_v36 }
 0x1d6   :  { %5869 = vmatpush3.bf16.msra.mxu1 %v6510_v2  ;;  %5990 = vmatprep.subr.bf16.mxu0 %v6623_v5  ;;  %v6539_v2 = vld [vmem:[%s8217_s1 + $0x688] sm:$0xff]  }
 0x1d7   :  { %5870 = vmatprep.subr.bf16.mxu1 %v6623_v5 }
 0x1d9   :  { %5991 = vmatpush3.bf16.msra.mxu0 %v6513_v45  ;;  %v6540_v45 = vld [vmem:[%s8217_s1 + $0x690] sm:$0xff]  }
 0x1da   :  { %5871 = vmatpush3.bf16.msra.mxu1 %v6512_v14  ;;  %5992 = vmatprep.subr.bf16.mxu0 %v6623_v5 }
 0x1db   :  { %5872 = vmatprep.subr.bf16.mxu1 %v6623_v5 }
 0x1dd   :  { %5993 = vmatpush3.bf16.msra.mxu0 %v6515_v16  ;;  %v6541_v16 = vld [vmem:[%s8217_s1 + $0x698] sm:$0xff]  }
 0x1de   :  { %5873 = vmatpush3.bf16.msra.mxu1 %v6514_v20  ;;  %5994 = vmatprep.subr.bf16.mxu0 %v6623_v5  ;;  %v6542_v20 = vld [vmem:[%s8217_s1 + $0x6a0] sm:$0xff]  }
 0x1df   :  { %5874 = vmatprep.subr.bf16.mxu1 %v6623_v5 }
 0x1e1   :  { %5995 = vmatpush3.bf16.msra.mxu0 %v6517_v59  ;;  %v6543_v59 = vld [vmem:[%s8217_s1 + $0x6a8] sm:$0xff]  }
 0x1e2   :  { %5875 = vmatpush3.bf16.msra.mxu1 %v6516_v9  ;;  %5996 = vmatprep.subr.bf16.mxu0 %v6623_v5  ;;  %v6544_v9 = vld [vmem:[%s8217_s1 + $0x6b0] sm:$0xff]  }
 0x1e3   :  { %5876 = vmatprep.subr.bf16.mxu1 %v6623_v5 }
 0x1e5   :  { %5997 = vmatpush3.bf16.msra.mxu0 %v6519_v1  ;;  %v6545_v1 = vld [vmem:[%s8217_s1 + $0x6b8] sm:$0xff]  }
 0x1e6   :  { %5877 = vmatpush3.bf16.msra.mxu1 %v6518_v10  ;;  %5998 = vmatprep.subr.bf16.mxu0 %v6623_v5 }
 0x1e7   :  { %5878 = vmatprep.subr.bf16.mxu1 %v6623_v5 }
 0x1e9   :  { %5999 = vmatpush3.bf16.msra.mxu0 %v6521_v17 }
 0x1ea   :  { %5879 = vmatpush3.bf16.msra.mxu1 %v6520_v30  ;;  %6004 = vmatprep.subr.bf16.mxu0 %v6623_v5 }
 0x1eb   :  { %6071 = vmatprep.subr.bf16.mxu1 %v6623_v5 }
 0x1ec   :  { %6001 = vmatmul.mubr.bf16.vlgmr.msra.gmra.mrb[4].mxu0 %v8233_v15 }
 0x1ed   :  { %5881 = vmatmul.mubr.bf16.vlgmr.msra.gmra.mrb[4].mxu1 %v2191_v23  ;;  %6005 = vmatpush3.bf16.msra.mxu0 %v6522_v13 }
 0x1ee   :  { %6006 = vmatprep.subr.bf16.mxu0 %v6623_v5  ;;  %6020 = vmatprep.mubr.msk.bf16.mxu0 %vm6624_vm14, %v6623_v5 }
 0x1ef   :  { %6087 = vmatprep.mubr.msk.bf16.mxu1 %vm6624_vm14, %v6623_v5 }
 0x1f1   :  { %6007 = vmatpush3.bf16.msra.mxu0 %v6523_v31 }
 0x1f2   :  { %6008 = vmatprep.subr.bf16.mxu0 %v6623_v5 }
 0x1f5   :  { %6009 = vmatpush3.bf16.msra.mxu0 %v6524_v4 }
 0x1f6   :  { %6010 = vmatprep.subr.bf16.mxu0 %v6623_v5 }
 0x1f9   :  { %6011 = vmatpush3.bf16.msra.mxu0 %v6525_v24 }
 0x1fa   :  { %6012 = vmatprep.subr.bf16.mxu0 %v6623_v5 }
 0x1fd   :  { %6013 = vmatpush3.bf16.msra.mxu0 %v6526_v58 }
 0x1fe   :  { %6014 = vmatprep.subr.bf16.mxu0 %v6623_v5 }
 0x1ff   :  { %v1152_v23 = vpop.f32.mrb[0].mxu0 }
 0x200   :  { %v6167_v11 = vadd.f32 %v1152_v23, %v7712_v21  ;;  %v5702_v6 = vpop.f32.mrb[1].mxu0 }
 0x201   :  { %v1155_v60 = vpop.f32.mrb[2].mxu0  ;;  %6015 = vmatpush3.bf16.msra.mxu0 %v6527_v51 }
 0x202   :  { %v6168_v56 = vadd.f32 %v1155_v60, %v7717_v28  ;;  %v5703_v61 = vpop.f32.mrb[3].mxu0  ;;  %6016 = vmatprep.subr.bf16.mxu0 %v6623_v5 }
 0x204   :  { %v1161_v27 = vadd.f32 %v6168_v56, %v6167_v11 }
 0x205   :  { %6017 = vmatpush3.bf16.msra.mxu0 %v6528_v38 }
 0x206   :  { %v1162_v39 = vrot.slane %v1161_v27, 4  ;;  %6018 = vmatprep.subr.bf16.mxu0 %v6623_v5 }
 0x208   :  { %v1163_v21 = vadd.f32 %v1162_v39, %v1161_v27 }
 0x209   :  { %6019 = vmatpush3.bf16.msra.mxu0 %v6529_v34 }
 0x20a   :  { %v1164_v54 = vrot.slane %v1163_v21, 2  ;;  %6024 = vmatprep.subr.bf16.mxu0 %v6623_v5 }
 0x20c   :  { %v1165_v28 = vadd.f32 %v1164_v54, %v1163_v21  ;;  %6021 = vmatmul.mubr.bf16.vlgmr.msra.gmra.mrb[4].mxu0 %v8234_v62 }
 0x20d   :  { %6025 = vmatpush3.bf16.msra.mxu0 %v6530_v41  ;;  %6040 = vmatprep.mubr.msk.bf16.mxu0 %vm6624_vm14, %v6623_v5  ;;  %v6546_v41 = vld [vmem:[%s8219_s2] sm:$0xff]  }
 0x20e   :  { %v1166_v26 = vrot.slane %v1165_v28, 1  ;;  %6026 = vmatprep.subr.bf16.mxu0 %v6623_v5  ;;  %6072 = vmatpush3.bf16.msra.mxu1 %v6546_v41  ;;  %v4223_v41 = vld [vmem:[%s8222_s8] sm:$0xff] }
 0x20f   :  { %6073 = vmatprep.subr.bf16.mxu1 %v6623_v5 }
 0x210   :  { %v1167_v33 = vadd.f32 %v1166_v26, %v1165_v28  ;;  %v6547_v28 = vld [vmem:[%s8219_s2 + $0x8] sm:$0xff]   ;;  %v6549_v26 = vld [vmem:[%s8219_s2 + $0x18] sm:$0xff]  }
 0x211   :  { %6027 = vmatpush3.bf16.msra.mxu0 %v6531_v7  ;;  %v6548_v7 = vld [vmem:[%s8219_s2 + $0x10] sm:$0xff]  }
 0x212   :  { %v1169_v40 = vmul.f32 0.0625, %v1167_v33  ;;  %6028 = vmatprep.subr.bf16.mxu0 %v6623_v5  ;;  %6074 = vmatpush3.bf16.msra.mxu1 %v6547_v28  ;;  %v6550_v33 = vld [vmem:[%s8219_s2 + $0x20] sm:$0xff]  }
 0x213   :  { %6075 = vmatprep.subr.bf16.mxu1 %v6623_v5  ;;  %v6554_v28 = vld [vmem:[%s8223_s3] ss:$12 sps:$4 sm:$0xff]  }
 0x214   :  { %v1170_v57 = vsub.f32 %v6167_v11, %v1169_v40  ;;  %v1171_v8 = vsub.f32 %v6168_v56, %v1169_v40 }
 0x215   :  { %6029 = vmatpush3.bf16.msra.mxu0 %v6532_v18 }
 0x216   :  { %v1172_v52 = vmul.f32 %v1170_v57, %v1170_v57  ;;  %v1173_v29 = vmul.f32 %v1171_v8, %v1171_v8  ;;  %6030 = vmatprep.subr.bf16.mxu0 %v6623_v5  ;;  %6076 = vmatpush3.bf16.msra.mxu1 %v6548_v7  ;;  %v6557_v7 = vld [vmem:[%s8223_s3 + $0x18] ss:$12 sps:$4 sm:$0xff]  }
 0x217   :  { %6077 = vmatprep.subr.bf16.mxu1 %v6623_v5 }
 0x218   :  { %v1174_v22 = vadd.f32 %v1173_v29, %v1172_v52 }
 0x219   :  { %6031 = vmatpush3.bf16.msra.mxu0 %v6533_v49  ;;  %v6552_v49 = vld [vmem:[%s8219_s2 + $0x30] sm:$0xff]  }
 0x21a   :  { %v1175_v48 = vrot.slane %v1174_v22, 4  ;;  %6032 = vmatprep.subr.bf16.mxu0 %v6623_v5  ;;  %6078 = vmatpush3.bf16.msra.mxu1 %v6549_v26  ;;  %v6562_v26 = vld [vmem:[%s8223_s3 + $0x34] ss:$12 sps:$4 sm:$0xff]  }
 0x21b   :  { %6079 = vmatprep.subr.bf16.mxu1 %v6623_v5 }
 0x21c   :  { %v1176_v3 = vadd.f32 %v1175_v48, %v1174_v22 }
 0x21d   :  { %6033 = vmatpush3.bf16.msra.mxu0 %v6534_v46 }
 0x21e   :  { %v1177_v43 = vrot.slane %v1176_v3, 2  ;;  %6034 = vmatprep.subr.bf16.mxu0 %v6623_v5  ;;  %6080 = vmatpush3.bf16.msra.mxu1 %v6550_v33  ;;  %v6560_v33 = vld [vmem:[%s8223_s3 + $0x30] ss:$12 sps:$4 sm:$0xff]  }
 0x21f   :  { %6081 = vmatprep.subr.bf16.mxu1 %v6623_v5 }
 0x220   :  { %v1178_v50 = vadd.f32 %v1177_v43, %v1176_v3 }
 0x221   :  { %6035 = vmatpush3.bf16.msra.mxu0 %v6535_v35 }
 0x222   :  { %v1179_v37 = vrot.slane %v1178_v50, 1  ;;  %6036 = vmatprep.subr.bf16.mxu0 %v6623_v5 }
 0x224   :  { %v1180_v32 = vadd.f32 %v1179_v37, %v1178_v50 }
 0x225   :  { %6037 = vmatpush3.bf16.msra.mxu0 %v6536_v47 }
 0x226   :  { %v1181_v44 = vmul.f32 0.0625, %v1180_v32  ;;  %6038 = vmatprep.subr.bf16.mxu0 %v6623_v5 }
 0x228   :  { %v1182_v63 = vadd.f32 1e-05, %v1181_v44 }
 0x229   :  { %6039 = vmatpush3.bf16.msra.mxu0 %v6537_v42 }
 0x22a   :  { %6586 = vrsqrt.f32 %v1182_v63  ;;  %6044 = vmatprep.subr.bf16.mxu0 %v6623_v5 }
 0x22c   :  { %6041 = vmatmul.mubr.bf16.vlgmr.msra.gmra.mrb[4].mxu0 %v8235_v53 }
 0x22d   :  { %6045 = vmatpush3.bf16.msra.mxu0 %v6538_v12  ;;  %6060 = vmatprep.mubr.msk.bf16.mxu0 %vm6624_vm14, %v6623_v5 }
 0x22e   :  { %6046 = vmatprep.subr.bf16.mxu0 %v6623_v5 }
 0x231   :  { %6047 = vmatpush3.bf16.msra.mxu0 %v6539_v2 }
 0x232   :  { %6048 = vmatprep.subr.bf16.mxu0 %v6623_v5 }
 0x234   :  { %v6587_v14 = vpop.eup %6586 }
 0x235   :  { %v7977_v19 = vmul.f32 %v6587_v14, %v1170_v57  ;;  %v7979_v36 = vmul.f32 %v6587_v14, %v1171_v8  ;;  %6049 = vmatpush3.bf16.msra.mxu0 %v6540_v45  ;;  %v6551_v8 = vld [vmem:[%s8219_s2 + $0x28] sm:$0xff]  }
 0x236   :  { %6050 = vmatprep.subr.bf16.mxu0 %v6623_v5  ;;  %6082 = vmatpush3.bf16.msra.mxu1 %v6551_v8  ;;  %v6566_v8 = vld [vmem:[%s8223_s3 + $0x60] ss:$12 sps:$4 sm:$0xff]  }
 0x237   :  { %6083 = vmatprep.subr.bf16.mxu1 %v6623_v5 }
 0x239   :  { %6051 = vmatpush3.bf16.msra.mxu0 %v6541_v16 }
 0x23a   :  { %6052 = vmatprep.subr.bf16.mxu0 %v6623_v5  ;;  %6084 = vmatpush3.bf16.msra.mxu1 %v6552_v49  ;;  %v6571_v49 = vld [vmem:[%s8223_s3 + $0x7c] ss:$12 sps:$4 sm:$0xff]  }
 0x23b   :  { %6085 = vmatprep.subr.bf16.mxu1 %v6623_v5 }
 0x23d   :  { %6053 = vmatpush3.bf16.msra.mxu0 %v6542_v20 }
 0x23e   :  { %6054 = vmatprep.subr.bf16.mxu0 %v6623_v5 }
 0x241   :  { %6055 = vmatpush3.bf16.msra.mxu0 %v6543_v59 }
 0x242   :  { %6056 = vmatprep.subr.bf16.mxu0 %v6623_v5 }
 0x245   :  { %6057 = vmatpush3.bf16.msra.mxu0 %v6544_v9 }
 0x246   :  { %6058 = vmatprep.subr.bf16.mxu0 %v6623_v5 }
 0x249   :  { %6059 = vmatpush3.bf16.msra.mxu0 %v6545_v1 }
 0x24a   :  { %6146 = vmatprep.subr.bf16.mxu0 %v6625_v25 }
 0x24c   :  { %6061 = vmatmul.mubr.bf16.vlgmr.msra.gmra.mrb[4].mxu0 %v3325_v0 }
 0x24d   :  { %6068 = vmatprep.mubr.msk.f32.mxu0 %vm6624_vm14, %v6623_v5 }
 0x2c0   :  { %v2291_v10 = vpop.f32.mrb[4].mxu1 }
 0x2c1   :  { %v5882_v17 = vpop.f32.mrb[5].mxu1 }
 0x2c2   :  { %v2294_v30 = vpop.f32.mrb[6].mxu1 }
 0x2c3   :  { %v2300_v13 = vadd.f32 %v2294_v30, %v2291_v10  ;;  %v5883_v15 = vpop.f32.mrb[7].mxu1 }
 0x2c4   :  { %v8043_v15 = vmax.f32 %v7979_v36, 0.0 }
 0x2c5   :  { %v2301_v31 = vrot.slane %v2300_v13, 4 }
 0x2c7   :  { %v2302_v4 = vadd.f32 %v2301_v31, %v2300_v13  ;;  %v8040_v13 = vmax.f32 %v7977_v19, 0.0 }
 0x2c9   :  { %v2303_v24 = vrot.slane %v2302_v4, 2  ;;  %v6149_v36 = vpack.c.bf16 %v8043_v15, %v8040_v13 }
 0x2cb   :  { %v2304_v58 = vadd.f32 %v2303_v24, %v2302_v4 }
 0x2cd   :  { %v2305_v51 = vrot.slane %v2304_v58, 1 }
 0x2cf   :  { %v2306_v23 = vadd.f32 %v2305_v51, %v2304_v58 }
 0x2d1   :  { %v2307_v11 = vmul.f32 0.0625, %v2306_v23 }
 0x2d3   :  { %v2308_v6 = vsub.f32 %v2291_v10, %v2307_v11  ;;  %v2309_v60 = vsub.f32 %v2294_v30, %v2307_v11 }
 0x2d5   :  { %v2310_v38 = vmul.f32 %v2308_v6, %v2308_v6  ;;  %v2311_v55 = vmul.f32 %v2309_v60, %v2309_v60 }
 0x2d7   :  { %v2312_v0 = vadd.f32 %v2311_v55, %v2310_v38  ;;  %v8063_v38 = vld [vmem:[%s8221_s9] sm:$0xff] }
 0x2d9   :  { %v2313_v56 = vrot.slane %v2312_v0, 4 }
 0x2db   :  { %v2314_v61 = vadd.f32 %v2313_v56, %v2312_v0  ;;  %v8071_v0 = vld [vmem:[%s8221_s9 + $0x8] sm:$0xff]  ;;  %v6553_v56 = vld [vmem:[%s8219_s2 + $0x38] sm:$0xff]  }
 0x2dc   :  { %6086 = vmatpush3.bf16.msra.mxu1 %v6553_v56 }
 0x2dd   :  { %v2315_v27 = vrot.slane %v2314_v61, 2 }
 0x2df   :  { %v2316_v34 = vadd.f32 %v2315_v27, %v2314_v61 }
 0x2e1   :  { %v2317_v39 = vrot.slane %v2316_v34, 1 }
 0x2e3   :  { %v2318_v21 = vadd.f32 %v2317_v39, %v2316_v34 }
 0x2e5   :  { %v2319_v54 = vmul.f32 0.0625, %v2318_v21  ;;  %v8236_v21 = vmov 0  }
 0x2e7   :  { %v2320_v62 = vadd.f32 1e-05, %v2319_v54  ;;  %v6556_v54 = vld [vmem:[%s8223_s3 + $0x4] ss:$12 sps:$4 sm:$0xff]  }
 0x2e8   :  { %3846 = vmatprep.subr.bf16.mxu1 %v6556_v54  ;;  %v6585_v54 = vld [vmem:[%s8223_s3 + $0xb0] ss:$12 sps:$4 sm:$0xff]  }
 0x2e9   :  { %6588 = vrsqrt.f32 %v2320_v62  ;;  %v6559_v62 = vld [vmem:[%s8223_s3 + $0x1c] ss:$12 sps:$4 sm:$0xff]  }
 0x2f3   :  { %v6589_v18 = vpop.eup %6588 }
 0x2f4   :  { %v2322_v40 = vmul.f32 %v6589_v18, %v2308_v6  ;;  %v2323_v57 = vmul.f32 %v6589_v18, %v2309_v60  ;;  %v3464_v60 = vld [vmem:[%s8220_s7] sm:$0x3]  ;;  %v6565_v18 = vld [vmem:[%s8223_s3 + $0x4c] ss:$12 sps:$4 sm:$0xff]  }
 0x2f6   :  { %v8035_v10 = vmax.f32 %v2322_v40, 0.0  ;;  %v8037_v17 = vmax.f32 %v2323_v57, 0.0  ;;  %v6563_v40 = vld [vmem:[%s8223_s3 + $0x48] ss:$12 sps:$4 sm:$0xff]   ;;  %v6568_v57 = vld [vmem:[%s8223_s3 + $0x64] ss:$12 sps:$4 sm:$0xff]  }
 0x2f8   :  { %v3460_v51 = vadd.f32 %v8035_v10, %v8040_v13  ;;  %v3461_v23 = vadd.f32 %v8037_v17, %v8043_v15  ;;  %v6153_v55 = vpack.c.bf16 %v8037_v17, %v8035_v10 }
 0x31f   :  { %v3425_v52 = vpop.f32.mrb[4].mxu0 }
 0x320   :  { %v6062_v29 = vpop.f32.mrb[5].mxu0 }
 0x321   :  { %v3428_v22 = vpop.f32.mrb[6].mxu0  ;;  %v6574_v29 = vld [vmem:[%s8223_s3 + $0x94] ss:$12 sps:$4 sm:$0xff]  }
 0x322   :  { %v3434_v46 = vadd.f32 %v3428_v22, %v3425_v52  ;;  %v6063_v48 = vpop.f32.mrb[7].mxu0 }
 0x323   :  { %v6575_v48 = vld [vmem:[%s8223_s3 + $0xa8] ss:$12 sps:$4 sm:$0xff]  }
 0x324   :  { %v3435_v3 = vrot.slane %v3434_v46, 4 }
 0x326   :  { %v3436_v35 = vadd.f32 %v3435_v3, %v3434_v46  ;;  %v6577_v46 = vld [vmem:[%s8223_s3 + $0xac] ss:$12 sps:$4 sm:$0xff]  }
 0x328   :  { %v3437_v43 = vrot.slane %v3436_v35, 2 }
 0x32a   :  { %v3438_v50 = vadd.f32 %v3437_v43, %v3436_v35  ;;  %v6626_v35 = vmov 1  }
 0x32c   :  { %v3439_v47 = vrot.slane %v3438_v50, 1 }
 0x32e   :  { %v3440_v37 = vadd.f32 %v3439_v47, %v3438_v50 }
 0x330   :  { %v3441_v32 = vmul.f32 0.0625, %v3440_v37 }
 0x332   :  { %v3442_v42 = vsub.f32 %v3425_v52, %v3441_v32  ;;  %v3443_v44 = vsub.f32 %v3428_v22, %v3441_v32  ;;  %v6569_v52 = vld [vmem:[%s8223_s3 + $0x78] ss:$12 sps:$4 sm:$0xff]   ;;  %v6572_v22 = vld [vmem:[%s8223_s3 + $0x90] ss:$12 sps:$4 sm:$0xff]  }
 0x334   :  { %v3444_v63 = vmul.f32 %v3442_v42, %v3442_v42  ;;  %v3445_v12 = vmul.f32 %v3443_v44, %v3443_v44 }
 0x336   :  { %v3446_v53 = vadd.f32 %v3445_v12, %v3444_v63 }
 0x338   :  { %v3447_v2 = vrot.slane %v3446_v53, 4 }
 0x33a   :  { %v3448_v45 = vadd.f32 %v3447_v2, %v3446_v53 }
 0x33c   :  { %v3449_v14 = vrot.slane %v3448_v45, 2 }
 0x33e   :  { %v3450_v16 = vadd.f32 %v3449_v14, %v3448_v45 }
 0x340   :  { %v3451_v20 = vrot.slane %v3450_v16, 1 }
 0x342   :  { %v3452_v59 = vadd.f32 %v3451_v20, %v3450_v16 }
 0x344   :  { %v3453_v9 = vmul.f32 0.0625, %v3452_v59 }
 0x346   :  { %v3454_v1 = vadd.f32 1e-05, %v3453_v9 }
 0x348   :  { %6590 = vrsqrt.f32 %v3454_v1 }
 0x352   :  { %v6591_v30 = vpop.eup %6590 }
 0x353   :  { %v3456_v31 = vmul.f32 %v6591_v30, %v3442_v42  ;;  %v3457_v4 = vmul.f32 %v6591_v30, %v3443_v44 }
 0x355   :  { %v8045_v24 = vmax.f32 %v3456_v31, 0.0  ;;  %v8047_v58 = vmax.f32 %v3457_v4, 0.0 }
 0x357   :  { %v3462_v11 = vadd.f32 %v3460_v51, %v8045_v24  ;;  %v3463_v19 = vadd.f32 %v3461_v23, %v8047_v58 }
 0x359   :  { %v6147_v6 = vpack.c.bf16 %v3463_v19, %v3462_v11 }
 0x35b   :  { %6148 = vmatpush3.bf16.msra.mxu0 %v6147_v6 }
 0x35c   :  { %6150 = vmatprep.subr.bf16.mxu0 %v6149_v36 }
 0x35e   :  { %6069 = vmatmul.mubr.msk.f32.vlgmr.msra.gmra.mrb[8].mxu0 %vm3465_vm9, %v3464_v60 }
 0x35f   :  { %6152 = vmatpush3.bf16.msra.mxu0 %v6149_v36  ;;  %6115 = vmatprep.mubr.msk.f32.mxu0 %vm3465_vm9, %v8063_v38 }
 0x360   :  { %6154 = vmatprep.subr.bf16.mxu0 %v6153_v55 }
 0x362   :  { %6116 = vmatmul.mubr.msk.f32.vlgmr.msra.gmra.mrb[10].mxu0 %vm3465_vm9, %v8071_v0 }
 0x363   :  { %6156 = vmatpush3.bf16.msra.mxu0 %v6153_v55  ;;  %6122 = vmatprep.mubr.msk.f32.mxu0 %vm3465_vm9, %v8063_v38  ;;  %v6578_v55 = vld [vmem:[%s8223_s3 + $0x8] ss:$12 sps:$4 sm:$0xff]  }
 0x366   :  { %6123 = vmatmul.mubr.msk.f32.vlgmr.msra.gmra.mrb[12].mxu0 %vm3465_vm9, %v8071_v0 }
 0x431   :  { %v3535_v61 = vpop.f32.mrb[8].mxu0 }
 0x432   :  { %v3539_v27 = vpack.c.bf16 %v3535_v61, %v3535_v61  ;;  %v6070_v34 = vpop.f32.mrb[9].mxu0  ;;  %v6579_v61 = vld [vmem:[%s8223_s3 + $0x20] ss:$12 sps:$4 sm:$0xff]  }
 0x433   :  { %v6581_v34 = vld [vmem:[%s8223_s3 + $0x50] ss:$12 sps:$4 sm:$0xff]  }
 0x434   :  { %6088 = vmatmul.mubr.bf16.vlgmr.msra.gmra.mrb[8].mxu1 %v3539_v27  ;;  %v6580_v27 = vld [vmem:[%s8223_s3 + $0x38] ss:$12 sps:$4 sm:$0xff]  }
 0x435   :  { %v6117_v39 = vpop.f32.mrb[10].mxu0  ;;  %3878 = vmatprep.mubr.bf16.mxu1 %v8236_v21  ;;  %3847 = vmatpush1.bf16.msra.mxu1 %v6554_v28  ;;  %v6583_v21 = vld [vmem:[%s8223_s3 + $0x80] ss:$12 sps:$4 sm:$0xff]   ;;  %v6157_v28 = vpack.c.bf16 %v8047_v58, %v8045_v24 }
 0x436   :  { %4029 = vadd.xlane.f32.xlu1 %v6117_v39  ;;  %3848 = vmatprep.subr.bf16.mxu1 %v6559_v62  ;;  %v4018_v3 = vpop.f32.mrb[11].mxu0  ;;  %v6582_v39 = vld [vmem:[%s8223_s3 + $0x68] ss:$12 sps:$4 sm:$0xff]   ;;  %v3703_v62 = vlaneseq }
 0x437   :  { %4027 = vadd.xlane.f32.xlu0 %v4018_v3 }
 0x439   :  { %3849 = vmatpush1.bf16.msra.mxu1 %v6557_v7  ;;  %v6124_v43 = vpop.f32.mrb[12].mxu0  ;;  %v3704_v7 = vshrl.u32 %v3703_v62, 7 }
 0x43a   :  { %3850 = vmatprep.subr.bf16.mxu1 %v6562_v26  ;;  %v4097_v50 = vpop.f32.mrb[13].mxu0 }
 0x43b   :  { %4108 = vadd.xlane.f32.xlu0 %v6124_v43  ;;  %v3705_v26 = vsub.s32 0, %v3704_v7 }
 0x43d   :  { %3851 = vmatpush1.bf16.msra.mxu1 %v6560_v33  ;;  %v3701_v33 = vld [vmem:[%s8224_s4] sm:$0x7] }
 0x43e   :  { %3852 = vmatprep.subr.bf16.mxu1 %v6565_v18  ;;  %v3709_v18 = vsub.s32 1, %v3704_v7 }
 0x43f   :  { %4106 = vadd.xlane.f32.xlu0 %v4097_v50 }
 0x441   :  { %3853 = vmatpush1.bf16.msra.mxu1 %v6563_v40  ;;  %v3706_v40 = vrot.slane %v3701_v33, %v3705_v26 }
 0x442   :  { %3854 = vmatprep.subr.bf16.mxu1 %v6568_v57  ;;  %v3710_v57 = vrot.slane %v3701_v33, %v3709_v18 }
 0x445   :  { %3855 = vmatpush1.bf16.msra.mxu1 %v6566_v8 }
 0x446   :  { %3856 = vmatprep.subr.bf16.mxu1 %v6571_v49 }
 0x447   :  { %4227 = vperm.xlu1 %6277, %v4223_v41  }
 0x449   :  { %3857 = vmatpush1.bf16.msra.mxu1 %v6569_v52 }
 0x44a   :  { %3858 = vmatprep.subr.bf16.mxu1 %v6574_v29 }
 0x44b   :  { %6328 = vset.pattern.permute.xlu1 %v6626_v35 }
 0x44c   :  { %4242 = vperm.xlu1 %6328, %v4223_v41   ;;  %v6584_v41 = vld [vmem:[%s8223_s3 + $0x98] ss:$12 sps:$4 sm:$0xff]  }
 0x44d   :  { %3859 = vmatpush1.bf16.msra.mxu1 %v6572_v22 }
 0x44e   :  { %3860 = vmatprep.subr.bf16.mxu1 %v6577_v46  ;;  %v3713_v46 = vsub.s32 2, %v3704_v7 }
 0x451   :  { %3861 = vmatpush1.bf16.msra.mxu1 %v6575_v48  ;;  %v3714_v48 = vrot.slane %v3701_v33, %v3713_v46 }
 0x452   :  { %6091 = vmatprep.subr.bf16.mxu1 %v6623_v5 }
 0x507   :  { %v3638_v47 = vpop.f32.mrb[8].mxu1 }
 0x508   :  { %v3645_v37 = vsel %vm3644_vm10, %v3638_v47, 0.0  ;;  %v6089_v32 = vpop.f32.mrb[9].mxu1 }
 0x509   :  { %v3646_v42 = vrot.slane %v3645_v37, 4  ;;  %v3641_v44 = vpop.f32.mrb[10].mxu1 }
 0x50a   :  { %v6090_v63 = vpop.f32.mrb[11].mxu1 }
 0x50b   :  { %v3647_v12 = vadd.f32 %v3646_v42, %v3645_v37 }
 0x50d   :  { %v3648_v53 = vrot.slane %v3647_v12, 2 }
 0x50f   :  { %v3649_v2 = vadd.f32 %v3648_v53, %v3647_v12 }
 0x511   :  { %v3650_v45 = vrot.slane %v3649_v2, 1 }
 0x513   :  { %v3651_v14 = vadd.f32 %v3650_v45, %v3649_v2 }
 0x515   :  { %v3653_v16 = vmul.f32 0.5, %v3651_v14 }
 0x517   :  { %v3654_v20 = vsub.f32 %v3638_v47, %v3653_v16 }
 0x519   :  { %v3655_v59 = vmul.f32 %v3654_v20, %v3654_v20 }
 0x51b   :  { %v3656_v9 = vsel %vm3644_vm10, %v3655_v59, 0.0 }
 0x51c   :  { %v3657_v1 = vrot.slane %v3656_v9, 4 }
 0x51e   :  { %v3658_v30 = vadd.f32 %v3657_v1, %v3656_v9 }
 0x520   :  { %v3659_v31 = vrot.slane %v3658_v30, 2 }
 0x522   :  { %v3660_v4 = vadd.f32 %v3659_v31, %v3658_v30  ;;  %v4224_v30 = vld [vmem:[%s8222_s8 + $0x8] sm:$0xff]  ;;  %v4030_v31 = vpop.xlane.xlu1 %4029 }
 0x524   :  { %v3661_v51 = vrot.slane %v3660_v4, 1 }
 0x526   :  { %v3662_v23 = vadd.f32 %v3661_v51, %v3660_v4  ;;  %v4228_v4 = vpop.permute.xlu1 %4227 }
 0x528   :  { %v3663_v11 = vmul.f32 0.5, %v3662_v23 }
 0x52a   :  { %v3664_v19 = vadd.f32 1e-05, %v3663_v11 }
 0x52c   :  { %6592 = vrsqrt.f32 %v3664_v19 }
 0x536   :  { %v6593_v6 = vpop.eup %6592 }
 0x537   :  { %v3666_v36 = vmul.f32 %v6593_v6, %v3654_v20  ;;  %v4243_v6 = vpop.permute.xlu1 %4242 }
 0x539   :  { %v3667_v60 = vmax.f32 %v3666_v36, 0.0 }
 0x53b   :  { %v3668_v56 = vpack.c.bf16 %v3667_v60, %v3667_v60 }
 0x53d   :  { %3879 = vmatmul.mubr.bf16.vlgmr.msra.gmra.mrb[12].mxu1 %v3668_v56 }
 0x53e   :  { %6092 = vmatpush3.bf16.msra.mxu1 %v6578_v55  ;;  %6107 = vmatprep.mubr.msk.bf16.mxu1 %vm6624_vm14, %v6623_v5 }
 0x53f   :  { %6093 = vmatprep.subr.bf16.mxu1 %v6623_v5 }
 0x542   :  { %6094 = vmatpush3.bf16.msra.mxu1 %v6579_v61 }
 0x543   :  { %6095 = vmatprep.subr.bf16.mxu1 %v6623_v5 }
 0x546   :  { %6096 = vmatpush3.bf16.msra.mxu1 %v6580_v27 }
 0x547   :  { %6097 = vmatprep.subr.bf16.mxu1 %v6623_v5 }
 0x54a   :  { %6098 = vmatpush3.bf16.msra.mxu1 %v6581_v34 }
 0x54b   :  { %6099 = vmatprep.subr.bf16.mxu1 %v6623_v5 }
 0x54e   :  { %6100 = vmatpush3.bf16.msra.mxu1 %v6582_v39 }
 0x54f   :  { %6101 = vmatprep.subr.bf16.mxu1 %v6623_v5 }
 0x552   :  { %6102 = vmatpush3.bf16.msra.mxu1 %v6583_v21 }
 0x553   :  { %6103 = vmatprep.subr.bf16.mxu1 %v6623_v5 }
 0x556   :  { %6104 = vmatpush3.bf16.msra.mxu1 %v6584_v41 }
 0x557   :  { %6105 = vmatprep.subr.bf16.mxu1 %v6623_v5 }
 0x55a   :  { %6106 = vmatpush3.bf16.msra.mxu1 %v6585_v54 }
 0x55b   :  { %6158 = vmatprep.subr.bf16.mxu1 %v6157_v28 }
 0x55d   :  { %6108 = vmatmul.mubr.bf16.vlgmr.msra.gmra.mrb[16].mxu1 %v3668_v56 }
 0x55e   :  { %6160 = vmatpush3.bf16.msra.mxu1 %v6157_v28  ;;  %6129 = vmatprep.mubr.msk.f32.mxu1 %vm3465_vm9, %v8063_v38 }
 0x55f   :  { %6161 = vmatprep.subr.bf16.mxu1 %v6625_v25 }
 0x565   :  { %6130 = vmatmul.mubr.msk.f32.vlgmr.msra.gmra.mrb[20].mxu1 %vm3465_vm9, %v8071_v0 }
 0x566   :  { %6136 = vmatprep.mubr.msk.f32.mxu1 %vm6624_vm14, %v6623_v5 }
 0x610   :  { %v3880_v8 = vpop.f32.mrb[12].mxu1 }
 0x611   :  { %v3881_v38 = vadd.f32 %v3880_v8, %v3706_v40  ;;  %v3882_v49 = vpop.f32.mrb[13].mxu1 }
 0x612   :  { %v3883_v52 = vadd.f32 %v3882_v49, %v3710_v57  ;;  %v3884_v29 = vpop.f32.mrb[14].mxu1 }
 0x613   :  { %v3885_v22 = vpop.f32.mrb[15].mxu1 }
 0x614   :  { %v3927_v0 = vmax.f32 %v3881_v38, %v3883_v52 }
 0x630   :  { %v3921_v3 = vpop.f32.mrb[16].mxu1 }
 0x631   :  { %v3922_v43 = vadd.f32 %v3921_v3, %v3714_v48  ;;  %v6109_v50 = vpop.f32.mrb[17].mxu1 }
 0x632   :  { %v3924_v47 = vpop.f32.mrb[18].mxu1 }
 0x633   :  { %v3928_v37 = vmax.f32 %v3927_v0, %v3922_v43  ;;  %v6110_v32 = vpop.f32.mrb[19].mxu1 }
 0x635   :  { %v3929_v42 = vsub.f32 %v3881_v38, %v3928_v37  ;;  %v3932_v44 = vsub.f32 %v3883_v52, %v3928_v37  ;;  %v3935_v63 = vsub.f32 %v3922_v43, %v3928_v37  ;;  %v4028_v38 = vpop.xlane.xlu0 %4027 }
 0x637   :  { %v3930_v12 = vmul.f32 1.442695, %v3929_v42  ;;  %v3933_v53 = vmul.f32 1.442695, %v3932_v44  ;;  %v3936_v2 = vmul.f32 1.442695, %v3935_v63 }
 0x638   :  { %v6131_v45 = vpop.f32.mrb[20].mxu1 }
 0x639   :  { %6594 = vpow2.f32 %v3930_v12  ;;  %4187 = vadd.xlane.f32.xlu0 %v6131_v45  ;;  %v4176_v14 = vpop.f32.mrb[21].mxu1 }
 0x63a   :  { %6596 = vpow2.f32 %v3933_v53  ;;  %4185 = vadd.xlane.f32.xlu1 %v4176_v14 }
 0x63b   :  { %6598 = vpow2.f32 %v3936_v2 }
 0x643   :  { %v6595_v16 = vpop.eup %6594 }
 0x644   :  { %v6597_v20 = vpop.eup %6596 }
 0x645   :  { %v3938_v59 = vadd.f32 %v6597_v20, %v6595_v16  ;;  %v6599_v9 = vpop.eup %6598 }
 0x647   :  { %v3939_v1 = vadd.f32 %v6599_v9, %v3938_v59 }
 0x649   :  { %6600 = vrcp.f32 %v3939_v1 }
 0x64b   :  { %4246 = vperm.xlu1 %6328, %v4224_v30  }
 0x64f   :  { %4232 = vperm.xlu0 %6266, %v4224_v30  }
 0x653   :  { %v6601_v51 = vpop.eup %6600  ;;  %6329 = vset.pattern.permute.xlu0 %v6626_v35 }
 0x654   :  { %v3941_v23 = vmul.f32 %v6601_v51, %v6595_v16  ;;  %v3942_v11 = vmul.f32 %v6601_v51, %v6597_v20  ;;  %v3943_v19 = vmul.f32 %v6601_v51, %v6599_v9 }
 0x656   :  { %v4252_v36 = vrot.slane %v3941_v23, %v3709_v18  ;;  %v4270_v60 = vrot.slane %v3942_v11, %v3709_v18  ;;  %v4292_v55 = vrot.slane %v3943_v19, %v3709_v18  ;;  %v4238_v56 = vrot.slane %v3941_v23, %v3705_v26 }
 0x657   :  { %v4264_v61 = vrot.slane %v3942_v11, %v3705_v26  ;;  %v4286_v27 = vrot.slane %v3943_v19, %v3705_v26  ;;  %v4109_v26 = vpop.xlane.xlu0 %4108 }
 0x658   :  { %v4253_v34 = vmul.f32 %v4252_v36, %v4243_v6  ;;  %v4271_v39 = vmul.f32 %v4270_v60, %v4243_v6  ;;  %v4293_v21 = vmul.f32 %v4292_v55, %v4243_v6  ;;  %v4239_v41 = vmul.f32 %v4238_v56, %v4228_v4 }
 0x659   :  { %v4265_v54 = vmul.f32 %v4264_v61, %v4228_v4  ;;  %v4287_v28 = vmul.f32 %v4286_v27, %v4228_v4  ;;  %v4190_v52 = vmax.f32 %v4030_v31, %v4109_v26 }
 0x65a   :  { %v4255_v62 = vadd.f32 %v4253_v34, %v4239_v41 }
 0x65b   :  { %v4273_v7 = vadd.f32 %v4271_v39, %v4265_v54  ;;  %v4295_v33 = vadd.f32 %v4293_v21, %v4287_v28  ;;  %v4107_v49 = vpop.xlane.xlu0 %4106  ;;  %v4348_v54 = vld [vmem:[%s8225_s10] sm:$0xff] }
 0x65c   :  { %v4257_v35 = vmul.f32 %v4255_v62, %v8040_v13  ;;  %v4189_v29 = vmax.f32 %v4028_v38, %v4107_v49 }
 0x65d   :  { %v4275_v40 = vmul.f32 %v4273_v7, %v8035_v10  ;;  %v4297_v8 = vmul.f32 %v4295_v33, %v8045_v24 }
 0x65f   :  { %v4279_v57 = vadd.f32 %v4275_v40, %v4257_v35 }
 0x661   :  { %v8190_v18 = vadd.f32 %v4297_v8, %v4279_v57 }
 0x6c6   :  { %v4188_v22 = vpop.xlane.xlu0 %4187 }
 0x6c7   :  { %v4192_v0 = vmax.f32 %v4190_v52, %v4188_v22  ;;  %v4186_v46 = vpop.xlane.xlu1 %4185 }
 0x6c8   :  { %v4191_v48 = vmax.f32 %v4189_v29, %v4186_v46 }
 0x6c9   :  { %v4194_v3 = vsub.f32 %v4030_v31, %v4192_v0  ;;  %v4200_v43 = vsub.f32 %v4109_v26, %v4192_v0  ;;  %v4206_v50 = vsub.f32 %v4188_v22, %v4192_v0 }
 0x6ca   :  { %v4193_v47 = vsub.f32 %v4028_v38, %v4191_v48  ;;  %v4199_v37 = vsub.f32 %v4107_v49, %v4191_v48  ;;  %v4205_v32 = vsub.f32 %v4186_v46, %v4191_v48 }
 0x6cb   :  { %v4197_v42 = vmul.f32 1.442695, %v4194_v3  ;;  %v4203_v44 = vmul.f32 1.442695, %v4200_v43  ;;  %v4209_v63 = vmul.f32 1.442695, %v4206_v50  ;;  %v4247_v12 = vpop.permute.xlu1 %4246 }
 0x6cc   :  { %v4195_v53 = vmul.f32 1.442695, %v4193_v47  ;;  %v4201_v2 = vmul.f32 1.442695, %v4199_v37  ;;  %v4207_v45 = vmul.f32 1.442695, %v4205_v32  ;;  %v4254_v14 = vmul.f32 %v4252_v36, %v4247_v12 }
 0x6cd   :  { %6602 = vpow2.f32 %v4197_v42  ;;  %v4272_v16 = vmul.f32 %v4270_v60, %v4247_v12  ;;  %v4294_v20 = vmul.f32 %v4292_v55, %v4247_v12 }
 0x6ce   :  { %6604 = vpow2.f32 %v4203_v44  ;;  %v4233_v59 = vpop.permute.xlu0 %4232 }
 0x6cf   :  { %6606 = vpow2.f32 %v4209_v63  ;;  %v4240_v9 = vmul.f32 %v4238_v56, %v4233_v59  ;;  %v4266_v1 = vmul.f32 %v4264_v61, %v4233_v59  ;;  %v4288_v30 = vmul.f32 %v4286_v27, %v4233_v59 }
 0x6d0   :  { %6608 = vpow2.f32 %v4195_v53 }
 0x6d1   :  { %6610 = vpow2.f32 %v4201_v2  ;;  %v4256_v31 = vadd.f32 %v4254_v14, %v4240_v9  ;;  %v4274_v4 = vadd.f32 %v4272_v16, %v4266_v1  ;;  %v4296_v51 = vadd.f32 %v4294_v20, %v4288_v30 }
 0x6d2   :  { %6612 = vpow2.f32 %v4207_v45 }
 0x6d3   :  { %v4258_v23 = vmul.f32 %v4256_v31, %v8043_v15  ;;  %v4276_v11 = vmul.f32 %v4274_v4, %v8037_v17  ;;  %v4298_v6 = vmul.f32 %v4296_v51, %v8047_v58 }
 0x6d5   :  { %v4280_v19 = vadd.f32 %v4276_v11, %v4258_v23 }
 0x6d7   :  { %v6603_v36 = vpop.eup %6602  ;;  %v4302_v60 = vadd.f32 %v4298_v6, %v4280_v19 }
 0x6d8   :  { %v6605_v55 = vpop.eup %6604 }
 0x6d9   :  { %v6607_v34 = vpop.eup %6606  ;;  %v4212_v56 = vadd.f32 %v6605_v55, %v6603_v36  ;;  %v4305_v61 = vadd.f32 %v4302_v60, %v8190_v18  ;;  %v6162_v27 = vpack.c.bf16 %v4302_v60, %v8190_v18 }
 0x6da   :  { %v6609_v39 = vpop.eup %6608 }
 0x6db   :  { %v6611_v21 = vpop.eup %6610  ;;  %v4214_v41 = vadd.f32 %v6607_v34, %v4212_v56  ;;  %6163 = vmatpush3.bf16.msra.mxu1 %v6162_v27 }
 0x6dc   :  { %v4211_v28 = vadd.f32 %v6611_v21, %v6609_v39  ;;  %6164 = vmatprep.subr.bf16.mxu1 %v6625_v25  ;;  %v6613_v62 = vpop.eup %6612  ;;  %v4306_v25 = vrot.slane %v4305_v61, 4 }
 0x6dd   :  { %6614 = vrcp.f32 %v4214_v41 }
 0x6de   :  { %v4213_v7 = vadd.f32 %v6613_v62, %v4211_v28  ;;  %6137 = vmatmul.mubr.msk.f32.vlgmr.msra.gmra.mrb[22].mxu1 %vm3465_vm9, %v4348_v54  ;;  %v4307_v48 = vadd.f32 %v4306_v25, %v4305_v61 }
 0x6df   :  { %6143 = vmatprep.mubr.msk.f32.mxu1 %vm6624_vm14, %v6623_v5 }
 0x6e0   :  { %6616 = vrcp.f32 %v4213_v7 }
 0x6e7   :  { %v6615_v33 = vpop.eup %6614 }
 0x6e8   :  { %v4218_v35 = vmul.f32 %v6615_v33, %v6603_v36  ;;  %v4220_v40 = vmul.f32 %v6615_v33, %v6605_v55  ;;  %v4222_v57 = vmul.f32 %v6615_v33, %v6607_v34 }
 0x6ea   :  { %v6617_v8 = vpop.eup %6616  ;;  %v4260_v38 = vmul.f32 %v4218_v35, %v8043_v15  ;;  %v4278_v26 = vmul.f32 %v4220_v40, %v8037_v17  ;;  %v4300_v5 = vmul.f32 %v4222_v57, %v8047_v58  ;;  %v4308_v15 = vrot.slane %v4307_v48, 2 }
 0x6eb   :  { %v4221_v49 = vmul.f32 %v6617_v8, %v6613_v62  ;;  %v4217_v52 = vmul.f32 %v6617_v8, %v6609_v39  ;;  %v4219_v29 = vmul.f32 %v6617_v8, %v6611_v21 }
 0x6ec   :  { %v4282_v22 = vadd.f32 %v4278_v26, %v4260_v38  ;;  %v4309_v42 = vadd.f32 %v4308_v15, %v4307_v48 }
 0x6ed   :  { %v4259_v0 = vmul.f32 %v4217_v52, %v8040_v13  ;;  %v4277_v46 = vmul.f32 %v4219_v29, %v8035_v10  ;;  %v4299_v43 = vmul.f32 %v4221_v49, %v8045_v24 }
 0x6ee   :  { %v4304_v50 = vadd.f32 %v4300_v5, %v4282_v22  ;;  %v4310_v63 = vrot.slane %v4309_v42, 1 }
 0x6ef   :  { %v4281_v3 = vadd.f32 %v4277_v46, %v4259_v0 }
 0x6f0   :  { %v4311_v58 = vadd.f32 %v4310_v63, %v4309_v42 }
 0x6f1   :  { %v4303_v47 = vadd.f32 %v4299_v43, %v4281_v3 }
 0x6f3   :  { %v4312_v37 = vadd.f32 %v4304_v50, %v4303_v47  ;;  %v6165_v17 = vpack.c.bf16 %v4304_v50, %v4303_v47 }
 0x6f5   :  { %v4313_v32 = vrot.slane %v4312_v37, 4  ;;  %6166 = vmatpush3.bf16.msra.mxu1 %v6165_v17 }
 0x6f7   :  { %v4314_v44 = vadd.f32 %v4313_v32, %v4312_v37 }
 0x6f8   :  { %6144 = vmatmul.mubr.msk.f32.vlgmr.msra.gmra.mrb[24].mxu1 %vm3465_vm9, %v4348_v54 }
 0x6f9   :  { %v4315_v13 = vrot.slane %v4314_v44, 2 }
 0x6fb   :  { %v4316_v10 = vadd.f32 %v4315_v13, %v4314_v44 }
 0x6fd   :  { %v4317_v12 = vrot.slane %v4316_v10, 1 }
 0x6ff   :  { %v4318_v53 = vadd.f32 %v4317_v12, %v4316_v10 }
 0x701   :  { %v4319_v2 = vadd.f32 %v4318_v53, %v4311_v58 }
 0x703   :  { %v4321_v45 = vmul.f32 0.03125, %v4319_v2 }
 0x705   :  { %v4333_v24 = vsub.f32 %v4303_v47, %v4321_v45  ;;  %v4334_v14 = vsub.f32 %v4304_v50, %v4321_v45  ;;  %v4322_v16 = vsub.f32 %v8190_v18, %v4321_v45  ;;  %v4323_v20 = vsub.f32 %v4302_v60, %v4321_v45 }
 0x707   :  { %v4335_v59 = vmul.f32 %v4333_v24, %v4333_v24  ;;  %v4336_v9 = vmul.f32 %v4334_v14, %v4334_v14  ;;  %v4324_v1 = vmul.f32 %v4322_v16, %v4322_v16  ;;  %v4325_v30 = vmul.f32 %v4323_v20, %v4323_v20 }
 0x709   :  { %v4337_v31 = vadd.f32 %v4336_v9, %v4335_v59  ;;  %v4326_v4 = vadd.f32 %v4325_v30, %v4324_v1 }
 0x70b   :  { %v4338_v51 = vrot.slane %v4337_v31, 4  ;;  %v4327_v23 = vrot.slane %v4326_v4, 4 }
 0x70d   :  { %v4328_v11 = vadd.f32 %v4327_v23, %v4326_v4  ;;  %v4339_v19 = vadd.f32 %v4338_v51, %v4337_v31 }
 0x70f   :  { %v4329_v6 = vrot.slane %v4328_v11, 2  ;;  %v4340_v36 = vrot.slane %v4339_v19, 2 }
 0x711   :  { %v4330_v55 = vadd.f32 %v4329_v6, %v4328_v11  ;;  %v4341_v34 = vadd.f32 %v4340_v36, %v4339_v19 }
 0x713   :  { %v4331_v56 = vrot.slane %v4330_v55, 1  ;;  %v4342_v61 = vrot.slane %v4341_v34, 1 }
 0x715   :  { %v4332_v27 = vadd.f32 %v4331_v56, %v4330_v55  ;;  %v4343_v39 = vadd.f32 %v4342_v61, %v4341_v34 }
 0x717   :  { %v4344_v18 = vadd.f32 %v4343_v39, %v4332_v27 }
 0x719   :  { %v4345_v60 = vmul.f32 0.03125, %v4344_v18 }
 0x71b   :  { %v4346_v21 = vadd.f32 1e-05, %v4345_v60 }
 0x71d   :  { %6618 = vrsqrt.f32 %v4346_v21 }
 0x727   :  { %v6619_v62 = vpop.eup %6618 }
 0x7b1   :  { %v4418_v41 = vpop.f32.mrb[22].mxu1 }
 0x7b2   :  { %v4422_v54 = vsub.f32 %v4418_v41, %v4321_v45  ;;  %v6138_v28 = vpop.f32.mrb[23].mxu1 }
 0x7b4   :  { %v4423_v7 = vmul.f32 %v6619_v62, %v4422_v54 }
 0x7b6   :  { %v4496_v33 = vrot.slane %v4423_v7, 4 }
 0x7b8   :  { %v4497_v35 = vadd.f32 %v4496_v33, %v4423_v7 }
 0x7ba   :  { %v4498_v38 = vrot.slane %v4497_v35, 2 }
 0x7bc   :  { %v4499_v25 = vadd.f32 %v4498_v38, %v4497_v35 }
 0x7be   :  { %v4500_v22 = vrot.slane %v4499_v25, 1 }
 0x7c0   :  { %v4501_v5 = vadd.f32 %v4500_v22, %v4499_v25 }
 0x7cb   :  { %v4490_v40 = vpop.f32.mrb[24].mxu1 }
 0x7cc   :  { %v4494_v57 = vsub.f32 %v4490_v40, %v4321_v45  ;;  %v6145_v8 = vpop.f32.mrb[25].mxu1 }
 0x7ce   :  { %v4495_v26 = vmul.f32 %v6619_v62, %v4494_v57 }
 0x7d0   :  { %v4502_v49 = vrot.slane %v4495_v26, 4 }
 0x7d2   :  { %v4503_v52 = vadd.f32 %v4502_v49, %v4495_v26 }
 0x7d4   :  { %v4504_v29 = vrot.slane %v4503_v52, 2 }
 0x7d6   :  { %v4505_v0 = vadd.f32 %v4504_v29, %v4503_v52 }
 0x7d8   :  { %v4506_v46 = vrot.slane %v4505_v0, 1 }
 0x7da   :  { %v4507_v48 = vadd.f32 %v4506_v46, %v4505_v0 }
 0x7dc   :  { %v4508_v3 = vadd.f32 %v4507_v48, %v4501_v5 }
 0x7de   :  { %v4509_v43 = vmul.f32 0.0625, %v4508_v3 }
 0x7e0   :  { %v4510_v50 = vsub.f32 %v4423_v7, %v4509_v43  ;;  %v4518_v47 = vsub.f32 %v4495_v26, %v4509_v43 }
 0x7e2   :  { %v4511_v15 = vmul.f32 %v4510_v50, %v4510_v50  ;;  %v4519_v37 = vmul.f32 %v4518_v47, %v4518_v47 }
 0x7e4   :  { %v4512_v17 = vrot.slane %v4511_v15, 4  ;;  %v4520_v32 = vrot.slane %v4519_v37, 4 }
 0x7e6   :  { %v4513_v42 = vadd.f32 %v4512_v17, %v4511_v15  ;;  %v4521_v44 = vadd.f32 %v4520_v32, %v4519_v37 }
 0x7e8   :  { %v4514_v13 = vrot.slane %v4513_v42, 2  ;;  %v4522_v63 = vrot.slane %v4521_v44, 2 }
 0x7ea   :  { %v4515_v10 = vadd.f32 %v4514_v13, %v4513_v42  ;;  %v4523_v12 = vadd.f32 %v4522_v63, %v4521_v44 }
 0x7ec   :  { %v4516_v58 = vrot.slane %v4515_v10, 1  ;;  %v4524_v53 = vrot.slane %v4523_v12, 1 }
 0x7ee   :  { %v4517_v2 = vadd.f32 %v4516_v58, %v4515_v10  ;;  %v4525_v45 = vadd.f32 %v4524_v53, %v4523_v12 }
 0x7f0   :  { %v4526_v24 = vadd.f32 %v4525_v45, %v4517_v2 }
 0x7f2   :  { %v4527_v14 = vmul.f32 0.0625, %v4526_v24 }
 0x7f4   :  { %v4528_v16 = vadd.f32 1e-05, %v4527_v14 }
 0x7f6   :  { %6620 = vrsqrt.f32 %v4528_v16 }
 0x800   :  { %v6621_v20 = vpop.eup %6620 }
 0x801   :  { %v4530_v59 = vmul.f32 %v6621_v20, %v4510_v50  ;;  %v4533_v9 = vmul.f32 %v6621_v20, %v4518_v47 }
 0x803   :  { %v5240_v1 = vpack.c.bf16 %v4533_v9, %v4530_v59 }
 0x805   :  { %5241 = vst [vmem:[%s8226_s11] sm:$0xff] %v5240_v1  }

// kernel: dsknet_forward.4
= control target key start
LH: loop header
LB: loop body
LE: loop exit
PB: predicated region body
PF: predicated region fallthrough
CT: control target
= control target key end

     0   :  { %v14010_v0 = vmov 0   ;;  %v14012_v7 = vmov 0.0   ;;  %s13998_s5 = inlined_call_operand.vmem [shape: f32[64,1], index: 5, kind: input, shape index: {}]   ;;  %s13999_s6 = inlined_call_operand.vmem [shape: f32[64,1], index: 6, kind: input, shape index: {}]   ;;  %s14000_s1 = inlined_call_operand.vmem [shape: bf16[27,128,128], index: 1, kind: input, shape index: {}]   ;;  %s14001_s0 = inlined_call_operand.vmem [shape: f32[96,128], index: 0, kind: input, shape index: {}]   ;;  %s14002_s8 = inlined_call_operand.vmem [shape: f32[64,2], index: 8, kind: input, shape index: {}]   ;;  %s14003_s2 = inlined_call_operand.vmem [shape: bf16[128,128], index: 2, kind: input, shape index: {}]   ;;  %s14004_s7 = inlined_call_operand.vmem [shape: f32[2,64], index: 7, kind: input, shape index: {}]   ;;  %s14005_s3 = inlined_call_operand.vmem [shape: bf16[128,384], index: 3, kind: input, shape index: {}]   ;;  %s14006_s9 = inlined_call_operand.vmem [shape: f32[64,64], index: 9, kind: input, shape index: {}]   ;;  %s14007_s4 = inlined_call_operand.vmem [shape: f32[1,384], index: 4, kind: input, shape index: {}]   ;;  %s14008_s10 = inlined_call_operand.vmem [shape: f32[32,64], index: 10, kind: input, shape index: {}]   ;;  %s14009_s11 = inlined_call_operand.vmem [shape: bf16[64,128], index: 11, kind: output, shape index: {}]  }
   0x1   :  { %9805 = vset.pattern.permute.xlu1 %v14010_v0  ;;  %9804 = vset.pattern.permute.xlu0 %v14010_v0  ;;  %v10509_v1 = vld [vmem:[%s13998_s5 + $0x10] sm:$0xff]  ;;  %v10519_v3 = vld [vmem:[%s13998_s5] sm:$0xff]  ;;  %v10532_v5 = vld [vmem:[%s13998_s5 + $0x18] sm:$0xff] }
   0x2   :  { %v10514_v2 = vld [vmem:[%s13999_s6 + $0x10] sm:$0xff]  ;;  %vm65_vm0 = vcmp.ge.f32.partialorder %v10509_v1, 1.0  ;;  %v10526_v4 = vld [vmem:[%s13999_s6] sm:$0xff]  ;;  %vm63_vm2 = vcmp.ge.f32.partialorder %v10519_v3, 1.0  ;;  %v10537_v6 = vld [vmem:[%s13999_s6 + $0x18] sm:$0xff]  ;;  %vm66_vm4 = vcmp.ge.f32.partialorder %v10532_v5, 1.0 }
   0x3   :  { %vm500_vm1 = vcmp.lt.f32.partialorder %v10514_v2, 3.0  ;;  %v10540_v8 = vsel %vm65_vm0, 1.0, %v14012_v7  ;;  %v10546_v10 = vsel %vm63_vm2, 1.0, %v14012_v7  ;;  %vm498_vm3 = vcmp.lt.f32.partialorder %v10526_v4, 3.0  ;;  %v10552_v11 = vld [vmem:[%s13998_s5 + $0x8] sm:$0xff]  ;;  %v10579_v17 = vld [vmem:[%s13998_s5 + $0x20] sm:$0xff] }
   0x4   :  { %v10543_v9 = vsel %vm500_vm1, 1.0, %v14012_v7  ;;  %v10557_v12 = vld [vmem:[%s13999_s6 + $0x8] sm:$0xff]  ;;  %v10562_v14 = vsel %vm498_vm3, 1.0, %v14012_v7  ;;  %vm501_vm5 = vcmp.lt.f32.partialorder %v10537_v6, 3.0  ;;  %v10584_v19 = vsel %vm66_vm4, 1.0, %v14012_v7  ;;  %v10593_v21 = vld [vmem:[%s13999_s6 + $0x20] sm:$0xff] }
   0x5   :  { %v524_v13 = vmul.f32 %v10543_v9, %v10540_v8  ;;  %v10569_v15 = vld [vmem:[%s13998_s5 + $0x28] sm:$0xff]  ;;  %v522_v18 = vmul.f32 %v10562_v14, %v10546_v10  ;;  %v10587_v20 = vsel %vm501_vm5, 1.0, %v14012_v7  ;;  %vm64_vm6 = vcmp.ge.f32.partialorder %v10552_v11, 1.0  ;;  %v10598_v22 = vld [vmem:[%s13998_s5 + $0x38] sm:$0xff]  ;;  %v10615_v26 = vld [vmem:[%s13998_s5 + $0x30] sm:$0xff] }
   0x6   :  { %v10574_v16 = vld [vmem:[%s13999_s6 + $0x28] sm:$0xff]  ;;  %v10603_v23 = vld [vmem:[%s13999_s6 + $0x38] sm:$0xff]  ;;  %v525_v24 = vmul.f32 %v10587_v20, %v10584_v19  ;;  %v10608_v25 = vsel %vm64_vm6, 1.0, %v14012_v7  ;;  %vm499_vm7 = vcmp.lt.f32.partialorder %v10557_v12, 3.0  ;;  %vm68_vm8 = vcmp.ge.f32.partialorder %v10569_v15, 1.0  ;;  %v10620_v27 = vld [vmem:[%s13999_s6 + $0x30] sm:$0xff] }
   0x7   :  { %542 = vperm.xlu1 %9805, %v524_v13   ;;  %v10054_v28 = vld [vmem:[%s14000_s1 + $0x80] sm:$0xff]   ;;  %532 = vperm.xlu0 %9804, %v522_v18   ;;  %v10626_v29 = vsel %vm499_vm7, 1.0, %v14012_v7  ;;  %v10629_v30 = vsel %vm68_vm8, 1.0, %v14012_v7  ;;  %vm503_vm9 = vcmp.lt.f32.partialorder %v10574_v16, 3.0  ;;  %vm67_vm10 = vcmp.ge.f32.partialorder %v10579_v17, 1.0  ;;  %v10055_v34 = vld [vmem:[%s14000_s1 + $0x88] sm:$0xff]  }
   0x8   :  { %v523_v31 = vmul.f32 %v10626_v29, %v10608_v25  ;;  %v10636_v32 = vsel %vm503_vm9, 1.0, %v14012_v7  ;;  %v10639_v33 = vsel %vm67_vm10, 1.0, %v14012_v7  ;;  %vm502_vm11 = vcmp.lt.f32.partialorder %v10593_v21, 3.0  ;;  %8728 = vmatprep.subr.bf16.mxu0 %v10054_v28  ;;  %v10056_v38 = vld [vmem:[%s14000_s1 + $0x90] sm:$0xff]   ;;  %v10057_v45 = vld [vmem:[%s14000_s1 + $0x98] sm:$0xff]   ;;  %v10058_v51 = vld [vmem:[%s14000_s1 + $0xa0] sm:$0xff]  }
   0x9   :  { %v10646_v35 = vsel %vm502_vm11, 1.0, %v14012_v7  ;;  %vm70_vm12 = vcmp.ge.f32.partialorder %v10598_v22, 1.0  ;;  %vm505_vm13 = vcmp.lt.f32.partialorder %v10603_v23, 3.0  ;;  %8729 = vmatpush3.bf16.msra.mxu0 %v10054_v28  ;;  %v527_v36 = vmul.f32 %v10636_v32, %v10629_v30  ;;  %v10059_v59 = vld [vmem:[%s14000_s1 + $0xa8] sm:$0xff]   ;;  %v10060_v61 = vld [vmem:[%s14000_s1 + $0xb0] sm:$0xff]   ;;  %v10066_v28 = vld [vmem:[%s14000_s1 + $0x40] sm:$0xff]  }
   0xa   :  { %v526_v37 = vmul.f32 %v10646_v35, %v10639_v33  ;;  %vm69_vm14 = vcmp.ge.f32.partialorder %v10615_v26, 1.0  ;;  %8730 = vmatprep.subr.bf16.mxu0 %v10055_v34  ;;  %v10659_v39 = vsel %vm70_vm12, 1.0, %v14012_v7  ;;  %v10662_v40 = vsel %vm505_vm13, 1.0, %v14012_v7  ;;  %8680 = vmatprep.subr.bf16.mxu1 %v10066_v28 }
   0xb   :  { %547 = vperm.xlu1 %9805, %v525_v24   ;;  %537 = vperm.xlu0 %9804, %v523_v31   ;;  %vm504_vm15 = vcmp.lt.f32.partialorder %v10620_v27, 3.0  ;;  %vm89_vm0 = vcmp.ge.f32.partialorder %v10514_v2, 1.0  ;;  %v10667_v41 = vsel %vm69_vm14, 1.0, %v14012_v7  ;;  %vm90_vm1 = vcmp.ge.f32.partialorder %v10537_v6, 1.0  ;;  %v10061_v24 = vld [vmem:[%s14000_s1 + $0xb8] sm:$0xff]  }
   0xc   :  { %v10670_v42 = vsel %vm504_vm15, 1.0, %v14012_v7  ;;  %vm87_vm2 = vcmp.ge.f32.partialorder %v10526_v4, 1.0  ;;  %vm88_vm3 = vcmp.ge.f32.partialorder %v10557_v12, 1.0  ;;  %v529_v43 = vmul.f32 %v10662_v40, %v10659_v39  ;;  %8681 = vmatpush3.bf16.msra.mxu1 %v10066_v28 }
   0xd   :  { %8731 = vmatpush3.bf16.msra.mxu0 %v10055_v34  ;;  %v10678_v44 = vsel %vm89_vm0, 1.0, %v14012_v7  ;;  %v528_v46 = vmul.f32 %v10670_v42, %v10667_v41  ;;  %v10686_v47 = vsel %vm90_vm1, 1.0, %v14012_v7  ;;  %v10689_v48 = vsel %vm87_vm2, 1.0, %v14012_v7 }
   0xe   :  { %8732 = vmatprep.subr.bf16.mxu0 %v10056_v38  ;;  %v10692_v49 = vsel %vm88_vm3, 1.0, %v14012_v7  ;;  %vm93_vm4 = vcmp.ge.f32.partialorder %v10620_v27, 1.0  ;;  %vm94_vm5 = vcmp.ge.f32.partialorder %v10603_v23, 1.0  ;;  %vm91_vm6 = vcmp.ge.f32.partialorder %v10593_v21, 1.0 }
   0xf   :  { %557 = vperm.xlu1 %9805, %v527_v36   ;;  %552 = vperm.xlu0 %9804, %v526_v37   ;;  %vm92_vm7 = vcmp.ge.f32.partialorder %v10574_v16, 1.0  ;;  %v9811_v50 = vpack.i.bf16 %v10686_v47, %v10678_v44  ;;  %v9806_v52 = vpack.i.bf16 %v10692_v49, %v10689_v48  ;;  %v10706_v53 = vsel %vm93_vm4, 1.0, %v14012_v7  ;;  %v10068_v37 = vld [vmem:[%s14000_s1 + $0x48] sm:$0xff]  }
  0x10   :  { %v10709_v54 = vsel %vm94_vm5, 1.0, %v14012_v7  ;;  %v10712_v55 = vsel %vm91_vm6, 1.0, %v14012_v7  ;;  %v10715_v56 = vsel %vm92_vm7, 1.0, %v14012_v7  ;;  %v9831_v60 = vpack.i.bf16 %v10587_v20, %v10543_v9  ;;  %8682 = vmatprep.subr.bf16.mxu1 %v10068_v37 }
  0x11   :  { %8733 = vmatpush3.bf16.msra.mxu0 %v10056_v38  ;;  %v9821_v57 = vpack.i.bf16 %v10709_v54, %v10706_v53  ;;  %v9816_v58 = vpack.i.bf16 %v10715_v56, %v10712_v55  ;;  %v9826_v62 = vpack.i.bf16 %v10626_v29, %v10562_v14  ;;  %vm1275_vm8 = vcmp.lt.f32.partialorder %v10552_v11, 7.0  ;;  %8683 = vmatpush3.bf16.msra.mxu1 %v10068_v37  ;;  %v10074_v37 = vld [vmem:[%s14000_s1 + $0x60] sm:$0xff]  }
  0x12   :  { %8734 = vmatprep.subr.bf16.mxu0 %v10057_v45  ;;  %v10734_v63 = vmul.f32 %v10709_v54, %v10659_v39  ;;  %vm1274_vm9 = vcmp.lt.f32.partialorder %v10519_v3, 7.0  ;;  %v10739_v13 = vmul.f32 %v10706_v53, %v10667_v41  ;;  %v9841_v18 = vpack.i.bf16 %v10662_v40, %v10670_v42 }
  0x13   :  { %567 = vperm.xlu1 %9805, %v529_v43   ;;  %562 = vperm.xlu0 %9804, %v528_v46   ;;  %v9836_v31 = vpack.i.bf16 %v10636_v32, %v10646_v35  ;;  %v10752_v34 = vsel %vm1275_vm8, 1.0, %v14012_v7  ;;  %v10755_v36 = vsel %vm1274_vm9, 1.0, %v14012_v7  ;;  %vm1277_vm10 = vcmp.lt.f32.partialorder %v10532_v5, 7.0  ;;  %v10767_v43 = vld [vmem:[%s14000_s1 + $0xc0] sm:$0xff]  }
  0x14   :  { %vm1276_vm11 = vcmp.lt.f32.partialorder %v10509_v1, 7.0  ;;  %v1299_v38 = vmul.f32 %v10752_v34, %v10692_v49  ;;  %v10772_v46 = vsel %vm1277_vm10, 1.0, %v14012_v7  ;;  %vm1279_vm12 = vcmp.lt.f32.partialorder %v10569_v15, 7.0 }
  0x15   :  { %8735 = vmatpush3.bf16.msra.mxu0 %v10057_v45  ;;  %v1298_v45 = vmul.f32 %v10755_v36, %v10689_v48  ;;  %vm1278_vm13 = vcmp.lt.f32.partialorder %v10579_v17, 7.0  ;;  %vm1281_vm14 = vcmp.lt.f32.partialorder %v10598_v22, 7.0  ;;  %vm1280_vm15 = vcmp.lt.f32.partialorder %v10615_v26, 7.0 }
  0x16   :  { %8736 = vmatprep.subr.bf16.mxu0 %v10058_v51  ;;  %vm1996_vm0 = vcmp.ge.f32.partialorder %v10557_v12, 2.0  ;;  %vm1995_vm1 = vcmp.ge.f32.partialorder %v10526_v4, 2.0  ;;  %vm1998_vm2 = vcmp.ge.f32.partialorder %v10537_v6, 2.0  ;;  %vm1997_vm3 = vcmp.ge.f32.partialorder %v10514_v2, 2.0 }
  0x17   :  { %9812 = vperm.xlu1 %9805, %v9811_v50   ;;  %9807 = vperm.xlu0 %9804, %v9806_v52   ;;  %v10775_v50 = vsel %vm1276_vm11, 1.0, %v14012_v7  ;;  %v10070_v52 = vld [vmem:[%s14000_s1 + $0x50] sm:$0xff]   ;;  %vm3892_vm4 = vcmp.ge.f32.partialorder %v10557_v12, 3.0  ;;  %vm3891_vm5 = vcmp.ge.f32.partialorder %v10526_v4, 3.0  ;;  %vm3894_vm6 = vcmp.ge.f32.partialorder %v10537_v6, 3.0  ;;  %v10080_v12 = vld [vmem:[%s14000_s1 + $0x78] sm:$0xff]  }
  0x18   :  { %8684 = vmatprep.subr.bf16.mxu1 %v10070_v52  ;;  %v10853_v4 = vsel %vm1997_vm3, 1.0, %v14012_v7  ;;  %vm3893_vm7 = vcmp.ge.f32.partialorder %v10514_v2, 3.0  ;;  %vm2000_vm8 = vcmp.ge.f32.partialorder %v10574_v16, 2.0  ;;  %vm1999_vm9 = vcmp.ge.f32.partialorder %v10593_v21, 2.0 }
  0x19   :  { %8737 = vmatpush3.bf16.msra.mxu0 %v10058_v51  ;;  %v1301_v51 = vmul.f32 %v10772_v46, %v10686_v47  ;;  %8685 = vmatpush3.bf16.msra.mxu1 %v10070_v52  ;;  %v9856_v52 = vpack.i.bf16 %v10752_v34, %v10755_v36  ;;  %v10859_v6 = vsel %vm3892_vm4, 1.0, %v14012_v7  ;;  %vm2002_vm10 = vcmp.ge.f32.partialorder %v10603_v23, 2.0 }
  0x1a   :  { %8738 = vmatprep.subr.bf16.mxu0 %v10059_v59  ;;  %vm2001_vm11 = vcmp.ge.f32.partialorder %v10620_v27, 2.0  ;;  %v10871_v2 = vsel %vm3893_vm7, 1.0, %v14012_v7  ;;  %v114_v0 = vmul.f32 %v10686_v47, %v10584_v19  ;;  %vm1972_vm3 = vcmp.ge.f32.partialorder %v10552_v11, 2.0 }
  0x1b   :  { %9822 = vperm.xlu1 %9805, %v9821_v57   ;;  %9817 = vperm.xlu0 %9804, %v9816_v58   ;;  %v1300_v57 = vmul.f32 %v10775_v50, %v10678_v44  ;;  %v10788_v58 = vsel %vm1279_vm12, 1.0, %v14012_v7  ;;  %vm3896_vm12 = vcmp.ge.f32.partialorder %v10574_v16, 3.0  ;;  %v10887_v16 = vsel %vm2002_vm10, 1.0, %v14012_v7 }
  0x1c   :  { %vm3869_vm4 = vcmp.ge.f32.partialorder %v10509_v1, 3.0  ;;  %vm3868_vm7 = vcmp.ge.f32.partialorder %v10552_v11, 3.0  ;;  %vm1975_vm10 = vcmp.ge.f32.partialorder %v10579_v17, 2.0 }
  0x1d   :  { %8739 = vmatpush3.bf16.msra.mxu0 %v10059_v59  ;;  %v10791_v59 = vsel %vm1278_vm13, 1.0, %v14012_v7  ;;  %vm3895_vm13 = vcmp.ge.f32.partialorder %v10593_v21, 3.0  ;;  %v10893_v21 = vsel %vm3896_vm12, 1.0, %v14012_v7  ;;  %vm3873_vm12 = vcmp.ge.f32.partialorder %v10615_v26, 3.0 }
  0x1e   :  { %8740 = vmatprep.subr.bf16.mxu0 %v10060_v61 }
  0x1f   :  { %9832 = vperm.xlu1 %9805, %v9831_v60   ;;  %9827 = vperm.xlu0 %9804, %v9826_v62   ;;  %v1303_v60 = vmul.f32 %v10788_v58, %v10715_v56  ;;  %v10800_v62 = vsel %vm1281_vm14, 1.0, %v14012_v7  ;;  %vm3898_vm14 = vcmp.ge.f32.partialorder %v10603_v23, 3.0  ;;  %v10082_v23 = vld [vmem:[%s14000_s1] sm:$0xff]  }
  0x20   :  { %v1305_v28 = vmul.f32 %v10800_v62, %v10709_v54  ;;  %v9846_v54 = vpack.i.bf16 %v10608_v25, %v10546_v10 }
  0x21   :  { %8741 = vmatpush3.bf16.msra.mxu0 %v10060_v61  ;;  %v1302_v61 = vmul.f32 %v10791_v59, %v10712_v55 }
  0x22   :  { %8742 = vmatprep.subr.bf16.mxu0 %v10061_v24 }
  0x23   :  { %9842 = vperm.xlu1 %9805, %v9841_v18   ;;  %9837 = vperm.xlu0 %9804, %v9836_v31   ;;  %v10803_v18 = vsel %vm1280_vm15, 1.0, %v14012_v7  ;;  %vm3897_vm15 = vcmp.ge.f32.partialorder %v10620_v27, 3.0  ;;  %v10901_v27 = vsel %vm3895_vm13, 1.0, %v14012_v7  ;;  %vm3874_vm13 = vcmp.ge.f32.partialorder %v10598_v22, 3.0 }
  0x24   :  { %v1304_v31 = vmul.f32 %v10803_v18, %v10706_v53  ;;  %v9861_v53 = vpack.i.bf16 %v10772_v46, %v10775_v50 }
  0x25   :  { %8743 = vmatpush3.bf16.msra.mxu0 %v10061_v24  ;;  %v10072_v24 = vld [vmem:[%s14000_s1 + $0x58] sm:$0xff]  }
  0x26   :  { %8752 = vmatprep.subr.bf16.mxu0 %v10767_v43  ;;  %8686 = vmatprep.subr.bf16.mxu1 %v10072_v24 }
  0x27   :  { %1313 = vperm.xlu1 %9805, %v1299_v38   ;;  %1308 = vperm.xlu0 %9804, %v1298_v45   ;;  %v9851_v38 = vpack.i.bf16 %v10584_v19, %v10540_v8  ;;  %v10076_v45 = vld [vmem:[%s14000_s1 + $0x68] sm:$0xff]   ;;  %v1704_v19 = vmul.f32 %v10775_v50, %v10543_v9  ;;  %v1706_v9 = vmul.f32 %v10791_v59, %v10646_v35  ;;  %v10969_v35 = vsel %vm1972_vm3, 1.0, %v14012_v7 }
  0x28   :  { %8687 = vmatpush3.bf16.msra.mxu1 %v10072_v24  ;;  %v10844_v24 = vsel %vm1995_vm1, 1.0, %v14012_v7  ;;  %vm1974_vm1 = vcmp.ge.f32.partialorder %v10532_v5, 2.0 }
  0x29   :  { %8688 = vmatprep.subr.bf16.mxu1 %v10074_v37 }
  0x2b   :  { %1323 = vperm.xlu1 %9805, %v1301_v51   ;;  %1318 = vperm.xlu0 %9804, %v1300_v57   ;;  %v10078_v51 = vld [vmem:[%s14000_s1 + $0x70] sm:$0xff]   ;;  %v9871_v57 = vpack.i.bf16 %v10659_v39, %v10667_v41  ;;  %v10862_v39 = vsel %vm3891_vm5, 1.0, %v14012_v7  ;;  %v10865_v41 = vsel %vm3894_vm6, 1.0, %v14012_v7  ;;  %vm3870_vm5 = vcmp.ge.f32.partialorder %v10532_v5, 3.0 }
  0x2c   :  { %8689 = vmatpush3.bf16.msra.mxu1 %v10074_v37  ;;  %v10877_v37 = vsel %vm1999_vm9, 1.0, %v14012_v7  ;;  %vm3867_vm6 = vcmp.ge.f32.partialorder %v10519_v3, 3.0  ;;  %v10977_v5 = vsel %vm3869_vm4, 1.0, %v14012_v7  ;;  %vm1978_vm9 = vcmp.ge.f32.partialorder %v10598_v22, 2.0 }
  0x2d   :  { %8690 = vmatprep.subr.bf16.mxu1 %v10076_v45  ;;  %v10986_v11 = vsel %vm3867_vm6, 1.0, %v14012_v7  ;;  %v10996_v47 = vsel %vm1978_vm9, 1.0, %v14012_v7  ;;  %v11016_v22 = vsel %vm3873_vm12, 1.0, %v14012_v7 }
  0x2f   :  { %1333 = vperm.xlu1 %9805, %v1303_v60   ;;  %1328 = vperm.xlu0 %9804, %v1302_v61   ;;  %v9866_v60 = vpack.i.bf16 %v10629_v30, %v10639_v33  ;;  %v10841_v61 = vsel %vm1996_vm0, 1.0, %v14012_v7  ;;  %vm1973_vm0 = vcmp.ge.f32.partialorder %v10509_v1, 2.0 }
  0x30   :  { %8691 = vmatpush3.bf16.msra.mxu1 %v10076_v45  ;;  %v9876_v45 = vpack.i.bf16 %v10788_v58, %v10791_v59  ;;  %v2020_v50 = vmul.f32 %v10841_v61, %v10969_v35 }
  0x31   :  { %8692 = vmatprep.subr.bf16.mxu1 %v10078_v51 }
  0x33   :  { %1343 = vperm.xlu1 %9805, %v1305_v28   ;;  %1338 = vperm.xlu0 %9804, %v1304_v31   ;;  %v10847_v28 = vsel %vm1998_vm2, 1.0, %v14012_v7  ;;  %v10874_v31 = vsel %vm2000_vm8, 1.0, %v14012_v7  ;;  %vm1971_vm2 = vcmp.ge.f32.partialorder %v10519_v3, 2.0  ;;  %vm1977_vm8 = vcmp.ge.f32.partialorder %v10615_v26, 2.0 }
  0x34   :  { %8693 = vmatpush3.bf16.msra.mxu1 %v10078_v51 }
  0x35   :  { %8694 = vmatprep.subr.bf16.mxu1 %v10080_v12 }
  0x37   :  { %9852 = vperm.xlu1 %9805, %v9851_v38   ;;  %9847 = vperm.xlu0 %9804, %v9846_v54   ;;  %v9881_v38 = vpack.i.bf16 %v10800_v62, %v10803_v18  ;;  %v10890_v54 = vsel %vm2001_vm11, 1.0, %v14012_v7  ;;  %vm1976_vm11 = vcmp.ge.f32.partialorder %v10569_v15, 2.0 }
  0x38   :  { %8695 = vmatpush3.bf16.msra.mxu1 %v10080_v12  ;;  %v10913_v12 = vsel %vm3897_vm15, 1.0, %v14012_v7  ;;  %vm3872_vm15 = vcmp.ge.f32.partialorder %v10569_v15, 3.0 }
  0x39   :  { %8704 = vmatprep.subr.bf16.mxu1 %v10082_v23  ;;  %v111_v23 = vmul.f32 %v10689_v48, %v10546_v10  ;;  %v1705_v10 = vmul.f32 %v10772_v46, %v10587_v20  ;;  %v1709_v20 = vmul.f32 %v10800_v62, %v10662_v40  ;;  %v10980_v40 = vsel %vm3870_vm5, 1.0, %v14012_v7 }
  0x3a   :  { %v9901_v48 = vpack.i.bf16 %v10980_v40, %v10977_v5 }
  0x3b   :  { %9862 = vperm.xlu1 %9805, %v9861_v53   ;;  %9857 = vperm.xlu0 %9804, %v9856_v52   ;;  %v112_v52 = vmul.f32 %v10692_v49, %v10608_v25  ;;  %v1703_v25 = vmul.f32 %v10752_v34, %v10626_v29  ;;  %v1702_v49 = vmul.f32 %v10755_v36, %v10562_v14  ;;  %v10956_v29 = vsel %vm1973_vm0, 1.0, %v14012_v7 }
  0x3c   :  { %v1707_v14 = vmul.f32 %v10788_v58, %v10636_v32  ;;  %v1708_v32 = vmul.f32 %v10803_v18, %v10670_v42  ;;  %v10989_v42 = vsel %vm3868_vm7, 1.0, %v14012_v7  ;;  %v2021_v62 = vmul.f32 %v10853_v4, %v10956_v29 }
  0x3d   :  { %v3916_v18 = vmul.f32 %v10859_v6, %v10989_v42 }
  0x3f   :  { %9872 = vperm.xlu1 %9805, %v9871_v57   ;;  %9867 = vperm.xlu0 %9804, %v9866_v60   ;;  %v10910_v60 = vsel %vm3898_vm14, 1.0, %v14012_v7  ;;  %vm3871_vm14 = vcmp.ge.f32.partialorder %v10579_v17, 3.0  ;;  %v11027_v17 = vsel %vm3872_vm15, 1.0, %v14012_v7 }
  0x40   :  { %v11024_v36 = vsel %vm3871_vm14, 1.0, %v14012_v7 }
  0x41   :  { %v9916_v46 = vpack.i.bf16 %v11027_v17, %v11024_v36 }
  0x43   :  { %9882 = vperm.xlu1 %9805, %v9881_v38   ;;  %9877 = vperm.xlu0 %9804, %v9876_v45   ;;  %v113_v38 = vmul.f32 %v10678_v44, %v10540_v8  ;;  %v116_v8 = vmul.f32 %v10715_v56, %v10629_v30  ;;  %v10959_v30 = vsel %vm1974_vm1, 1.0, %v14012_v7  ;;  %v10992_v44 = vsel %vm1977_vm8, 1.0, %v14012_v7 }
  0x44   :  { %v9891_v1 = vpack.i.bf16 %v10959_v30, %v10956_v29  ;;  %v11006_v56 = vsel %vm1975_vm10, 1.0, %v14012_v7  ;;  %v9911_v26 = vpack.i.bf16 %v10996_v47, %v10992_v44  ;;  %v2022_v59 = vmul.f32 %v10847_v28, %v10959_v30 }
  0x45   :  { %v3915_v45 = vmul.f32 %v10862_v39, %v10986_v11 }
  0x47   :  { %126 = vperm.xlu1 %9805, %v112_v52   ;;  %121 = vperm.xlu0 %9804, %v111_v23   ;;  %v3918_v52 = vmul.f32 %v10865_v41, %v10980_v40  ;;  %v3917_v23 = vmul.f32 %v10871_v2, %v10977_v5 }
  0x4b   :  { %136 = vperm.xlu1 %9805, %v114_v0   ;;  %131 = vperm.xlu0 %9804, %v113_v38   ;;  %v115_v0 = vmul.f32 %v10712_v55, %v10639_v33  ;;  %v10966_v33 = vsel %vm1971_vm2, 1.0, %v14012_v7  ;;  %v9896_v55 = vpack.i.bf16 %v10989_v42, %v10986_v11 }
  0x4c   :  { %v9886_v3 = vpack.i.bf16 %v10969_v35, %v10966_v33  ;;  %v2019_v58 = vmul.f32 %v10844_v24, %v10966_v33 }
  0x4f   :  { %1717 = vperm.xlu1 %9805, %v1703_v25   ;;  %1712 = vperm.xlu0 %9804, %v1702_v49   ;;  %v2023_v25 = vmul.f32 %v10877_v37, %v11006_v56 }
  0x53   :  { %1727 = vperm.xlu1 %9805, %v1705_v10   ;;  %1722 = vperm.xlu0 %9804, %v1704_v19   ;;  %v492_v10 = vld [vmem:[%s14001_s0 + $0x1d] sm:$0xff] }
  0x57   :  { %146 = vperm.xlu1 %9805, %v116_v8   ;;  %141 = vperm.xlu0 %9804, %v115_v0   ;;  %v490_v8 = vld [vmem:[%s14001_s0 + $0xd] sm:$0xff]  ;;  %v493_v0 = vld [vmem:[%s14001_s0 + $0x25] sm:$0xff] }
  0x5b   :  { %156 = vperm.xlu1 %9805, %v10734_v63   ;;  %151 = vperm.xlu0 %9804, %v10739_v13   ;;  %v11009_v63 = vsel %vm1976_vm11, 1.0, %v14012_v7  ;;  %v11019_v13 = vsel %vm3874_vm13, 1.0, %v14012_v7 }
  0x5c   :  { %v9906_v34 = vpack.i.bf16 %v11009_v63, %v11006_v56  ;;  %v9921_v15 = vpack.i.bf16 %v11019_v13, %v11016_v22  ;;  %v2024_v38 = vmul.f32 %v10874_v31, %v11009_v63 }
  0x5f   :  { %1737 = vperm.xlu1 %9805, %v1707_v14   ;;  %1732 = vperm.xlu0 %9804, %v1706_v9   ;;  %v2026_v14 = vmul.f32 %v10887_v16, %v10996_v47  ;;  %v2025_v9 = vmul.f32 %v10890_v54, %v10992_v44 }
  0x63   :  { %1747 = vperm.xlu1 %9805, %v1709_v20   ;;  %1742 = vperm.xlu0 %9804, %v1708_v32   ;;  %v491_v20 = vld [vmem:[%s14001_s0 + $0x15] sm:$0xff] }
  0x67   :  { %9892 = vperm.xlu1 %9805, %v9891_v1   ;;  %9887 = vperm.xlu0 %9804, %v9886_v3  }
  0x6b   :  { %9902 = vperm.xlu1 %9805, %v9901_v48   ;;  %9897 = vperm.xlu0 %9804, %v9896_v55   ;;  %v495_v55 = vld [vmem:[%s14001_s0 + $0x35] sm:$0xff] }
  0x6f   :  { %9912 = vperm.xlu1 %9805, %v9911_v26   ;;  %9907 = vperm.xlu0 %9804, %v9906_v34   ;;  %v3920_v26 = vmul.f32 %v10893_v21, %v11027_v17  ;;  %v10394_v34 = vld [vmem:[%s13999_s6 + $0x8] sm:$0xff] }
  0x70   :  { %vm2408_vm0 = vcmp.lt.f32.partialorder %v10394_v34, 2.0  ;;  %vm4304_vm4 = vcmp.lt.f32.partialorder %v10394_v34, 1.0 }
  0x73   :  { %9922 = vperm.xlu1 %9805, %v9921_v15   ;;  %9917 = vperm.xlu0 %9804, %v9916_v46  }
  0x77   :  { %2034 = vperm.xlu1 %9805, %v2020_v50   ;;  %2029 = vperm.xlu0 %9804, %v2019_v58   ;;  %v3919_v50 = vmul.f32 %v10901_v27, %v11024_v36 }
  0x7b   :  { %2044 = vperm.xlu1 %9805, %v2022_v59   ;;  %2039 = vperm.xlu0 %9804, %v2021_v62   ;;  %v494_v59 = vld [vmem:[%s14001_s0 + $0x2d] sm:$0xff] }
  0x7f   :  { %3930 = vperm.xlu1 %9805, %v3916_v18   ;;  %3925 = vperm.xlu0 %9804, %v3915_v45   ;;  %v497_v45 = vld [vmem:[%s14001_s0 + $0x45] sm:$0xff] }
  0x83   :  { %3940 = vperm.xlu1 %9805, %v3918_v52   ;;  %3935 = vperm.xlu0 %9804, %v3917_v23   ;;  %v10395_v52 = vld [vmem:[%s13999_s6] sm:$0xff] }
  0x84   :  { %vm2407_vm1 = vcmp.lt.f32.partialorder %v10395_v52, 2.0  ;;  %vm4303_vm5 = vcmp.lt.f32.partialorder %v10395_v52, 1.0 }
  0x86   :  { %v543_v49 = vpop.permute.xlu1 %542  ;;  %v533_v19 = vpop.permute.xlu0 %532 }
  0x87   :  { %2054 = vperm.xlu1 %9805, %v2024_v38   ;;  %2049 = vperm.xlu0 %9804, %v2023_v25   ;;  %v572_v1 = vmul.f32 %v543_v49, %v492_v10  ;;  %v570_v15 = vmul.f32 %v533_v19, %v490_v8  ;;  %v496_v25 = vld [vmem:[%s14001_s0 + $0x3d] sm:$0xff]  ;;  %v3922_v49 = vmul.f32 %v10910_v60, %v11019_v13  ;;  %v10063_v10 = vld [vmem:[%s14000_s1 + $0xc8] sm:$0xff]   ;;  %v11098_v19 = vsel %vm2408_vm0, 1.0, %v14012_v7 }
  0x88   :  { %14086 = vst [vmem:[#allocation2_spill] sm:$0xff] %v11098_v19  ;;  %v10396_v8 = vld [vmem:[%s13999_s6 + $0x18] sm:$0xff] }
  0x89   :  { %vm2410_vm2 = vcmp.lt.f32.partialorder %v10396_v8, 2.0  ;;  %vm4306_vm6 = vcmp.lt.f32.partialorder %v10396_v8, 1.0  ;;  %v10399_v8 = vld [vmem:[%s13999_s6 + $0x20] sm:$0xff] }
  0x8a   :  { %v548_v32 = vpop.permute.xlu1 %547  ;;  %v538_v48 = vpop.permute.xlu0 %537  ;;  %vm2411_vm9 = vcmp.lt.f32.partialorder %v10399_v8, 2.0  ;;  %vm4307_vm13 = vcmp.lt.f32.partialorder %v10399_v8, 1.0 }
  0x8b   :  { %v573_v3 = vmul.f32 %v548_v32, %v493_v0  ;;  %2064 = vperm.xlu1 %9805, %v2026_v14   ;;  %v571_v46 = vmul.f32 %v538_v48, %v491_v20  ;;  %2059 = vperm.xlu0 %9804, %v2025_v9   ;;  %v3921_v14 = vmul.f32 %v10913_v12, %v11016_v22  ;;  %v11106_v9 = vsel %vm2407_vm1, 1.0, %v14012_v7  ;;  %v10397_v20 = vld [vmem:[%s13999_s6 + $0x10] sm:$0xff] }
  0x8c   :  { %14087 = vst [vmem:[#allocation3_spill] sm:$0xff] %v11106_v9  ;;  %vm2409_vm3 = vcmp.lt.f32.partialorder %v10397_v20, 2.0  ;;  %vm4305_vm7 = vcmp.lt.f32.partialorder %v10397_v20, 1.0  ;;  %v10069_v20 = vld [vmem:[%s14000_s1 + $0xe8] sm:$0xff]  }
  0x8d   :  { %v579_v58 = vpack.c.bf16 %v573_v3, %v572_v1  ;;  %v578_v18 = vpack.c.bf16 %v571_v46, %v570_v15  ;;  %v11119_v15 = vsel %vm2410_vm2, 1.0, %v14012_v7 }
  0x8e   :  { %v558_v62 = vpop.permute.xlu1 %557  ;;  %v553_v38 = vpop.permute.xlu0 %552  ;;  %14088 = vst [vmem:[#allocation4_spill] sm:$0xff] %v11119_v15 }
  0x8f   :  { %v575_v23 = vmul.f32 %v558_v62, %v495_v55  ;;  %3950 = vperm.xlu1 %9805, %v3920_v26   ;;  %v574_v0 = vmul.f32 %v553_v38, %v494_v59  ;;  %3945 = vperm.xlu0 %9804, %v3919_v50   ;;  %v2432_v55 = vmul.f32 %v11098_v19, %v10969_v35  ;;  %v10064_v26 = vld [vmem:[%s14000_s1 + $0xd0] sm:$0xff]   ;;  %v11125_v50 = vsel %vm2409_vm3, 1.0, %v14012_v7 }
  0x90   :  { %8744 = vmatprep.mubr.bf16.mxu0 %v578_v18  ;;  %14089 = vst [vmem:[#allocation5_spill] sm:$0xff] %v11125_v50  ;;  %v720_v59 = vld [vmem:[%s14001_s0 + $0xf] sm:$0xff]  ;;  %v721_v18 = vld [vmem:[%s14001_s0 + $0x17] sm:$0xff] }
  0x91   :  { %8745 = vmatmul.mubr.bf16.vlgmr.msra.gmra.mrb[0].mxu0 %v579_v58  ;;  %v580_v32 = vpack.c.bf16 %v575_v23, %v574_v0  ;;  %v11142_v23 = vsel %vm4304_vm4, 1.0, %v14012_v7 }
  0x92   :  { %8753 = vmatpush3.bf16.msra.mxu0 %v10767_v43  ;;  %v568_v1 = vpop.permute.xlu1 %567  ;;  %v563_v48 = vpop.permute.xlu0 %562  ;;  %v2431_v43 = vmul.f32 %v11106_v9, %v10966_v33  ;;  %v2434_v33 = vmul.f32 %v11119_v15, %v10959_v30  ;;  %14090 = vst [vmem:[#allocation6_spill] sm:$0xff] %v11142_v23 }
  0x93   :  { %v577_v3 = vmul.f32 %v568_v1, %v497_v45  ;;  %3960 = vperm.xlu1 %9805, %v3922_v49   ;;  %8754 = vmatprep.subr.bf16.mxu0 %v10063_v10  ;;  %v576_v46 = vmul.f32 %v563_v48, %v496_v25  ;;  %v10065_v45 = vld [vmem:[%s14000_s1 + $0xd8] sm:$0xff]   ;;  %v2433_v25 = vmul.f32 %v11125_v50, %v10956_v29  ;;  %v11147_v49 = vsel %vm4303_vm5, 1.0, %v14012_v7  ;;  %v10067_v29 = vld [vmem:[%s14000_s1 + $0xe0] sm:$0xff]   ;;  %v10398_v1 = vld [vmem:[%s13999_s6 + $0x28] sm:$0xff] }
  0x94   :  { %3955 = vperm.xlu0 %9804, %v3921_v14   ;;  %8748 = vmatprep.mubr.bf16.mxu0 %v580_v32  ;;  %14091 = vst [vmem:[#allocation7_spill] sm:$0xff] %v11147_v49  ;;  %v4328_v14 = vmul.f32 %v11142_v23, %v10989_v42  ;;  %v11160_v32 = vsel %vm4306_vm6, 1.0, %v14012_v7  ;;  %vm2412_vm8 = vcmp.lt.f32.partialorder %v10398_v1, 2.0  ;;  %v4327_v48 = vmul.f32 %v11147_v49, %v10986_v11 }
  0x95   :  { %v581_v35 = vpack.c.bf16 %v577_v3, %v576_v46  ;;  %14092 = vst [vmem:[#allocation8_spill] sm:$0xff] %v11160_v32  ;;  %v11169_v42 = vsel %vm4305_vm7, 1.0, %v14012_v7  ;;  %v4330_v11 = vmul.f32 %v11160_v32, %v10980_v40  ;;  %v11184_v46 = vsel %vm2412_vm8, 1.0, %v14012_v7 }
  0x96   :  { %8755 = vmatpush3.bf16.msra.mxu0 %v10063_v10  ;;  %v11127_v58 = vpop.permute.xlu1 %9812  ;;  %v9808_v62 = vpop.permute.xlu0 %9807  ;;  %14093 = vst [vmem:[#allocation9_spill] sm:$0xff] %v11169_v42  ;;  %14094 = vst [vmem:[#allocation10_spill] sm:$0xff] %v11184_v46  ;;  %vm4308_vm12 = vcmp.lt.f32.partialorder %v10398_v1, 1.0  ;;  %v10075_v1 = vld [vmem:[%s14000_s1 + $0x100] sm:$0xff]  }
  0x97   :  { %2446 = vperm.xlu1 %9805, %v2432_v55   ;;  %8756 = vmatprep.subr.bf16.mxu0 %v10064_v26  ;;  %v9810_v52 = vunpack.i.h.bf16 %v9808_v62  ;;  %v9809_v38 = vunpack.i.l.bf16 %v9808_v62  ;;  %v10401_v62 = vld [vmem:[%s13999_s6 + $0x30] sm:$0xff] }
  0x98   :  { %2441 = vperm.xlu0 %9804, %v2431_v43   ;;  %v10400_v43 = vld [vmem:[%s13999_s6 + $0x38] sm:$0xff]  ;;  %vm2413_vm11 = vcmp.lt.f32.partialorder %v10401_v62, 2.0  ;;  %vm4309_vm15 = vcmp.lt.f32.partialorder %v10401_v62, 1.0 }
  0x99   :  { %8749 = vmatmul.mubr.bf16.gmra.mrb[4].mxu0 %v581_v35  ;;  %v768_v30 = vmul.f32 %v9809_v38, %v720_v59  ;;  %v769_v10 = vmul.f32 %v9810_v52, %v721_v18  ;;  %vm2414_vm10 = vcmp.lt.f32.partialorder %v10400_v43, 2.0  ;;  %v4329_v35 = vmul.f32 %v11169_v42, %v10977_v5  ;;  %v10071_v5 = vld [vmem:[%s14000_s1 + $0xf0] sm:$0xff]  }
  0x9a   :  { %8757 = vmatpush3.bf16.msra.mxu0 %v10064_v26  ;;  %v11149_v0 = vpop.permute.xlu1 %9822  ;;  %v11151_v34 = vpop.permute.xlu0 %9817  ;;  %v11192_v59 = vsel %vm2411_vm9, 1.0, %v14012_v7  ;;  %v11212_v38 = vsel %vm2413_vm11, 1.0, %v14012_v7  ;;  %vm4310_vm14 = vcmp.lt.f32.partialorder %v10400_v43, 1.0 }
  0x9b   :  { %2456 = vperm.xlu1 %9805, %v2434_v33   ;;  %8758 = vmatprep.subr.bf16.mxu0 %v10065_v45  ;;  %v776_v3 = vpack.c.bf16 %v769_v10, %v768_v30  ;;  %14095 = vst [vmem:[#allocation11_spill] sm:$0xff] %v11192_v59  ;;  %v2436_v33 = vmul.f32 %v11184_v46, %v11009_v63  ;;  %14097 = vst [vmem:[#allocation13_spill] sm:$0xff] %v11212_v38  ;;  %v9815_v63 = vunpack.i.h.bf16 %v11127_v58  ;;  %v722_v10 = vld [vmem:[%s14001_s0 + $0x1f] sm:$0xff] }
  0x9c   :  { %2451 = vperm.xlu0 %9804, %v2433_v25   ;;  %v2435_v52 = vmul.f32 %v11192_v59, %v11006_v56  ;;  %v9814_v30 = vunpack.i.l.bf16 %v11127_v58  ;;  %v9820_v58 = vunpack.i.h.bf16 %v11151_v34  ;;  %v11261_v62 = vsel %vm4310_vm14, 1.0, %v14012_v7 }
  0x9d   :  { %8768 = vmatprep.mubr.bf16.mxu0 %v776_v3  ;;  %v10073_v3 = vld [vmem:[%s14000_s1 + $0xf8] sm:$0xff]   ;;  %14102 = vst [vmem:[#allocation18_spill] sm:$0xff] %v11261_v62 }
  0x9e   :  { %8759 = vmatpush3.bf16.msra.mxu0 %v10065_v45  ;;  %v11174_v55 = vpop.permute.xlu1 %9832  ;;  %v11176_v26 = vpop.permute.xlu0 %9827  ;;  %v11207_v45 = vsel %vm2414_vm10, 1.0, %v14012_v7  ;;  %v770_v51 = vmul.f32 %v9814_v30, %v722_v10  ;;  %v9825_v30 = vunpack.i.h.bf16 %v11149_v0  ;;  %v9824_v10 = vunpack.i.l.bf16 %v11149_v0 }
  0x9f   :  { %4342 = vperm.xlu1 %9805, %v4328_v14   ;;  %8760 = vmatprep.subr.bf16.mxu0 %v10067_v29  ;;  %14096 = vst [vmem:[#allocation12_spill] sm:$0xff] %v11207_v45  ;;  %v723_v14 = vld [vmem:[%s14001_s0 + $0x27] sm:$0xff] }
  0xa0   :  { %4337 = vperm.xlu0 %9804, %v4327_v48   ;;  %v9819_v48 = vunpack.i.l.bf16 %v11151_v34  ;;  %v771_v57 = vmul.f32 %v9815_v63, %v723_v14  ;;  %v726_v14 = vld [vmem:[%s14001_s0 + $0x3f] sm:$0xff] }
  0xa2   :  { %8761 = vmatpush3.bf16.msra.mxu0 %v10067_v29  ;;  %v11194_v40 = vpop.permute.xlu1 %9842  ;;  %v11199_v18 = vpop.permute.xlu0 %9837  ;;  %v2438_v29 = vmul.f32 %v11207_v45, %v10996_v47  ;;  %v2437_v47 = vmul.f32 %v11212_v38, %v10992_v44 }
  0xa3   :  { %4352 = vperm.xlu1 %9805, %v4330_v11   ;;  %8762 = vmatprep.subr.bf16.mxu0 %v10069_v20  ;;  %v724_v11 = vld [vmem:[%s14001_s0 + $0x2f] sm:$0xff] }
  0xa4   :  { %4347 = vperm.xlu0 %9804, %v4329_v35   ;;  %v11243_v35 = vsel %vm4308_vm12, 1.0, %v14012_v7  ;;  %v772_v8 = vmul.f32 %v9819_v48, %v724_v11  ;;  %v774_v48 = vmul.f32 %v9824_v10, %v726_v14 }
  0xa5   :  { %14098 = vst [vmem:[#allocation14_spill] sm:$0xff] %v11243_v35  ;;  %v4332_v44 = vmul.f32 %v11243_v35, %v11027_v17  ;;  %v777_v17 = vpack.c.bf16 %v771_v57, %v770_v51  ;;  %v727_v51 = vld [vmem:[%s14001_s0 + $0x47] sm:$0xff] }
  0xa6   :  { %8763 = vmatpush3.bf16.msra.mxu0 %v10069_v20  ;;  %v11214_v25 = vpop.permute.xlu1 %1313  ;;  %v11224_v56 = vpop.permute.xlu0 %1308  ;;  %v725_v20 = vld [vmem:[%s14001_s0 + $0x37] sm:$0xff] }
  0xa7   :  { %2466 = vperm.xlu1 %9805, %v2436_v33   ;;  %8764 = vmatprep.subr.bf16.mxu0 %v10071_v5  ;;  %v11247_v33 = vsel %vm4307_vm13, 1.0, %v14012_v7 }
  0xa8   :  { %2461 = vperm.xlu0 %9804, %v2435_v52   ;;  %14099 = vst [vmem:[#allocation15_spill] sm:$0xff] %v11247_v33  ;;  %v773_v52 = vmul.f32 %v9820_v58, %v725_v20  ;;  %v4331_v43 = vmul.f32 %v11247_v33, %v11024_v36  ;;  %v4334_v36 = vmul.f32 %v11261_v62, %v11019_v13  ;;  %v10079_v20 = vld [vmem:[%s14000_s1 + $0x110] sm:$0xff]  }
  0xa9   :  { %v775_v13 = vmul.f32 %v9825_v30, %v727_v51 }
  0xaa   :  { %8765 = vmatpush3.bf16.msra.mxu0 %v10071_v5  ;;  %v11249_v34 = vpop.permute.xlu1 %1323  ;;  %v11251_v53 = vpop.permute.xlu0 %1318  ;;  %v11264_v5 = vsel %vm4309_vm15, 1.0, %v14012_v7  ;;  %v778_v57 = vpack.c.bf16 %v773_v52, %v772_v8  ;;  %v11313_v8 = vld [vmem:[%s14001_s0 + $0x14] sm:$0xff] }
  0xab   :  { %14100 = vst [vmem:[#allocation16_spill] sm:$0xff] %v11249_v34  ;;  %14101 = vst [vmem:[#allocation17_spill] sm:$0xff] %v11251_v53  ;;  %2476 = vperm.xlu1 %9805, %v2438_v29   ;;  %8766 = vmatprep.subr.bf16.mxu0 %v10073_v3  ;;  %v4333_v0 = vmul.f32 %v11264_v5, %v11016_v22  ;;  %v919_v22 = vld [vmem:[%s14001_s0 + $0x18] sm:$0xff]  ;;  %v779_v51 = vpack.c.bf16 %v775_v13, %v774_v48  ;;  %v11335_v48 = vld [vmem:[%s14001_s0 + $0x2c] sm:$0xff] }
  0xac   :  { %2471 = vperm.xlu0 %9804, %v2437_v47   ;;  %14103 = vst [vmem:[#allocation19_spill] sm:$0xff] %v11264_v5  ;;  %v11295_v47 = vld [vmem:[%s14001_s0 + $0x10] sm:$0xff]  ;;  %v10081_v52 = vld [vmem:[%s14000_s1 + $0x118] sm:$0xff]  }
  0xae   :  { %8767 = vmatpush3.bf16.msra.mxu0 %v10073_v3  ;;  %v11266_v63 = vpop.permute.xlu1 %1333  ;;  %v11273_v29 = vpop.permute.xlu0 %1328  ;;  %v10077_v3 = vld [vmem:[%s14000_s1 + $0x108] sm:$0xff]  }
  0xaf   :  { %14104 = vst [vmem:[#allocation20_spill] sm:$0xff] %v11266_v63  ;;  %14105 = vst [vmem:[#allocation21_spill] sm:$0xff] %v11273_v29  ;;  %4362 = vperm.xlu1 %9805, %v4332_v44   ;;  %8776 = vmatprep.subr.bf16.mxu0 %v10075_v1  ;;  %v11303_v44 = vld [vmem:[%s14001_s0 + $0x1c] sm:$0xff]  ;;  %v11376_v63 = vld [vmem:[%s14001_s0 + $0x34] sm:$0xff] }
  0xb0   :  { %4357 = vperm.xlu0 %9804, %v4331_v43  }
  0xb1   :  { %8769 = vmatmul.mubr.bf16.vlgmr.msra.gmra.mrb[0].mxu0 %v777_v17  ;;  %v11319_v17 = vpack.c.bf16 %v919_v22, %v11295_v47 }
  0xb2   :  { %8772 = vmatprep.mubr.bf16.mxu0 %v778_v57  ;;  %8777 = vmatpush3.bf16.msra.mxu0 %v10075_v1  ;;  %v11285_v58 = vpop.permute.xlu1 %1343  ;;  %v11287_v11 = vpop.permute.xlu0 %1338  ;;  %v11308_v1 = vld [vmem:[%s14001_s0 + $0x24] sm:$0xff]  ;;  %v187_v57 = vld [vmem:[%s14001_s0 + $0xc] sm:$0xff] }
  0xb3   :  { %14106 = vst [vmem:[#allocation22_spill] sm:$0xff] %v11285_v58  ;;  %14107 = vst [vmem:[#allocation23_spill] sm:$0xff] %v11287_v11  ;;  %4372 = vperm.xlu1 %9805, %v4334_v36   ;;  %8778 = vmatprep.subr.bf16.mxu0 %v10077_v3  ;;  %v14109_v36 = vpack.i.bf16 %v10847_v28, %v10853_v4 }
  0xb4   :  { %4367 = vperm.xlu0 %9804, %v4333_v0   ;;  %14108 = vst [vmem:[#allocation24_spill] sm:$0xff] %v11319_v17 }
  0xb6   :  { %8779 = vmatpush3.bf16.msra.mxu0 %v10077_v3  ;;  %v9853_v43 = vpop.permute.xlu1 %9852  ;;  %v9848_v14 = vpop.permute.xlu0 %9847  ;;  %v14110_v3 = vpack.i.bf16 %v10841_v61, %v10844_v24 }
  0xb7   :  { %v9855_v30 = vunpack.i.h.bf16 %v9853_v43  ;;  %v9854_v10 = vunpack.i.l.bf16 %v9853_v43  ;;  %9932 = vperm.xlu1 %9805, %v14109_v36   ;;  %8780 = vmatprep.subr.bf16.mxu0 %v10079_v20  ;;  %v9850_v0 = vunpack.i.h.bf16 %v9848_v14  ;;  %v9849_v7 = vunpack.i.l.bf16 %v9848_v14 }
  0xb8   :  { %9927 = vperm.xlu0 %9804, %v14110_v3  }
  0xb9   :  { %v237_v22 = vmul.f32 %v9854_v10, %v11303_v44  ;;  %v238_v43 = vmul.f32 %v9855_v30, %v11308_v1  ;;  %8773 = vmatmul.mubr.bf16.gmra.mrb[4].mxu0 %v779_v51  ;;  %v235_v36 = vmul.f32 %v9849_v7, %v187_v57  ;;  %v236_v11 = vmul.f32 %v9850_v0, %v11313_v8  ;;  %v10083_v51 = vld [vmem:[%s14000_s1 + $0x120] sm:$0xff]  }
  0xba   :  { %8781 = vmatpush3.bf16.msra.mxu0 %v10079_v20  ;;  %v9863_v13 = vpop.permute.xlu1 %9862  ;;  %8792 = vmatprep.mubr.bf16.mxu0 %v11319_v17  ;;  %v9858_v3 = vpop.permute.xlu0 %9857  ;;  %v14111_v10 = vpack.i.bf16 %v10865_v41, %v10871_v2  ;;  %v14112_v7 = vpack.i.bf16 %v10859_v6, %v10862_v39  ;;  %v11351_v0 = vld [vmem:[%s14001_s0 + $0x3c] sm:$0xff] }
  0xbb   :  { %v9865_v14 = vunpack.i.h.bf16 %v9863_v13  ;;  %v9864_v58 = vunpack.i.l.bf16 %v9863_v13  ;;  %8782 = vmatprep.subr.bf16.mxu0 %v10081_v52  ;;  %v244_v30 = vpack.c.bf16 %v238_v43, %v237_v22  ;;  %v9860_v20 = vunpack.i.h.bf16 %v9858_v3  ;;  %v194_v22 = vld [vmem:[%s14001_s0 + $0x44] sm:$0xff] }
  0xbc   :  { %9942 = vperm.xlu1 %9805, %v14111_v10   ;;  %v9859_v29 = vunpack.i.l.bf16 %v9858_v3  ;;  %9937 = vperm.xlu0 %9804, %v14112_v7   ;;  %v243_v57 = vpack.c.bf16 %v236_v11, %v235_v36  ;;  %v10084_v3 = vld [vmem:[%s14000_s1 + $0x8] sm:$0xff]  }
  0xbd   :  { %v11357_v43 = vmul.f32 %v9864_v58, %v11308_v1  ;;  %v11360_v13 = vmul.f32 %v9865_v14, %v11335_v48  ;;  %v11369_v36 = vmul.f32 %v9860_v20, %v11303_v44  ;;  %v14118_v58 = vpack.i.bf16 %v10874_v31, %v10877_v37 }
  0xbe   :  { %v11366_v11 = vmul.f32 %v9859_v29, %v11313_v8  ;;  %8783 = vmatpush3.bf16.msra.mxu0 %v10081_v52  ;;  %8696 = vmatprep.mubr.bf16.mxu1 %v243_v57  ;;  %v9873_v10 = vpop.permute.xlu1 %9872  ;;  %v9868_v14 = vpop.permute.xlu0 %9867  ;;  %v14117_v29 = vpack.i.bf16 %v10887_v16, %v10890_v54  ;;  %v10085_v52 = vld [vmem:[%s14000_s1 + $0x128] sm:$0xff]  }
  0xbf   :  { %14113 = vst [vmem:[#allocation25_spill] sm:$0xff] %v11357_v43  ;;  %14114 = vst [vmem:[#allocation26_spill] sm:$0xff] %v11360_v13  ;;  %v9875_v7 = vunpack.i.h.bf16 %v9873_v10  ;;  %v9874_v17 = vunpack.i.l.bf16 %v9873_v10  ;;  %8697 = vmatmul.mubr.bf16.vlgmr.msra.gmra.mrb[0].mxu1 %v244_v30  ;;  %v9870_v20 = vunpack.i.h.bf16 %v9868_v14  ;;  %v9869_v57 = vunpack.i.l.bf16 %v9868_v14  ;;  %v10402_v10 = vld [vmem:[%s14000_s1] sm:$0xff]   ;;  %8784 = vmatprep.subr.bf16.mxu0 %v10083_v51  ;;  %v10086_v14 = vld [vmem:[%s14000_s1 + $0x10] sm:$0xff]  }
  0xc0   :  { %14115 = vst [vmem:[#allocation27_spill] sm:$0xff] %v11366_v11  ;;  %14116 = vst [vmem:[#allocation28_spill] sm:$0xff] %v11369_v36  ;;  %9952 = vperm.xlu1 %9805, %v14117_v29   ;;  %8705 = vmatpush3.bf16.msra.mxu1 %v10402_v10  ;;  %v14120_v30 = vpack.i.bf16 %v10910_v60, %v10913_v12  ;;  %v9966_v11 = vpack.i.bf16 %v11098_v19, %v11106_v9  ;;  %v10089_v36 = vld [vmem:[%s14000_s1 + $0x138] sm:$0xff]  }
  0xc1   :  { %9947 = vperm.xlu0 %9804, %v14118_v58   ;;  %v241_v29 = vmul.f32 %v9874_v17, %v11351_v0  ;;  %v242_v43 = vmul.f32 %v9875_v7, %v194_v22  ;;  %8706 = vmatprep.subr.bf16.mxu1 %v10084_v3  ;;  %v239_v13 = vmul.f32 %v9869_v57, %v11335_v48  ;;  %v55_v17 = vld [vmem:[%s14001_s0 + $0xb] sm:$0xff]  ;;  %v11417_v57 = vld [vmem:[%s14001_s0 + $0x13] sm:$0xff] }
  0xc2   :  { %v240_v10 = vmul.f32 %v9870_v20, %v11376_v63  ;;  %8785 = vmatpush3.bf16.msra.mxu0 %v10083_v51  ;;  %v11398_v53 = vpop.permute.xlu1 %9882  ;;  %v9878_v58 = vpop.permute.xlu0 %9877  ;;  %v9971_v7 = vpack.i.bf16 %v11119_v15, %v11125_v50  ;;  %v10087_v51 = vld [vmem:[%s14000_s1 + $0x130] sm:$0xff]   ;;  %v10088_v20 = vld [vmem:[%s14000_s1 + $0x18] sm:$0xff]  }
  0xc3   :  { %14119 = vst [vmem:[#allocation29_spill] sm:$0xff] %v11398_v53  ;;  %8786 = vmatprep.subr.bf16.mxu0 %v10085_v52  ;;  %v246_v22 = vpack.c.bf16 %v242_v43, %v241_v29  ;;  %v9879_v53 = vunpack.i.l.bf16 %v9878_v58  ;;  %v14121_v43 = vpack.i.bf16 %v10893_v21, %v10901_v27 }
  0xc4   :  { %9962 = vperm.xlu1 %9805, %v14120_v30   ;;  %v9880_v30 = vunpack.i.h.bf16 %v9878_v58  ;;  %8707 = vmatpush3.bf16.msra.mxu1 %v10084_v3  ;;  %v245_v29 = vpack.c.bf16 %v240_v10, %v239_v13  ;;  %v9981_v10 = vpack.i.bf16 %v11160_v32, %v11169_v42  ;;  %v11538_v32 = vld [vmem:[%s14001_s0 + $0x40] sm:$0xff] }
  0xc5   :  { %9957 = vperm.xlu0 %9804, %v14121_v43   ;;  %8708 = vmatprep.subr.bf16.mxu1 %v10086_v14  ;;  %v11428_v34 = vmul.f32 %v9879_v53, %v11376_v63  ;;  %v10090_v43 = vld [vmem:[%s14000_s1 + $0x20] sm:$0xff]   ;;  %14130 = vst [vmem:[#allocation37_spill] sm:$0xff] %v11538_v32 }
  0xc6   :  { %v11431_v50 = vmul.f32 %v9880_v30, %v11351_v0  ;;  %8787 = vmatpush3.bf16.msra.mxu0 %v10085_v52  ;;  %8700 = vmatprep.mubr.bf16.mxu1 %v245_v29  ;;  %v127_v3 = vpop.permute.xlu1 %126  ;;  %v122_v13 = vpop.permute.xlu0 %121  ;;  %v9976_v52 = vpack.i.bf16 %v11142_v23, %v11147_v49  ;;  %v11444_v30 = vld [vmem:[%s14001_s0 + $0x20] sm:$0xff]  ;;  %v925_v49 = vld [vmem:[%s14001_s0 + $0x48] sm:$0xff] }
  0xc7   :  { %14122 = vst [vmem:[#allocation30_spill] sm:$0xff] %v11428_v34  ;;  %v160_v58 = vmul.f32 %v11417_v57, %v127_v3  ;;  %8701 = vmatmul.mubr.bf16.gmra.mrb[4].mxu1 %v246_v22  ;;  %v159_v53 = vmul.f32 %v122_v13, %v55_v17  ;;  %v11449_v22 = vld [vmem:[%s14001_s0 + $0x28] sm:$0xff]  ;;  %8788 = vmatprep.subr.bf16.mxu0 %v10087_v51  ;;  %v11464_v17 = vld [vmem:[%s14001_s0 + $0x38] sm:$0xff] }
  0xc8   :  { %14123 = vst [vmem:[#allocation31_spill] sm:$0xff] %v11431_v50  ;;  %9972 = vperm.xlu1 %9805, %v9971_v7   ;;  %8709 = vmatpush3.bf16.msra.mxu1 %v10086_v14  ;;  %v11459_v14 = vld [vmem:[%s14001_s0 + $0x30] sm:$0xff]  ;;  %14124 = vst [vmem:[#allocation32_spill] sm:$0xff] %v11464_v17  ;;  %v9991_v7 = vpack.i.bf16 %v11207_v45, %v11212_v38  ;;  %v11475_v34 = vld [vmem:[%s13998_s5 + $0x8] sm:$0xff] }
  0xc9   :  { %9967 = vperm.xlu0 %9804, %v9966_v11   ;;  %8710 = vmatprep.subr.bf16.mxu1 %v10088_v20  ;;  %v10091_v11 = vld [vmem:[%s14000_s1 + $0x140] sm:$0xff]   ;;  %v167_v29 = vpack.c.bf16 %v160_v58, %v159_v53  ;;  %vm3172_vm0 = vcmp.lt.f32.partialorder %v11475_v34, 6.0  ;;  %v9986_v58 = vpack.i.bf16 %v11184_v46, %v11192_v59  ;;  %v10092_v53 = vld [vmem:[%s14000_s1 + $0x28] sm:$0xff]   ;;  %v11496_v50 = vld [vmem:[%s13998_s5 + $0x18] sm:$0xff]  ;;  %v14129_v46 = vmov 0.0  }
  0xca   :  { %8789 = vmatpush3.bf16.msra.mxu0 %v10087_v51  ;;  %v11466_v3 = vpop.permute.xlu1 %136  ;;  %v11468_v13 = vpop.permute.xlu0 %131  ;;  %v11481_v51 = vld [vmem:[%s13998_s5] sm:$0xff]  ;;  %vm3174_vm2 = vcmp.lt.f32.partialorder %v11496_v50, 6.0  ;;  %v10094_v59 = vld [vmem:[%s14000_s1 + $0x30] sm:$0xff]   ;;  %v11524_v42 = vsel %vm3172_vm0, 1.0, %v14129_v46  ;;  %vm5052_vm4 = vcmp.lt.f32.partialorder %v11475_v34, 5.0  ;;  %vm5054_vm6 = vcmp.lt.f32.partialorder %v11496_v50, 5.0 }
  0xcb   :  { %8790 = vmatprep.subr.bf16.mxu0 %v10089_v36  ;;  %vm3171_vm1 = vcmp.lt.f32.partialorder %v11481_v51, 6.0  ;;  %8720 = vmatprep.mubr.bf16.mxu1 %v167_v29  ;;  %v1068_v29 = vld [vmem:[%s14001_s0 + $0x11] sm:$0xff]  ;;  %v1069_v38 = vld [vmem:[%s14001_s0 + $0x19] sm:$0xff]  ;;  %vm5051_vm5 = vcmp.lt.f32.partialorder %v11481_v51, 5.0  ;;  %v11625_v34 = vsel %vm5054_vm6, 1.0, %v14129_v46  ;;  %v11641_v51 = vld [vmem:[%s13998_s5 + $0x28] sm:$0xff] }
  0xcc   :  { %9982 = vperm.xlu1 %9805, %v9981_v10   ;;  %8711 = vmatpush3.bf16.msra.mxu1 %v10088_v20  ;;  %v11488_v10 = vpack.c.bf16 %v11449_v22, %v11444_v30  ;;  %v10099_v50 = vld [vmem:[%s14000_s1 + $0x160] sm:$0xff]   ;;  %vm3176_vm8 = vcmp.lt.f32.partialorder %v11641_v51, 6.0  ;;  %vm5056_vm12 = vcmp.lt.f32.partialorder %v11641_v51, 5.0  ;;  %vm10442_vm0 = vmmov 0  }
  0xcd   :  { %9977 = vperm.xlu0 %9804, %v9976_v52   ;;  %8712 = vmatprep.subr.bf16.mxu1 %v10090_v43  ;;  %v11503_v52 = vpack.c.bf16 %v11464_v17, %v11459_v14 }
  0xce   :  { %14125 = vst [vmem:[#allocation33_spill] sm:$0xff] %v11488_v10  ;;  %8791 = vmatpush3.bf16.msra.mxu0 %v10089_v36  ;;  %v11499_v20 = vpop.permute.xlu1 %1717  ;;  %v11511_v45 = vpop.permute.xlu0 %1712  ;;  %v10001_v36 = vpack.i.bf16 %v11261_v62, %v11264_v5  ;;  %v9829_v5 = vunpack.i.l.bf16 %v11176_v26  ;;  %v9996_v62 = vpack.i.bf16 %v11243_v35, %v11247_v33  ;;  %v3196_v35 = vmul.f32 %v11524_v42, %v10841_v61 }
  0xcf   :  { %14126 = vst [vmem:[#allocation34_spill] sm:$0xff] %v11499_v20  ;;  %14127 = vst [vmem:[#allocation35_spill] sm:$0xff] %v11503_v52  ;;  %8800 = vmatprep.subr.bf16.mxu0 %v10091_v11  ;;  %v10093_v20 = vld [vmem:[%s14000_s1 + $0x148] sm:$0xff]  }
  0xd0   :  { %14128 = vst [vmem:[#allocation36_spill] sm:$0xff] %v11511_v45  ;;  %9992 = vperm.xlu1 %9805, %v9991_v7   ;;  %v11529_v7 = vsel %vm3171_vm1, 1.0, %v14129_v46  ;;  %v9830_v45 = vunpack.i.h.bf16 %v11176_v26  ;;  %8713 = vmatpush3.bf16.msra.mxu1 %v10090_v43  ;;  %v10095_v26 = vld [vmem:[%s14000_s1 + $0x150] sm:$0xff]   ;;  %v11550_v43 = vsel %vm3174_vm2, 1.0, %v14129_v46  ;;  %v1116_v23 = vmul.f32 %v9829_v5, %v1068_v29  ;;  %v10098_v29 = vld [vmem:[%s14000_s1 + $0x280] sm:$0xff]  }
  0xd1   :  { %9987 = vperm.xlu0 %9804, %v9986_v58   ;;  %8793 = vmatmul.mubr.bf16.vlgmr.msra.gmra.mrb[0].mxu0 %v11488_v10  ;;  %v10406_v58 = vld [vmem:[%s13998_s5 + $0x10] sm:$0xff]  ;;  %vm5756_vm1 = vcmask 523264   ;;  %vm5935_vm2 = vcmask 1041408  }
  0xd2   :  { %8714 = vmatprep.subr.bf16.mxu1 %v10092_v53  ;;  %vm3173_vm3 = vcmp.lt.f32.partialorder %v10406_v58, 6.0  ;;  %8801 = vmatpush3.bf16.msra.mxu0 %v10091_v11  ;;  %v11555_v33 = vpop.permute.xlu1 %1727  ;;  %v11558_v10 = vpop.permute.xlu0 %1722  ;;  %v1117_v15 = vmul.f32 %v9830_v45, %v1069_v38  ;;  %v3195_v11 = vmul.f32 %v11529_v7, %v10844_v24  ;;  %v11579_v45 = vld [vmem:[%s14001_s0 + $0x1b] sm:$0xff]  ;;  %v11584_v24 = vld [vmem:[%s14001_s0 + $0x23] sm:$0xff]  ;;  %vm5053_vm7 = vcmp.lt.f32.partialorder %v10406_v58, 5.0  ;;  %v11590_v38 = vld [vmem:[%s14001_s0 + $0x2b] sm:$0xff] }
  0xd3   :  { %14131 = vst [vmem:[#allocation38_spill] sm:$0xff] %v11555_v33  ;;  %8796 = vmatprep.mubr.bf16.mxu0 %v11503_v52  ;;  %14132 = vst [vmem:[#allocation39_spill] sm:$0xff] %v11558_v10  ;;  %8802 = vmatprep.subr.bf16.mxu0 %v10093_v20  ;;  %v11567_v52 = vpack.c.bf16 %v925_v49, %v11538_v32  ;;  %v11574_v61 = vsel %vm3173_vm3, 1.0, %v14129_v46  ;;  %v11608_v10 = vsel %vm5052_vm4, 1.0, %v14129_v46 }
  0xd4   :  { %10002 = vperm.xlu1 %9805, %v10001_v36   ;;  %8715 = vmatpush3.bf16.msra.mxu1 %v10092_v53  ;;  %v10096_v36 = vld [vmem:[%s14000_s1 + $0x38] sm:$0xff]   ;;  %14134 = vst [vmem:[#allocation41_spill] sm:$0xff] %v11584_v24  ;;  %14135 = vst [vmem:[#allocation42_spill] sm:$0xff] %v11590_v38  ;;  %v3198_v53 = vmul.f32 %v11550_v43, %v10847_v28  ;;  %v1124_v28 = vpack.c.bf16 %v1117_v15, %v1116_v23  ;;  %v11629_v15 = vsel %vm5053_vm7, 1.0, %v14129_v46 }
  0xd5   :  { %9997 = vperm.xlu0 %9804, %v9996_v62   ;;  %8716 = vmatprep.subr.bf16.mxu1 %v10094_v59  ;;  %14133 = vst [vmem:[#allocation40_spill] sm:$0xff] %v11567_v52  ;;  %v11595_v62 = vld [vmem:[%s14001_s0 + $0x33] sm:$0xff]  ;;  %v3197_v33 = vmul.f32 %v11574_v61, %v10853_v4  ;;  %v162_v9 = vmul.f32 %v11584_v24, %v11466_v3 }
  0xd6   :  { %8803 = vmatpush3.bf16.msra.mxu0 %v10093_v20  ;;  %v147_v49 = vpop.permute.xlu1 %146  ;;  %14136 = vst [vmem:[#allocation43_spill] sm:$0xff] %v11595_v62  ;;  %v142_v5 = vpop.permute.xlu0 %141  ;;  %v10097_v20 = vld [vmem:[%s14000_s1 + $0x158] sm:$0xff]   ;;  %v161_v19 = vmul.f32 %v11579_v45, %v11468_v13  ;;  %v5076_v13 = vmul.f32 %v11608_v10, %v10859_v6  ;;  %v10100_v6 = vld [vmem:[%s14000_s1 + $0x288] sm:$0xff]  }
  0xd7   :  { %8804 = vmatprep.subr.bf16.mxu0 %v10095_v26  ;;  %v164_v4 = vmul.f32 %v11595_v62, %v147_v49  ;;  %v163_v23 = vmul.f32 %v11590_v38, %v142_v5  ;;  %v10101_v49 = vld [vmem:[%s14000_s1 + $0x168] sm:$0xff]   ;;  %v11661_v5 = vld [vmem:[%s13998_s5 + $0x38] sm:$0xff]  ;;  %v5077_v62 = vmul.f32 %v11629_v15, %v10871_v2 }
  0xd8   :  { %3210 = vperm.xlu1 %9805, %v3196_v35   ;;  %v11613_v35 = vsel %vm5051_vm5, 1.0, %v14129_v46  ;;  %8717 = vmatpush3.bf16.msra.mxu1 %v10094_v59  ;;  %v168_v58 = vpack.c.bf16 %v162_v9, %v161_v19  ;;  %vm3178_vm10 = vcmp.lt.f32.partialorder %v11661_v5, 6.0  ;;  %v11678_v19 = vld [vmem:[%s14001_s0 + $0x43] sm:$0xff]  ;;  %vm5058_vm14 = vcmp.lt.f32.partialorder %v11661_v5, 5.0 }
  0xd9   :  { %3205 = vperm.xlu0 %9804, %v3195_v11   ;;  %8797 = vmatmul.mubr.bf16.gmra.mrb[4].mxu0 %v11567_v52  ;;  %v5075_v11 = vmul.f32 %v11613_v35, %v10862_v39  ;;  %v11673_v39 = vld [vmem:[%s14001_s0 + $0x3b] sm:$0xff]  ;;  %14138 = vst [vmem:[#allocation45_spill] sm:$0xff] %v11678_v19  ;;  %v169_v9 = vpack.c.bf16 %v164_v4, %v163_v23  ;;  %v10102_v52 = vld [vmem:[%s14000_s1 + $0x290] sm:$0xff]   ;;  %v11706_v2 = vsel %vm3178_vm10, 1.0, %v14129_v46  ;;  %v11774_v24 = vsel %vm5058_vm14, 1.0, %v14129_v46 }
  0xda   :  { %8718 = vmatprep.subr.bf16.mxu1 %v10096_v36  ;;  %8805 = vmatpush3.bf16.msra.mxu0 %v10095_v26  ;;  %v157_v59 = vpop.permute.xlu1 %156  ;;  %v152_v3 = vpop.permute.xlu0 %151  ;;  %v11647_v26 = vld [vmem:[%s13998_s5 + $0x20] sm:$0xff]  ;;  %14137 = vst [vmem:[#allocation44_spill] sm:$0xff] %v11673_v39 }
  0xdb   :  { %8816 = vmatprep.mubr.bf16.mxu0 %v1124_v28  ;;  %8806 = vmatprep.subr.bf16.mxu0 %v10097_v20  ;;  %vm3175_vm9 = vcmp.lt.f32.partialorder %v11647_v26, 6.0  ;;  %v5078_v28 = vmul.f32 %v11625_v34, %v10865_v41  ;;  %v166_v41 = vmul.f32 %v11678_v19, %v157_v59  ;;  %v165_v23 = vmul.f32 %v11673_v39, %v152_v3  ;;  %v10103_v59 = vld [vmem:[%s14000_s1 + $0x170] sm:$0xff]   ;;  %v10107_v5 = vld [vmem:[%s14000_s1 + $0x180] sm:$0xff]  }
  0xdc   :  { %3220 = vperm.xlu1 %9805, %v3198_v53   ;;  %8719 = vmatpush3.bf16.msra.mxu1 %v10096_v36  ;;  %v11699_v4 = vsel %vm3175_vm9, 1.0, %v14129_v46  ;;  %vm5055_vm13 = vcmp.lt.f32.partialorder %v11647_v26, 5.0  ;;  %v9840_v19 = vunpack.i.h.bf16 %v11199_v18 }
  0xdd   :  { %3215 = vperm.xlu0 %9804, %v3197_v33   ;;  %8896 = vmatprep.subr.bf16.mxu1 %v10098_v29  ;;  %v11667_v33 = vld [vmem:[%s13998_s5 + $0x30] sm:$0xff] }
  0xde   :  { %vm3177_vm11 = vcmp.lt.f32.partialorder %v11667_v33, 6.0  ;;  %8807 = vmatpush3.bf16.msra.mxu0 %v10097_v20  ;;  %v11680_v36 = vpop.permute.xlu1 %1737  ;;  %v11682_v53 = vpop.permute.xlu0 %1732  ;;  %v11694_v20 = vsel %vm3176_vm8, 1.0, %v14129_v46  ;;  %vm5057_vm15 = vcmp.lt.f32.partialorder %v11667_v33, 5.0  ;;  %v9844_v33 = vunpack.i.l.bf16 %v11194_v40 }
  0xdf   :  { %14139 = vst [vmem:[#allocation46_spill] sm:$0xff] %v11680_v36  ;;  %8721 = vmatmul.mubr.bf16.vlgmr.msra.gmra.mrb[0].mxu1 %v168_v58  ;;  %14140 = vst [vmem:[#allocation47_spill] sm:$0xff] %v11682_v53  ;;  %8808 = vmatprep.subr.bf16.mxu0 %v10099_v50  ;;  %v3200_v58 = vmul.f32 %v11694_v20, %v10874_v31  ;;  %v10105_v31 = vld [vmem:[%s14000_s1 + $0x178] sm:$0xff]  }
  0xe0   :  { %5090 = vperm.xlu1 %9805, %v5076_v13   ;;  %8724 = vmatprep.mubr.bf16.mxu1 %v169_v9  ;;  %v2096_v9 = vld [vmem:[%s14001_s0 + $0x8] sm:$0xff]  ;;  %v1073_v53 = vld [vmem:[%s14001_s0 + $0x39] sm:$0xff] }
  0xe1   :  { %8897 = vmatpush3.bf16.msra.mxu1 %v10098_v29  ;;  %5085 = vperm.xlu0 %9804, %v5075_v11   ;;  %v11711_v29 = vsel %vm3177_vm11, 1.0, %v14129_v46  ;;  %v10104_v11 = vld [vmem:[%s14000_s1 + $0x298] sm:$0xff]  }
  0xe2   :  { %8809 = vmatpush3.bf16.msra.mxu0 %v10099_v50  ;;  %8898 = vmatprep.subr.bf16.mxu1 %v10100_v6  ;;  %v11713_v13 = vpop.permute.xlu1 %1747  ;;  %v11718_v3 = vpop.permute.xlu0 %1742  ;;  %v170_v50 = vpack.c.bf16 %v166_v41, %v165_v23  ;;  %v9835_v23 = vunpack.i.h.bf16 %v11174_v55  ;;  %v3201_v51 = vmul.f32 %v11711_v29, %v10890_v54 }
  0xe3   :  { %14141 = vst [vmem:[#allocation48_spill] sm:$0xff] %v11713_v13  ;;  %14142 = vst [vmem:[#allocation49_spill] sm:$0xff] %v11718_v3  ;;  %8810 = vmatprep.subr.bf16.mxu0 %v10101_v49  ;;  %v9834_v3 = vunpack.i.l.bf16 %v11174_v55  ;;  %v1072_v13 = vld [vmem:[%s14001_s0 + $0x31] sm:$0xff]  ;;  %v11765_v55 = vsel %vm5055_vm13, 1.0, %v14129_v46 }
  0xe4   :  { %5100 = vperm.xlu1 %9805, %v5078_v28   ;;  %v3199_v28 = vmul.f32 %v11699_v4, %v10877_v37  ;;  %v3202_v37 = vmul.f32 %v11706_v2, %v10887_v16  ;;  %v11760_v16 = vsel %vm5056_vm12, 1.0, %v14129_v46 }
  0xe5   :  { %8899 = vmatpush3.bf16.msra.mxu1 %v10100_v6  ;;  %5095 = vperm.xlu0 %9804, %v5077_v62   ;;  %v1070_v6 = vld [vmem:[%s14001_s0 + $0x21] sm:$0xff]  ;;  %v1071_v62 = vld [vmem:[%s14001_s0 + $0x29] sm:$0xff] }
  0xe6   :  { %8900 = vmatprep.subr.bf16.mxu1 %v10102_v52  ;;  %8811 = vmatpush3.bf16.msra.mxu0 %v10101_v49  ;;  %v11742_v41 = vpop.permute.xlu1 %9892  ;;  %v9888_v36 = vpop.permute.xlu0 %9887  ;;  %v10106_v49 = vld [vmem:[%s14000_s1 + $0x2a0] sm:$0xff]  }
  0xe7   :  { %8725 = vmatmul.mubr.bf16.gmra.mrb[4].mxu1 %v170_v50  ;;  %v9839_v50 = vunpack.i.l.bf16 %v11199_v18  ;;  %v9890_v39 = vunpack.i.h.bf16 %v9888_v36  ;;  %8812 = vmatprep.subr.bf16.mxu0 %v10103_v59 }
  0xe8   :  { %3230 = vperm.xlu1 %9805, %v3200_v58   ;;  %v9889_v58 = vunpack.i.l.bf16 %v9888_v36  ;;  %v1118_v36 = vmul.f32 %v9834_v3, %v1070_v6  ;;  %v11796_v3 = vsel %vm5057_vm15, 1.0, %v14129_v46 }
  0xe9   :  { %8901 = vmatpush3.bf16.msra.mxu1 %v10102_v52  ;;  %3225 = vperm.xlu0 %9804, %v3199_v28   ;;  %v2145_v38 = vmul.f32 %v9890_v39, %v11295_v47  ;;  %v5080_v52 = vmul.f32 %v11760_v16, %v10893_v21  ;;  %v1119_v28 = vmul.f32 %v9835_v23, %v1071_v62 }
  0xea   :  { %8902 = vmatprep.subr.bf16.mxu1 %v10104_v11  ;;  %v2144_v26 = vmul.f32 %v9889_v58, %v2096_v9  ;;  %8813 = vmatpush3.bf16.msra.mxu0 %v10103_v59  ;;  %v9903_v18 = vpop.permute.xlu1 %9902  ;;  %v11780_v54 = vpop.permute.xlu0 %9897  ;;  %v1120_v9 = vmul.f32 %v9839_v50, %v1072_v13  ;;  %v1121_v58 = vmul.f32 %v9840_v19, %v1073_v53  ;;  %v10108_v13 = vld [vmem:[%s14000_s1 + $0x2a8] sm:$0xff]  }
  0xeb   :  { %v9905_v32 = vunpack.i.h.bf16 %v9903_v18  ;;  %v9904_v17 = vunpack.i.l.bf16 %v9903_v18  ;;  %8814 = vmatprep.subr.bf16.mxu0 %v10105_v31  ;;  %v5079_v59 = vmul.f32 %v11765_v55, %v10901_v27  ;;  %v5082_v27 = vmul.f32 %v11774_v24, %v10910_v60 }
  0xec   :  { %3240 = vperm.xlu1 %9805, %v3202_v37   ;;  %v2152_v47 = vpack.c.bf16 %v2145_v38, %v2144_v26  ;;  %v1074_v38 = vld [vmem:[%s14001_s0 + $0x41] sm:$0xff]  ;;  %v1126_v60 = vpack.c.bf16 %v1121_v58, %v1120_v9  ;;  %v10011_v62 = vpack.i.bf16 %v11550_v43, %v11574_v61  ;;  %v10006_v37 = vpack.i.bf16 %v11524_v42, %v11529_v7 }
  0xed   :  { %8903 = vmatpush3.bf16.msra.mxu1 %v10104_v11  ;;  %v11786_v39 = vmul.f32 %v9904_v17, %v11313_v8  ;;  %v11789_v21 = vmul.f32 %v9905_v32, %v11303_v44  ;;  %3235 = vperm.xlu0 %9804, %v3201_v51   ;;  %v1075_v8 = vld [vmem:[%s14001_s0 + $0x49] sm:$0xff]  ;;  %v1125_v44 = vpack.c.bf16 %v1119_v28, %v1118_v36  ;;  %v9845_v17 = vunpack.i.h.bf16 %v11194_v40 }
  0xee   :  { %8904 = vmatprep.subr.bf16.mxu1 %v10106_v49  ;;  %8815 = vmatpush3.bf16.msra.mxu0 %v10105_v31  ;;  %v11804_v32 = vpop.permute.xlu1 %9912  ;;  %v9908_v53 = vpop.permute.xlu0 %9907  ;;  %v10109_v11 = vld [vmem:[%s14000_s1 + $0x188] sm:$0xff]   ;;  %v5081_v40 = vmul.f32 %v11796_v3, %v10913_v12  ;;  %v10110_v31 = vld [vmem:[%s14000_s1 + $0x2b0] sm:$0xff]   ;;  %v1122_v23 = vmul.f32 %v9844_v33, %v1074_v38  ;;  %v1347_v18 = vmul.f32 %v11214_v25, %v11579_v45  ;;  %v9894_v9 = vunpack.i.l.bf16 %v11742_v41 }
  0xef   :  { %8912 = vmatprep.mubr.bf16.mxu1 %v2152_v47  ;;  %8824 = vmatprep.subr.bf16.mxu0 %v10107_v5  ;;  %v10111_v12 = vld [vmem:[%s14000_s1 + $0x190] sm:$0xff]   ;;  %v9910_v25 = vunpack.i.h.bf16 %v9908_v53  ;;  %v9909_v45 = vunpack.i.l.bf16 %v9908_v53  ;;  %v10016_v53 = vpack.i.bf16 %v11608_v10, %v11613_v35 }
  0xf0   :  { %5110 = vperm.xlu1 %9805, %v5080_v52   ;;  %v1346_v52 = vmul.f32 %v11224_v56, %v11417_v57 }
  0xf1   :  { %8905 = vmatpush3.bf16.msra.mxu1 %v10106_v49  ;;  %5105 = vperm.xlu0 %9804, %v5079_v59   ;;  %v1123_v49 = vmul.f32 %v9845_v17, %v1075_v8 }
  0xf2   :  { %8817 = vmatmul.mubr.bf16.vlgmr.msra.gmra.mrb[0].mxu0 %v1125_v44  ;;  %v9923_v6 = vpop.permute.xlu1 %9922  ;;  %8906 = vmatprep.subr.bf16.mxu1 %v10108_v13  ;;  %v9918_v26 = vpop.permute.xlu0 %9917  ;;  %v1354_v8 = vpack.c.bf16 %v1347_v18, %v1346_v52  ;;  %v10411_v44 = vld [vmem:[%s14001_s0 + $0x18] sm:$0xff]  ;;  %v10117_v18 = vld [vmem:[%s14000_s1 + $0x1a8] sm:$0xff]   ;;  %v14143_v52 = vld [vmem:[#allocation32_spill] sm:$0xff] }
  0xf3   :  { %8820 = vmatprep.mubr.bf16.mxu0 %v1126_v60  ;;  %8825 = vmatpush3.bf16.msra.mxu0 %v10107_v5  ;;  %v9925_v50 = vunpack.i.h.bf16 %v9923_v6  ;;  %v9924_v51 = vunpack.i.l.bf16 %v9923_v6  ;;  %v9920_v36 = vunpack.i.h.bf16 %v9918_v26  ;;  %v9919_v28 = vunpack.i.l.bf16 %v9918_v26 }
  0xf4   :  { %5120 = vperm.xlu1 %9805, %v5082_v27   ;;  %8826 = vmatprep.subr.bf16.mxu0 %v10109_v11  ;;  %v9895_v5 = vunpack.i.h.bf16 %v11742_v41  ;;  %v1127_v41 = vpack.c.bf16 %v1123_v49, %v1122_v23  ;;  %v2146_v17 = vmul.f32 %v10411_v44, %v9894_v9  ;;  %v2149_v60 = vmul.f32 %v9910_v25, %v11459_v14  ;;  %v10118_v25 = vld [vmem:[%s14000_s1 + $0x250] sm:$0xff]   ;;  %v14190_v27 = vld [vmem:[#allocation46_spill] sm:$0xff] }
  0xf5   :  { %8907 = vmatpush3.bf16.msra.mxu1 %v10108_v13  ;;  %v11837_v58 = vmul.f32 %v9924_v51, %v11376_v63  ;;  %v11840_v47 = vmul.f32 %v9925_v50, %v11351_v0  ;;  %5115 = vperm.xlu0 %9804, %v5081_v40   ;;  %v11843_v56 = vmul.f32 %v9919_v28, %v11308_v1  ;;  %v10112_v63 = vld [vmem:[%s14000_s1 + $0x2b8] sm:$0xff]   ;;  %v10114_v13 = vld [vmem:[%s14000_s1 + $0x240] sm:$0xff]   ;;  %v10116_v50 = vld [vmem:[%s14000_s1 + $0x248] sm:$0xff]  }
  0xf6   :  { %8908 = vmatprep.subr.bf16.mxu1 %v10110_v31  ;;  %v11846_v57 = vmul.f32 %v9920_v36, %v11335_v48  ;;  %v2035_v59 = vpop.permute.xlu1 %2034  ;;  %v2030_v38 = vpop.permute.xlu0 %2029  ;;  %v10021_v0 = vpack.i.bf16 %v11625_v34, %v11629_v15  ;;  %v10113_v48 = vld [vmem:[%s14000_s1 + $0x198] sm:$0xff]   ;;  %v2147_v33 = vmul.f32 %v9895_v5, %v11444_v30  ;;  %v10031_v30 = vpack.i.bf16 %v11706_v2, %v11711_v29  ;;  %v1963_v51 = vld [vmem:[%s14001_s0 + $0x6] sm:$0xff] }
  0xf7   :  { %8827 = vmatpush3.bf16.msra.mxu0 %v10109_v11  ;;  %v2148_v11 = vmul.f32 %v9909_v45, %v11449_v22  ;;  %v9914_v22 = vunpack.i.l.bf16 %v11804_v32  ;;  %v10026_v14 = vpack.i.bf16 %v11694_v20, %v11699_v4  ;;  %v14144_v28 = vld [vmem:[#allocation37_spill] sm:$0xff]  ;;  %v10036_v9 = vpack.i.bf16 %v11760_v16, %v11765_v55  ;;  %v14186_v1 = vld [vmem:[#allocation38_spill] sm:$0xff] }
  0xf8   :  { %10012 = vperm.xlu1 %9805, %v10011_v62   ;;  %8828 = vmatprep.subr.bf16.mxu0 %v10111_v12  ;;  %v2153_v6 = vpack.c.bf16 %v2147_v33, %v2146_v17  ;;  %v9915_v62 = vunpack.i.h.bf16 %v11804_v32  ;;  %v11892_v32 = vld [vmem:[%s14001_s0 + $0xe] sm:$0xff] }
  0xf9   :  { %8909 = vmatpush3.bf16.msra.mxu1 %v10110_v31  ;;  %10007 = vperm.xlu0 %9804, %v10006_v37   ;;  %v10115_v37 = vld [vmem:[%s14000_s1 + $0x1a0] sm:$0xff]   ;;  %v2154_v49 = vpack.c.bf16 %v2149_v60, %v2148_v11  ;;  %v2150_v36 = vmul.f32 %v9914_v22, %v14143_v52  ;;  %v2068_v45 = vmul.f32 %v2035_v59, %v11892_v32  ;;  %v14146_v17 = vld [vmem:[#allocation3_spill] sm:$0xff]  ;;  %v10119_v59 = vld [vmem:[%s14000_s1 + $0x1b0] sm:$0xff]  }
  0xfa   :  { %8821 = vmatmul.mubr.bf16.gmra.mrb[4].mxu0 %v1127_v41  ;;  %v11871_v40 = vpop.permute.xlu1 %2044  ;;  %8910 = vmatprep.subr.bf16.mxu1 %v10112_v63  ;;  %v11873_v31 = vpop.permute.xlu0 %2039  ;;  %v2151_v5 = vmul.f32 %v9915_v62, %v14144_v28  ;;  %v2067_v41 = vmul.f32 %v2030_v38, %v1963_v51  ;;  %v3599_v33 = vmul.f32 %v11529_v7, %v14146_v17  ;;  %v14147_v11 = vld [vmem:[#allocation4_spill] sm:$0xff]  ;;  %v10121_v7 = vld [vmem:[%s14000_s1 + $0x1b8] sm:$0xff]   ;;  %v10122_v62 = vld [vmem:[%s14000_s1 + $0x260] sm:$0xff]  }
  0xfb   :  { %8829 = vmatpush3.bf16.msra.mxu0 %v10111_v12  ;;  %8840 = vmatprep.mubr.bf16.mxu0 %v1354_v8  ;;  %v10041_v12 = vpack.i.bf16 %v11774_v24, %v11796_v3  ;;  %v14145_v8 = vld [vmem:[#allocation2_spill] sm:$0xff]  ;;  %v3602_v60 = vmul.f32 %v11550_v43, %v14147_v11  ;;  %v14155_v28 = vld [vmem:[#allocation20_spill] sm:$0xff]  ;;  %v10124_v17 = vld [vmem:[%s14000_s1 + $0x268] sm:$0xff]  }
  0xfc   :  { %10022 = vperm.xlu1 %9805, %v10021_v0   ;;  %8830 = vmatprep.subr.bf16.mxu0 %v10113_v48  ;;  %v2155_v44 = vpack.c.bf16 %v2151_v5, %v2150_v36  ;;  %v2075_v38 = vpack.c.bf16 %v2068_v45, %v2067_v41  ;;  %v14149_v43 = vld [vmem:[#allocation42_spill] sm:$0xff]  ;;  %v14154_v36 = vld [vmem:[#allocation44_spill] sm:$0xff]  ;;  %v14158_v41 = vld [vmem:[#allocation7_spill] sm:$0xff] }
  0xfd   :  { %8911 = vmatpush3.bf16.msra.mxu1 %v10112_v63  ;;  %10017 = vperm.xlu0 %9804, %v10016_v53   ;;  %v10123_v52 = vld [vmem:[%s14000_s1 + $0x1c0] sm:$0xff]   ;;  %v1351_v5 = vmul.f32 %v14155_v28, %v14154_v36  ;;  %v14160_v11 = vld [vmem:[#allocation9_spill] sm:$0xff]  ;;  %v12006_v28 = vld [vmem:[%s14001_s0 + $0x2e] sm:$0xff] }
  0xfe   :  { %8920 = vmatprep.subr.bf16.mxu1 %v10114_v13  ;;  %v11884_v23 = vpop.permute.xlu1 %3930  ;;  %v11897_v26 = vpop.permute.xlu0 %3925 }
  0xff   :  { %8831 = vmatpush3.bf16.msra.mxu0 %v10113_v48  ;;  %v3600_v48 = vmul.f32 %v11524_v42, %v14145_v8  ;;  %v5479_v8 = vmul.f32 %v11613_v35, %v14158_v41  ;;  %v1273_v35 = vld [vmem:[%s14001_s0 + $0x4b] sm:$0xff]  ;;  %v10129_v41 = vld [vmem:[%s14000_s1 + $0x1d8] sm:$0xff]  }
 0x100   :  { %8913 = vmatmul.mubr.bf16.vlgmr.msra.gmra.mrb[8].mxu1 %v2153_v6  ;;  %10032 = vperm.xlu1 %9805, %v10031_v30   ;;  %v14148_v30 = vld [vmem:[#allocation5_spill] sm:$0xff] }
 0x101   :  { %8916 = vmatprep.mubr.bf16.mxu1 %v2154_v49  ;;  %8921 = vmatpush3.bf16.msra.mxu1 %v10114_v13  ;;  %v10120_v13 = vld [vmem:[%s14000_s1 + $0x258] sm:$0xff]   ;;  %v3601_v6 = vmul.f32 %v11574_v61, %v14148_v30  ;;  %v14161_v30 = vld [vmem:[#allocation22_spill] sm:$0xff] }
 0x102   :  { %10027 = vperm.xlu0 %9804, %v10026_v14   ;;  %8832 = vmatprep.subr.bf16.mxu0 %v10115_v37  ;;  %v11912_v63 = vpop.permute.xlu1 %3940  ;;  %v11914_v0 = vpop.permute.xlu0 %3935  ;;  %v14150_v14 = vld [vmem:[#allocation16_spill] sm:$0xff]  ;;  %v14151_v49 = vld [vmem:[#allocation41_spill] sm:$0xff] }
 0x103   :  { %8833 = vmatpush3.bf16.msra.mxu0 %v10115_v37  ;;  %8922 = vmatprep.subr.bf16.mxu1 %v10116_v50  ;;  %v1349_v37 = vmul.f32 %v14150_v14, %v14149_v43  ;;  %v14163_v43 = vld [vmem:[#allocation23_spill] sm:$0xff] }
 0x104   :  { %10042 = vperm.xlu1 %9805, %v10041_v12   ;;  %8834 = vmatprep.subr.bf16.mxu0 %v10117_v18 }
 0x105   :  { %8923 = vmatpush3.bf16.msra.mxu1 %v10116_v50  ;;  %v14152_v50 = vld [vmem:[#allocation17_spill] sm:$0xff] }
 0x106   :  { %10037 = vperm.xlu0 %9804, %v10036_v9   ;;  %8924 = vmatprep.subr.bf16.mxu1 %v10118_v25  ;;  %v11923_v53 = vpop.permute.xlu1 %2054  ;;  %v11928_v42 = vpop.permute.xlu0 %2049  ;;  %v1348_v51 = vmul.f32 %v14152_v50, %v14151_v49  ;;  %v14156_v9 = vld [vmem:[#allocation43_spill] sm:$0xff]  ;;  %v14164_v49 = vld [vmem:[#allocation10_spill] sm:$0xff]  ;;  %v10127_v50 = vld [vmem:[%s14000_s1 + $0x1d0] sm:$0xff]  }
 0x107   :  { %8835 = vmatpush3.bf16.msra.mxu0 %v10117_v18  ;;  %v14153_v18 = vld [vmem:[#allocation6_spill] sm:$0xff] }
 0x108   :  { %8917 = vmatmul.mubr.bf16.gmra.mrb[12].mxu1 %v2155_v44  ;;  %3614 = vperm.xlu1 %9805, %v3600_v48   ;;  %v5480_v61 = vmul.f32 %v11608_v10, %v14153_v18  ;;  %v1355_v10 = vpack.c.bf16 %v1349_v37, %v1348_v51  ;;  %v14165_v51 = vld [vmem:[#allocation11_spill] sm:$0xff] }
 0x109   :  { %8925 = vmatpush3.bf16.msra.mxu1 %v10118_v25  ;;  %8936 = vmatprep.mubr.bf16.mxu1 %v2075_v38  ;;  %v14157_v25 = vld [vmem:[#allocation21_spill] sm:$0xff]  ;;  %v3603_v18 = vmul.f32 %v11699_v4, %v14165_v51  ;;  %v12011_v4 = vld [vmem:[%s14001_s0 + $0x26] sm:$0xff] }
 0x10a   :  { %3609 = vperm.xlu0 %9804, %v3599_v33   ;;  %8836 = vmatprep.subr.bf16.mxu0 %v10119_v59  ;;  %v11940_v22 = vpop.permute.xlu1 %2064  ;;  %v11946_v12 = vpop.permute.xlu0 %2059  ;;  %v1350_v45 = vmul.f32 %v14157_v25, %v14156_v9  ;;  %v14159_v33 = vld [vmem:[#allocation8_spill] sm:$0xff]  ;;  %v10128_v9 = vld [vmem:[%s14000_s1 + $0x278] sm:$0xff]  }
 0x10b   :  { %8837 = vmatpush3.bf16.msra.mxu0 %v10119_v59  ;;  %8926 = vmatprep.subr.bf16.mxu1 %v10120_v13  ;;  %v5482_v59 = vmul.f32 %v11625_v34, %v14159_v33  ;;  %v14166_v25 = vld [vmem:[#allocation12_spill] sm:$0xff] }
 0x10c   :  { %3624 = vperm.xlu1 %9805, %v3602_v60   ;;  %8838 = vmatprep.subr.bf16.mxu0 %v10121_v7  ;;  %v1356_v38 = vpack.c.bf16 %v1351_v5, %v1350_v45  ;;  %v5481_v60 = vmul.f32 %v11629_v15, %v14160_v11  ;;  %v3604_v15 = vmul.f32 %v11694_v20, %v14164_v49  ;;  %v12001_v20 = vld [vmem:[%s14001_s0 + $0x16] sm:$0xff]  ;;  %v2399_v49 = vld [vmem:[%s14001_s0 + $0xa] sm:$0xff] }
 0x10d   :  { %8927 = vmatpush3.bf16.msra.mxu1 %v10120_v13  ;;  %v10125_v13 = vld [vmem:[%s14000_s1 + $0x1c8] sm:$0xff]   ;;  %v3606_v45 = vmul.f32 %v11706_v2, %v14166_v25  ;;  %v10130_v2 = vld [vmem:[%s14000_s1 + $0x2c0] sm:$0xff]  }
 0x10e   :  { %3619 = vperm.xlu0 %9804, %v3601_v6   ;;  %8928 = vmatprep.subr.bf16.mxu1 %v10122_v62  ;;  %v11959_v48 = vpop.permute.xlu1 %3950  ;;  %v11961_v44 = vpop.permute.xlu0 %3945  ;;  %v1353_v6 = vmul.f32 %v14161_v30, %v1273_v35  ;;  %v14169_v35 = vld [vmem:[#allocation27_spill] sm:$0xff]  ;;  %v10131_v30 = vld [vmem:[%s14000_s1 + $0x1e0] sm:$0xff]  }
 0x10f   :  { %8839 = vmatpush3.bf16.msra.mxu0 %v10121_v7  ;;  %v10126_v7 = vld [vmem:[%s14000_s1 + $0x270] sm:$0xff]   ;;  %v14174_v25 = vld [vmem:[#allocation19_spill] sm:$0xff] }
 0x110   :  { %5494 = vperm.xlu1 %9805, %v5480_v61   ;;  %8848 = vmatprep.subr.bf16.mxu0 %v10123_v52  ;;  %v11996_v61 = vld [vmem:[%s14001_s0 + $0x1e] sm:$0xff] }
 0x111   :  { %8929 = vmatpush3.bf16.msra.mxu1 %v10122_v62  ;;  %v14162_v62 = vld [vmem:[#allocation45_spill] sm:$0xff] }
 0x112   :  { %5489 = vperm.xlu0 %9804, %v5479_v8   ;;  %8841 = vmatmul.mubr.bf16.vlgmr.msra.gmra.mrb[0].mxu0 %v1355_v10  ;;  %v11979_v34 = vpop.permute.xlu1 %3960  ;;  %v1352_v14 = vmul.f32 %v14163_v43, %v14162_v62  ;;  %v2070_v8 = vmul.f32 %v11871_v40, %v11996_v61  ;;  %v2069_v10 = vmul.f32 %v11873_v31, %v12001_v20  ;;  %v14168_v40 = vld [vmem:[#allocation28_spill] sm:$0xff]  ;;  %v12051_v62 = vld [vmem:[%s14001_s0 + $0x3e] sm:$0xff] }
 0x113   :  { %8844 = vmatprep.mubr.bf16.mxu0 %v1356_v38  ;;  %8849 = vmatpush3.bf16.msra.mxu0 %v10123_v52  ;;  %v11984_v37 = vpop.permute.xlu0 %3955  ;;  %v2071_v38 = vmul.f32 %v11928_v42, %v12011_v4  ;;  %v14172_v42 = vld [vmem:[#allocation15_spill] sm:$0xff] }
 0x114   :  { %8930 = vmatprep.subr.bf16.mxu1 %v10124_v17  ;;  %5504 = vperm.xlu1 %9805, %v5482_v59   ;;  %v1357_v36 = vpack.c.bf16 %v1353_v6, %v1352_v14  ;;  %v2072_v59 = vmul.f32 %v11923_v53, %v12006_v28  ;;  %v2076_v53 = vpack.c.bf16 %v2070_v8, %v2069_v10  ;;  %v12066_v14 = vld [vmem:[%s14001_s0 + $0x12] sm:$0xff] }
 0x115   :  { %8931 = vmatpush3.bf16.msra.mxu1 %v10124_v17  ;;  %8850 = vmatprep.subr.bf16.mxu0 %v10125_v13  ;;  %v14167_v17 = vld [vmem:[#allocation13_spill] sm:$0xff] }
 0x116   :  { %5499 = vperm.xlu0 %9804, %v5481_v60   ;;  %8932 = vmatprep.subr.bf16.mxu1 %v10126_v7  ;;  %v2447_v52 = vpop.permute.xlu1 %2446  ;;  %v3605_v33 = vmul.f32 %v11711_v29, %v14167_v17  ;;  %v14171_v29 = vld [vmem:[#allocation14_spill] sm:$0xff]  ;;  %v2077_v6 = vpack.c.bf16 %v2072_v59, %v2071_v38  ;;  %v10137_v38 = vld [vmem:[%s14000_s1 + $0x1f8] sm:$0xff]  }
 0x117   :  { %8851 = vmatpush3.bf16.msra.mxu0 %v10125_v13  ;;  %v2442_v5 = vpop.permute.xlu0 %2441  ;;  %v14170_v13 = vpack.c.bf16 %v14168_v40, %v14169_v35  ;;  %v5484_v60 = vmul.f32 %v11760_v16, %v14171_v29  ;;  %v12056_v16 = vld [vmem:[%s14001_s0 + $0x36] sm:$0xff]  ;;  %v10138_v40 = vld [vmem:[%s14000_s1 + $0x2e0] sm:$0xff]  }
 0x118   :  { %3634 = vperm.xlu1 %9805, %v3604_v15   ;;  %8852 = vmatprep.subr.bf16.mxu0 %v10127_v50  ;;  %v2479_v8 = vmul.f32 %v2442_v5, %v2399_v49  ;;  %v10140_v49 = vld [vmem:[%s14000_s1 + $0x2e8] sm:$0xff]  }
 0x119   :  { %8933 = vmatpush3.bf16.msra.mxu1 %v10126_v7  ;;  %v5483_v7 = vmul.f32 %v11765_v55, %v14172_v42  ;;  %v10132_v55 = vld [vmem:[%s14000_s1 + $0x2c8] sm:$0xff]  }
 0x11a   :  { %3629 = vperm.xlu0 %9804, %v3603_v18   ;;  %8845 = vmatmul.mubr.bf16.gmra.mrb[4].mxu0 %v1357_v36  ;;  %v12037_v31 = vpop.permute.xlu1 %2456  ;;  %v10133_v18 = vld [vmem:[%s14000_s1 + $0x1e8] sm:$0xff]   ;;  %v2074_v36 = vmul.f32 %v11940_v22, %v12051_v62 }
 0x11b   :  { %8853 = vmatpush3.bf16.msra.mxu0 %v10127_v50  ;;  %8864 = vmatprep.mubr.bf16.mxu0 %v14170_v13  ;;  %v12039_v11 = vpop.permute.xlu0 %2451  ;;  %v14173_v50 = vld [vmem:[#allocation18_spill] sm:$0xff]  ;;  %v6768_v13 = vld [vmem:[%s14002_s8 + $0x10] sm:$0xff]  ;;  %v6771_v42 = vld [vmem:[%s14002_s8 + $0x28] sm:$0xff] }
 0x11c   :  { %8934 = vmatprep.subr.bf16.mxu1 %v10128_v9  ;;  %3644 = vperm.xlu1 %9805, %v3606_v45   ;;  %v5486_v51 = vmul.f32 %v11774_v24, %v14173_v50  ;;  %v5485_v45 = vmul.f32 %v11796_v3, %v14174_v25  ;;  %v10134_v24 = vld [vmem:[%s14000_s1 + $0x2d0] sm:$0xff]   ;;  %v6766_v3 = vld [vmem:[%s14002_s8] sm:$0xff]  ;;  %v10141_v50 = vld [vmem:[%s14000_s1 + $0x208] sm:$0xff]  }
 0x11d   :  { %8935 = vmatpush3.bf16.msra.mxu1 %v10128_v9  ;;  %8854 = vmatprep.subr.bf16.mxu0 %v10129_v41  ;;  %v2073_v9 = vmul.f32 %v11946_v12, %v12056_v16  ;;  %v10142_v25 = vld [vmem:[%s14000_s1 + $0x2f0] sm:$0xff]  }
 0x11e   :  { %3639 = vperm.xlu0 %9804, %v3605_v33   ;;  %8944 = vmatprep.subr.bf16.mxu1 %v10130_v2  ;;  %v12058_v43 = vpop.permute.xlu1 %4342  ;;  %v6767_v33 = vld [vmem:[%s14002_s8 + $0x8] sm:$0xff] }
 0x11f   :  { %8855 = vmatpush3.bf16.msra.mxu0 %v10129_v41  ;;  %v12071_v15 = vpop.permute.xlu0 %4337  ;;  %v2480_v41 = vmul.f32 %v2447_v52, %v12066_v14  ;;  %v2078_v12 = vpack.c.bf16 %v2074_v36, %v2073_v9  ;;  %v10135_v52 = vld [vmem:[%s14000_s1 + $0x1f0] sm:$0xff]   ;;  %v14177_v36 = vld [vmem:[#allocation25_spill] sm:$0xff] }
 0x120   :  { %8937 = vmatmul.mubr.bf16.vlgmr.msra.gmra.mrb[8].mxu1 %v2076_v53  ;;  %5514 = vperm.xlu1 %9805, %v5484_v60   ;;  %v10139_v60 = vld [vmem:[%s14000_s1 + $0x200] sm:$0xff]  }
 0x121   :  { %8940 = vmatprep.mubr.bf16.mxu1 %v2077_v6  ;;  %8945 = vmatpush3.bf16.msra.mxu1 %v10130_v2  ;;  %v2487_v5 = vpack.c.bf16 %v2480_v41, %v2479_v8  ;;  %v10136_v2 = vld [vmem:[%s14000_s1 + $0x2d8] sm:$0xff]  }
 0x122   :  { %5509 = vperm.xlu0 %9804, %v5483_v7   ;;  %8856 = vmatprep.subr.bf16.mxu0 %v10131_v30  ;;  %v12088_v10 = vpop.permute.xlu1 %4352  ;;  %v14175_v7 = vld [vmem:[#allocation29_spill] sm:$0xff] }
 0x123   :  { %8857 = vmatpush3.bf16.msra.mxu0 %v10131_v30  ;;  %8946 = vmatprep.subr.bf16.mxu1 %v10132_v55  ;;  %v12090_v22 = vpop.permute.xlu0 %4347  ;;  %v9885_v30 = vunpack.i.h.bf16 %v14175_v7  ;;  %v9884_v6 = vunpack.i.l.bf16 %v14175_v7 }
 0x124   :  { %5524 = vperm.xlu1 %9805, %v5486_v51   ;;  %8858 = vmatprep.subr.bf16.mxu0 %v10133_v18  ;;  %v1503_v51 = vld [vmem:[%s14001_s0 + $0x4c] sm:$0xff] }
 0x125   :  { %8947 = vmatpush3.bf16.msra.mxu1 %v10132_v55 }
 0x126   :  { %5519 = vperm.xlu0 %9804, %v5485_v45   ;;  %8948 = vmatprep.subr.bf16.mxu1 %v10134_v24  ;;  %v12098_v17 = vpop.permute.xlu1 %2466  ;;  %v14179_v45 = vld [vmem:[#allocation31_spill] sm:$0xff] }
 0x127   :  { %8859 = vmatpush3.bf16.msra.mxu0 %v10133_v18  ;;  %v12106_v59 = vpop.permute.xlu0 %2461  ;;  %v14176_v18 = vld [vmem:[#allocation26_spill] sm:$0xff] }
 0x128   :  { %8941 = vmatmul.mubr.bf16.gmra.mrb[12].mxu1 %v2078_v12  ;;  %6776 = vperm.xlu1 %9805, %v6766_v3   ;;  %v14178_v9 = vpack.c.bf16 %v14176_v18, %v14177_v36  ;;  %v6772_v3 = vld [vmem:[%s14002_s8 + $0x30] sm:$0xff]  ;;  %v10412_v12 = vld [vmem:[%s14001_s0 + $0x44] sm:$0xff] }
 0x129   :  { %8949 = vmatpush3.bf16.msra.mxu1 %v10134_v24  ;;  %8960 = vmatprep.mubr.bf16.mxu1 %v2487_v5  ;;  %v14180_v24 = vld [vmem:[#allocation30_spill] sm:$0xff]  ;;  %v1551_v5 = vmul.f32 %v9885_v30, %v1503_v51  ;;  %v10144_v30 = vld [vmem:[%s14000_s1 + $0x2f8] sm:$0xff]   ;;  %v12201_v36 = vld [vmem:[%s14001_s0 + $0x2a] sm:$0xff] }
 0x12a   :  { %6781 = vperm.xlu0 %9804, %v6767_v33   ;;  %8860 = vmatprep.subr.bf16.mxu0 %v10135_v52  ;;  %v12114_v35 = vpop.permute.xlu1 %2476  ;;  %v14181_v41 = vpack.c.bf16 %v14179_v45, %v14180_v24  ;;  %v12189_v51 = vld [vmem:[%s14001_s0 + $0x1a] sm:$0xff] }
 0x12b   :  { %8861 = vmatpush3.bf16.msra.mxu0 %v10135_v52  ;;  %8950 = vmatprep.subr.bf16.mxu1 %v10136_v2  ;;  %v12119_v29 = vpop.permute.xlu0 %2471  ;;  %v1550_v52 = vmul.f32 %v10412_v12, %v9884_v6  ;;  %v12184_v6 = vld [vmem:[%s14001_s0 + $0x22] sm:$0xff]  ;;  %v10145_v24 = vld [vmem:[%s14000_s1 + $0x218] sm:$0xff]  }
 0x12c   :  { %8862 = vmatprep.subr.bf16.mxu0 %v10137_v38  ;;  %v10146_v12 = vld [vmem:[%s14000_s1 + $0x300] sm:$0xff]  }
 0x12d   :  { %8951 = vmatpush3.bf16.msra.mxu1 %v10136_v2  ;;  %v10143_v2 = vld [vmem:[%s14000_s1 + $0x210] sm:$0xff]   ;;  %v1555_v45 = vpack.c.bf16 %v1551_v5, %v1550_v52  ;;  %v2483_v5 = vmul.f32 %v12106_v59, %v12201_v36  ;;  %v12230_v59 = vld [vmem:[%s14001_s0 + $0x42] sm:$0xff] }
 0x12e   :  { %6786 = vperm.xlu0 %9804, %v6768_v13   ;;  %8952 = vmatprep.subr.bf16.mxu1 %v10138_v40  ;;  %v12124_v53 = vpop.permute.xlu1 %4362 }
 0x12f   :  { %8863 = vmatpush3.bf16.msra.mxu0 %v10137_v38  ;;  %v12131_v55 = vpop.permute.xlu0 %4357  ;;  %v12167_v38 = vld [vmem:[%s14001_s0 + $0x1d] sm:$0xff] }
 0x130   :  { %8872 = vmatprep.subr.bf16.mxu0 %v10139_v60 }
 0x131   :  { %8953 = vmatpush3.bf16.msra.mxu1 %v10138_v40  ;;  %v14182_v40 = vld [vmem:[#allocation34_spill] sm:$0xff] }
 0x132   :  { %6801 = vperm.xlu0 %9804, %v6771_v42   ;;  %8865 = vmatmul.mubr.bf16.vlgmr.msra.gmra.mrb[0].mxu0 %v14178_v9  ;;  %v12151_v8 = vpop.permute.xlu1 %4372  ;;  %v1751_v13 = vmul.f32 %v12167_v38, %v14182_v40  ;;  %v14183_v42 = vld [vmem:[#allocation36_spill] sm:$0xff] }
 0x133   :  { %8868 = vmatprep.mubr.bf16.mxu0 %v14181_v41  ;;  %8873 = vmatpush3.bf16.msra.mxu0 %v10139_v60  ;;  %v12159_v33 = vpop.permute.xlu0 %4367  ;;  %v12174_v60 = vld [vmem:[%s14001_s0 + $0x15] sm:$0xff]  ;;  %v2482_v41 = vmul.f32 %v12037_v31, %v12184_v6 }
 0x134   :  { %8954 = vmatprep.subr.bf16.mxu1 %v10140_v49  ;;  %8874 = vmatprep.subr.bf16.mxu0 %v10141_v50  ;;  %v1750_v7 = vmul.f32 %v12174_v60, %v14183_v42 }
 0x135   :  { %8955 = vmatpush3.bf16.msra.mxu1 %v10140_v49  ;;  %v12196_v49 = vld [vmem:[%s14001_s0 + $0x32] sm:$0xff] }
 0x136   :  { %6806 = vperm.xlu0 %9804, %v6772_v3   ;;  %8956 = vmatprep.subr.bf16.mxu1 %v10142_v25  ;;  %v12191_v18 = vpop.permute.xlu1 %9932  ;;  %v2481_v3 = vmul.f32 %v12039_v11, %v12189_v51  ;;  %v2484_v52 = vmul.f32 %v12098_v17, %v12196_v49  ;;  %v10147_v11 = vld [vmem:[%s14000_s1 + $0x220] sm:$0xff]   ;;  %v10148_v17 = vld [vmem:[%s14000_s1 + $0x308] sm:$0xff]  }
 0x137   :  { %8875 = vmatpush3.bf16.msra.mxu0 %v10141_v50  ;;  %v9928_v9 = vpop.permute.xlu0 %9927  ;;  %v1758_v50 = vpack.c.bf16 %v1751_v13, %v1750_v7 }
 0x138   :  { %8876 = vmatprep.subr.bf16.mxu0 %v10143_v2  ;;  %v2488_v40 = vpack.c.bf16 %v2482_v41, %v2481_v3  ;;  %v2489_v13 = vpack.c.bf16 %v2484_v52, %v2483_v5  ;;  %v9930_v42 = vunpack.i.h.bf16 %v9928_v9  ;;  %v9929_v7 = vunpack.i.l.bf16 %v9928_v9  ;;  %v10150_v9 = vld [vmem:[%s14000_s1 + $0x310] sm:$0xff]  }
 0x139   :  { %8957 = vmatpush3.bf16.msra.mxu1 %v10142_v25  ;;  %v2486_v41 = vmul.f32 %v12114_v35, %v12230_v59  ;;  %v10151_v35 = vld [vmem:[%s14000_s1 + $0x230] sm:$0xff]  }
 0x13a   :  { %8869 = vmatmul.mubr.bf16.gmra.mrb[4].mxu0 %v1555_v45  ;;  %8958 = vmatprep.subr.bf16.mxu1 %v10144_v30  ;;  %v2678_v52 = vmul.f32 %v9930_v42, %v12001_v20 }
 0x13b   :  { %8877 = vmatpush3.bf16.msra.mxu0 %v10143_v2  ;;  %8888 = vmatprep.mubr.bf16.mxu0 %v1758_v50  ;;  %v12217_v25 = vpop.permute.xlu1 %9942  ;;  %v12219_v31 = vpop.permute.xlu0 %9937  ;;  %v12235_v2 = vld [vmem:[%s14001_s0 + $0x3a] sm:$0xff]  ;;  %v10149_v50 = vld [vmem:[%s14000_s1 + $0x228] sm:$0xff]  }
 0x13c   :  { %8878 = vmatprep.subr.bf16.mxu0 %v10145_v24  ;;  %v2485_v3 = vmul.f32 %v12119_v29, %v12235_v2 }
 0x13d   :  { %8959 = vmatpush3.bf16.msra.mxu1 %v10144_v30 }
 0x13e   :  { %8968 = vmatprep.subr.bf16.mxu1 %v10146_v12  ;;  %v2490_v29 = vpack.c.bf16 %v2486_v41, %v2485_v3  ;;  %v1698_v41 = vld [vmem:[%s14001_s0 + $0x35] sm:$0xff] }
 0x13f   :  { %8879 = vmatpush3.bf16.msra.mxu0 %v10145_v24  ;;  %v12237_v30 = vpop.permute.xlu1 %9952  ;;  %v2677_v24 = vmul.f32 %v9929_v7, %v11892_v32  ;;  %v10153_v7 = vld [vmem:[%s14000_s1 + $0x238] sm:$0xff]  }
 0x140   :  { %8961 = vmatmul.mubr.bf16.vlgmr.msra.gmra.mrb[8].mxu1 %v2488_v40  ;;  %v12239_v45 = vpop.permute.xlu0 %9947  ;;  %8880 = vmatprep.subr.bf16.mxu0 %v10147_v11 }
 0x141   :  { %8964 = vmatprep.mubr.bf16.mxu1 %v2489_v13  ;;  %8969 = vmatpush3.bf16.msra.mxu1 %v10146_v12  ;;  %v10152_v12 = vld [vmem:[%s14000_s1 + $0x318] sm:$0xff]   ;;  %v2685_v20 = vpack.c.bf16 %v2678_v52, %v2677_v24 }
 0x142   :  { %8970 = vmatprep.subr.bf16.mxu1 %v10148_v17 }
 0x143   :  { %8881 = vmatpush3.bf16.msra.mxu0 %v10147_v11  ;;  %v12253_v5 = vpop.permute.xlu1 %9962 }
 0x144   :  { %14184 = vst [vmem:[#allocation32_spill] sm:$0xff] %v12253_v5  ;;  %v12255_v40 = vpop.permute.xlu0 %9957  ;;  %8882 = vmatprep.subr.bf16.mxu0 %v10149_v50  ;;  %v14195_v5 = vld [vmem:[#allocation49_spill] sm:$0xff] }
 0x145   :  { %8971 = vmatpush3.bf16.msra.mxu1 %v10148_v17  ;;  %v1699_v17 = vld [vmem:[%s14001_s0 + $0x3d] sm:$0xff] }
 0x146   :  { %8972 = vmatprep.subr.bf16.mxu1 %v10150_v9  ;;  %v1755_v19 = vmul.f32 %v14190_v27, %v1699_v17  ;;  %v10156_v27 = vld [vmem:[%s14000_s1 + $0x328] sm:$0xff]  }
 0x147   :  { %8883 = vmatpush3.bf16.msra.mxu0 %v10149_v50  ;;  %v9973_v32 = vpop.permute.xlu1 %9972 }
 0x148   :  { %8965 = vmatmul.mubr.bf16.gmra.mrb[12].mxu1 %v2490_v29  ;;  %v9975_v11 = vunpack.i.h.bf16 %v9973_v32  ;;  %v9974_v13 = vunpack.i.l.bf16 %v9973_v32  ;;  %v9968_v42 = vpop.permute.xlu0 %9967  ;;  %8884 = vmatprep.subr.bf16.mxu0 %v10151_v35  ;;  %v10154_v29 = vld [vmem:[%s14000_s1 + $0x320] sm:$0xff]   ;;  %v12284_v32 = vld [vmem:[%s14001_s0 + $0x2d] sm:$0xff] }
 0x149   :  { %v9970_v50 = vunpack.i.h.bf16 %v9968_v42  ;;  %v9969_v3 = vunpack.i.l.bf16 %v9968_v42  ;;  %8973 = vmatpush3.bf16.msra.mxu1 %v10150_v9  ;;  %8984 = vmatprep.mubr.bf16.mxu1 %v2685_v20  ;;  %14185 = vst [vmem:[#allocation37_spill] sm:$0xff] %v12284_v32  ;;  %v1753_v9 = vmul.f32 %v12284_v32, %v14186_v1  ;;  %v14191_v1 = vld [vmem:[#allocation47_spill] sm:$0xff] }
 0x14a   :  { %v12273_v24 = vmul.f32 %v9974_v13, %v12184_v6  ;;  %v12276_v52 = vmul.f32 %v9975_v11, %v12201_v36  ;;  %8974 = vmatprep.subr.bf16.mxu1 %v10152_v12  ;;  %v12299_v11 = vld [vmem:[%s14001_s0 + $0x25] sm:$0xff]  ;;  %v1754_v46 = vmul.f32 %v14191_v1, %v1698_v41 }
 0x14b   :  { %v12289_v20 = vmul.f32 %v9969_v3, %v12066_v14  ;;  %v12292_v6 = vmul.f32 %v9970_v50, %v12189_v51  ;;  %8885 = vmatpush3.bf16.msra.mxu0 %v10151_v35  ;;  %v12294_v36 = vpop.permute.xlu1 %9982  ;;  %14188 = vst [vmem:[#allocation3_spill] sm:$0xff] %v12299_v11  ;;  %v14189_v13 = vld [vmem:[#allocation39_spill] sm:$0xff]  ;;  %v10155_v35 = vld [vmem:[%s14000_s1 + $0x4c0] sm:$0xff]   ;;  %v9899_v50 = vunpack.i.l.bf16 %v11780_v54 }
 0x14c   :  { %14187 = vst [vmem:[#allocation2_spill] sm:$0xff] %v12294_v36  ;;  %v1752_v42 = vmul.f32 %v12299_v11, %v14189_v13  ;;  %v12307_v51 = vpop.permute.xlu0 %9977  ;;  %8886 = vmatprep.subr.bf16.mxu0 %v10153_v7  ;;  %v1760_v3 = vpack.c.bf16 %v1755_v19, %v1754_v46  ;;  %v10157_v1 = vld [vmem:[%s14000_s1 + $0x4c8] sm:$0xff]   ;;  %v10159_v11 = vld [vmem:[%s14000_s1 + $0x4d0] sm:$0xff]  }
 0x14d   :  { %14192 = vst [vmem:[#allocation4_spill] sm:$0xff] %v12307_v51  ;;  %8975 = vmatpush3.bf16.msra.mxu1 %v10152_v12  ;;  %v1701_v12 = vld [vmem:[%s14001_s0 + $0x4d] sm:$0xff]  ;;  %v1700_v14 = vld [vmem:[%s14001_s0 + $0x45] sm:$0xff] }
 0x14e   :  { %8976 = vmatprep.subr.bf16.mxu1 %v10154_v29  ;;  %v1759_v41 = vpack.c.bf16 %v1753_v9, %v1752_v42  ;;  %v3992_v19 = vld [vmem:[%s14001_s0 + $0x4] sm:$0xff]  ;;  %v10158_v42 = vld [vmem:[%s14000_s1 + $0x330] sm:$0xff]   ;;  %v1756_v32 = vmul.f32 %v14195_v5, %v1700_v14  ;;  %v9934_v5 = vunpack.i.l.bf16 %v12191_v18  ;;  %v10160_v14 = vld [vmem:[%s14000_s1 + $0x338] sm:$0xff]  }
 0x14f   :  { %8887 = vmatpush3.bf16.msra.mxu0 %v10153_v7  ;;  %v12317_v17 = vpop.permute.xlu1 %9992  ;;  %v9900_v7 = vunpack.i.h.bf16 %v11780_v54 }
 0x150   :  { %v9988_v13 = vpop.permute.xlu0 %9987  ;;  %9112 = vmatprep.subr.bf16.mxu0 %v10155_v35 }
 0x151   :  { %v9990_v9 = vunpack.i.h.bf16 %v9988_v13  ;;  %v9989_v46 = vunpack.i.l.bf16 %v9988_v13  ;;  %8977 = vmatpush3.bf16.msra.mxu1 %v10154_v29  ;;  %v14194_v29 = vld [vmem:[#allocation48_spill] sm:$0xff] }
 0x152   :  { %8889 = vmatmul.mubr.bf16.vlgmr.msra.gmra.mrb[0].mxu0 %v1759_v41  ;;  %8978 = vmatprep.subr.bf16.mxu1 %v10156_v27  ;;  %v1757_v13 = vmul.f32 %v14194_v29, %v1701_v12  ;;  %v9935_v12 = vunpack.i.h.bf16 %v12191_v18  ;;  %v10161_v18 = vld [vmem:[%s14000_s1 + $0x4d8] sm:$0xff]   ;;  %v2679_v29 = vmul.f32 %v9934_v5, %v11996_v61  ;;  %v10163_v61 = vld [vmem:[%s14000_s1 + $0x4e0] sm:$0xff]  }
 0x153   :  { %v12337_v36 = vmul.f32 %v9989_v46, %v12196_v49  ;;  %v12340_v51 = vmul.f32 %v9990_v9, %v12235_v2  ;;  %8892 = vmatprep.mubr.bf16.mxu0 %v1760_v3  ;;  %9113 = vmatpush3.bf16.msra.mxu0 %v10155_v35  ;;  %v12342_v54 = vpop.permute.xlu1 %10002  ;;  %v4040_v49 = vmul.f32 %v9899_v50, %v3992_v19  ;;  %v10417_v2 = vld [vmem:[%s14001_s0 + $0xc] sm:$0xff]  ;;  %v9950_v50 = vunpack.i.h.bf16 %v12239_v45 }
 0x154   :  { %14193 = vst [vmem:[#allocation5_spill] sm:$0xff] %v12342_v54  ;;  %v12346_v41 = vpop.permute.xlu0 %9997  ;;  %9114 = vmatprep.subr.bf16.mxu0 %v10157_v1  ;;  %v4041_v3 = vmul.f32 %v10417_v2, %v9900_v7  ;;  %v9949_v9 = vunpack.i.l.bf16 %v12239_v45  ;;  %v2680_v2 = vmul.f32 %v9935_v12, %v12011_v4  ;;  %v10162_v45 = vld [vmem:[%s14000_s1 + $0x340] sm:$0xff]   ;;  %v14213_v54 = vld [vmem:[#allocation40_spill] sm:$0xff] }
 0x155   :  { %8979 = vmatpush3.bf16.msra.mxu1 %v10156_v27  ;;  %v1761_v27 = vpack.c.bf16 %v1757_v13, %v1756_v32 }
 0x156   :  { %8980 = vmatprep.subr.bf16.mxu1 %v10158_v42  ;;  %v4048_v19 = vpack.c.bf16 %v4041_v3, %v4040_v49  ;;  %v2681_v32 = vmul.f32 %v9949_v9, %v12006_v28  ;;  %v2686_v4 = vpack.c.bf16 %v2680_v2, %v2679_v29  ;;  %v9955_v49 = vunpack.i.h.bf16 %v12237_v30  ;;  %v10164_v28 = vld [vmem:[%s14000_s1 + $0x348] sm:$0xff]   ;;  %v10166_v29 = vld [vmem:[%s14000_s1 + $0x350] sm:$0xff]  }
 0x157   :  { %9115 = vmatpush3.bf16.msra.mxu0 %v10157_v1  ;;  %v12363_v46 = vpop.permute.xlu1 %3210  ;;  %v2682_v1 = vmul.f32 %v9950_v50, %v12056_v16  ;;  %v9954_v3 = vunpack.i.l.bf16 %v12237_v30  ;;  %v12392_v16 = vld [vmem:[%s14001_s0 + $0x21] sm:$0xff]  ;;  %v5043_v30 = vld [vmem:[%s14001_s0 + $0x19] sm:$0xff]  ;;  %v12418_v2 = vld [vmem:[%s14001_s0 + $0x31] sm:$0xff] }
 0x158   :  { %v12365_v7 = vpop.permute.xlu0 %3205  ;;  %9116 = vmatprep.subr.bf16.mxu0 %v10159_v11  ;;  %v10165_v50 = vld [vmem:[%s14000_s1 + $0x4e8] sm:$0xff]  }
 0x159   :  { %8981 = vmatpush3.bf16.msra.mxu1 %v10158_v42  ;;  %v2687_v5 = vpack.c.bf16 %v2682_v1, %v2681_v32  ;;  %v10167_v1 = vld [vmem:[%s14000_s1 + $0x4f0] sm:$0xff]  }
 0x15a   :  { %8893 = vmatmul.mubr.bf16.gmra.mrb[4].mxu0 %v1761_v27  ;;  %8982 = vmatprep.subr.bf16.mxu1 %v10160_v14  ;;  %v2683_v27 = vmul.f32 %v9954_v3, %v12051_v62 }
 0x15b   :  { %9117 = vmatpush3.bf16.msra.mxu0 %v10159_v11  ;;  %9128 = vmatprep.mubr.bf16.mxu0 %v4048_v19  ;;  %v12377_v13 = vpop.permute.xlu1 %3220  ;;  %v12397_v11 = vld [vmem:[%s14001_s0 + $0x46] sm:$0xff] }
 0x15c   :  { %v12379_v42 = vpop.permute.xlu0 %3215  ;;  %9118 = vmatprep.subr.bf16.mxu0 %v10161_v18 }
 0x15d   :  { %8983 = vmatpush3.bf16.msra.mxu1 %v10160_v14 }
 0x15e   :  { %8992 = vmatprep.subr.bf16.mxu1 %v10162_v45 }
 0x15f   :  { %9119 = vmatpush3.bf16.msra.mxu0 %v10161_v18  ;;  %v5091_v12 = vpop.permute.xlu1 %5090  ;;  %v2684_v18 = vmul.f32 %v9955_v49, %v12397_v11 }
 0x160   :  { %8985 = vmatmul.mubr.bf16.vlgmr.msra.gmra.mrb[8].mxu1 %v2686_v4  ;;  %v12403_v14 = vmul.f32 %v5091_v12, %v12392_v16  ;;  %9120 = vmatprep.subr.bf16.mxu0 %v10163_v61  ;;  %v5086_v9 = vpop.permute.xlu0 %5085  ;;  %v12431_v4 = vld [vmem:[%s14001_s0 + $0x29] sm:$0xff]  ;;  %v10168_v12 = vld [vmem:[%s14000_s1 + $0x358] sm:$0xff]  }
 0x161   :  { %8988 = vmatprep.mubr.bf16.mxu1 %v2687_v5  ;;  %8993 = vmatpush3.bf16.msra.mxu1 %v10162_v45  ;;  %v12410_v19 = vmul.f32 %v5086_v9, %v5043_v30  ;;  %v2688_v3 = vpack.c.bf16 %v2684_v18, %v2683_v27  ;;  %v14200_v27 = vld [vmem:[#allocation24_spill] sm:$0xff]  ;;  %v10173_v45 = vld [vmem:[%s14000_s1 + $0x488] sm:$0xff]  }
 0x162   :  { %14196 = vst [vmem:[#allocation42_spill] sm:$0xff] %v12403_v14  ;;  %8994 = vmatprep.subr.bf16.mxu1 %v10164_v28 }
 0x163   :  { %14197 = vst [vmem:[#allocation16_spill] sm:$0xff] %v12410_v19  ;;  %9121 = vmatpush3.bf16.msra.mxu0 %v10163_v61  ;;  %v5101_v32 = vpop.permute.xlu1 %5100  ;;  %v14204_v19 = vpack.c.bf16 %v11846_v57, %v11843_v56 }
 0x164   :  { %v12423_v62 = vmul.f32 %v5101_v32, %v12418_v2  ;;  %9122 = vmatprep.subr.bf16.mxu0 %v10165_v50  ;;  %v5096_v49 = vpop.permute.xlu0 %5095  ;;  %v10171_v32 = vld [vmem:[%s14000_s1 + $0x480] sm:$0xff]  }
 0x165   :  { %8995 = vmatpush3.bf16.msra.mxu1 %v10164_v28  ;;  %v12434_v61 = vmul.f32 %v5096_v49, %v12431_v4  ;;  %v10169_v28 = vld [vmem:[%s14000_s1 + $0x4f8] sm:$0xff]  }
 0x166   :  { %14198 = vst [vmem:[#allocation41_spill] sm:$0xff] %v12423_v62  ;;  %8996 = vmatprep.subr.bf16.mxu1 %v10166_v29  ;;  %v14203_v62 = vpack.c.bf16 %v11789_v21, %v11786_v39  ;;  %v10175_v21 = vld [vmem:[%s14000_s1 + $0x490] sm:$0xff]  }
 0x167   :  { %14199 = vst [vmem:[#allocation17_spill] sm:$0xff] %v12434_v61  ;;  %9123 = vmatpush3.bf16.msra.mxu0 %v10165_v50  ;;  %v12439_v30 = vpop.permute.xlu1 %3230  ;;  %v10170_v50 = vld [vmem:[%s14000_s1 + $0x360] sm:$0xff]   ;;  %v5050_v61 = vld [vmem:[%s14001_s0 + $0x51] sm:$0xff] }
 0x168   :  { %8989 = vmatmul.mubr.bf16.gmra.mrb[12].mxu1 %v2688_v3  ;;  %9124 = vmatprep.subr.bf16.mxu0 %v10167_v1  ;;  %v12446_v9 = vpop.permute.xlu0 %3225  ;;  %v10172_v3 = vld [vmem:[%s14000_s1 + $0x368] sm:$0xff]  }
 0x169   :  { %8997 = vmatpush3.bf16.msra.mxu1 %v10166_v29  ;;  %9008 = vmatprep.mubr.bf16.mxu1 %v14200_v27  ;;  %v5048_v29 = vld [vmem:[%s14001_s0 + $0x41] sm:$0xff] }
 0x16a   :  { %8998 = vmatprep.subr.bf16.mxu1 %v10168_v12 }
 0x16b   :  { %9125 = vmatpush3.bf16.msra.mxu0 %v10167_v1  ;;  %v12452_v18 = vpop.permute.xlu1 %3240 }
 0x16c   :  { %9126 = vmatprep.subr.bf16.mxu0 %v10169_v28  ;;  %v12457_v49 = vpop.permute.xlu0 %3235 }
 0x16d   :  { %8999 = vmatpush3.bf16.msra.mxu1 %v10168_v12  ;;  %v12473_v12 = vld [vmem:[%s14001_s0 + $0x39] sm:$0xff] }
 0x16e   :  { %9000 = vmatprep.subr.bf16.mxu1 %v10170_v50 }
 0x16f   :  { %9127 = vmatpush3.bf16.msra.mxu0 %v10169_v28  ;;  %v5111_v1 = vpop.permute.xlu1 %5110  ;;  %v3860_v28 = vld [vmem:[%s14001_s0 + $0x9] sm:$0xff] }
 0x170   :  { %v12465_v5 = vmul.f32 %v5111_v1, %v5048_v29  ;;  %9136 = vmatprep.subr.bf16.mxu0 %v10171_v32  ;;  %v5106_v35 = vpop.permute.xlu0 %5105  ;;  %v3859_v29 = vld [vmem:[%s14001_s0 + $0x1] sm:$0xff] }
 0x171   :  { %9001 = vmatpush3.bf16.msra.mxu1 %v10170_v50  ;;  %v12485_v1 = vmul.f32 %v5106_v35, %v12473_v12  ;;  %v10174_v50 = vld [vmem:[%s14000_s1 + $0x370] sm:$0xff]   ;;  %v3963_v56 = vmul.f32 %v11897_v26, %v3859_v29 }
 0x172   :  { %14201 = vst [vmem:[#allocation6_spill] sm:$0xff] %v12465_v5  ;;  %9129 = vmatmul.mubr.bf16.vlgmr.msra.gmra.mrb[8].mxu0 %v14203_v62  ;;  %9002 = vmatprep.subr.bf16.mxu1 %v10172_v3  ;;  %v5049_v35 = vld [vmem:[%s14001_s0 + $0x49] sm:$0xff]  ;;  %v3964_v62 = vmul.f32 %v11884_v23, %v3860_v28  ;;  %v10177_v23 = vld [vmem:[%s14000_s1 + $0x498] sm:$0xff]   ;;  %v14207_v28 = vpack.c.bf16 %v11840_v47, %v11837_v58 }
 0x173   :  { %14202 = vst [vmem:[#allocation44_spill] sm:$0xff] %v12485_v1  ;;  %9132 = vmatprep.mubr.bf16.mxu0 %v14204_v19  ;;  %9137 = vmatpush3.bf16.msra.mxu0 %v10171_v32  ;;  %v5121_v14 = vpop.permute.xlu1 %5120  ;;  %v10176_v32 = vld [vmem:[%s14000_s1 + $0x378] sm:$0xff]   ;;  %v10180_v58 = vld [vmem:[%s14000_s1 + $0x388] sm:$0xff]  }
 0x174   :  { %v12501_v39 = vmul.f32 %v5121_v14, %v5050_v61  ;;  %9138 = vmatprep.subr.bf16.mxu0 %v10173_v45  ;;  %v5116_v57 = vpop.permute.xlu0 %5115  ;;  %v3971_v26 = vpack.c.bf16 %v3964_v62, %v3963_v56 }
 0x175   :  { %9003 = vmatpush3.bf16.msra.mxu1 %v10172_v3  ;;  %v12508_v19 = vmul.f32 %v5116_v57, %v5049_v35  ;;  %v10179_v35 = vld [vmem:[%s14000_s1 + $0x4a0] sm:$0xff]   ;;  %v14210_v57 = vld [vmem:[#allocation35_spill] sm:$0xff] }
 0x176   :  { %14205 = vst [vmem:[#allocation20_spill] sm:$0xff] %v12501_v39  ;;  %9004 = vmatprep.subr.bf16.mxu1 %v10174_v50 }
 0x177   :  { %14206 = vst [vmem:[#allocation43_spill] sm:$0xff] %v12508_v19  ;;  %9139 = vmatpush3.bf16.msra.mxu0 %v10173_v45  ;;  %v12513_v14 = vpop.permute.xlu1 %10012  ;;  %v10178_v45 = vld [vmem:[%s14000_s1 + $0x380] sm:$0xff]  }
 0x178   :  { %9140 = vmatprep.subr.bf16.mxu0 %v10175_v21  ;;  %v12520_v3 = vpop.permute.xlu0 %10007 }
 0x179   :  { %9005 = vmatpush3.bf16.msra.mxu1 %v10174_v50  ;;  %v14209_v50 = vld [vmem:[#allocation33_spill] sm:$0xff] }
 0x17a   :  { %9133 = vmatmul.mubr.bf16.gmra.mrb[12].mxu0 %v14207_v28  ;;  %9006 = vmatprep.subr.bf16.mxu1 %v10176_v32 }
 0x17b   :  { %9141 = vmatpush3.bf16.msra.mxu0 %v10175_v21  ;;  %9152 = vmatprep.mubr.bf16.mxu0 %v3971_v26  ;;  %v12528_v29 = vpop.permute.xlu1 %10022  ;;  %v10181_v21 = vld [vmem:[%s14000_s1 + $0x4a8] sm:$0xff]   ;;  %v10183_v26 = vld [vmem:[%s14000_s1 + $0x4b0] sm:$0xff]  }
 0x17c   :  { %14208 = vst [vmem:[#allocation21_spill] sm:$0xff] %v12528_v29  ;;  %9142 = vmatprep.subr.bf16.mxu0 %v10177_v23  ;;  %v12533_v62 = vpop.permute.xlu0 %10017  ;;  %v10186_v29 = vld [vmem:[%s14000_s1 + $0x3a0] sm:$0xff]  }
 0x17d   :  { %9007 = vmatpush3.bf16.msra.mxu1 %v10176_v32  ;;  %v10182_v32 = vld [vmem:[%s14000_s1 + $0x390] sm:$0xff]  }
 0x17e   :  { %9016 = vmatprep.subr.bf16.mxu1 %v10178_v45 }
 0x17f   :  { %9143 = vmatpush3.bf16.msra.mxu0 %v10177_v23  ;;  %v12538_v47 = vpop.permute.xlu1 %10032 }
 0x180   :  { %9009 = vmatmul.mubr.bf16.vlgmr.msra.gmra.mrb[8].mxu1 %v14209_v50  ;;  %9144 = vmatprep.subr.bf16.mxu0 %v10179_v35 }
 0x181   :  { %v12544_v56 = vpop.permute.xlu0 %10027  ;;  %9017 = vmatpush3.bf16.msra.mxu1 %v10178_v45  ;;  %9012 = vmatprep.mubr.bf16.mxu1 %v14210_v57  ;;  %v10184_v45 = vld [vmem:[%s14000_s1 + $0x398] sm:$0xff]  }
 0x182   :  { %9018 = vmatprep.subr.bf16.mxu1 %v10180_v58 }
 0x183   :  { %9145 = vmatpush3.bf16.msra.mxu0 %v10179_v35  ;;  %v12550_v23 = vpop.permute.xlu1 %10042  ;;  %v10185_v35 = vld [vmem:[%s14000_s1 + $0x4b8] sm:$0xff]  }
 0x184   :  { %14211 = vst [vmem:[#allocation7_spill] sm:$0xff] %v12550_v23  ;;  %9146 = vmatprep.subr.bf16.mxu0 %v10181_v21  ;;  %v3862_v23 = vld [vmem:[%s14001_s0 + $0x19] sm:$0xff] }
 0x185   :  { %v12555_v28 = vpop.permute.xlu0 %10037  ;;  %9019 = vmatpush3.bf16.msra.mxu1 %v10180_v58  ;;  %v3861_v58 = vld [vmem:[%s14001_s0 + $0x11] sm:$0xff]  ;;  %v3966_v39 = vmul.f32 %v11912_v63, %v3862_v23  ;;  %v5472_v63 = vld [vmem:[%s14001_s0 + $0x27] sm:$0xff] }
 0x186   :  { %14212 = vst [vmem:[#allocation8_spill] sm:$0xff] %v12555_v28  ;;  %9020 = vmatprep.subr.bf16.mxu1 %v10182_v32  ;;  %v3965_v1 = vmul.f32 %v11914_v0, %v3861_v58  ;;  %v10188_v0 = vld [vmem:[%s14000_s1 + $0x3a8] sm:$0xff]  }
 0x187   :  { %9147 = vmatpush3.bf16.msra.mxu0 %v10181_v21  ;;  %v12560_v61 = vpop.permute.xlu1 %3614  ;;  %v14214_v21 = vpack.c.bf16 %v12292_v6, %v12289_v20  ;;  %v3968_v20 = vmul.f32 %v11959_v48, %v12431_v4  ;;  %v3967_v6 = vmul.f32 %v11961_v44, %v12392_v16  ;;  %v5471_v48 = vld [vmem:[%s14001_s0 + $0x1f] sm:$0xff]  ;;  %v10189_v16 = vld [vmem:[%s14000_s1 + $0x508] sm:$0xff]  }
 0x188   :  { %9013 = vmatmul.mubr.bf16.gmra.mrb[12].mxu1 %v14213_v54  ;;  %9148 = vmatprep.subr.bf16.mxu0 %v10183_v26  ;;  %v3972_v4 = vpack.c.bf16 %v3966_v39, %v3965_v1  ;;  %v4296_v58 = vld [vmem:[%s14001_s0 + $0xf] sm:$0xff]  ;;  %v4295_v1 = vld [vmem:[%s14001_s0 + $0x7] sm:$0xff] }
 0x189   :  { %v12572_v28 = vpop.permute.xlu0 %3609  ;;  %9021 = vmatpush3.bf16.msra.mxu1 %v10182_v32  ;;  %9032 = vmatprep.mubr.bf16.mxu1 %v14214_v21  ;;  %v10187_v32 = vld [vmem:[%s14000_s1 + $0x500] sm:$0xff]  }
 0x18a   :  { %9022 = vmatprep.subr.bf16.mxu1 %v10184_v45 }
 0x18b   :  { %9149 = vmatpush3.bf16.msra.mxu0 %v10183_v26  ;;  %v12580_v19 = vpop.permute.xlu1 %3624  ;;  %v3973_v26 = vpack.c.bf16 %v3968_v20, %v3967_v6  ;;  %v5473_v6 = vld [vmem:[%s14001_s0 + $0x2f] sm:$0xff] }
 0x18c   :  { %9150 = vmatprep.subr.bf16.mxu0 %v10185_v35 }
 0x18d   :  { %v12591_v21 = vpop.permute.xlu0 %3619  ;;  %9023 = vmatpush3.bf16.msra.mxu1 %v10184_v45 }
 0x18e   :  { %9024 = vmatprep.subr.bf16.mxu1 %v10186_v29 }
 0x18f   :  { %9151 = vmatpush3.bf16.msra.mxu0 %v10185_v35  ;;  %v5495_v23 = vpop.permute.xlu1 %5494  ;;  %v5474_v35 = vld [vmem:[%s14001_s0 + $0x37] sm:$0xff] }
 0x190   :  { %v12602_v44 = vmul.f32 %v5495_v23, %v5472_v63  ;;  %9160 = vmatprep.subr.bf16.mxu0 %v10187_v32  ;;  %v3970_v63 = vmul.f32 %v11979_v34, %v12473_v12  ;;  %v3969_v23 = vmul.f32 %v11984_v37, %v12418_v2  ;;  %v10192_v37 = vld [vmem:[%s14000_s1 + $0x3b8] sm:$0xff]  }
 0x191   :  { %v5490_v45 = vpop.permute.xlu0 %5489  ;;  %9025 = vmatpush3.bf16.msra.mxu1 %v10186_v29  ;;  %v10190_v29 = vld [vmem:[%s14000_s1 + $0x3b0] sm:$0xff]  }
 0x192   :  { %v12616_v39 = vmul.f32 %v5490_v45, %v5471_v48  ;;  %9153 = vmatmul.mubr.bf16.vlgmr.msra.gmra.mrb[8].mxu0 %v3972_v4  ;;  %9026 = vmatprep.subr.bf16.mxu1 %v10188_v0  ;;  %v4375_v45 = vmul.f32 %v12071_v15, %v4295_v1  ;;  %v3974_v2 = vpack.c.bf16 %v3970_v63, %v3969_v23  ;;  %v12661_v1 = vld [vmem:[%s14001_s0 + $0x4a] sm:$0xff] }
 0x193   :  { %9156 = vmatprep.mubr.bf16.mxu0 %v3973_v26  ;;  %9161 = vmatpush3.bf16.msra.mxu0 %v10187_v32  ;;  %v5505_v20 = vpop.permute.xlu1 %5504  ;;  %v10191_v32 = vld [vmem:[%s14000_s1 + $0x510] sm:$0xff]   ;;  %v4376_v26 = vmul.f32 %v12058_v43, %v4296_v58  ;;  %v10193_v43 = vld [vmem:[%s14000_s1 + $0x518] sm:$0xff]   ;;  %v10196_v58 = vld [vmem:[%s14000_s1 + $0x3c8] sm:$0xff]   ;;  %v14216_v63 = vpack.c.bf16 %v12340_v51, %v12337_v36 }
 0x194   :  { %v5535_v48 = vpack.c.bf16 %v12602_v44, %v12616_v39  ;;  %v12630_v4 = vmul.f32 %v5505_v20, %v5474_v35  ;;  %9162 = vmatprep.subr.bf16.mxu0 %v10189_v16  ;;  %v9994_v35 = vunpack.i.l.bf16 %v12317_v17  ;;  %v3163_v20 = vld [vmem:[%s14001_s0 + $0x16] sm:$0xff] }
 0x195   :  { %v5500_v5 = vpop.permute.xlu0 %5499  ;;  %9027 = vmatpush3.bf16.msra.mxu1 %v10188_v0  ;;  %v4383_v15 = vpack.c.bf16 %v4376_v26, %v4375_v45  ;;  %v10195_v0 = vld [vmem:[%s14000_s1 + $0x520] sm:$0xff]   ;;  %v3243_v26 = vmul.f32 %v12365_v7, %v3163_v20  ;;  %v10199_v36 = vld [vmem:[%s14000_s1 + $0x530] sm:$0xff]  }
 0x196   :  { %v12637_v34 = vmul.f32 %v5500_v5, %v5473_v6  ;;  %9028 = vmatprep.subr.bf16.mxu1 %v10190_v29  ;;  %v10194_v5 = vld [vmem:[%s14000_s1 + $0x3c0] sm:$0xff]   ;;  %v10197_v6 = vld [vmem:[%s14000_s1 + $0x528] sm:$0xff]   ;;  %v3019_v23 = vmul.f32 %v9994_v35, %v12230_v59  ;;  %v10200_v59 = vld [vmem:[%s14000_s1 + $0x3d8] sm:$0xff]  }
 0x197   :  { %9163 = vmatpush3.bf16.msra.mxu0 %v10189_v16  ;;  %v9995_v16 = vunpack.i.h.bf16 %v12317_v17  ;;  %v14215_v17 = vpack.c.bf16 %v12276_v52, %v12273_v24  ;;  %v10198_v24 = vld [vmem:[%s14000_s1 + $0x3d0] sm:$0xff]   ;;  %v4298_v7 = vld [vmem:[%s14001_s0 + $0x1f] sm:$0xff] }
 0x198   :  { %v5536_v12 = vpack.c.bf16 %v12630_v4, %v12637_v34  ;;  %9164 = vmatprep.subr.bf16.mxu0 %v10191_v32  ;;  %v10268_v44 = vld [vmem:[%s14000_s1 + $0x6b0] sm:$0xff]  }
 0x199   :  { %9029 = vmatpush3.bf16.msra.mxu1 %v10190_v29  ;;  %v3164_v29 = vld [vmem:[%s14001_s0 + $0x1e] sm:$0xff] }
 0x19a   :  { %9157 = vmatmul.mubr.bf16.gmra.mrb[12].mxu0 %v3974_v2  ;;  %9030 = vmatprep.subr.bf16.mxu1 %v10192_v37  ;;  %v3244_v52 = vmul.f32 %v12363_v46, %v3164_v29  ;;  %v10201_v46 = vld [vmem:[%s14000_s1 + $0x538] sm:$0xff]   ;;  %v4300_v2 = vld [vmem:[%s14001_s0 + $0x2f] sm:$0xff] }
 0x19b   :  { %9165 = vmatpush3.bf16.msra.mxu0 %v10191_v32  ;;  %9176 = vmatprep.mubr.bf16.mxu0 %v4383_v15  ;;  %v3020_v32 = vmul.f32 %v9995_v16, %v12661_v1  ;;  %v10202_v15 = vld [vmem:[%s14000_s1 + $0x3e0] sm:$0xff]   ;;  %v4380_v35 = vmul.f32 %v12124_v53, %v4300_v2  ;;  %v10204_v29 = vld [vmem:[%s14000_s1 + $0x3e8] sm:$0xff]  }
 0x19c   :  { %9166 = vmatprep.subr.bf16.mxu0 %v10193_v43  ;;  %v3251_v45 = vpack.c.bf16 %v3244_v52, %v3243_v26  ;;  %v10203_v16 = vld [vmem:[%s14000_s1 + $0x540] sm:$0xff]   ;;  %v10418_v26 = vld [vmem:[%s14001_s0 + $0xd] sm:$0xff] }
 0x19d   :  { %9031 = vmatpush3.bf16.msra.mxu1 %v10192_v37  ;;  %v3024_v51 = vpack.c.bf16 %v3020_v32, %v3019_v23  ;;  %v4297_v37 = vld [vmem:[%s14001_s0 + $0x17] sm:$0xff]  ;;  %v4302_v53 = vld [vmem:[%s14001_s0 + $0x3f] sm:$0xff] }
 0x19e   :  { %9040 = vmatprep.subr.bf16.mxu1 %v10194_v5  ;;  %v4382_v32 = vmul.f32 %v12151_v8, %v4302_v53  ;;  %v10420_v2 = vld [vmem:[%s14001_s0 + $0x26] sm:$0xff]  ;;  %v10010_v53 = vunpack.i.h.bf16 %v12520_v3 }
 0x19f   :  { %9167 = vmatpush3.bf16.msra.mxu0 %v10193_v43  ;;  %v4299_v43 = vld [vmem:[%s14001_s0 + $0x27] sm:$0xff] }
 0x1a0   :  { %9033 = vmatmul.mubr.bf16.vlgmr.msra.gmra.mrb[8].mxu1 %v14215_v17  ;;  %9168 = vmatprep.subr.bf16.mxu0 %v10195_v0  ;;  %v9940_v17 = vunpack.i.h.bf16 %v12219_v31 }
 0x1a1   :  { %9036 = vmatprep.mubr.bf16.mxu1 %v14216_v63  ;;  %9041 = vmatpush3.bf16.msra.mxu1 %v10194_v5  ;;  %v4378_v5 = vmul.f32 %v12088_v10, %v4298_v7  ;;  %v10205_v10 = vld [vmem:[%s14000_s1 + $0x548] sm:$0xff]   ;;  %v10206_v63 = vld [vmem:[%s14000_s1 + $0x3f0] sm:$0xff]  }
 0x1a2   :  { %9042 = vmatprep.subr.bf16.mxu1 %v10196_v58 }
 0x1a3   :  { %9169 = vmatpush3.bf16.msra.mxu0 %v10195_v0  ;;  %v4377_v0 = vmul.f32 %v12090_v22, %v4297_v37 }
 0x1a4   :  { %9170 = vmatprep.subr.bf16.mxu0 %v10197_v6 }
 0x1a5   :  { %9043 = vmatpush3.bf16.msra.mxu1 %v10196_v58  ;;  %v4379_v58 = vmul.f32 %v12131_v55, %v4299_v43  ;;  %v4384_v20 = vpack.c.bf16 %v4378_v5, %v4377_v0  ;;  %v4301_v55 = vld [vmem:[%s14001_s0 + $0x37] sm:$0xff]  ;;  %v3245_v43 = vmul.f32 %v10420_v2, %v12379_v42 }
 0x1a6   :  { %9044 = vmatprep.subr.bf16.mxu1 %v10198_v24  ;;  %v10421_v5 = vld [vmem:[%s14001_s0 + $0x3e] sm:$0xff] }
 0x1a7   :  { %9171 = vmatpush3.bf16.msra.mxu0 %v10197_v6  ;;  %v4385_v22 = vpack.c.bf16 %v4380_v35, %v4379_v58  ;;  %v9939_v6 = vunpack.i.l.bf16 %v12219_v31  ;;  %v10207_v31 = vld [vmem:[%s14000_s1 + $0x550] sm:$0xff]   ;;  %v3248_v0 = vmul.f32 %v10421_v5, %v12439_v30  ;;  %v10211_v58 = vld [vmem:[%s14000_s1 + $0x560] sm:$0xff]  }
 0x1a8   :  { %9037 = vmatmul.mubr.bf16.gmra.mrb[12].mxu1 %v3024_v51  ;;  %9172 = vmatprep.subr.bf16.mxu0 %v10199_v36  ;;  %v4566_v51 = vmul.f32 %v12174_v60, %v9940_v17  ;;  %v10419_v60 = vld [vmem:[%s14001_s0 + $0x2e] sm:$0xff]  ;;  %v3393_v17 = vld [vmem:[%s14001_s0 + $0x18] sm:$0xff] }
 0x1a9   :  { %9045 = vmatpush3.bf16.msra.mxu1 %v10198_v24  ;;  %9056 = vmatprep.mubr.bf16.mxu1 %v3251_v45  ;;  %v4381_v24 = vmul.f32 %v12159_v33, %v4301_v55  ;;  %v10208_v33 = vld [vmem:[%s14000_s1 + $0x3f8] sm:$0xff]   ;;  %v3246_v37 = vmul.f32 %v10419_v60, %v12377_v13  ;;  %v10009_v55 = vunpack.i.l.bf16 %v12520_v3  ;;  %v3249_v3 = vmul.f32 %v12457_v49, %v12397_v11  ;;  %v10218_v60 = vld [vmem:[%s14000_s1 + $0x420] sm:$0xff]  }
 0x1aa   :  { %9046 = vmatprep.subr.bf16.mxu1 %v10200_v59  ;;  %v10422_v13 = vld [vmem:[%s14001_s0 + $0x36] sm:$0xff]  ;;  %v9945_v49 = vunpack.i.h.bf16 %v12217_v25 }
 0x1ab   :  { %9173 = vmatpush3.bf16.msra.mxu0 %v10199_v36  ;;  %v4565_v36 = vmul.f32 %v10418_v26, %v9939_v6  ;;  %v4386_v45 = vpack.c.bf16 %v4382_v32, %v4381_v24  ;;  %v3252_v30 = vpack.c.bf16 %v3246_v37, %v3245_v43  ;;  %v3394_v6 = vld [vmem:[%s14001_s0 + $0x20] sm:$0xff]  ;;  %v10214_v24 = vld [vmem:[%s14000_s1 + $0x410] sm:$0xff]   ;;  %v10216_v11 = vld [vmem:[%s14000_s1 + $0x418] sm:$0xff]  }
 0x1ac   :  { %9174 = vmatprep.subr.bf16.mxu0 %v10201_v46  ;;  %v3442_v26 = vmul.f32 %v10010_v53, %v3394_v6  ;;  %v14217_v37 = vld [vmem:[#allocation3_spill] sm:$0xff]  ;;  %v10219_v43 = vld [vmem:[%s14000_s1 + $0x580] sm:$0xff]  }
 0x1ad   :  { %9047 = vmatpush3.bf16.msra.mxu1 %v10200_v59  ;;  %v4573_v7 = vpack.c.bf16 %v4566_v51, %v4565_v36  ;;  %v10215_v36 = vld [vmem:[%s14000_s1 + $0x570] sm:$0xff]   ;;  %v4568_v2 = vmul.f32 %v14217_v37, %v9945_v49  ;;  %v10424_v53 = vld [vmem:[%s14001_s0 + $0x3d] sm:$0xff]  ;;  %v10035_v37 = vunpack.i.h.bf16 %v12538_v47 }
 0x1ae   :  { %9048 = vmatprep.subr.bf16.mxu1 %v10202_v15  ;;  %v10225_v49 = vld [vmem:[%s14000_s1 + $0x598] sm:$0xff]  }
 0x1af   :  { %9175 = vmatpush3.bf16.msra.mxu0 %v10201_v46  ;;  %v10209_v46 = vld [vmem:[%s14000_s1 + $0x558] sm:$0xff]  }
 0x1b0   :  { %9184 = vmatprep.subr.bf16.mxu0 %v10203_v16 }
 0x1b1   :  { %9049 = vmatpush3.bf16.msra.mxu1 %v10202_v15  ;;  %v10210_v15 = vld [vmem:[%s14000_s1 + $0x400] sm:$0xff]  }
 0x1b2   :  { %9177 = vmatmul.mubr.bf16.vlgmr.msra.gmra.mrb[8].mxu0 %v4384_v20  ;;  %9050 = vmatprep.subr.bf16.mxu1 %v10204_v29  ;;  %v12733_v23 = vpop.f32.mrb[0].mxu1 }
 0x1b3   :  { %9180 = vmatprep.mubr.bf16.mxu0 %v4385_v22  ;;  %9185 = vmatpush3.bf16.msra.mxu0 %v10203_v16  ;;  %v12737_v52 = vpop.f32.mrb[1].mxu1  ;;  %v3247_v16 = vmul.f32 %v10422_v13, %v12446_v9  ;;  %v10212_v9 = vld [vmem:[%s14000_s1 + $0x408] sm:$0xff]  }
 0x1b4   :  { %9186 = vmatprep.subr.bf16.mxu0 %v10205_v10  ;;  %v12746_v59 = vpop.f32.mrb[2].mxu1  ;;  %v3170_v22 = vld [vmem:[%s14001_s0 + $0x4e] sm:$0xff] }
 0x1b5   :  { %9051 = vmatpush3.bf16.msra.mxu1 %v10204_v29  ;;  %v12748_v8 = vpop.f32.mrb[3].mxu1  ;;  %v3250_v32 = vmul.f32 %v12452_v18, %v3170_v22  ;;  %v10222_v22 = vld [vmem:[%s14000_s1 + $0x430] sm:$0xff]  }
 0x1b6   :  { %9052 = vmatprep.subr.bf16.mxu1 %v10206_v63 }
 0x1b7   :  { %9187 = vmatpush3.bf16.msra.mxu0 %v10205_v10  ;;  %v3253_v10 = vpack.c.bf16 %v3248_v0, %v3247_v16  ;;  %v3254_v51 = vpack.c.bf16 %v3250_v32, %v3249_v3  ;;  %v14219_v16 = vld [vmem:[#allocation32_spill] sm:$0xff]  ;;  %v10015_v32 = vunpack.i.h.bf16 %v12513_v14  ;;  %v10014_v3 = vunpack.i.l.bf16 %v12513_v14  ;;  %v3397_v14 = vld [vmem:[%s14001_s0 + $0x38] sm:$0xff] }
 0x1b8   :  { %9188 = vmatprep.subr.bf16.mxu0 %v10207_v31 }
 0x1b9   :  { %9053 = vmatpush3.bf16.msra.mxu1 %v10206_v63  ;;  %v10213_v63 = vld [vmem:[%s14000_s1 + $0x568] sm:$0xff]  }
 0x1ba   :  { %9181 = vmatmul.mubr.bf16.gmra.mrb[12].mxu0 %v4386_v45  ;;  %9054 = vmatprep.subr.bf16.mxu1 %v10208_v33  ;;  %v12775_v35 = vpop.f32.mrb[4].mxu1  ;;  %v10217_v45 = vld [vmem:[%s14000_s1 + $0x578] sm:$0xff]  }
 0x1bb   :  { %9189 = vmatpush3.bf16.msra.mxu0 %v10207_v31  ;;  %9200 = vmatprep.mubr.bf16.mxu0 %v4573_v7  ;;  %v12777_v42 = vpop.f32.mrb[5].mxu1  ;;  %v3441_v31 = vmul.f32 %v10009_v55, %v3393_v17  ;;  %v9959_v7 = vunpack.i.l.bf16 %v12255_v40  ;;  %v10425_v17 = vld [vmem:[%s14001_s0 + $0x45] sm:$0xff] }
 0x1bc   :  { %9190 = vmatprep.subr.bf16.mxu0 %v10209_v46  ;;  %v12782_v29 = vpop.f32.mrb[6].mxu1 }
 0x1bd   :  { %9055 = vmatpush3.bf16.msra.mxu1 %v10208_v33  ;;  %v12784_v20 = vpop.f32.mrb[7].mxu1  ;;  %v3449_v18 = vpack.c.bf16 %v3442_v26, %v3441_v31  ;;  %v9944_v33 = vunpack.i.l.bf16 %v12217_v25  ;;  %v3395_v31 = vld [vmem:[%s14001_s0 + $0x28] sm:$0xff]  ;;  %v3396_v26 = vld [vmem:[%s14001_s0 + $0x30] sm:$0xff] }
 0x1be   :  { %9064 = vmatprep.subr.bf16.mxu1 %v10210_v15 }
 0x1bf   :  { %9191 = vmatpush3.bf16.msra.mxu0 %v10209_v46  ;;  %v9960_v46 = vunpack.i.h.bf16 %v12255_v40  ;;  %v4567_v25 = vmul.f32 %v12167_v38, %v9944_v33  ;;  %v10423_v40 = vld [vmem:[%s14001_s0 + $0x35] sm:$0xff]  ;;  %v10220_v38 = vld [vmem:[%s14000_s1 + $0x428] sm:$0xff]   ;;  %v3443_v33 = vmul.f32 %v10014_v3, %v3395_v31 }
 0x1c0   :  { %9057 = vmatmul.mubr.bf16.vlgmr.msra.gmra.mrb[8].mxu1 %v3252_v30  ;;  %9192 = vmatprep.subr.bf16.mxu0 %v10211_v58  ;;  %v9964_v30 = vunpack.i.l.bf16 %v14219_v16  ;;  %v10239_v31 = vld [vmem:[%s14000_s1 + $0x5d0] sm:$0xff]  }
 0x1c1   :  { %9060 = vmatprep.mubr.bf16.mxu1 %v3253_v10  ;;  %9065 = vmatpush3.bf16.msra.mxu1 %v10210_v15  ;;  %v14218_v15 = vld [vmem:[#allocation37_spill] sm:$0xff]  ;;  %v4570_v0 = vmul.f32 %v10423_v40, %v9960_v46  ;;  %v4574_v13 = vpack.c.bf16 %v4568_v2, %v4567_v25  ;;  %v10034_v2 = vunpack.i.l.bf16 %v12538_v47  ;;  %v3592_v40 = vld [vmem:[%s14001_s0 + $0x22] sm:$0xff] }
 0x1c2   :  { %9066 = vmatprep.subr.bf16.mxu1 %v10212_v9  ;;  %v4569_v5 = vmul.f32 %v14218_v15, %v9959_v7  ;;  %v4571_v55 = vmul.f32 %v10424_v53, %v9964_v30  ;;  %v3400_v15 = vld [vmem:[%s14001_s0 + $0x50] sm:$0xff]  ;;  %v3591_v47 = vld [vmem:[%s14001_s0 + $0x1a] sm:$0xff] }
 0x1c3   :  { %9193 = vmatpush3.bf16.msra.mxu0 %v10211_v58  ;;  %v9965_v58 = vunpack.i.h.bf16 %v14219_v16  ;;  %v10230_v16 = vld [vmem:[%s14000_s1 + $0x450] sm:$0xff]   ;;  %v3647_v30 = vmul.f32 %v12572_v28, %v3591_v47  ;;  %v10234_v28 = vld [vmem:[%s14000_s1 + $0x460] sm:$0xff]  }
 0x1c4   :  { %9194 = vmatprep.subr.bf16.mxu0 %v10213_v63  ;;  %v4575_v10 = vpack.c.bf16 %v4570_v0, %v4569_v5  ;;  %v10229_v0 = vld [vmem:[%s14000_s1 + $0x5a8] sm:$0xff]  }
 0x1c5   :  { %9067 = vmatpush3.bf16.msra.mxu1 %v10212_v9  ;;  %v10221_v9 = vld [vmem:[%s14000_s1 + $0x588] sm:$0xff]   ;;  %v4572_v6 = vmul.f32 %v10425_v17, %v9965_v58  ;;  %v3648_v58 = vmul.f32 %v12560_v61, %v3592_v40  ;;  %v10233_v61 = vld [vmem:[%s14000_s1 + $0x5b8] sm:$0xff]  }
 0x1c6   :  { %9068 = vmatprep.subr.bf16.mxu1 %v10214_v24  ;;  %v10236_v17 = vld [vmem:[%s14000_s1 + $0x468] sm:$0xff]  }
 0x1c7   :  { %9195 = vmatpush3.bf16.msra.mxu0 %v10213_v63  ;;  %v10223_v63 = vld [vmem:[%s14000_s1 + $0x590] sm:$0xff]   ;;  %v3655_v53 = vpack.c.bf16 %v3648_v58, %v3647_v30  ;;  %v10245_v30 = vld [vmem:[%s14000_s1 + $0x5f8] sm:$0xff]  }
 0x1c8   :  { %9061 = vmatmul.mubr.bf16.gmra.mrb[12].mxu1 %v3254_v51  ;;  %9196 = vmatprep.subr.bf16.mxu0 %v10215_v36  ;;  %v10029_v51 = vunpack.i.l.bf16 %v12544_v56 }
 0x1c9   :  { %9069 = vmatpush3.bf16.msra.mxu1 %v10214_v24  ;;  %9080 = vmatprep.mubr.bf16.mxu1 %v3449_v18  ;;  %v10224_v24 = vld [vmem:[%s14000_s1 + $0x438] sm:$0xff]   ;;  %v4576_v18 = vpack.c.bf16 %v4572_v6, %v4571_v55  ;;  %v10235_v55 = vld [vmem:[%s14000_s1 + $0x5c0] sm:$0xff]   ;;  %v10237_v6 = vld [vmem:[%s14000_s1 + $0x5c8] sm:$0xff]  }
 0x1ca   :  { %9070 = vmatprep.subr.bf16.mxu1 %v10216_v11  ;;  %v3445_v46 = vmul.f32 %v10029_v51, %v3397_v14  ;;  %v3594_v14 = vld [vmem:[%s14001_s0 + $0x32] sm:$0xff] }
 0x1cb   :  { %9197 = vmatpush3.bf16.msra.mxu0 %v10215_v36  ;;  %v10030_v36 = vunpack.i.h.bf16 %v12544_v56  ;;  %v10226_v56 = vld [vmem:[%s14000_s1 + $0x440] sm:$0xff]  }
 0x1cc   :  { %9198 = vmatprep.subr.bf16.mxu0 %v10217_v45 }
 0x1cd   :  { %9071 = vmatpush3.bf16.msra.mxu1 %v10216_v11  ;;  %v3398_v11 = vld [vmem:[%s14001_s0 + $0x40] sm:$0xff] }
 0x1ce   :  { %9072 = vmatprep.subr.bf16.mxu1 %v10218_v60  ;;  %v3446_v7 = vmul.f32 %v10030_v36, %v3398_v11  ;;  %v3593_v11 = vld [vmem:[%s14001_s0 + $0x2a] sm:$0xff] }
 0x1cf   :  { %9199 = vmatpush3.bf16.msra.mxu0 %v10217_v45  ;;  %v3444_v45 = vmul.f32 %v10015_v32, %v3396_v26  ;;  %v10426_v26 = vld [vmem:[%s14001_s0 + $0x13] sm:$0xff] }
 0x1d0   :  { %9208 = vmatprep.subr.bf16.mxu0 %v10219_v43  ;;  %v3451_v5 = vpack.c.bf16 %v3446_v7, %v3445_v46  ;;  %v3650_v7 = vmul.f32 %v12580_v19, %v3594_v14  ;;  %v10248_v14 = vld [vmem:[%s14000_s1 + $0x610] sm:$0xff]  }
 0x1d1   :  { %9073 = vmatpush3.bf16.msra.mxu1 %v10218_v60  ;;  %v10227_v60 = vld [vmem:[%s14000_s1 + $0x5a0] sm:$0xff]   ;;  %v3450_v25 = vpack.c.bf16 %v3444_v45, %v3443_v33  ;;  %v3630_v33 = vpop.permute.xlu0 %3629 }
 0x1d2   :  { %9201 = vmatmul.mubr.bf16.vlgmr.msra.gmra.mrb[8].mxu0 %v4574_v13  ;;  %9074 = vmatprep.subr.bf16.mxu1 %v10220_v38  ;;  %v3448_v13 = vmul.f32 %v10035_v37, %v3400_v15  ;;  %v3595_v45 = vld [vmem:[%s14001_s0 + $0x3a] sm:$0xff] }
 0x1d3   :  { %9204 = vmatprep.mubr.bf16.mxu0 %v4575_v10  ;;  %9209 = vmatpush3.bf16.msra.mxu0 %v10219_v43  ;;  %v10228_v43 = vld [vmem:[%s14000_s1 + $0x448] sm:$0xff]   ;;  %v3651_v37 = vmul.f32 %v3630_v33, %v3595_v45  ;;  %v14225_v33 = vld [vmem:[#allocation16_spill] sm:$0xff] }
 0x1d4   :  { %9210 = vmatprep.subr.bf16.mxu0 %v10221_v9 }
 0x1d5   :  { %9075 = vmatpush3.bf16.msra.mxu1 %v10220_v38 }
 0x1d6   :  { %9076 = vmatprep.subr.bf16.mxu1 %v10222_v22 }
 0x1d7   :  { %9211 = vmatpush3.bf16.msra.mxu0 %v10221_v9  ;;  %v10231_v9 = vld [vmem:[%s14000_s1 + $0x5b0] sm:$0xff]  }
 0x1d8   :  { %9212 = vmatprep.subr.bf16.mxu0 %v10223_v63 }
 0x1d9   :  { %9077 = vmatpush3.bf16.msra.mxu1 %v10222_v22  ;;  %v10232_v22 = vld [vmem:[%s14000_s1 + $0x458] sm:$0xff]  }
 0x1da   :  { %9205 = vmatmul.mubr.bf16.gmra.mrb[12].mxu0 %v4576_v18  ;;  %9078 = vmatprep.subr.bf16.mxu1 %v10224_v24  ;;  %v3635_v18 = vpop.permute.xlu1 %3634 }
 0x1db   :  { %9213 = vmatpush3.bf16.msra.mxu0 %v10223_v63  ;;  %9224 = vmatprep.mubr.bf16.mxu0 %v14200_v27  ;;  %v3399_v27 = vld [vmem:[%s14001_s0 + $0x48] sm:$0xff]  ;;  %v14220_v63 = vld [vmem:[#allocation4_spill] sm:$0xff] }
 0x1dc   :  { %9214 = vmatprep.subr.bf16.mxu0 %v10225_v49  ;;  %v3447_v38 = vmul.f32 %v10034_v2, %v3399_v27  ;;  %v9980_v32 = vunpack.i.h.bf16 %v14220_v63  ;;  %v9979_v3 = vunpack.i.l.bf16 %v14220_v63  ;;  %v10242_v2 = vld [vmem:[%s14000_s1 + $0x5e0] sm:$0xff]   ;;  %v14221_v27 = vmov 0.0  }
 0x1dd   :  { %9079 = vmatpush3.bf16.msra.mxu1 %v10224_v24  ;;  %v10238_v24 = vld [vmem:[%s14000_s1 + $0x470] sm:$0xff]  }
 0x1de   :  { %9088 = vmatprep.subr.bf16.mxu1 %v10226_v56  ;;  %v3452_v10 = vpack.c.bf16 %v3448_v13, %v3447_v38  ;;  %v4893_v36 = vmul.f32 %v10426_v26, %v9979_v3  ;;  %v3645_v19 = vpop.permute.xlu1 %3644  ;;  %v14222_v13 = vld [vmem:[#allocation2_spill] sm:$0xff] }
 0x1df   :  { %9215 = vmatpush3.bf16.msra.mxu0 %v10225_v49  ;;  %v3596_v49 = vld [vmem:[%s14001_s0 + $0x42] sm:$0xff]  ;;  %v9984_v58 = vunpack.i.l.bf16 %v14222_v13 }
 0x1e0   :  { %9081 = vmatmul.mubr.bf16.vlgmr.msra.gmra.mrb[8].mxu1 %v3450_v25  ;;  %9216 = vmatprep.subr.bf16.mxu0 %v10227_v60  ;;  %v3652_v25 = vmul.f32 %v3635_v18, %v3596_v49  ;;  %v10249_v18 = vld [vmem:[%s14000_s1 + $0x618] sm:$0xff]   ;;  %v14224_v49 = vld [vmem:[#allocation42_spill] sm:$0xff] }
 0x1e1   :  { %9084 = vmatprep.mubr.bf16.mxu1 %v3451_v5  ;;  %9089 = vmatpush3.bf16.msra.mxu1 %v10226_v56  ;;  %v10241_v56 = vld [vmem:[%s14000_s1 + $0x5d8] sm:$0xff]   ;;  %v10243_v5 = vld [vmem:[%s14000_s1 + $0x5e8] sm:$0xff]   ;;  %v14226_v45 = vpack.c.bf16 %v14224_v49, %v14225_v33  ;;  %v10260_v33 = vld [vmem:[%s14000_s1 + $0x670] sm:$0xff]  }
 0x1e2   :  { %9090 = vmatprep.subr.bf16.mxu1 %v10228_v43  ;;  %v3657_v15 = vpack.c.bf16 %v3652_v25, %v3651_v37 }
 0x1e3   :  { %9217 = vmatpush3.bf16.msra.mxu0 %v10227_v60  ;;  %v3649_v60 = vmul.f32 %v12591_v21, %v3593_v11  ;;  %v3640_v21 = vpop.permute.xlu0 %3639 }
 0x1e4   :  { %9218 = vmatprep.subr.bf16.mxu0 %v10229_v0  ;;  %v3653_v47 = vmul.f32 %v3640_v21, %v12661_v1  ;;  %v10000_v1 = vunpack.i.h.bf16 %v12346_v41 }
 0x1e5   :  { %9091 = vmatpush3.bf16.msra.mxu1 %v10228_v43  ;;  %v3656_v43 = vpack.c.bf16 %v3650_v7, %v3649_v60  ;;  %v10252_v7 = vld [vmem:[%s14000_s1 + $0x630] sm:$0xff]  }
 0x1e6   :  { %9092 = vmatprep.subr.bf16.mxu1 %v10230_v16 }
 0x1e7   :  { %9219 = vmatpush3.bf16.msra.mxu0 %v10229_v0  ;;  %v10244_v0 = vld [vmem:[%s14000_s1 + $0x5f0] sm:$0xff]  }
 0x1e8   :  { %9085 = vmatmul.mubr.bf16.gmra.mrb[12].mxu1 %v3452_v10  ;;  %9220 = vmatprep.subr.bf16.mxu0 %v10231_v9  ;;  %v10428_v10 = vld [vmem:[%s14001_s0 + $0x23] sm:$0xff] }
 0x1e9   :  { %9093 = vmatpush3.bf16.msra.mxu1 %v10230_v16  ;;  %9104 = vmatprep.mubr.bf16.mxu1 %v3655_v53  ;;  %v9985_v16 = vunpack.i.h.bf16 %v14222_v13  ;;  %v10429_v53 = vld [vmem:[%s14001_s0 + $0x2b] sm:$0xff] }
 0x1ea   :  { %9094 = vmatprep.subr.bf16.mxu1 %v10232_v22 }
 0x1eb   :  { %9221 = vmatpush3.bf16.msra.mxu0 %v10231_v9  ;;  %v9999_v9 = vunpack.i.l.bf16 %v12346_v41  ;;  %v10430_v41 = vld [vmem:[%s14001_s0 + $0x33] sm:$0xff] }
 0x1ec   :  { %9222 = vmatprep.subr.bf16.mxu0 %v10233_v61 }
 0x1ed   :  { %9095 = vmatpush3.bf16.msra.mxu1 %v10232_v22  ;;  %v4895_v22 = vmul.f32 %v10428_v10, %v9984_v58  ;;  %v10255_v58 = vld [vmem:[%s14000_s1 + $0x648] sm:$0xff]   ;;  %v14227_v10 = vld [vmem:[#allocation41_spill] sm:$0xff] }
 0x1ee   :  { %9096 = vmatprep.subr.bf16.mxu1 %v10234_v28 }
 0x1ef   :  { %9223 = vmatpush3.bf16.msra.mxu0 %v10233_v61  ;;  %v4896_v61 = vmul.f32 %v10429_v53, %v9985_v16 }
 0x1f0   :  { %9232 = vmatprep.subr.bf16.mxu0 %v10235_v55 }
 0x1f1   :  { %9097 = vmatpush3.bf16.msra.mxu1 %v10234_v28  ;;  %v10246_v28 = vld [vmem:[%s14000_s1 + $0x600] sm:$0xff]   ;;  %v4902_v63 = vpack.c.bf16 %v4896_v61, %v4895_v22  ;;  %v14228_v22 = vld [vmem:[#allocation17_spill] sm:$0xff] }
 0x1f2   :  { %9225 = vmatmul.mubr.bf16.vlgmr.msra.gmra.mrb[8].mxu0 %v14209_v50  ;;  %9098 = vmatprep.subr.bf16.mxu1 %v10236_v17  ;;  %v10427_v50 = vld [vmem:[%s14001_s0 + $0x1b] sm:$0xff]  ;;  %v14229_v53 = vpack.c.bf16 %v14227_v10, %v14228_v22 }
 0x1f3   :  { %9233 = vmatpush3.bf16.msra.mxu0 %v10235_v55  ;;  %9228 = vmatprep.mubr.bf16.mxu0 %v14210_v57  ;;  %v4894_v51 = vmul.f32 %v10427_v50, %v9980_v32  ;;  %v10240_v57 = vld [vmem:[%s14000_s1 + $0x478] sm:$0xff]   ;;  %v4897_v55 = vmul.f32 %v10430_v41, %v9999_v9  ;;  %v14231_v41 = vld [vmem:[#allocation44_spill] sm:$0xff] }
 0x1f4   :  { %9234 = vmatprep.subr.bf16.mxu0 %v10237_v6  ;;  %v14223_v32 = vld [vmem:[#allocation5_spill] sm:$0xff] }
 0x1f5   :  { %9099 = vmatpush3.bf16.msra.mxu1 %v10236_v17  ;;  %v4901_v46 = vpack.c.bf16 %v4894_v51, %v4893_v36  ;;  %v10431_v17 = vld [vmem:[%s14001_s0 + $0x3b] sm:$0xff]  ;;  %v10005_v3 = vunpack.i.h.bf16 %v14223_v32  ;;  %v10432_v36 = vld [vmem:[%s14001_s0 + $0x43] sm:$0xff]  ;;  %v10433_v51 = vld [vmem:[%s14001_s0 + $0x4b] sm:$0xff] }
 0x1f6   :  { %9100 = vmatprep.subr.bf16.mxu1 %v10238_v24 }
 0x1f7   :  { %9235 = vmatpush3.bf16.msra.mxu0 %v10237_v6  ;;  %v4898_v6 = vmul.f32 %v10431_v17, %v10000_v1  ;;  %v10019_v1 = vunpack.i.l.bf16 %v12533_v62 }
 0x1f8   :  { %9236 = vmatprep.subr.bf16.mxu0 %v10239_v31 }
 0x1f9   :  { %9101 = vmatpush3.bf16.msra.mxu1 %v10238_v24  ;;  %v10004_v24 = vunpack.i.l.bf16 %v14223_v32  ;;  %v4903_v26 = vpack.c.bf16 %v4898_v6, %v4897_v55  ;;  %v10257_v32 = vld [vmem:[%s14000_s1 + $0x658] sm:$0xff]  }
 0x1fa   :  { %9229 = vmatmul.mubr.bf16.gmra.mrb[12].mxu0 %v14213_v54  ;;  %9102 = vmatprep.subr.bf16.mxu1 %v10240_v57  ;;  %v3598_v54 = vld [vmem:[%s14001_s0 + $0x52] sm:$0xff] }
 0x1fb   :  { %9237 = vmatpush3.bf16.msra.mxu0 %v10239_v31  ;;  %9248 = vmatprep.mubr.bf16.mxu0 %v4901_v46  ;;  %v3654_v40 = vmul.f32 %v3645_v19, %v3598_v54  ;;  %v10247_v31 = vld [vmem:[%s14000_s1 + $0x608] sm:$0xff]   ;;  %v4899_v50 = vmul.f32 %v10432_v36, %v10004_v24  ;;  %v10253_v54 = vld [vmem:[%s14000_s1 + $0x638] sm:$0xff]  }
 0x1fc   :  { %9238 = vmatprep.subr.bf16.mxu0 %v10241_v56  ;;  %v10251_v46 = vld [vmem:[%s14000_s1 + $0x628] sm:$0xff]  }
 0x1fd   :  { %9103 = vmatpush3.bf16.msra.mxu1 %v10240_v57  ;;  %v3658_v38 = vpack.c.bf16 %v3654_v40, %v3653_v47  ;;  %v4900_v57 = vmul.f32 %v10433_v51, %v10005_v3  ;;  %v10258_v51 = vld [vmem:[%s14000_s1 + $0x660] sm:$0xff]  }
 0x1fe   :  { %9347 = vmatprep.subr.bf16.mxu1 %v14221_v27 }
 0x1ff   :  { %9239 = vmatpush3.bf16.msra.mxu0 %v10241_v56  ;;  %v4904_v11 = vpack.c.bf16 %v4900_v57, %v4899_v50  ;;  %v10250_v56 = vld [vmem:[%s14000_s1 + $0x620] sm:$0xff]  }
 0x200   :  { %9105 = vmatmul.mubr.bf16.vlgmr.msra.gmra.mrb[8].mxu1 %v3656_v43  ;;  %9240 = vmatprep.subr.bf16.mxu0 %v10242_v2 }
 0x201   :  { %9108 = vmatprep.mubr.bf16.mxu1 %v3657_v15 }
 0x203   :  { %9241 = vmatpush3.bf16.msra.mxu0 %v10242_v2 }
 0x204   :  { %9242 = vmatprep.subr.bf16.mxu0 %v10243_v5 }
 0x207   :  { %9243 = vmatpush3.bf16.msra.mxu0 %v10243_v5 }
 0x208   :  { %9109 = vmatmul.mubr.bf16.gmra.mrb[12].mxu1 %v3658_v38  ;;  %9244 = vmatprep.subr.bf16.mxu0 %v10244_v0 }
 0x209   :  { %9363 = vmatprep.mubr.msk.bf16.mxu1 %vm10442_vm0, %v14221_v27 }
 0x20b   :  { %9245 = vmatpush3.bf16.msra.mxu0 %v10244_v0 }
 0x20c   :  { %9246 = vmatprep.subr.bf16.mxu0 %v10245_v30 }
 0x20f   :  { %9247 = vmatpush3.bf16.msra.mxu0 %v10245_v30  ;;  %v10020_v30 = vunpack.i.h.bf16 %v12533_v62  ;;  %v10256_v62 = vld [vmem:[%s14000_s1 + $0x650] sm:$0xff]  }
 0x210   :  { %9256 = vmatprep.subr.bf16.mxu0 %v10246_v28 }
 0x212   :  { %9249 = vmatmul.mubr.bf16.vlgmr.msra.gmra.mrb[8].mxu0 %v4902_v63 }
 0x213   :  { %9252 = vmatprep.mubr.bf16.mxu0 %v4903_v26  ;;  %9257 = vmatpush3.bf16.msra.mxu0 %v10246_v28  ;;  %v14230_v28 = vld [vmem:[#allocation6_spill] sm:$0xff]  ;;  %v14234_v26 = vld [vmem:[#allocation43_spill] sm:$0xff] }
 0x214   :  { %9258 = vmatprep.subr.bf16.mxu0 %v10247_v31  ;;  %v14232_v55 = vpack.c.bf16 %v14230_v28, %v14231_v41 }
 0x217   :  { %9259 = vmatpush3.bf16.msra.mxu0 %v10247_v31  ;;  %v14233_v31 = vld [vmem:[#allocation20_spill] sm:$0xff] }
 0x218   :  { %9260 = vmatprep.subr.bf16.mxu0 %v10248_v14  ;;  %v14235_v36 = vpack.c.bf16 %v14233_v31, %v14234_v26  ;;  %v10264_v26 = vld [vmem:[%s14000_s1 + $0x690] sm:$0xff]  }
 0x21a   :  { %9253 = vmatmul.mubr.bf16.gmra.mrb[12].mxu0 %v4904_v11  ;;  %v10259_v11 = vld [vmem:[%s14000_s1 + $0x668] sm:$0xff]  }
 0x21b   :  { %9261 = vmatpush3.bf16.msra.mxu0 %v10248_v14  ;;  %9272 = vmatprep.mubr.bf16.mxu0 %v14226_v45 }
 0x21c   :  { %9262 = vmatprep.subr.bf16.mxu0 %v10249_v18 }
 0x21f   :  { %9263 = vmatpush3.bf16.msra.mxu0 %v10249_v18 }
 0x220   :  { %9264 = vmatprep.subr.bf16.mxu0 %v10250_v56 }
 0x223   :  { %9265 = vmatpush3.bf16.msra.mxu0 %v10250_v56  ;;  %v14236_v56 = vld [vmem:[#allocation21_spill] sm:$0xff] }
 0x224   :  { %9266 = vmatprep.subr.bf16.mxu0 %v10251_v46 }
 0x225   :  { %v8890_v60 = vpop.f32.mrb[0].mxu0 }
 0x226   :  { %v13032_v25 = vadd.f32 %v8890_v60, %v12733_v23  ;;  %v1861_v37 = vpop.f32.mrb[1].mxu0 }
 0x227   :  { %v13035_v2 = vadd.f32 %v1861_v37, %v12737_v52  ;;  %v8891_v43 = vpop.f32.mrb[2].mxu0  ;;  %9267 = vmatpush3.bf16.msra.mxu0 %v10251_v46  ;;  %v10254_v52 = vld [vmem:[%s14000_s1 + $0x640] sm:$0xff]   ;;  %v10025_v46 = vunpack.i.h.bf16 %v14236_v56 }
 0x228   :  { %v13038_v15 = vadd.f32 %v8891_v43, %v12746_v59  ;;  %v1864_v19 = vpop.f32.mrb[3].mxu0  ;;  %9268 = vmatprep.subr.bf16.mxu0 %v10252_v7 }
 0x229   :  { %v9610_v21 = vadd.f32 %v1864_v19, %v12748_v8 }
 0x22b   :  { %v1900_v23 = vadd.f32 %v9610_v21, %v13035_v2  ;;  %9269 = vmatpush3.bf16.msra.mxu0 %v10252_v7  ;;  %v10024_v7 = vunpack.i.l.bf16 %v14236_v56  ;;  %v10267_v56 = vld [vmem:[%s14000_s1 + $0x6a8] sm:$0xff]  }
 0x22c   :  { %9270 = vmatprep.subr.bf16.mxu0 %v10253_v54 }
 0x22d   :  { %v1901_v5 = vadd.f32 %v13032_v25, %v1900_v23  ;;  %v8894_v59 = vpop.f32.mrb[4].mxu0 }
 0x22e   :  { %v9611_v40 = vadd.f32 %v8894_v59, %v12775_v35  ;;  %v1877_v47 = vpop.f32.mrb[5].mxu0 }
 0x22f   :  { %v9612_v0 = vadd.f32 %v1877_v47, %v12777_v42  ;;  %v1902_v38 = vadd.f32 %v13038_v15, %v1901_v5  ;;  %v8895_v13 = vpop.f32.mrb[6].mxu0  ;;  %9271 = vmatpush3.bf16.msra.mxu0 %v10253_v54  ;;  %v5273_v42 = vld [vmem:[%s14001_s0 + $0x1c] sm:$0xff] }
 0x230   :  { %v9613_v8 = vadd.f32 %v8895_v13, %v12782_v29  ;;  %v1880_v16 = vpop.f32.mrb[7].mxu0  ;;  %9280 = vmatprep.subr.bf16.mxu0 %v10254_v52  ;;  %v5274_v29 = vld [vmem:[%s14001_s0 + $0x24] sm:$0xff] }
 0x231   :  { %v1903_v35 = vadd.f32 %v9612_v0, %v1902_v38  ;;  %v9614_v9 = vadd.f32 %v1880_v16, %v12784_v20  ;;  %v5321_v20 = vmul.f32 %v10019_v1, %v5273_v42  ;;  %v5322_v17 = vmul.f32 %v10020_v30, %v5274_v29  ;;  %v5277_v38 = vld [vmem:[%s14001_s0 + $0x3c] sm:$0xff]  ;;  %v5278_v13 = vld [vmem:[%s14001_s0 + $0x44] sm:$0xff] }
 0x232   :  { %9273 = vmatmul.mubr.bf16.vlgmr.msra.gmra.mrb[8].mxu0 %v14229_v53  ;;  %v10262_v1 = vld [vmem:[%s14000_s1 + $0x680] sm:$0xff]  }
 0x233   :  { %v1904_v61 = vadd.f32 %v9614_v9, %v1903_v35  ;;  %9276 = vmatprep.mubr.bf16.mxu0 %v14232_v55  ;;  %9281 = vmatpush3.bf16.msra.mxu0 %v10254_v52  ;;  %v5329_v24 = vpack.c.bf16 %v5322_v17, %v5321_v20  ;;  %v10263_v55 = vld [vmem:[%s14000_s1 + $0x688] sm:$0xff]   ;;  %v5280_v20 = vld [vmem:[%s14001_s0 + $0x54] sm:$0xff] }
 0x234   :  { %9282 = vmatprep.subr.bf16.mxu0 %v10255_v58 }
 0x235   :  { %v1905_v6 = vadd.f32 %v9611_v40, %v1904_v61  ;;  %v14238_v61 = vld [vmem:[#allocation7_spill] sm:$0xff] }
 0x236   :  { %v10045_v28 = vunpack.i.h.bf16 %v14238_v61  ;;  %v10044_v41 = vunpack.i.l.bf16 %v14238_v61 }
 0x237   :  { %v1906_v63 = vadd.f32 %v9613_v8, %v1905_v6  ;;  %9283 = vmatpush3.bf16.msra.mxu0 %v10255_v58 }
 0x238   :  { %9284 = vmatprep.subr.bf16.mxu0 %v10256_v62  ;;  %v5328_v31 = vmul.f32 %v10045_v28, %v5280_v20 }
 0x239   :  { %v1907_v3 = vrot.slane %v1906_v63, 4 }
 0x23a   :  { %9277 = vmatmul.mubr.bf16.gmra.mrb[12].mxu0 %v14235_v36 }
 0x23b   :  { %v1908_v50 = vadd.f32 %v1907_v3, %v1906_v63  ;;  %9285 = vmatpush3.bf16.msra.mxu0 %v10256_v62  ;;  %9296 = vmatprep.mubr.bf16.mxu0 %v5329_v24  ;;  %v5279_v62 = vld [vmem:[%s14001_s0 + $0x4c] sm:$0xff] }
 0x23c   :  { %9286 = vmatprep.subr.bf16.mxu0 %v10257_v32  ;;  %v5327_v24 = vmul.f32 %v10044_v41, %v5279_v62 }
 0x23d   :  { %v1909_v57 = vrot.slane %v1908_v50, 2 }
 0x23f   :  { %v1910_v14 = vadd.f32 %v1909_v57, %v1908_v50  ;;  %9287 = vmatpush3.bf16.msra.mxu0 %v10257_v32  ;;  %v5332_v57 = vpack.c.bf16 %v5328_v31, %v5327_v24 }
 0x240   :  { %9288 = vmatprep.subr.bf16.mxu0 %v10258_v51 }
 0x241   :  { %v1911_v18 = vrot.slane %v1910_v14, 1 }
 0x243   :  { %v1912_v49 = vadd.f32 %v1911_v18, %v1910_v14  ;;  %9289 = vmatpush3.bf16.msra.mxu0 %v10258_v51  ;;  %v10265_v14 = vld [vmem:[%s14000_s1 + $0x698] sm:$0xff]  }
 0x244   :  { %9290 = vmatprep.subr.bf16.mxu0 %v10259_v11 }
 0x245   :  { %v1914_v45 = vmul.f32 0.015625, %v1912_v49  ;;  %v10266_v49 = vld [vmem:[%s14000_s1 + $0x6a0] sm:$0xff]  }
 0x247   :  { %v13092_v60 = vsub.f32 %v13035_v2, %v1914_v45  ;;  %v13094_v37 = vsub.f32 %v9610_v21, %v1914_v45  ;;  %v13097_v43 = vsub.f32 %v13032_v25, %v1914_v45  ;;  %v13100_v19 = vsub.f32 %v13038_v15, %v1914_v45  ;;  %9291 = vmatpush3.bf16.msra.mxu0 %v10259_v11  ;;  %v10261_v2 = vld [vmem:[%s14000_s1 + $0x678] sm:$0xff]   ;;  %v5275_v25 = vld [vmem:[%s14001_s0 + $0x2c] sm:$0xff] }
 0x248   :  { %v13102_v54 = vsub.f32 %v9612_v0, %v1914_v45  ;;  %v13104_v23 = vsub.f32 %v9614_v9, %v1914_v45  ;;  %v13106_v52 = vsub.f32 %v9611_v40, %v1914_v45  ;;  %v13108_v5 = vsub.f32 %v9613_v8, %v1914_v45  ;;  %9292 = vmatprep.subr.bf16.mxu0 %v10260_v33  ;;  %v5276_v15 = vld [vmem:[%s14001_s0 + $0x34] sm:$0xff] }
 0x249   :  { %v14237_v21 = vld [vmem:[#allocation8_spill] sm:$0xff]  ;;  %v1923_v47 = vmul.f32 %v13092_v60, %v13092_v60  ;;  %v1924_v0 = vmul.f32 %v13094_v37, %v13094_v37  ;;  %v1925_v8 = vmul.f32 %v13097_v43, %v13097_v43  ;;  %v5323_v58 = vmul.f32 %v10024_v7, %v5275_v25  ;;  %v5515_v25 = vpop.permute.xlu1 %5514 }
 0x24a   :  { %v10040_v59 = vunpack.i.h.bf16 %v14237_v21  ;;  %v10039_v40 = vunpack.i.l.bf16 %v14237_v21  ;;  %v5324_v30 = vmul.f32 %v10025_v46, %v5276_v15  ;;  %v1926_v42 = vmul.f32 %v13100_v19, %v13100_v19  ;;  %v5476_v15 = vld [vmem:[%s14001_s0 + $0x47] sm:$0xff]  ;;  %v5510_v21 = vpop.permute.xlu0 %5509 }
 0x24b   :  { %v1931_v16 = vadd.f32 %v1924_v0, %v1923_v47  ;;  %9293 = vmatpush3.bf16.msra.mxu0 %v10260_v33  ;;  %v1927_v10 = vmul.f32 %v13102_v54, %v13102_v54  ;;  %v1928_v17 = vmul.f32 %v13104_v23, %v13104_v23  ;;  %v1929_v32 = vmul.f32 %v13106_v52, %v13106_v52 }
 0x24c   :  { %9294 = vmatprep.subr.bf16.mxu0 %v10261_v2  ;;  %v5325_v35 = vmul.f32 %v10039_v40, %v5277_v38  ;;  %v5326_v9 = vmul.f32 %v10040_v59, %v5278_v13  ;;  %v5330_v53 = vpack.c.bf16 %v5324_v30, %v5323_v58  ;;  %v1930_v36 = vmul.f32 %v13108_v5, %v13108_v5  ;;  %v5475_v59 = vld [vmem:[%s14001_s0 + $0x3f] sm:$0xff]  ;;  %v5478_v38 = vld [vmem:[%s14001_s0 + $0x57] sm:$0xff] }
 0x24d   :  { %v1932_v29 = vadd.f32 %v1931_v16, %v1925_v8  ;;  %v5532_v40 = vmul.f32 %v5515_v25, %v5476_v15  ;;  %v5531_v47 = vmul.f32 %v5510_v21, %v5475_v59  ;;  %v5525_v0 = vpop.permute.xlu1 %5524  ;;  %v5477_v8 = vld [vmem:[%s14001_s0 + $0x4f] sm:$0xff] }
 0x24e   :  { %v5331_v63 = vpack.c.bf16 %v5326_v9, %v5325_v35  ;;  %v5520_v13 = vpop.permute.xlu0 %5519  ;;  %v5534_v30 = vmul.f32 %v5525_v0, %v5478_v38 }
 0x24f   :  { %v1933_v22 = vadd.f32 %v1932_v29, %v1926_v42  ;;  %9295 = vmatpush3.bf16.msra.mxu0 %v10261_v2  ;;  %v10269_v2 = vld [vmem:[%s14000_s1 + $0x6b8] sm:$0xff]   ;;  %v5537_v16 = vpack.c.bf16 %v5532_v40, %v5531_v47 }
 0x250   :  { %9304 = vmatprep.subr.bf16.mxu0 %v10262_v1 }
 0x251   :  { %v1934_v6 = vadd.f32 %v1933_v22, %v1927_v10 }
 0x252   :  { %9297 = vmatmul.mubr.bf16.vlgmr.msra.gmra.mrb[8].mxu0 %v5330_v53 }
 0x253   :  { %v1935_v3 = vadd.f32 %v1934_v6, %v1928_v17  ;;  %9300 = vmatprep.mubr.bf16.mxu0 %v5331_v63  ;;  %9305 = vmatpush3.bf16.msra.mxu0 %v10262_v1  ;;  %v5533_v1 = vmul.f32 %v5520_v13, %v5477_v8 }
 0x254   :  { %9306 = vmatprep.subr.bf16.mxu0 %v10263_v55 }
 0x255   :  { %v1936_v50 = vadd.f32 %v1935_v3, %v1929_v32 }
 0x257   :  { %v1937_v51 = vadd.f32 %v1936_v50, %v1930_v36  ;;  %9307 = vmatpush3.bf16.msra.mxu0 %v10263_v55 }
 0x258   :  { %9308 = vmatprep.subr.bf16.mxu0 %v10264_v26 }
 0x259   :  { %v1938_v11 = vrot.slane %v1937_v51, 4 }
 0x25a   :  { %9301 = vmatmul.mubr.bf16.gmra.mrb[12].mxu0 %v5332_v57 }
 0x25b   :  { %v1939_v18 = vadd.f32 %v1938_v11, %v1937_v51  ;;  %9309 = vmatpush3.bf16.msra.mxu0 %v10264_v26  ;;  %9320 = vmatprep.mubr.bf16.mxu0 %v5535_v48 }
 0x25c   :  { %9310 = vmatprep.subr.bf16.mxu0 %v10265_v14 }
 0x25d   :  { %v1940_v33 = vrot.slane %v1939_v18, 2 }
 0x25f   :  { %v1941_v45 = vadd.f32 %v1940_v33, %v1939_v18  ;;  %9311 = vmatpush3.bf16.msra.mxu0 %v10265_v14 }
 0x260   :  { %9312 = vmatprep.subr.bf16.mxu0 %v10266_v49 }
 0x261   :  { %v1942_v46 = vrot.slane %v1941_v45, 1 }
 0x263   :  { %v1943_v7 = vadd.f32 %v1942_v46, %v1941_v45  ;;  %9313 = vmatpush3.bf16.msra.mxu0 %v10266_v49 }
 0x264   :  { %9314 = vmatprep.subr.bf16.mxu0 %v10267_v56 }
 0x265   :  { %v1944_v39 = vmul.f32 0.015625, %v1943_v7 }
 0x267   :  { %v1945_v48 = vadd.f32 1e-05, %v1944_v39  ;;  %9315 = vmatpush3.bf16.msra.mxu0 %v10267_v56 }
 0x268   :  { %9316 = vmatprep.subr.bf16.mxu0 %v10268_v44 }
 0x269   :  { %10310 = vrsqrt.f32 %v1945_v48 }
 0x26b   :  { %9317 = vmatpush3.bf16.msra.mxu0 %v10268_v44 }
 0x26c   :  { %9318 = vmatprep.subr.bf16.mxu0 %v10269_v2 }
 0x26f   :  { %9319 = vmatpush3.bf16.msra.mxu0 %v10269_v2 }
 0x272   :  { %9321 = vmatmul.mubr.bf16.vlgmr.msra.gmra.mrb[8].mxu0 %v5536_v12 }
 0x273   :  { %v10311_v58 = vpop.eup %10310  ;;  %9324 = vmatprep.mubr.bf16.mxu0 %v5537_v16 }
 0x274   :  { %v13194_v35 = vmul.f32 %v10311_v58, %v13097_v43  ;;  %v13197_v9 = vmul.f32 %v10311_v58, %v13100_v19  ;;  %v13200_v42 = vmul.f32 %v10311_v58, %v13102_v54  ;;  %v13203_v29 = vmul.f32 %v10311_v58, %v13104_v23 }
 0x275   :  { %v13206_v10 = vmul.f32 %v10311_v58, %v13106_v52  ;;  %v13209_v4 = vmul.f32 %v10311_v58, %v13108_v5  ;;  %v13212_v34 = vmul.f32 %v10311_v58, %v13092_v60  ;;  %v13215_v12 = vmul.f32 %v10311_v58, %v13094_v37 }
 0x276   :  { %v5538_v43 = vpack.c.bf16 %v5534_v30, %v5533_v1  ;;  %v10441_v1 = vmov 0.0|0.0  }
 0x277   :  { %9515 = vmatprep.subr.bf16.mxu0 %v10441_v1 }
 0x27a   :  { %9325 = vmatmul.mubr.bf16.gmra.mrb[12].mxu0 %v5538_v43 }
 0x27b   :  { %9344 = vmatprep.mubr.msk.f32.mxu0 %vm10442_vm0, %v14221_v27 }
 0x2d3   :  { %v9106_v19 = vpop.f32.mrb[8].mxu1 }
 0x2d4   :  { %v3758_v54 = vpop.f32.mrb[9].mxu1 }
 0x2d5   :  { %v9107_v22 = vpop.f32.mrb[10].mxu1 }
 0x2d6   :  { %v3761_v53 = vpop.f32.mrb[11].mxu1 }
 0x2d7   :  { %v3797_v23 = vadd.f32 %v3761_v53, %v3758_v54 }
 0x2d9   :  { %v3798_v61 = vadd.f32 %v9106_v19, %v3797_v23 }
 0x2db   :  { %v9110_v28 = vpop.f32.mrb[12].mxu1  ;;  %v3799_v52 = vadd.f32 %v9107_v22, %v3798_v61 }
 0x2dc   :  { %v3774_v41 = vpop.f32.mrb[13].mxu1 }
 0x2dd   :  { %v3800_v55 = vadd.f32 %v3799_v52, %v3774_v41  ;;  %v9111_v5 = vpop.f32.mrb[14].mxu1 }
 0x2de   :  { %v3777_v62 = vpop.f32.mrb[15].mxu1 }
 0x2df   :  { %v3801_v20 = vadd.f32 %v3800_v55, %v3777_v62  ;;  %v10271_v55 = vld [vmem:[%s14003_s2 + $0x8] sm:$0xff]  }
 0x2e1   :  { %v3802_v60 = vadd.f32 %v9110_v28, %v3801_v20  ;;  %v10274_v20 = vld [vmem:[%s14003_s2 + $0x20] sm:$0xff]  }
 0x2e3   :  { %v3803_v17 = vadd.f32 %v9111_v5, %v3802_v60  ;;  %v10275_v60 = vld [vmem:[%s14003_s2 + $0x28] sm:$0xff]  }
 0x2e5   :  { %v3804_v6 = vrot.slane %v3803_v17, 4 }
 0x2e7   :  { %v3805_v37 = vadd.f32 %v3804_v6, %v3803_v17  ;;  %v10276_v17 = vld [vmem:[%s14003_s2 + $0x30] sm:$0xff]  }
 0x2e9   :  { %v3806_v63 = vrot.slane %v3805_v37, 2 }
 0x2eb   :  { %v3807_v32 = vadd.f32 %v3806_v63, %v3805_v37 }
 0x2ed   :  { %v3808_v3 = vrot.slane %v3807_v32, 1 }
 0x2ef   :  { %v3809_v24 = vadd.f32 %v3808_v3, %v3807_v32 }
 0x2f1   :  { %v3810_v31 = vmul.f32 0.015625, %v3809_v24 }
 0x2f3   :  { %v3811_v26 = vsub.f32 %v3758_v54, %v3810_v31  ;;  %v3812_v36 = vsub.f32 %v3761_v53, %v3810_v31  ;;  %v3813_v50 = vsub.f32 %v9106_v19, %v3810_v31  ;;  %v3814_v51 = vsub.f32 %v9107_v22, %v3810_v31 }
 0x2f4   :  { %v3815_v57 = vsub.f32 %v3774_v41, %v3810_v31  ;;  %v3816_v14 = vsub.f32 %v3777_v62, %v3810_v31  ;;  %v3817_v11 = vsub.f32 %v9110_v28, %v3810_v31  ;;  %v3818_v18 = vsub.f32 %v9111_v5, %v3810_v31  ;;  %v10270_v41 = vld [vmem:[%s14003_s2] sm:$0xff]   ;;  %v10272_v5 = vld [vmem:[%s14003_s2 + $0x10] sm:$0xff]   ;;  %v10273_v62 = vld [vmem:[%s14003_s2 + $0x18] sm:$0xff]  }
 0x2f5   :  { %v3819_v49 = vmul.f32 %v3811_v26, %v3811_v26  ;;  %v3820_v33 = vmul.f32 %v3812_v36, %v3812_v36  ;;  %v3821_v45 = vmul.f32 %v3813_v50, %v3813_v50  ;;  %v3822_v46 = vmul.f32 %v3814_v51, %v3814_v51  ;;  %9348 = vmatpush3.bf16.msra.mxu1 %v10270_v41 }
 0x2f6   :  { %v3823_v44 = vmul.f32 %v3815_v57, %v3815_v57  ;;  %v3824_v48 = vmul.f32 %v3816_v14, %v3816_v14  ;;  %v3825_v25 = vmul.f32 %v3817_v11, %v3817_v11  ;;  %v3826_v21 = vmul.f32 %v3818_v18, %v3818_v18  ;;  %9349 = vmatprep.subr.bf16.mxu1 %v14221_v27 }
 0x2f7   :  { %v3827_v56 = vadd.f32 %v3820_v33, %v3819_v49 }
 0x2f9   :  { %v3828_v7 = vadd.f32 %v3827_v56, %v3821_v45  ;;  %9350 = vmatpush3.bf16.msra.mxu1 %v10271_v55 }
 0x2fa   :  { %9351 = vmatprep.subr.bf16.mxu1 %v14221_v27 }
 0x2fb   :  { %v3829_v39 = vadd.f32 %v3828_v7, %v3822_v46 }
 0x2fd   :  { %v3830_v2 = vadd.f32 %v3829_v39, %v3823_v44  ;;  %9352 = vmatpush3.bf16.msra.mxu1 %v10272_v5 }
 0x2fe   :  { %9353 = vmatprep.subr.bf16.mxu1 %v14221_v27 }
 0x2ff   :  { %v3831_v15 = vadd.f32 %v3830_v2, %v3824_v48 }
 0x301   :  { %v3832_v59 = vadd.f32 %v3831_v15, %v3825_v25  ;;  %9354 = vmatpush3.bf16.msra.mxu1 %v10273_v62 }
 0x302   :  { %9355 = vmatprep.subr.bf16.mxu1 %v14221_v27 }
 0x303   :  { %v3833_v40 = vadd.f32 %v3832_v59, %v3826_v21 }
 0x305   :  { %v3834_v47 = vrot.slane %v3833_v40, 4  ;;  %9356 = vmatpush3.bf16.msra.mxu1 %v10274_v20 }
 0x306   :  { %9357 = vmatprep.subr.bf16.mxu1 %v14221_v27 }
 0x307   :  { %v3835_v0 = vadd.f32 %v3834_v47, %v3833_v40 }
 0x309   :  { %v3836_v38 = vrot.slane %v3835_v0, 2  ;;  %9358 = vmatpush3.bf16.msra.mxu1 %v10275_v60 }
 0x30a   :  { %9359 = vmatprep.subr.bf16.mxu1 %v14221_v27 }
 0x30b   :  { %v3837_v13 = vadd.f32 %v3836_v38, %v3835_v0 }
 0x30d   :  { %v3838_v8 = vrot.slane %v3837_v13, 1  ;;  %9360 = vmatpush3.bf16.msra.mxu1 %v10276_v17 }
 0x30e   :  { %9361 = vmatprep.subr.bf16.mxu1 %v14221_v27 }
 0x30f   :  { %v3839_v16 = vadd.f32 %v3838_v8, %v3837_v13 }
 0x311   :  { %v3840_v58 = vmul.f32 0.015625, %v3839_v16 }
 0x313   :  { %v3841_v30 = vadd.f32 1e-05, %v3840_v58 }
 0x315   :  { %10312 = vrsqrt.f32 %v3841_v30 }
 0x31f   :  { %v10313_v43 = vpop.eup %10312 }
 0x320   :  { %v13218_v19 = vmul.f32 %v10313_v43, %v3811_v26  ;;  %v13220_v54 = vmul.f32 %v10313_v43, %v3812_v36  ;;  %v13222_v22 = vmul.f32 %v10313_v43, %v3813_v50  ;;  %v13224_v53 = vmul.f32 %v10313_v43, %v3814_v51 }
 0x321   :  { %v13226_v23 = vmul.f32 %v10313_v43, %v3815_v57  ;;  %v13228_v61 = vmul.f32 %v10313_v43, %v3816_v14  ;;  %v13230_v28 = vmul.f32 %v10313_v43, %v3817_v11  ;;  %v13232_v52 = vmul.f32 %v10313_v43, %v3818_v18 }
 0x345   :  { %v9322_v6 = vpop.f32.mrb[8].mxu0 }
 0x346   :  { %v5638_v37 = vpop.f32.mrb[9].mxu0 }
 0x347   :  { %v9323_v63 = vpop.f32.mrb[10].mxu0 }
 0x348   :  { %v5641_v32 = vpop.f32.mrb[11].mxu0 }
 0x349   :  { %v5677_v3 = vadd.f32 %v5641_v32, %v5638_v37 }
 0x34b   :  { %v5678_v24 = vadd.f32 %v9322_v6, %v5677_v3 }
 0x34d   :  { %v9326_v31 = vpop.f32.mrb[12].mxu0  ;;  %v5679_v26 = vadd.f32 %v9323_v63, %v5678_v24 }
 0x34e   :  { %v5654_v36 = vpop.f32.mrb[13].mxu0 }
 0x34f   :  { %v5680_v50 = vadd.f32 %v5679_v26, %v5654_v36  ;;  %v9327_v51 = vpop.f32.mrb[14].mxu0  ;;  %v13267_v26 = vmax.f32 %v13218_v19, 0.0 }
 0x350   :  { %v5657_v57 = vpop.f32.mrb[15].mxu0 }
 0x351   :  { %v5681_v14 = vadd.f32 %v5680_v50, %v5657_v57 }
 0x353   :  { %v5682_v11 = vadd.f32 %v9326_v31, %v5681_v14  ;;  %v13279_v14 = vmax.f32 %v13212_v34, 0.0 }
 0x355   :  { %v5683_v18 = vadd.f32 %v9327_v51, %v5682_v11  ;;  %v13282_v11 = vmax.f32 %v13215_v12, 0.0  ;;  %v5739_v34 = vadd.f32 %v13267_v26, %v13279_v14 }
 0x357   :  { %v5684_v49 = vrot.slane %v5683_v18, 4  ;;  %14241 = vst [vmem:[#allocation45_spill] sm:$0xff] %v13282_v11 }
 0x359   :  { %v5685_v33 = vadd.f32 %v5684_v49, %v5683_v18 }
 0x35b   :  { %v5686_v45 = vrot.slane %v5685_v33, 2 }
 0x35d   :  { %v5687_v56 = vadd.f32 %v5686_v45, %v5685_v33 }
 0x35f   :  { %v5688_v46 = vrot.slane %v5687_v56, 1 }
 0x361   :  { %v5689_v7 = vadd.f32 %v5688_v46, %v5687_v56 }
 0x363   :  { %v5690_v44 = vmul.f32 0.015625, %v5689_v7 }
 0x365   :  { %v5691_v39 = vsub.f32 %v5638_v37, %v5690_v44  ;;  %v5692_v48 = vsub.f32 %v5641_v32, %v5690_v44  ;;  %v5693_v2 = vsub.f32 %v9322_v6, %v5690_v44  ;;  %v5694_v25 = vsub.f32 %v9323_v63, %v5690_v44 }
 0x366   :  { %v5695_v15 = vsub.f32 %v5654_v36, %v5690_v44  ;;  %v5696_v21 = vsub.f32 %v5657_v57, %v5690_v44  ;;  %v5697_v59 = vsub.f32 %v9326_v31, %v5690_v44  ;;  %v5698_v40 = vsub.f32 %v9327_v51, %v5690_v44 }
 0x367   :  { %v5699_v47 = vmul.f32 %v5691_v39, %v5691_v39  ;;  %v5700_v0 = vmul.f32 %v5692_v48, %v5692_v48  ;;  %v5701_v38 = vmul.f32 %v5693_v2, %v5693_v2  ;;  %v5702_v8 = vmul.f32 %v5694_v25, %v5694_v25 }
 0x368   :  { %v5703_v58 = vmul.f32 %v5695_v15, %v5695_v15  ;;  %v5704_v43 = vmul.f32 %v5696_v21, %v5696_v21  ;;  %v5705_v55 = vmul.f32 %v5697_v59, %v5697_v59  ;;  %v5706_v62 = vmul.f32 %v5698_v40, %v5698_v40 }
 0x369   :  { %v5707_v13 = vadd.f32 %v5700_v0, %v5699_v47  ;;  %v13270_v36 = vmax.f32 %v13220_v54, 0.0  ;;  %v13273_v51 = vmax.f32 %v13222_v22, 0.0  ;;  %v13276_v57 = vmax.f32 %v13224_v53, 0.0 }
 0x36a   :  { %v13285_v22 = vmax.f32 %v13194_v35, 0.0  ;;  %v13288_v53 = vmax.f32 %v13197_v9, 0.0  ;;  %v13303_v35 = vmax.f32 %v13226_v23, 0.0  ;;  %v13306_v9 = vmax.f32 %v13228_v61, 0.0 }
 0x36b   :  { %v5708_v16 = vadd.f32 %v5707_v13, %v5701_v38  ;;  %14239 = vst [vmem:[#allocation9_spill] sm:$0xff] %v13270_v36  ;;  %14240 = vst [vmem:[#allocation22_spill] sm:$0xff] %v13276_v57  ;;  %v5740_v12 = vadd.f32 %v13270_v36, %v13282_v11  ;;  %v13327_v13 = vmax.f32 %v13230_v28, 0.0 }
 0x36c   :  { %14242 = vst [vmem:[#allocation23_spill] sm:$0xff] %v13288_v53  ;;  %14245 = vst [vmem:[#allocation12_spill] sm:$0xff] %v13303_v35 }
 0x36d   :  { %v5709_v30 = vadd.f32 %v5708_v16, %v5702_v8  ;;  %14246 = vst [vmem:[#allocation13_spill] sm:$0xff] %v13306_v9  ;;  %v13330_v8 = vmax.f32 %v13232_v52, 0.0  ;;  %v13337_v16 = vmax.f32 %v13206_v10, 0.0 }
 0x36f   :  { %v5710_v41 = vadd.f32 %v5709_v30, %v5703_v58  ;;  %v13340_v58 = vmax.f32 %v13209_v4, 0.0 }
 0x371   :  { %v5711_v5 = vadd.f32 %v5710_v41, %v5704_v43  ;;  %v5746_v10 = vadd.f32 %v13330_v8, %v13340_v58 }
 0x373   :  { %v5712_v20 = vadd.f32 %v5711_v5, %v5705_v55  ;;  %v5745_v55 = vadd.f32 %v13327_v13, %v13337_v16 }
 0x375   :  { %v5713_v60 = vadd.f32 %v5712_v20, %v5706_v62 }
 0x377   :  { %v5714_v17 = vrot.slane %v5713_v60, 4 }
 0x379   :  { %v5715_v6 = vadd.f32 %v5714_v17, %v5713_v60  ;;  %v5755_v60 = vld [vmem:[%s14004_s7] sm:$0x3]  ;;  %v10277_v17 = vld [vmem:[%s14003_s2 + $0x38] sm:$0xff]  }
 0x37a   :  { %9362 = vmatpush3.bf16.msra.mxu1 %v10277_v17 }
 0x37b   :  { %v5716_v37 = vrot.slane %v5715_v6, 2 }
 0x37d   :  { %v5717_v63 = vadd.f32 %v5716_v37, %v5715_v6 }
 0x37f   :  { %v5718_v32 = vrot.slane %v5717_v63, 1 }
 0x381   :  { %v5719_v3 = vadd.f32 %v5718_v32, %v5717_v63  ;;  %v14251_v32 = vmov 0  }
 0x383   :  { %v5720_v24 = vmul.f32 0.015625, %v5719_v3  ;;  %v10278_v3 = vld [vmem:[%s14005_s3] ss:$12 sps:$4 sm:$0xff]  }
 0x385   :  { %v5721_v31 = vadd.f32 1e-05, %v5720_v24  ;;  %v10283_v24 = vld [vmem:[%s14005_s3 + $0x1c] ss:$12 sps:$4 sm:$0xff]  }
 0x387   :  { %10314 = vrsqrt.f32 %v5721_v31  ;;  %v10281_v31 = vld [vmem:[%s14005_s3 + $0x18] ss:$12 sps:$4 sm:$0xff]  }
 0x391   :  { %v10315_v50 = vpop.eup %10314 }
 0x392   :  { %v5725_v18 = vmul.f32 %v10315_v50, %v5693_v2  ;;  %v5726_v49 = vmul.f32 %v10315_v50, %v5694_v25  ;;  %v5727_v19 = vmul.f32 %v10315_v50, %v5695_v15  ;;  %v5728_v33 = vmul.f32 %v10315_v50, %v5696_v21 }
 0x393   :  { %v5729_v45 = vmul.f32 %v10315_v50, %v5697_v59  ;;  %v5730_v54 = vmul.f32 %v10315_v50, %v5698_v40  ;;  %v5723_v56 = vmul.f32 %v10315_v50, %v5691_v39  ;;  %v5724_v46 = vmul.f32 %v10315_v50, %v5692_v48  ;;  %v10286_v50 = vld [vmem:[%s14005_s3 + $0x34] ss:$12 sps:$4 sm:$0xff]  }
 0x394   :  { %v13294_v7 = vmax.f32 %v5726_v49, 0.0  ;;  %v13300_v39 = vmax.f32 %v5725_v18, 0.0  ;;  %v5741_v15 = vadd.f32 %v13273_v51, %v13285_v22  ;;  %v5742_v21 = vadd.f32 %v13276_v57, %v13288_v53  ;;  %v10284_v18 = vld [vmem:[%s14005_s3 + $0x30] ss:$12 sps:$4 sm:$0xff]   ;;  %v10289_v49 = vld [vmem:[%s14005_s3 + $0x4c] ss:$12 sps:$4 sm:$0xff]  }
 0x395   :  { %v13296_v44 = vmax.f32 %v5723_v56, 0.0  ;;  %v13298_v2 = vmax.f32 %v5724_v46, 0.0  ;;  %v13315_v59 = vmax.f32 %v13200_v42, 0.0  ;;  %v13318_v40 = vmax.f32 %v13203_v29, 0.0  ;;  %v10293_v56 = vld [vmem:[%s14005_s3 + $0x78] ss:$12 sps:$4 sm:$0xff]  }
 0x396   :  { %14243 = vst [vmem:[#allocation10_spill] sm:$0xff] %v13294_v7  ;;  %14244 = vst [vmem:[#allocation11_spill] sm:$0xff] %v13300_v39  ;;  %v13320_v23 = vmax.f32 %v5727_v19, 0.0  ;;  %v13322_v61 = vmax.f32 %v5728_v33, 0.0  ;;  %v5749_v0 = vadd.f32 %v5741_v15, %v13300_v39  ;;  %v5750_v38 = vadd.f32 %v5742_v21, %v13294_v7  ;;  %v10287_v19 = vld [vmem:[%s14005_s3 + $0x48] ss:$12 sps:$4 sm:$0xff]  }
 0x397   :  { %v5747_v48 = vadd.f32 %v5739_v34, %v13296_v44  ;;  %v5748_v25 = vadd.f32 %v5740_v12, %v13298_v2  ;;  %14247 = vst [vmem:[#allocation28_spill] sm:$0xff] %v13315_v59  ;;  %14248 = vst [vmem:[#allocation27_spill] sm:$0xff] %v13318_v40  ;;  %v5743_v42 = vadd.f32 %v13303_v35, %v13315_v59  ;;  %v13342_v30 = vmax.f32 %v5729_v45, 0.0  ;;  %v10292_v33 = vld [vmem:[%s14005_s3 + $0x64] ss:$12 sps:$4 sm:$0xff]  }
 0x398   :  { %14249 = vst [vmem:[#allocation14_spill] sm:$0xff] %v13320_v23  ;;  %14250 = vst [vmem:[#allocation15_spill] sm:$0xff] %v13322_v61  ;;  %v5744_v29 = vadd.f32 %v13306_v9, %v13318_v40  ;;  %v13345_v28 = vmax.f32 %v5730_v54, 0.0  ;;  %v9519_v52 = vpack.c.bf16 %v5750_v38, %v5749_v0  ;;  %v10290_v45 = vld [vmem:[%s14005_s3 + $0x60] ss:$12 sps:$4 sm:$0xff]  }
 0x399   :  { %v9516_v47 = vpack.c.bf16 %v5748_v25, %v5747_v48  ;;  %v5751_v43 = vadd.f32 %v5743_v42, %v13320_v23  ;;  %v5753_v5 = vadd.f32 %v5745_v55, %v13342_v30  ;;  %v10295_v54 = vld [vmem:[%s14005_s3 + $0x7c] ss:$12 sps:$4 sm:$0xff]   ;;  %v10298_v46 = vld [vmem:[%s14005_s3 + $0x94] ss:$12 sps:$4 sm:$0xff]   ;;  %v10301_v12 = vld [vmem:[%s14005_s3 + $0xac] ss:$12 sps:$4 sm:$0xff]  }
 0x39a   :  { %v5752_v41 = vadd.f32 %v5744_v29, %v13322_v61  ;;  %v5754_v62 = vadd.f32 %v5746_v10, %v13345_v28  ;;  %v10296_v34 = vld [vmem:[%s14005_s3 + $0x90] ss:$12 sps:$4 sm:$0xff]   ;;  %v10299_v48 = vld [vmem:[%s14005_s3 + $0xa8] ss:$12 sps:$4 sm:$0xff]  }
 0x39b   :  { %9517 = vmatpush3.bf16.msra.mxu0 %v9516_v47 }
 0x39c   :  { %9518 = vmatprep.subr.bf16.mxu0 %v10441_v1  ;;  %v9522_v4 = vpack.c.bf16 %v5752_v41, %v5751_v43  ;;  %v9525_v20 = vpack.c.bf16 %v5754_v62, %v5753_v5  ;;  %v10443_v5 = vmov 1  }
 0x39d   :  { %10046 = vset.pattern.permute.xlu1 %v10443_v5  ;;  %10051 = vset.pattern.permute.xlu0 %v10443_v5 }
 0x39f   :  { %9520 = vmatpush3.bf16.msra.mxu0 %v9519_v52 }
 0x3a0   :  { %9521 = vmatprep.subr.bf16.mxu0 %v10441_v1 }
 0x3a3   :  { %9523 = vmatpush3.bf16.msra.mxu0 %v9522_v4 }
 0x3a4   :  { %9524 = vmatprep.subr.bf16.mxu0 %v10441_v1  ;;  %v10280_v1 = vld [vmem:[%s14005_s3 + $0x4] ss:$12 sps:$4 sm:$0xff]  }
 0x3a5   :  { %6137 = vmatprep.subr.bf16.mxu1 %v10280_v1  ;;  %v6769_v1 = vld [vmem:[%s14002_s8 + $0x18] sm:$0xff] }
 0x3a7   :  { %9526 = vmatpush3.bf16.msra.mxu0 %v9525_v20  ;;  %v10434_v20 = vld [vmem:[%s14002_s8] sm:$0xff] }
 0x3a8   :  { %6827 = vperm.xlu1 %10046, %v10434_v20   ;;  %v6241_v20 = vld [vmem:[%s14006_s9 + $0x30] sm:$0xff] }
 0x3aa   :  { %9345 = vmatmul.mubr.msk.f32.vlgmr.msra.gmra.mrb[16].mxu0 %vm5756_vm1, %v5755_v60  ;;  %v10435_v60 = vld [vmem:[%s14002_s8 + $0x10] sm:$0xff] }
 0x3ab   :  { %6835 = vperm.xlu0 %10051, %v10435_v60   ;;  %v9555_v60 = vpack.c.bf16 %v13330_v8, %v13327_v13 }
 0x47d   :  { %v5826_v6 = vpop.f32.mrb[16].mxu0 }
 0x47e   :  { %v5830_v37 = vpack.c.bf16 %v5826_v6, %v5826_v6  ;;  %v9346_v63 = vpop.f32.mrb[17].mxu0 }
 0x480   :  { %9364 = vmatmul.mubr.bf16.vlgmr.msra.gmra.mrb[16].mxu1 %v5830_v37  ;;  %v10436_v37 = vld [vmem:[%s14002_s8 + $0x8] sm:$0xff] }
 0x481   :  { %6169 = vmatprep.mubr.bf16.mxu1 %v14251_v32  ;;  %6138 = vmatpush1.bf16.msra.mxu1 %v10278_v3 }
 0x482   :  { %6139 = vmatprep.subr.bf16.mxu1 %v10283_v24  ;;  %6831 = vperm.xlu1 %10046, %v10436_v37   ;;  %v9563_v37 = vpack.c.bf16 %v13294_v7, %v13300_v39 }
 0x485   :  { %6140 = vmatpush1.bf16.msra.mxu1 %v10281_v31 }
 0x486   :  { %6141 = vmatprep.subr.bf16.mxu1 %v10286_v50  ;;  %10047 = vset.pattern.permute.xlu1 %v14251_v32 }
 0x487   :  { %6791 = vperm.xlu1 %10047, %v6769_v1  }
 0x489   :  { %6142 = vmatpush1.bf16.msra.mxu1 %v10284_v18 }
 0x48a   :  { %6143 = vmatprep.subr.bf16.mxu1 %v10289_v49  ;;  %v6770_v49 = vld [vmem:[%s14002_s8 + $0x20] sm:$0xff] }
 0x48b   :  { %10048 = vset.pattern.permute.xlu1 %v10443_v5 }
 0x48c   :  { %6839 = vperm.xlu1 %10048, %v6769_v1   ;;  %v9571_v1 = vpack.c.bf16 %v13345_v28, %v13342_v30 }
 0x48d   :  { %6144 = vmatpush1.bf16.msra.mxu1 %v10287_v19 }
 0x48e   :  { %6145 = vmatprep.subr.bf16.mxu1 %v10292_v33 }
 0x490   :  { %10049 = vset.pattern.permute.xlu1 %v14251_v32 }
 0x491   :  { %6146 = vmatpush1.bf16.msra.mxu1 %v10290_v45  ;;  %6796 = vperm.xlu1 %10049, %v6770_v49   ;;  %v10437_v45 = vld [vmem:[%s14002_s8 + $0x28] sm:$0xff] }
 0x492   :  { %6147 = vmatprep.subr.bf16.mxu1 %v10295_v54 }
 0x495   :  { %6148 = vmatpush1.bf16.msra.mxu1 %v10293_v56  ;;  %10050 = vset.pattern.permute.xlu1 %v10443_v5  ;;  %v13439_v56 = vld [vmem:[%s14002_s8 + $0x38] sm:$0xff] }
 0x496   :  { %6149 = vmatprep.subr.bf16.mxu1 %v10298_v46  ;;  %6843 = vperm.xlu1 %10050, %v6770_v49   ;;  %v10302_v46 = vld [vmem:[%s14005_s3 + $0x8] ss:$12 sps:$4 sm:$0xff]  }
 0x499   :  { %6150 = vmatpush1.bf16.msra.mxu1 %v10296_v34 }
 0x49a   :  { %6151 = vmatprep.subr.bf16.mxu1 %v10301_v12  ;;  %6847 = vperm.xlu1 %10050, %v10437_v45   ;;  %v10303_v12 = vld [vmem:[%s14005_s3 + $0x20] ss:$12 sps:$4 sm:$0xff]  }
 0x49d   :  { %6152 = vmatpush1.bf16.msra.mxu1 %v10299_v48  ;;  %v10304_v48 = vld [vmem:[%s14005_s3 + $0x38] ss:$12 sps:$4 sm:$0xff]  }
 0x49e   :  { %9367 = vmatprep.subr.bf16.mxu1 %v14221_v27  ;;  %10052 = vset.pattern.permute.xlu1 %v14251_v32  ;;  %v10305_v32 = vld [vmem:[%s14005_s3 + $0x50] ss:$12 sps:$4 sm:$0xff]  }
 0x49f   :  { %6811 = vperm.xlu1 %10052, %v13439_v56  }
 0x4a3   :  { %10053 = vset.pattern.permute.xlu1 %v10443_v5  ;;  %v9551_v5 = vpack.c.bf16 %v13306_v9, %v13303_v35 }
 0x553   :  { %v5929_v25 = vpop.f32.mrb[16].mxu1 }
 0x554   :  { %v5936_v15 = vsel %vm5935_vm2, %v5929_v25, 0.0  ;;  %v9365_v21 = vpop.f32.mrb[17].mxu1 }
 0x555   :  { %v5937_v47 = vrot.slane %v5936_v15, 4  ;;  %v5932_v0 = vpop.f32.mrb[18].mxu1  ;;  %v10308_v21 = vld [vmem:[%s14005_s3 + $0x98] ss:$12 sps:$4 sm:$0xff]  }
 0x556   :  { %v9366_v38 = vpop.f32.mrb[19].mxu1  ;;  %v9527_v0 = vpack.c.bf16 %v13282_v11, %v13279_v14 }
 0x557   :  { %v5938_v42 = vadd.f32 %v5937_v47, %v5936_v15  ;;  %v10307_v15 = vld [vmem:[%s14005_s3 + $0x80] ss:$12 sps:$4 sm:$0xff]   ;;  %v10309_v47 = vld [vmem:[%s14005_s3 + $0xb0] ss:$12 sps:$4 sm:$0xff]  }
 0x558   :  { %v6235_v38 = vld [vmem:[%s14006_s9] sm:$0xff] }
 0x559   :  { %v5939_v29 = vrot.slane %v5938_v42, 2 }
 0x55b   :  { %v5940_v52 = vadd.f32 %v5939_v29, %v5938_v42  ;;  %v9531_v42 = vpack.c.bf16 %v13288_v53, %v13285_v22  ;;  %v9539_v29 = vpack.c.bf16 %v13340_v58, %v13337_v16 }
 0x55d   :  { %v5941_v43 = vrot.slane %v5940_v52, 1 }
 0x55f   :  { %v5942_v41 = vadd.f32 %v5941_v43, %v5940_v52  ;;  %v9543_v52 = vpack.c.bf16 %v13270_v36, %v13267_v26  ;;  %v6236_v43 = vld [vmem:[%s14006_s9 + $0x8] sm:$0xff] }
 0x561   :  { %v5944_v55 = vmul.f32 0.5, %v5942_v41  ;;  %v6237_v41 = vld [vmem:[%s14006_s9 + $0x10] sm:$0xff] }
 0x563   :  { %v5945_v10 = vsub.f32 %v5929_v25, %v5944_v55  ;;  %v10306_v25 = vld [vmem:[%s14005_s3 + $0x68] ss:$12 sps:$4 sm:$0xff]   ;;  %v9547_v55 = vpack.c.bf16 %v13276_v57, %v13273_v51 }
 0x565   :  { %v5946_v4 = vmul.f32 %v5945_v10, %v5945_v10 }
 0x567   :  { %v5947_v62 = vsel %vm5935_vm2, %v5946_v4, 0.0  ;;  %v6239_v4 = vld [vmem:[%s14006_s9 + $0x20] sm:$0xff] }
 0x568   :  { %v5948_v17 = vrot.slane %v5947_v62, 4 }
 0x56a   :  { %v5949_v6 = vadd.f32 %v5948_v17, %v5947_v62  ;;  %v6240_v62 = vld [vmem:[%s14006_s9 + $0x28] sm:$0xff]  ;;  %v6242_v17 = vld [vmem:[%s14006_s9 + $0x38] sm:$0xff] }
 0x56c   :  { %v5950_v63 = vrot.slane %v5949_v6, 2 }
 0x56e   :  { %v5951_v3 = vadd.f32 %v5950_v63, %v5949_v6  ;;  %v9559_v6 = vpack.c.bf16 %v13298_v2, %v13296_v44  ;;  %v9567_v63 = vpack.c.bf16 %v13322_v61, %v13320_v23 }
 0x570   :  { %v5952_v24 = vrot.slane %v5951_v3, 1 }
 0x572   :  { %v5953_v31 = vadd.f32 %v5952_v24, %v5951_v3  ;;  %v5994_v3 = vlaneseq }
 0x574   :  { %v5954_v50 = vmul.f32 0.5, %v5953_v31  ;;  %v5995_v24 = vshrl.u32 %v5994_v3, 7 }
 0x576   :  { %v5955_v18 = vadd.f32 1e-05, %v5954_v50  ;;  %v13548_v31 = vsub.s32 0, %v5995_v24  ;;  %v5992_v50 = vld [vmem:[%s14007_s4] sm:$0x7] }
 0x578   :  { %10316 = vrsqrt.f32 %v5955_v18  ;;  %v13553_v18 = vsub.s32 1, %v5995_v24  ;;  %v5997_v49 = vrot.slane %v5992_v50, %v13548_v31 }
 0x582   :  { %v10317_v19 = vpop.eup %10316 }
 0x583   :  { %v5957_v33 = vmul.f32 %v10317_v19, %v5945_v10  ;;  %v6238_v10 = vld [vmem:[%s14006_s9 + $0x18] sm:$0xff]  ;;  %v6001_v19 = vrot.slane %v5992_v50, %v13553_v18 }
 0x585   :  { %v5958_v54 = vmax.f32 %v5957_v33, 0.0 }
 0x587   :  { %v5959_v34 = vpack.c.bf16 %v5958_v54, %v5958_v54 }
 0x589   :  { %6170 = vmatmul.mubr.bf16.vlgmr.msra.gmra.mrb[20].mxu1 %v5959_v34 }
 0x58a   :  { %9368 = vmatpush3.bf16.msra.mxu1 %v10302_v46  ;;  %9383 = vmatprep.mubr.msk.bf16.mxu1 %vm10442_vm0, %v14221_v27 }
 0x58b   :  { %9369 = vmatprep.subr.bf16.mxu1 %v14221_v27 }
 0x58e   :  { %9370 = vmatpush3.bf16.msra.mxu1 %v10303_v12 }
 0x58f   :  { %9371 = vmatprep.subr.bf16.mxu1 %v14221_v27 }
 0x592   :  { %9372 = vmatpush3.bf16.msra.mxu1 %v10304_v48 }
 0x593   :  { %9373 = vmatprep.subr.bf16.mxu1 %v14221_v27 }
 0x596   :  { %9374 = vmatpush3.bf16.msra.mxu1 %v10305_v32  ;;  %v6004_v32 = vsub.s32 2, %v5995_v24 }
 0x597   :  { %9375 = vmatprep.subr.bf16.mxu1 %v14221_v27 }
 0x59a   :  { %9376 = vmatpush3.bf16.msra.mxu1 %v10306_v25  ;;  %v6005_v25 = vrot.slane %v5992_v50, %v6004_v32 }
 0x59b   :  { %9377 = vmatprep.subr.bf16.mxu1 %v14221_v27 }
 0x59e   :  { %9378 = vmatpush3.bf16.msra.mxu1 %v10307_v15 }
 0x59f   :  { %9379 = vmatprep.subr.bf16.mxu1 %v14221_v27 }
 0x5a2   :  { %9380 = vmatpush3.bf16.msra.mxu1 %v10308_v21 }
 0x5a3   :  { %9381 = vmatprep.subr.bf16.mxu1 %v14221_v27  ;;  %v9535_v27 = vpack.c.bf16 %v13318_v40, %v13315_v59 }
 0x5a6   :  { %9382 = vmatpush3.bf16.msra.mxu1 %v10309_v47 }
 0x5a7   :  { %9528 = vmatprep.subr.bf16.mxu1 %v9527_v0 }
 0x5a9   :  { %9384 = vmatmul.mubr.bf16.vlgmr.msra.gmra.mrb[24].mxu1 %v5959_v34 }
 0x5aa   :  { %9530 = vmatpush3.bf16.msra.mxu1 %v9527_v0  ;;  %9403 = vmatprep.mubr.msk.f32.mxu1 %vm5756_vm1, %v6235_v38 }
 0x5ab   :  { %9532 = vmatprep.subr.bf16.mxu1 %v9531_v42 }
 0x5ae   :  { %9534 = vmatpush3.bf16.msra.mxu1 %v9531_v42 }
 0x5af   :  { %9536 = vmatprep.subr.bf16.mxu1 %v9535_v27 }
 0x5b2   :  { %9538 = vmatpush3.bf16.msra.mxu1 %v9535_v27 }
 0x5b3   :  { %9540 = vmatprep.subr.bf16.mxu1 %v9539_v29 }
 0x5b6   :  { %9542 = vmatpush3.bf16.msra.mxu1 %v9539_v29 }
 0x5b7   :  { %9544 = vmatprep.subr.bf16.mxu1 %v9543_v52 }
 0x5b9   :  { %9404 = vmatmul.mubr.msk.f32.vlgmr.msra.gmra.mrb[28].mxu1 %vm5756_vm1, %v6236_v43 }
 0x5ba   :  { %9546 = vmatpush3.bf16.msra.mxu1 %v9543_v52  ;;  %9406 = vmatprep.mubr.msk.f32.mxu1 %vm5756_vm1, %v6237_v41 }
 0x5bb   :  { %9548 = vmatprep.subr.bf16.mxu1 %v9547_v55 }
 0x5bd   :  { %9407 = vmatmul.mubr.msk.f32.gmra.mrb[30].mxu1 %vm5756_vm1, %v6238_v10 }
 0x5be   :  { %9550 = vmatpush3.bf16.msra.mxu1 %v9547_v55  ;;  %9409 = vmatprep.mubr.msk.f32.mxu1 %vm5756_vm1, %v6239_v4 }
 0x5bf   :  { %9552 = vmatprep.subr.bf16.mxu1 %v9551_v5 }
 0x5c1   :  { %9410 = vmatmul.mubr.msk.f32.gmra.mrb[32].mxu1 %vm5756_vm1, %v6240_v62 }
 0x5c2   :  { %9554 = vmatpush3.bf16.msra.mxu1 %v9551_v5  ;;  %9412 = vmatprep.mubr.msk.f32.mxu1 %vm5756_vm1, %v6241_v20 }
 0x5c3   :  { %9556 = vmatprep.subr.bf16.mxu1 %v9555_v60 }
 0x5c5   :  { %9413 = vmatmul.mubr.msk.f32.gmra.mrb[34].mxu1 %vm5756_vm1, %v6242_v17 }
 0x5c6   :  { %9558 = vmatpush3.bf16.msra.mxu1 %v9555_v60  ;;  %9431 = vmatprep.mubr.msk.f32.mxu1 %vm5756_vm1, %v6235_v38 }
 0x5c7   :  { %9560 = vmatprep.subr.bf16.mxu1 %v9559_v6 }
 0x5c9   :  { %9432 = vmatmul.mubr.msk.f32.vlgmr.msra.gmra.mrb[36].mxu1 %vm5756_vm1, %v6236_v43 }
 0x5ca   :  { %9562 = vmatpush3.bf16.msra.mxu1 %v9559_v6  ;;  %9434 = vmatprep.mubr.msk.f32.mxu1 %vm5756_vm1, %v6237_v41 }
 0x5cb   :  { %9564 = vmatprep.subr.bf16.mxu1 %v9563_v37 }
 0x5cd   :  { %9435 = vmatmul.mubr.msk.f32.gmra.mrb[38].mxu1 %vm5756_vm1, %v6238_v10 }
 0x5ce   :  { %9566 = vmatpush3.bf16.msra.mxu1 %v9563_v37  ;;  %9437 = vmatprep.mubr.msk.f32.mxu1 %vm5756_vm1, %v6239_v4 }
 0x5cf   :  { %9568 = vmatprep.subr.bf16.mxu1 %v9567_v63 }
 0x5d1   :  { %9438 = vmatmul.mubr.msk.f32.gmra.mrb[40].mxu1 %vm5756_vm1, %v6240_v62 }
 0x5d2   :  { %9570 = vmatpush3.bf16.msra.mxu1 %v9567_v63  ;;  %9440 = vmatprep.mubr.msk.f32.mxu1 %vm5756_vm1, %v6241_v20 }
 0x5d3   :  { %9572 = vmatprep.subr.bf16.mxu1 %v9571_v1 }
 0x5d5   :  { %9441 = vmatmul.mubr.msk.f32.gmra.mrb[42].mxu1 %vm5756_vm1, %v6242_v17 }
 0x5d6   :  { %9574 = vmatpush3.bf16.msra.mxu1 %v9571_v1  ;;  %9459 = vmatprep.mubr.msk.f32.mxu1 %vm5756_vm1, %v6235_v38 }
 0x5d9   :  { %9460 = vmatmul.mubr.msk.f32.vlgmr.msra.gmra.mrb[44].mxu1 %vm5756_vm1, %v6236_v43 }
 0x5da   :  { %9462 = vmatprep.mubr.msk.f32.mxu1 %vm5756_vm1, %v6237_v41 }
 0x5dd   :  { %9463 = vmatmul.mubr.msk.f32.gmra.mrb[46].mxu1 %vm5756_vm1, %v6238_v10  ;;  %v6777_v10 = vpop.permute.xlu1 %6776 }
 0x5de   :  { %9465 = vmatprep.mubr.msk.f32.mxu1 %vm5756_vm1, %v6239_v4 }
 0x5e1   :  { %9466 = vmatmul.mubr.msk.f32.gmra.mrb[48].mxu1 %vm5756_vm1, %v6240_v62  ;;  %v6828_v4 = vpop.permute.xlu1 %6827 }
 0x5e2   :  { %9468 = vmatprep.mubr.msk.f32.mxu1 %vm5756_vm1, %v6241_v20 }
 0x5e5   :  { %9469 = vmatmul.mubr.msk.f32.gmra.mrb[50].mxu1 %vm5756_vm1, %v6242_v17  ;;  %v13557_v60 = vpop.permute.xlu1 %6831 }
 0x5e9   :  { %v13559_v50 = vpop.permute.xlu1 %6791 }
 0x65c   :  { %v6171_v33 = vpop.f32.mrb[20].mxu1 }
 0x65d   :  { %v6172_v45 = vadd.f32 %v6171_v33, %v5997_v49  ;;  %v6173_v54 = vpop.f32.mrb[21].mxu1 }
 0x65e   :  { %v6174_v46 = vadd.f32 %v6173_v54, %v6001_v19  ;;  %v6175_v34 = vpop.f32.mrb[22].mxu1  ;;  %v6840_v54 = vpop.permute.xlu1 %6839 }
 0x65f   :  { %v6176_v12 = vpop.f32.mrb[23].mxu1 }
 0x660   :  { %v6218_v48 = vmax.f32 %v6172_v45, %v6174_v46 }
 0x67c   :  { %v6212_v15 = vpop.f32.mrb[24].mxu1 }
 0x67d   :  { %v6213_v21 = vadd.f32 %v6212_v15, %v6005_v25  ;;  %v9385_v47 = vpop.f32.mrb[25].mxu1 }
 0x67e   :  { %v6215_v0 = vpop.f32.mrb[26].mxu1  ;;  %v6797_v47 = vpop.permute.xlu1 %6796 }
 0x67f   :  { %v6219_v38 = vmax.f32 %v6218_v48, %v6213_v21  ;;  %v9386_v42 = vpop.f32.mrb[27].mxu1 }
 0x681   :  { %v6220_v27 = vsub.f32 %v6172_v45, %v6219_v38  ;;  %v6223_v29 = vsub.f32 %v6174_v46, %v6219_v38  ;;  %v6226_v52 = vsub.f32 %v6213_v21, %v6219_v38  ;;  %v6782_v45 = vpop.permute.xlu0 %6781 }
 0x683   :  { %v6221_v43 = vmul.f32 1.442695, %v6220_v27  ;;  %v6224_v41 = vmul.f32 1.442695, %v6223_v29  ;;  %v6227_v55 = vmul.f32 1.442695, %v6226_v52 }
 0x685   :  { %10318 = vpow2.f32 %v6221_v43  ;;  %v13561_v48 = vpop.permute.xlu0 %6786 }
 0x686   :  { %10320 = vpow2.f32 %v6224_v41 }
 0x687   :  { %10322 = vpow2.f32 %v6227_v55 }
 0x68c   :  { %v9405_v5 = vpop.f32.mrb[28].mxu1 }
 0x68d   :  { %v6333_v62 = vpop.f32.mrb[29].mxu1  ;;  %6374 = vadd.xlane.f32.xlu1 %v9405_v5 }
 0x68e   :  { %6372 = vadd.xlane.f32.xlu0 %v6333_v62 }
 0x68f   :  { %v10319_v20 = vpop.eup %10318 }
 0x690   :  { %v10321_v17 = vpop.eup %10320  ;;  %v9408_v6 = vpop.f32.mrb[30].mxu1 }
 0x691   :  { %v6229_v37 = vadd.f32 %v10321_v17, %v10319_v20  ;;  %v6343_v63 = vpop.f32.mrb[31].mxu1  ;;  %v10323_v1 = vpop.eup %10322 }
 0x692   :  { %6378 = vadd.xlane.f32.xlu0 %v9408_v6  ;;  %6376 = vadd.xlane.f32.xlu1 %v6343_v63  ;;  %v6802_v63 = vpop.permute.xlu0 %6801 }
 0x693   :  { %v6230_v3 = vadd.f32 %v10323_v1, %v6229_v37 }
 0x694   :  { %v9411_v24 = vpop.f32.mrb[32].mxu1 }
 0x695   :  { %10324 = vrcp.f32 %v6230_v3  ;;  %v6353_v49 = vpop.f32.mrb[33].mxu1 }
 0x696   :  { %6382 = vadd.xlane.f32.xlu0 %v9411_v24  ;;  %6380 = vadd.xlane.f32.xlu1 %v6353_v49 }
 0x698   :  { %v9414_v19 = vpop.f32.mrb[34].mxu1 }
 0x699   :  { %v6363_v33 = vpop.f32.mrb[35].mxu1 }
 0x69a   :  { %6386 = vadd.xlane.f32.xlu0 %v9414_v19  ;;  %6384 = vadd.xlane.f32.xlu1 %v6363_v33  ;;  %v6844_v33 = vpop.permute.xlu1 %6843 }
 0x69c   :  { %v9433_v46 = vpop.f32.mrb[36].mxu1 }
 0x69d   :  { %v6454_v34 = vpop.f32.mrb[37].mxu1 }
 0x69e   :  { %6495 = vadd.xlane.f32.xlu0 %v9433_v46 }
 0x69f   :  { %v10325_v12 = vpop.eup %10324 }
 0x6a0   :  { %v6232_v32 = vmul.f32 %v10325_v12, %v10319_v20  ;;  %v6233_v25 = vmul.f32 %v10325_v12, %v10321_v17  ;;  %v6234_v15 = vmul.f32 %v10325_v12, %v10323_v1  ;;  %v9436_v21 = vpop.f32.mrb[38].mxu1 }
 0x6a1   :  { %v6464_v0 = vpop.f32.mrb[39].mxu1 }
 0x6a2   :  { %v13564_v38 = vrot.slane %v6232_v32, %v13548_v31  ;;  %v13567_v42 = vrot.slane %v6232_v32, %v13553_v18  ;;  %v13570_v27 = vrot.slane %v6233_v25, %v13548_v31  ;;  %v13573_v29 = vrot.slane %v6233_v25, %v13553_v18  ;;  %6493 = vadd.xlane.f32.xlu0 %v6454_v34 }
 0x6a3   :  { %v13576_v52 = vrot.slane %v6234_v15, %v13548_v31  ;;  %v13579_v43 = vrot.slane %v6234_v15, %v13553_v18  ;;  %6497 = vadd.xlane.f32.xlu1 %v6464_v0 }
 0x6a4   :  { %v6818_v41 = vmul.f32 %v13564_v38, %v6777_v10  ;;  %v6862_v55 = vmul.f32 %v13567_v42, %v6828_v4  ;;  %v6898_v5 = vmul.f32 %v13570_v27, %v6777_v10  ;;  %v6910_v62 = vmul.f32 %v13573_v29, %v6828_v4  ;;  %v9439_v20 = vpop.f32.mrb[40].mxu1 }
 0x6a5   :  { %v6962_v17 = vmul.f32 %v13576_v52, %v6777_v10  ;;  %v6974_v6 = vmul.f32 %v13579_v43, %v6828_v4  ;;  %v6819_v31 = vmul.f32 %v13564_v38, %v6782_v45  ;;  %v6863_v18 = vmul.f32 %v13567_v42, %v13557_v60  ;;  %v6474_v37 = vpop.f32.mrb[41].mxu1 }
 0x6a6   :  { %v6870_v1 = vadd.f32 %v6862_v55, %v6818_v41  ;;  %v6918_v3 = vadd.f32 %v6910_v62, %v6898_v5  ;;  %v6899_v24 = vmul.f32 %v13570_v27, %v6782_v45  ;;  %v6911_v49 = vmul.f32 %v13573_v29, %v13557_v60  ;;  %6499 = vadd.xlane.f32.xlu0 %v9436_v21 }
 0x6a7   :  { %v6871_v19 = vadd.f32 %v6863_v18, %v6819_v31  ;;  %6501 = vadd.xlane.f32.xlu1 %v6474_v37  ;;  %v6821_v34 = vmul.f32 %v13564_v38, %v13559_v50  ;;  %v6963_v25 = vmul.f32 %v13576_v52, %v6782_v45  ;;  %v6975_v15 = vmul.f32 %v13579_v43, %v13557_v60  ;;  %v13612_v37 = vpop.permute.xlu0 %6806 }
 0x6a8   :  { %v6878_v10 = vmul.f32 %v6870_v1, %v13279_v14  ;;  %v6926_v4 = vmul.f32 %v6918_v3, %v13267_v26  ;;  %v6919_v46 = vadd.f32 %v6911_v49, %v6899_v24  ;;  %v9442_v12 = vpop.f32.mrb[42].mxu1  ;;  %v6901_v21 = vmul.f32 %v13570_v27, %v13559_v50 }
 0x6a9   :  { %v6879_v32 = vmul.f32 %v6871_v19, %v13282_v11  ;;  %v6484_v0 = vpop.f32.mrb[43].mxu1  ;;  %v6982_v55 = vadd.f32 %v6974_v6, %v6962_v17  ;;  %v6865_v62 = vmul.f32 %v13567_v42, %v6840_v54  ;;  %v6965_v31 = vmul.f32 %v13576_v52, %v13559_v50 }
 0x6aa   :  { %v13603_v41 = vadd.f32 %v6926_v4, %v6878_v10  ;;  %v6927_v5 = vmul.f32 %v6919_v46, %v13270_v36  ;;  %6503 = vadd.xlane.f32.xlu0 %v9439_v20  ;;  %v6913_v45 = vmul.f32 %v13573_v29, %v6840_v54  ;;  %v6977_v18 = vmul.f32 %v13579_v43, %v6840_v54  ;;  %v6848_v10 = vpop.permute.xlu1 %6847 }
 0x6ab   :  { %v6822_v60 = vmul.f32 %v13564_v38, %v6797_v47  ;;  %6505 = vadd.xlane.f32.xlu1 %v6484_v0  ;;  %v6873_v3 = vadd.f32 %v6865_v62, %v6821_v34  ;;  %v6902_v17 = vmul.f32 %v13570_v27, %v6797_v47  ;;  %v6966_v6 = vmul.f32 %v13576_v52, %v6797_v47  ;;  %v6836_v11 = vpop.permute.xlu0 %6835 }
 0x6ac   :  { %v6943_v1 = vadd.f32 %v6927_v5, %v6879_v32  ;;  %v9461_v24 = vpop.f32.mrb[44].mxu1  ;;  %v6983_v20 = vadd.f32 %v6975_v15, %v6963_v25  ;;  %v6921_v49 = vadd.f32 %v6913_v45, %v6901_v21  ;;  %v6866_v50 = vmul.f32 %v13567_v42, %v6844_v33 }
 0x6ad   :  { %v6914_v19 = vmul.f32 %v13573_v29, %v6844_v33  ;;  %v6575_v54 = vpop.f32.mrb[45].mxu1  ;;  %v6881_v4 = vmul.f32 %v6873_v3, %v13288_v53  ;;  %v6978_v46 = vmul.f32 %v13579_v43, %v6844_v33  ;;  %v6823_v32 = vmul.f32 %v13564_v38, %v6802_v63 }
 0x6ae   :  { %v6867_v34 = vmul.f32 %v13567_v42, %v6848_v10  ;;  %6507 = vadd.xlane.f32.xlu0 %v9442_v12  ;;  %v6929_v47 = vmul.f32 %v6921_v49, %v13276_v57  ;;  %v6985_v0 = vadd.f32 %v6977_v18, %v6965_v31  ;;  %v6874_v25 = vadd.f32 %v6866_v50, %v6822_v60 }
 0x6af   :  { %v6922_v15 = vadd.f32 %v6914_v19, %v6902_v17  ;;  %6614 = vadd.xlane.f32.xlu1 %v6575_v54  ;;  %v6986_v21 = vadd.f32 %v6978_v46, %v6966_v6  ;;  %v6903_v62 = vmul.f32 %v13570_v27, %v6802_v63  ;;  %v6915_v45 = vmul.f32 %v13573_v29, %v6848_v10 }
 0x6b0   :  { %v6875_v5 = vadd.f32 %v6867_v34, %v6823_v32  ;;  %v9464_v3 = vpop.f32.mrb[46].mxu1  ;;  %v6945_v53 = vadd.f32 %v6929_v47, %v6881_v4  ;;  %v6882_v33 = vmul.f32 %v6874_v25, %v13315_v59  ;;  %v6967_v12 = vmul.f32 %v13576_v52, %v6802_v63 }
 0x6b1   :  { %v6930_v36 = vmul.f32 %v6922_v15, %v13303_v35  ;;  %v6585_v49 = vpop.f32.mrb[47].mxu1  ;;  %v6990_v31 = vmul.f32 %v6982_v55, %v13296_v44  ;;  %v6923_v60 = vadd.f32 %v6915_v45, %v6903_v62  ;;  %v6979_v17 = vmul.f32 %v13579_v43, %v6848_v10 }
 0x6b2   :  { %v6883_v18 = vmul.f32 %v6875_v5, %v13318_v40  ;;  %6616 = vadd.xlane.f32.xlu0 %v9461_v24  ;;  %v6991_v6 = vmul.f32 %v6983_v20, %v13298_v2  ;;  %v6993_v50 = vmul.f32 %v6985_v0, %v13294_v7  ;;  %v6994_v54 = vmul.f32 %v6986_v21, %v13320_v23 }
 0x6b3   :  { %v6946_v19 = vadd.f32 %v6930_v36, %v6882_v33  ;;  %6618 = vadd.xlane.f32.xlu1 %v6585_v49  ;;  %v6931_v63 = vmul.f32 %v6923_v60, %v13306_v9  ;;  %v6987_v4 = vadd.f32 %v6979_v17, %v6967_v12  ;;  %v6820_v55 = vmul.f32 %v13564_v38, %v13561_v48  ;;  %v10438_v17 = vld [vmem:[%s14002_s8 + $0x30] sm:$0xff] }
 0x6b4   :  { %v6864_v46 = vmul.f32 %v13567_v42, %v6836_v11  ;;  %v9467_v32 = vpop.f32.mrb[48].mxu1  ;;  %v6900_v24 = vmul.f32 %v13570_v27, %v13561_v48  ;;  %v6912_v20 = vmul.f32 %v13573_v29, %v6836_v11  ;;  %v6964_v36 = vmul.f32 %v13576_v52, %v13561_v48 }
 0x6b5   :  { %v6976_v10 = vmul.f32 %v13579_v43, %v6836_v11  ;;  %v6595_v34 = vpop.f32.mrb[49].mxu1  ;;  %v6947_v47 = vadd.f32 %v6931_v63, %v6883_v18  ;;  %v6995_v0 = vmul.f32 %v6987_v4, %v13322_v61  ;;  %v13646_v15 = vadd.f32 %v6990_v31, %v13603_v41 }
 0x6b6   :  { %v6872_v25 = vadd.f32 %v6864_v46, %v6820_v55  ;;  %6620 = vadd.xlane.f32.xlu0 %v9464_v3  ;;  %v6920_v21 = vadd.f32 %v6912_v20, %v6900_v24  ;;  %v13648_v62 = vadd.f32 %v6991_v6, %v6943_v1  ;;  %v13650_v45 = vadd.f32 %v6993_v50, %v6945_v53  ;;  %v13674_v6 = vld [vmem:[%s14008_s10] sm:$0xff]  ;;  %v6812_v50 = vpop.permute.xlu1 %6811 }
 0x6b7   :  { %14252 = vst [vmem:[#allocation18_spill] sm:$0xff] %v13646_v15  ;;  %v6984_v5 = vadd.f32 %v6976_v10, %v6964_v36  ;;  %6622 = vadd.xlane.f32.xlu1 %v6595_v34  ;;  %v13653_v33 = vadd.f32 %v6994_v54, %v6946_v19  ;;  %v13655_v11 = vadd.f32 %v6995_v0, %v6947_v47  ;;  %14255 = vst [vmem:[#allocation26_spill] sm:$0xff] %v13674_v6 }
 0x6b8   :  { %14253 = vst [vmem:[#allocation19_spill] sm:$0xff] %v13648_v62  ;;  %v6880_v48 = vmul.f32 %v6872_v25, %v13285_v22  ;;  %v9470_v12 = vpop.f32.mrb[50].mxu1  ;;  %v6928_v49 = vmul.f32 %v6920_v21, %v13273_v51  ;;  %v9575_v41 = vpack.c.bf16 %v13648_v62, %v13646_v15  ;;  %9487 = vmatprep.mubr.msk.f32.mxu1 %vm5756_vm1, %v13674_v6 }
 0x6b9   :  { %v6605_v3 = vpop.f32.mrb[51].mxu1  ;;  %v6992_v1 = vmul.f32 %v6984_v5, %v13300_v39  ;;  %v9583_v60 = vpack.c.bf16 %v13655_v11, %v13653_v33  ;;  %v7022_v5 = vadd.f32 %v13648_v62, %v13646_v15 }
 0x6ba   :  { %6624 = vadd.xlane.f32.xlu0 %v9467_v32  ;;  %v6944_v31 = vadd.f32 %v6928_v49, %v6880_v48  ;;  %9576 = vmatprep.subr.bf16.mxu1 %v9575_v41 }
 0x6bb   :  { %6626 = vadd.xlane.f32.xlu1 %v6605_v3  ;;  %9578 = vmatpush3.bf16.msra.mxu1 %v9575_v41  ;;  %v13704_v41 = vmul.f32 %v13570_v27, %v6812_v50  ;;  %v13707_v3 = vmul.f32 %v13576_v52, %v6812_v50 }
 0x6bc   :  { %v13661_v53 = vadd.f32 %v6992_v1, %v6944_v31  ;;  %v13711_v1 = vmul.f32 %v13564_v38, %v13612_v37 }
 0x6be   :  { %14254 = vst [vmem:[#allocation29_spill] sm:$0xff] %v13661_v53  ;;  %6628 = vadd.xlane.f32.xlu0 %v9470_v12  ;;  %v9579_v18 = vpack.c.bf16 %v13650_v45, %v13661_v53  ;;  %v13701_v12 = vmul.f32 %v13564_v38, %v6812_v50  ;;  %v7023_v6 = vadd.f32 %v7022_v5, %v13661_v53 }
 0x6bf   :  { %v13718_v50 = vmul.f32 %v13570_v27, %v13612_v37 }
 0x6c0   :  { %9580 = vmatprep.subr.bf16.mxu1 %v9579_v18 }
 0x6c1   :  { %9582 = vmatpush3.bf16.msra.mxu1 %v9579_v18 }
 0x6c2   :  { %9584 = vmatprep.subr.bf16.mxu1 %v9583_v60 }
 0x6c5   :  { %9586 = vmatpush3.bf16.msra.mxu1 %v9583_v60 }
 0x6cc   :  { %6855 = vperm.xlu1 %10053, %v13439_v56  }
 0x6d4   :  { %6851 = vperm.xlu0 %10051, %v10438_v17  }
 0x71a   :  { %v6375_v19 = vpop.xlane.xlu1 %6374 }
 0x71b   :  { %v6373_v54 = vpop.xlane.xlu0 %6372 }
 0x71f   :  { %v13678_v63 = vpop.xlane.xlu0 %6378  ;;  %v6377_v4 = vpop.xlane.xlu1 %6376 }
 0x723   :  { %v13680_v56 = vpop.xlane.xlu0 %6382  ;;  %v13682_v55 = vpop.xlane.xlu1 %6380 }
 0x727   :  { %v13684_v46 = vpop.xlane.xlu0 %6386  ;;  %v13686_v24 = vpop.xlane.xlu1 %6384 }
 0x72b   :  { %v6496_v32 = vpop.xlane.xlu0 %6495 }
 0x72c   :  { %v6631_v31 = vmax.f32 %v6375_v19, %v6496_v32 }
 0x72f   :  { %v6494_v20 = vpop.xlane.xlu0 %6493 }
 0x730   :  { %v6498_v36 = vpop.xlane.xlu1 %6497  ;;  %v6630_v25 = vmax.f32 %v6373_v54, %v6494_v20 }
 0x731   :  { %v6632_v18 = vmax.f32 %v6377_v4, %v6498_v36 }
 0x733   :  { %v13688_v10 = vpop.xlane.xlu0 %6499 }
 0x734   :  { %v13690_v34 = vpop.xlane.xlu1 %6501 }
 0x737   :  { %v13692_v47 = vpop.xlane.xlu0 %6503 }
 0x738   :  { %v13694_v0 = vpop.xlane.xlu1 %6505 }
 0x73b   :  { %v13696_v21 = vpop.xlane.xlu0 %6507 }
 0x73c   :  { %v6615_v48 = vpop.xlane.xlu1 %6614 }
 0x73d   :  { %v6638_v49 = vmax.f32 %v6630_v25, %v6615_v48  ;;  %v6633_v25 = vmax.f32 %v13678_v63, %v13688_v10 }
 0x73f   :  { %v6646_v60 = vsub.f32 %v6373_v54, %v6638_v49  ;;  %v6670_v17 = vsub.f32 %v6494_v20, %v6638_v49  ;;  %v6694_v62 = vsub.f32 %v6615_v48, %v6638_v49  ;;  %v6617_v15 = vpop.xlane.xlu0 %6616  ;;  %v6634_v54 = vmax.f32 %v13682_v55, %v13690_v34 }
 0x740   :  { %v6639_v61 = vmax.f32 %v6631_v31, %v6617_v15  ;;  %v6619_v9 = vpop.xlane.xlu1 %6618 }
 0x741   :  { %v6654_v40 = vmul.f32 1.442695, %v6646_v60  ;;  %v6678_v23 = vmul.f32 1.442695, %v6670_v17  ;;  %v6702_v38 = vmul.f32 1.442695, %v6694_v62  ;;  %v6640_v35 = vmax.f32 %v6632_v18, %v6619_v9 }
 0x742   :  { %v6647_v20 = vsub.f32 %v6375_v19, %v6639_v61  ;;  %v6671_v48 = vsub.f32 %v6496_v32, %v6639_v61  ;;  %v6695_v49 = vsub.f32 %v6617_v15, %v6639_v61  ;;  %v13723_v60 = vadd.f32 %v7023_v6, %v13650_v45 }
 0x743   :  { %10326 = vpow2.f32 %v6654_v40  ;;  %v6648_v5 = vsub.f32 %v6377_v4, %v6640_v35  ;;  %v6672_v53 = vsub.f32 %v6498_v36, %v6640_v35  ;;  %v6696_v59 = vsub.f32 %v6619_v9, %v6640_v35  ;;  %v6621_v31 = vpop.xlane.xlu0 %6620 }
 0x744   :  { %10328 = vpow2.f32 %v6678_v23  ;;  %v6656_v7 = vmul.f32 1.442695, %v6647_v20  ;;  %v6680_v39 = vmul.f32 1.442695, %v6671_v48  ;;  %v6704_v27 = vmul.f32 1.442695, %v6695_v49  ;;  %v6623_v57 = vpop.xlane.xlu1 %6622 }
 0x745   :  { %10330 = vpow2.f32 %v6702_v38  ;;  %v6658_v62 = vmul.f32 1.442695, %v6648_v5  ;;  %v13727_v19 = vmul.f32 %v13576_v52, %v13612_v37  ;;  %v6682_v40 = vmul.f32 1.442695, %v6672_v53 }
 0x746   :  { %10332 = vpow2.f32 %v6656_v7  ;;  %v6641_v61 = vmax.f32 %v6633_v25, %v6621_v31  ;;  %v6642_v15 = vmax.f32 %v6634_v54, %v6623_v57  ;;  %v6635_v35 = vmax.f32 %v13680_v56, %v13692_v47 }
 0x747   :  { %v6636_v9 = vmax.f32 %v13686_v24, %v13694_v0  ;;  %10334 = vpow2.f32 %v6680_v39  ;;  %v6706_v23 = vmul.f32 1.442695, %v6696_v59  ;;  %v6625_v6 = vpop.xlane.xlu0 %6624  ;;  %v6637_v39 = vmax.f32 %v13684_v46, %v13696_v21 }
 0x748   :  { %10336 = vpow2.f32 %v6704_v27  ;;  %v6649_v4 = vsub.f32 %v13678_v63, %v6641_v61  ;;  %v6673_v32 = vsub.f32 %v13688_v10, %v6641_v61  ;;  %v6697_v52 = vsub.f32 %v6621_v31, %v6641_v61  ;;  %v6627_v37 = vpop.xlane.xlu1 %6626 }
 0x749   :  { %10338 = vpow2.f32 %v6658_v62  ;;  %v6650_v7 = vsub.f32 %v13682_v55, %v6642_v15  ;;  %v6674_v53 = vsub.f32 %v13690_v34, %v6642_v15  ;;  %v6698_v36 = vsub.f32 %v6623_v57, %v6642_v15 }
 0x74a   :  { %10340 = vpow2.f32 %v6682_v40  ;;  %v6660_v18 = vmul.f32 1.442695, %v6649_v4  ;;  %v6684_v17 = vmul.f32 1.442695, %v6673_v32  ;;  %v6708_v25 = vmul.f32 1.442695, %v6697_v52 }
 0x74b   :  { %10342 = vpow2.f32 %v6706_v23  ;;  %v6662_v59 = vmul.f32 1.442695, %v6650_v7  ;;  %v6686_v63 = vmul.f32 1.442695, %v6674_v53  ;;  %v13739_v38 = vpop.xlane.xlu0 %6628  ;;  %v6710_v10 = vmul.f32 1.442695, %v6698_v36 }
 0x74c   :  { %10344 = vpow2.f32 %v6660_v18  ;;  %v6643_v54 = vmax.f32 %v6635_v35, %v6625_v6  ;;  %v6644_v20 = vmax.f32 %v6636_v9, %v6627_v37  ;;  %v6856_v55 = vpop.permute.xlu1 %6855  ;;  %v6645_v57 = vmax.f32 %v6637_v39, %v13739_v38 }
 0x74d   :  { %v13741_v48 = vpop.eup %10326  ;;  %10346 = vpow2.f32 %v6684_v17  ;;  %v6869_v34 = vmul.f32 %v13567_v42, %v6856_v55  ;;  %v6917_v49 = vmul.f32 %v13573_v29, %v6856_v55 }
 0x74e   :  { %v13746_v5 = vpop.eup %10328  ;;  %10348 = vpow2.f32 %v6708_v25  ;;  %v6651_v31 = vsub.f32 %v13680_v56, %v6643_v54  ;;  %v6675_v27 = vsub.f32 %v13692_v47, %v6643_v54  ;;  %v6699_v62 = vsub.f32 %v6625_v6, %v6643_v54 }
 0x74f   :  { %v13750_v40 = vpop.eup %10330  ;;  %v6718_v61 = vadd.f32 %v13746_v5, %v13741_v48  ;;  %10350 = vpow2.f32 %v6662_v59  ;;  %v6652_v15 = vsub.f32 %v13686_v24, %v6644_v20  ;;  %v6676_v35 = vsub.f32 %v13694_v0, %v6644_v20 }
 0x750   :  { %v13756_v9 = vpop.eup %10332  ;;  %10352 = vpow2.f32 %v6686_v63  ;;  %v6664_v23 = vmul.f32 1.442695, %v6651_v31  ;;  %v6688_v4 = vmul.f32 1.442695, %v6675_v27  ;;  %v6981_v56 = vmul.f32 %v13579_v43, %v6856_v55 }
 0x751   :  { %v13759_v32 = vpop.eup %10334  ;;  %v6726_v47 = vadd.f32 %v13750_v40, %v6718_v61  ;;  %10354 = vpow2.f32 %v6710_v10  ;;  %v6712_v6 = vmul.f32 1.442695, %v6699_v62  ;;  %v6666_v52 = vmul.f32 1.442695, %v6652_v15 }
 0x752   :  { %v13762_v7 = vpop.eup %10336  ;;  %v6719_v24 = vadd.f32 %v13759_v32, %v13756_v9  ;;  %10356 = vpow2.f32 %v6664_v23  ;;  %v6700_v0 = vsub.f32 %v6627_v37, %v6644_v20  ;;  %v6653_v53 = vsub.f32 %v13684_v46, %v6645_v57 }
 0x753   :  { %v13767_v36 = vpop.eup %10338  ;;  %10358 = vrcp.f32 %v6726_v47  ;;  %v6690_v18 = vmul.f32 1.442695, %v6676_v35  ;;  %v6677_v17 = vsub.f32 %v13696_v21, %v6645_v57  ;;  %v6877_v25 = vadd.f32 %v6869_v34, %v13701_v12  ;;  %v6852_v54 = vpop.permute.xlu0 %6851 }
 0x754   :  { %v13771_v39 = vpop.eup %10340  ;;  %v6727_v59 = vadd.f32 %v13762_v7, %v6719_v24  ;;  %10360 = vpow2.f32 %v6688_v4  ;;  %v6714_v63 = vmul.f32 1.442695, %v6700_v0  ;;  %v6701_v10 = vsub.f32 %v13739_v38, %v6645_v57 }
 0x755   :  { %v13775_v37 = vpop.eup %10342  ;;  %v6720_v46 = vadd.f32 %v13771_v39, %v13767_v36  ;;  %10362 = vpow2.f32 %v6712_v6  ;;  %v6668_v20 = vmul.f32 1.442695, %v6653_v53  ;;  %v6692_v55 = vmul.f32 1.442695, %v6677_v17 }
 0x756   :  { %v13779_v21 = vpop.eup %10344  ;;  %10364 = vrcp.f32 %v6727_v59  ;;  %v6885_v12 = vmul.f32 %v6877_v25, %v13340_v58  ;;  %v6925_v34 = vadd.f32 %v6917_v49, %v13704_v41  ;;  %v6989_v31 = vadd.f32 %v6981_v56, %v13707_v3 }
 0x757   :  { %v13784_v27 = vpop.eup %10346  ;;  %v6728_v38 = vadd.f32 %v13775_v37, %v6720_v46  ;;  %10366 = vpow2.f32 %v6666_v52  ;;  %v6868_v57 = vmul.f32 %v13567_v42, %v6852_v54  ;;  %v6916_v62 = vmul.f32 %v13573_v29, %v6852_v54 }
 0x758   :  { %v13789_v61 = vpop.eup %10348  ;;  %v6721_v15 = vadd.f32 %v13784_v27, %v13779_v21  ;;  %10368 = vpow2.f32 %v6690_v18  ;;  %v6716_v35 = vmul.f32 1.442695, %v6701_v10  ;;  %v6933_v41 = vmul.f32 %v6925_v34, %v13330_v8 }
 0x759   :  { %v13794_v49 = vpop.eup %10350  ;;  %10370 = vrcp.f32 %v6728_v38  ;;  %v6876_v3 = vadd.f32 %v6868_v57, %v13711_v1  ;;  %v6924_v23 = vadd.f32 %v6916_v62, %v13718_v50  ;;  %v6980_v42 = vmul.f32 %v13579_v43, %v6852_v54 }
 0x75a   :  { %v13799_v4 = vpop.eup %10352  ;;  %v6729_v29 = vadd.f32 %v13789_v61, %v6721_v15  ;;  %10372 = vpow2.f32 %v6714_v63  ;;  %v6949_v56 = vadd.f32 %v6933_v41, %v6885_v12  ;;  %v6997_v47 = vmul.f32 %v6989_v31, %v13345_v28  ;;  %v14256_v15 = vld [vmem:[#allocation45_spill] sm:$0xff] }
 0x75b   :  { %v13803_v6 = vpop.eup %10354  ;;  %v6722_v52 = vadd.f32 %v13799_v4, %v13794_v49  ;;  %10374 = vpow2.f32 %v6668_v20  ;;  %v6884_v1 = vmul.f32 %v6876_v3, %v13337_v16  ;;  %v6932_v50 = vmul.f32 %v6924_v23, %v13327_v13  ;;  %v14257_v41 = vld [vmem:[#allocation9_spill] sm:$0xff] }
 0x75c   :  { %v13809_v24 = vpop.eup %10356  ;;  %10376 = vrcp.f32 %v6729_v29  ;;  %v13811_v43 = vadd.f32 %v6997_v47, %v6949_v56  ;;  %v6988_v0 = vadd.f32 %v6980_v42, %v13727_v19  ;;  %v7025_v59 = vadd.f32 %v13723_v60, %v13653_v33 }
 0x75d   :  { %v10359_v53 = vpop.eup %10358  ;;  %v6730_v18 = vadd.f32 %v13803_v6, %v6722_v52  ;;  %10378 = vpow2.f32 %v6692_v55  ;;  %v6948_v17 = vadd.f32 %v6932_v50, %v6884_v1 }
 0x75e   :  { %v13815_v25 = vpop.eup %10360  ;;  %10380 = vpow2.f32 %v6716_v35  ;;  %v6742_v63 = vmul.f32 %v10359_v53, %v13741_v48  ;;  %v6750_v10 = vmul.f32 %v10359_v53, %v13746_v5  ;;  %v6758_v20 = vmul.f32 %v10359_v53, %v13750_v40 }
 0x75f   :  { %v13821_v54 = vpop.eup %10362  ;;  %10382 = vrcp.f32 %v6730_v18  ;;  %v6723_v19 = vadd.f32 %v13815_v25, %v13809_v24  ;;  %v6996_v60 = vmul.f32 %v6988_v0, %v13342_v30  ;;  %v7026_v57 = vadd.f32 %v7025_v59, %v13655_v11 }
 0x760   :  { %v10365_v46 = vpop.eup %10364  ;;  %v6886_v55 = vmul.f32 %v6742_v63, %v13279_v14  ;;  %v6934_v12 = vmul.f32 %v6750_v10, %v13267_v26 }
 0x761   :  { %v13829_v34 = vpop.eup %10366  ;;  %v6731_v48 = vadd.f32 %v13821_v54, %v6723_v19  ;;  %v6743_v5 = vmul.f32 %v10365_v46, %v13756_v9  ;;  %v6751_v31 = vmul.f32 %v10365_v46, %v13759_v32  ;;  %v6759_v40 = vmul.f32 %v10365_v46, %v13762_v7  ;;  %v14258_v19 = vld [vmem:[#allocation23_spill] sm:$0xff] }
 0x762   :  { %v13834_v38 = vpop.eup %10368  ;;  %v13838_v62 = vadd.f32 %v6996_v60, %v6948_v17  ;;  %v6950_v42 = vadd.f32 %v6934_v12, %v6886_v55  ;;  %v6998_v7 = vmul.f32 %v6758_v20, %v13296_v44  ;;  %v13881_v12 = vld [vmem:[%s14008_s10 + $0x8] sm:$0xff] }
 0x763   :  { %v10371_v14 = vpop.eup %10370  ;;  %10384 = vrcp.f32 %v6731_v48  ;;  %v6724_v26 = vadd.f32 %v13834_v38, %v13829_v34  ;;  %v6887_v35 = vmul.f32 %v6743_v5, %v14256_v15  ;;  %v6935_v3 = vmul.f32 %v6751_v31, %v14257_v41  ;;  %v14262_v41 = vld [vmem:[#allocation28_spill] sm:$0xff] }
 0x764   :  { %v13844_v9 = vpop.eup %10372  ;;  %v6744_v32 = vmul.f32 %v10371_v14, %v13767_v36  ;;  %v6752_v23 = vmul.f32 %v10371_v14, %v13771_v39  ;;  %v6760_v47 = vmul.f32 %v10371_v14, %v13775_v37  ;;  %v7027_v1 = vadd.f32 %v7026_v57, %v13838_v62  ;;  %v13890_v57 = vld [vmem:[%s14008_s10 + $0x10] sm:$0xff]  ;;  %v14261_v14 = vld [vmem:[#allocation10_spill] sm:$0xff] }
 0x765   :  { %v13849_v29 = vpop.eup %10374  ;;  %v6732_v56 = vadd.f32 %v13844_v9, %v6724_v26  ;;  %v6951_v52 = vadd.f32 %v6935_v3, %v6887_v35  ;;  %v6999_v36 = vmul.f32 %v6759_v40, %v13298_v2  ;;  %v9587_v39 = vpack.c.bf16 %v13811_v43, %v13838_v62  ;;  %v14263_v3 = vld [vmem:[#allocation12_spill] sm:$0xff] }
 0x766   :  { %v10377_v50 = vpop.eup %10376  ;;  %v6888_v0 = vmul.f32 %v6744_v32, %v13285_v22  ;;  %v6936_v53 = vmul.f32 %v6752_v23, %v13273_v51  ;;  %v13871_v2 = vadd.f32 %v7027_v1, %v13811_v43  ;;  %v14264_v32 = vld [vmem:[#allocation14_spill] sm:$0xff] }
 0x767   :  { %v13859_v44 = vpop.eup %10378  ;;  %10386 = vrcp.f32 %v6732_v56  ;;  %v6745_v18 = vmul.f32 %v10377_v50, %v13779_v21  ;;  %v6753_v37 = vmul.f32 %v10377_v50, %v13784_v27  ;;  %v6761_v17 = vmul.f32 %v10377_v50, %v13789_v61  ;;  %9588 = vmatprep.subr.bf16.mxu1 %v9587_v39  ;;  %v14259_v21 = vld [vmem:[#allocation22_spill] sm:$0xff]  ;;  %v14260_v27 = vld [vmem:[#allocation11_spill] sm:$0xff]  ;;  %v7116_v56 = vld [vmem:[%s14008_s10 + $0x18] sm:$0xff] }
 0x768   :  { %v13864_v59 = vpop.eup %10380  ;;  %v6725_v22 = vadd.f32 %v13859_v44, %v13849_v29  ;;  %v6952_v51 = vadd.f32 %v6936_v53, %v6888_v0  ;;  %v13868_v63 = vadd.f32 %v6999_v36, %v6951_v52  ;;  %v7000_v55 = vmul.f32 %v6760_v47, %v14260_v27  ;;  %9590 = vmatpush3.bf16.msra.mxu1 %v9587_v39  ;;  %v14265_v39 = vld [vmem:[#allocation27_spill] sm:$0xff] }
 0x769   :  { %v10383_v10 = vpop.eup %10382  ;;  %v6889_v46 = vmul.f32 %v6745_v18, %v14258_v19  ;;  %v6937_v20 = vmul.f32 %v6753_v37, %v14259_v21  ;;  %v13876_v61 = vadd.f32 %v6998_v7, %v6950_v42  ;;  %v7001_v26 = vmul.f32 %v6761_v17, %v14261_v14  ;;  %v14266_v37 = vld [vmem:[#allocation13_spill] sm:$0xff] }
 0x76a   :  { %v6733_v60 = vadd.f32 %v13864_v59, %v6725_v22  ;;  %v6746_v48 = vmul.f32 %v10383_v10, %v13794_v49  ;;  %v6754_v5 = vmul.f32 %v10383_v10, %v13799_v4  ;;  %v6762_v31 = vmul.f32 %v10383_v10, %v13803_v6 }
 0x76b   :  { %v6953_v40 = vadd.f32 %v6937_v20, %v6889_v46  ;;  %v13893_v15 = vadd.f32 %v7000_v55, %v6952_v51  ;;  %v7035_v35 = vadd.f32 %v13868_v63, %v13876_v61  ;;  %9488 = vmatmul.mubr.msk.f32.vlgmr.msra.gmra.mrb[52].mxu1 %vm5756_vm1, %v13881_v12  ;;  %v9591_v47 = vpack.c.bf16 %v13868_v63, %v13876_v61  ;;  %v14267_v51 = vld [vmem:[#allocation15_spill] sm:$0xff] }
 0x76c   :  { %10388 = vrcp.f32 %v6733_v60  ;;  %v6890_v49 = vmul.f32 %v6746_v48, %v14262_v41  ;;  %v6938_v4 = vmul.f32 %v6754_v5, %v14263_v3  ;;  %v7002_v23 = vmul.f32 %v6762_v31, %v14264_v32  ;;  %9490 = vmatprep.mubr.msk.f32.mxu1 %vm5756_vm1, %v13890_v57 }
 0x76d   :  { %v10385_v6 = vpop.eup %10384  ;;  %v13902_v42 = vadd.f32 %v7001_v26, %v6953_v40  ;;  %v7036_v7 = vadd.f32 %v7035_v35, %v13893_v15  ;;  %9592 = vmatprep.subr.bf16.mxu1 %v9591_v47 }
 0x76e   :  { %v6747_v52 = vmul.f32 %v10385_v6, %v13809_v24  ;;  %v6755_v1 = vmul.f32 %v10385_v6, %v13815_v25  ;;  %v6763_v50 = vmul.f32 %v10385_v6, %v13821_v54  ;;  %v6954_v0 = vadd.f32 %v6938_v4, %v6890_v49  ;;  %9594 = vmatpush3.bf16.msra.mxu1 %v9591_v47  ;;  %v14268_v54 = vld [vmem:[#allocation26_spill] sm:$0xff] }
 0x76f   :  { %v7037_v53 = vadd.f32 %v7036_v7, %v13902_v42  ;;  %v9595_v36 = vpack.c.bf16 %v13902_v42, %v13893_v15  ;;  %9491 = vmatmul.mubr.msk.f32.gmra.mrb[54].mxu1 %vm5756_vm1, %v7116_v56 }
 0x770   :  { %v6891_v18 = vmul.f32 %v6747_v52, %v14265_v39  ;;  %v6939_v17 = vmul.f32 %v6755_v1, %v14266_v37  ;;  %v13920_v22 = vadd.f32 %v7002_v23, %v6954_v0  ;;  %v7003_v25 = vmul.f32 %v6763_v50, %v14267_v51  ;;  %9509 = vmatprep.mubr.msk.f32.mxu1 %vm5756_vm1, %v14268_v54  ;;  %v14269_v50 = vld [vmem:[#allocation18_spill] sm:$0xff] }
 0x771   :  { %v10387_v24 = vpop.eup %10386  ;;  %9596 = vmatprep.subr.bf16.mxu1 %v9595_v36 }
 0x772   :  { %v6955_v10 = vadd.f32 %v6939_v17, %v6891_v18  ;;  %v7038_v19 = vadd.f32 %v7037_v53, %v13920_v22  ;;  %v6748_v46 = vmul.f32 %v10387_v24, %v13829_v34  ;;  %v6756_v21 = vmul.f32 %v10387_v24, %v13834_v38  ;;  %9598 = vmatpush3.bf16.msra.mxu1 %v9595_v36  ;;  %v14270_v53 = vld [vmem:[#allocation19_spill] sm:$0xff] }
 0x773   :  { %v6764_v20 = vmul.f32 %v10387_v24, %v13844_v9  ;;  %v7029_v9 = vrot.slane %v13871_v2, 4 }
 0x774   :  { %v7019_v27 = vadd.f32 %v7003_v25, %v6955_v10  ;;  %v6892_v55 = vmul.f32 %v6748_v46, %v13337_v16  ;;  %v6940_v60 = vmul.f32 %v6756_v21, %v13327_v13 }
 0x775   :  { %v7004_v40 = vmul.f32 %v6764_v20, %v13342_v30  ;;  %v7030_v3 = vadd.f32 %v7029_v9, %v13871_v2 }
 0x776   :  { %v10389_v48 = vpop.eup %10388  ;;  %v7039_v5 = vadd.f32 %v7038_v19, %v7019_v27  ;;  %v6956_v31 = vadd.f32 %v6940_v60, %v6892_v55  ;;  %v9599_v14 = vpack.c.bf16 %v7019_v27, %v13920_v22 }
 0x777   :  { %v6749_v34 = vmul.f32 %v10389_v48, %v13849_v29  ;;  %v6757_v38 = vmul.f32 %v10389_v48, %v13859_v44  ;;  %v6765_v26 = vmul.f32 %v10389_v48, %v13864_v59  ;;  %v7031_v4 = vrot.slane %v7030_v3, 2 }
 0x778   :  { %v7020_v35 = vadd.f32 %v7004_v40, %v6956_v31  ;;  %9600 = vmatprep.subr.bf16.mxu1 %v9599_v14 }
 0x779   :  { %v6893_v13 = vmul.f32 %v6749_v34, %v13340_v58  ;;  %v6941_v16 = vmul.f32 %v6757_v38, %v13330_v8  ;;  %9602 = vmatpush3.bf16.msra.mxu1 %v9599_v14  ;;  %v7005_v30 = vmul.f32 %v6765_v26, %v13345_v28  ;;  %v7032_v32 = vadd.f32 %v7031_v4, %v7030_v3 }
 0x77a   :  { %v7040_v41 = vadd.f32 %v7039_v5, %v7020_v35 }
 0x77b   :  { %v6957_v49 = vadd.f32 %v6941_v16, %v6893_v13  ;;  %v7033_v8 = vrot.slane %v7032_v32, 1 }
 0x77d   :  { %v7021_v29 = vadd.f32 %v7005_v30, %v6957_v49  ;;  %v7034_v2 = vadd.f32 %v7033_v8, %v7032_v32 }
 0x77f   :  { %v7041_v44 = vadd.f32 %v7040_v41, %v7021_v29  ;;  %v9603_v6 = vpack.c.bf16 %v7021_v29, %v7020_v35 }
 0x781   :  { %v7042_v59 = vrot.slane %v7041_v44, 4  ;;  %9604 = vmatprep.subr.bf16.mxu1 %v9603_v6 }
 0x782   :  { %9606 = vmatpush3.bf16.msra.mxu1 %v9603_v6 }
 0x783   :  { %v7043_v23 = vadd.f32 %v7042_v59, %v7041_v44 }
 0x785   :  { %v7044_v7 = vrot.slane %v7043_v23, 2  ;;  %9510 = vmatmul.mubr.msk.f32.vlgmr.msra.gmra.mrb[56].mxu1 %vm5756_vm1, %v13881_v12  ;;  %v14271_v12 = vld [vmem:[#allocation29_spill] sm:$0xff] }
 0x786   :  { %9512 = vmatprep.mubr.msk.f32.mxu1 %vm5756_vm1, %v13890_v57 }
 0x787   :  { %v7045_v58 = vadd.f32 %v7044_v7, %v7043_v23 }
 0x789   :  { %v7046_v28 = vrot.slane %v7045_v58, 1  ;;  %9513 = vmatmul.mubr.msk.f32.gmra.mrb[58].mxu1 %vm5756_vm1, %v7116_v56 }
 0x78b   :  { %v7047_v47 = vadd.f32 %v7046_v28, %v7045_v58 }
 0x78d   :  { %v7048_v52 = vadd.f32 %v7047_v47, %v7034_v2 }
 0x78f   :  { %v13947_v1 = vmul.f32 0.0078125, %v7048_v52 }
 0x791   :  { %v7051_v0 = vsub.f32 %v14269_v50, %v13947_v1  ;;  %v7052_v36 = vsub.f32 %v14270_v53, %v13947_v1  ;;  %v7053_v39 = vsub.f32 %v14271_v12, %v13947_v1  ;;  %v7057_v57 = vsub.f32 %v13838_v62, %v13947_v1 }
 0x792   :  { %v7058_v56 = vsub.f32 %v13811_v43, %v13947_v1  ;;  %v7054_v18 = vsub.f32 %v13650_v45, %v13947_v1  ;;  %v7055_v24 = vsub.f32 %v13653_v33, %v13947_v1  ;;  %v7056_v51 = vsub.f32 %v13655_v11, %v13947_v1 }
 0x793   :  { %v7059_v37 = vmul.f32 %v7051_v0, %v7051_v0  ;;  %v7060_v17 = vmul.f32 %v7052_v36, %v7052_v36  ;;  %v7061_v25 = vmul.f32 %v7053_v39, %v7053_v39  ;;  %v7080_v10 = vsub.f32 %v13876_v61, %v13947_v1 }
 0x794   :  { %v7081_v62 = vsub.f32 %v13868_v63, %v13947_v1  ;;  %v7082_v43 = vsub.f32 %v13893_v15, %v13947_v1  ;;  %v7083_v45 = vsub.f32 %v13902_v42, %v13947_v1  ;;  %v7084_v33 = vsub.f32 %v13920_v22, %v13947_v1 }
 0x795   :  { %v7067_v54 = vadd.f32 %v7060_v17, %v7059_v37  ;;  %v7085_v19 = vsub.f32 %v7019_v27, %v13947_v1  ;;  %v7086_v11 = vsub.f32 %v7020_v35, %v13947_v1  ;;  %v7062_v46 = vmul.f32 %v7054_v18, %v7054_v18 }
 0x796   :  { %v7088_v20 = vmul.f32 %v7080_v10, %v7080_v10  ;;  %v7089_v61 = vmul.f32 %v7081_v62, %v7081_v62  ;;  %v7087_v55 = vsub.f32 %v7021_v29, %v13947_v1  ;;  %v7063_v63 = vmul.f32 %v7055_v24, %v7055_v24 }
 0x797   :  { %v7068_v21 = vadd.f32 %v7067_v54, %v7061_v25  ;;  %v7090_v15 = vmul.f32 %v7082_v43, %v7082_v43  ;;  %v7064_v5 = vmul.f32 %v7056_v51, %v7056_v51  ;;  %v7091_v42 = vmul.f32 %v7083_v45, %v7083_v45 }
 0x798   :  { %v7096_v48 = vadd.f32 %v7089_v61, %v7088_v20  ;;  %v7065_v14 = vmul.f32 %v7057_v57, %v7057_v57  ;;  %v7092_v27 = vmul.f32 %v7084_v33, %v7084_v33  ;;  %v7066_v38 = vmul.f32 %v7058_v56, %v7058_v56 }
 0x799   :  { %v7069_v60 = vadd.f32 %v7068_v21, %v7062_v46  ;;  %v7093_v9 = vmul.f32 %v7085_v19, %v7085_v19  ;;  %v7094_v41 = vmul.f32 %v7086_v11, %v7086_v11  ;;  %v7095_v30 = vmul.f32 %v7087_v55, %v7087_v55 }
 0x79a   :  { %v7097_v40 = vadd.f32 %v7096_v48, %v7090_v15 }
 0x79b   :  { %v7070_v31 = vadd.f32 %v7069_v60, %v7063_v63 }
 0x79c   :  { %v7098_v34 = vadd.f32 %v7097_v40, %v7091_v42 }
 0x79d   :  { %v7071_v22 = vadd.f32 %v7070_v31, %v7064_v5 }
 0x79e   :  { %v7099_v35 = vadd.f32 %v7098_v34, %v7092_v27 }
 0x79f   :  { %v7072_v26 = vadd.f32 %v7071_v22, %v7065_v14 }
 0x7a0   :  { %v7100_v16 = vadd.f32 %v7099_v35, %v7093_v9 }
 0x7a1   :  { %v7073_v13 = vadd.f32 %v7072_v26, %v7066_v38 }
 0x7a2   :  { %v7101_v3 = vadd.f32 %v7100_v16, %v7094_v41 }
 0x7a3   :  { %v7074_v49 = vrot.slane %v7073_v13, 4 }
 0x7a4   :  { %v7102_v4 = vadd.f32 %v7101_v3, %v7095_v30 }
 0x7a5   :  { %v7075_v29 = vadd.f32 %v7074_v49, %v7073_v13 }
 0x7a6   :  { %v7103_v6 = vrot.slane %v7102_v4, 4 }
 0x7a7   :  { %v7076_v44 = vrot.slane %v7075_v29, 2 }
 0x7a8   :  { %v7104_v32 = vadd.f32 %v7103_v6, %v7102_v4 }
 0x7a9   :  { %v7077_v59 = vadd.f32 %v7076_v44, %v7075_v29 }
 0x7aa   :  { %v7105_v7 = vrot.slane %v7104_v32, 2 }
 0x7ab   :  { %v7078_v23 = vrot.slane %v7077_v59, 1 }
 0x7ac   :  { %v7106_v8 = vadd.f32 %v7105_v7, %v7104_v32 }
 0x7ad   :  { %v7079_v58 = vadd.f32 %v7078_v23, %v7077_v59 }
 0x7ae   :  { %v7107_v28 = vrot.slane %v7106_v8, 1 }
 0x7b0   :  { %v7108_v2 = vadd.f32 %v7107_v28, %v7106_v8 }
 0x7b2   :  { %v7109_v47 = vadd.f32 %v7108_v2, %v7079_v58 }
 0x7b4   :  { %v7110_v52 = vmul.f32 0.0078125, %v7109_v47 }
 0x7b6   :  { %v7111_v50 = vadd.f32 1e-05, %v7110_v52 }
 0x7b8   :  { %10390 = vrsqrt.f32 %v7111_v50 }
 0x7c2   :  { %v10391_v12 = vpop.eup %10390 }
 0x83e   :  { %v9489_v0 = vpop.f32.mrb[52].mxu1 }
 0x83f   :  { %v7215_v53 = vsub.f32 %v9489_v0, %v13947_v1  ;;  %v7195_v36 = vpop.f32.mrb[53].mxu1 }
 0x840   :  { %v7214_v39 = vsub.f32 %v7195_v36, %v13947_v1 }
 0x841   :  { %v7219_v57 = vmul.f32 %v10391_v12, %v7215_v53 }
 0x842   :  { %v7218_v56 = vmul.f32 %v10391_v12, %v7214_v39  ;;  %v9492_v18 = vpop.f32.mrb[54].mxu1 }
 0x843   :  { %v7217_v37 = vsub.f32 %v9492_v18, %v13947_v1  ;;  %v7205_v17 = vpop.f32.mrb[55].mxu1 }
 0x844   :  { %v7315_v24 = vadd.f32 %v7219_v57, %v7218_v56  ;;  %v7216_v51 = vsub.f32 %v7205_v17, %v13947_v1 }
 0x845   :  { %v7221_v25 = vmul.f32 %v10391_v12, %v7217_v37 }
 0x846   :  { %v7220_v54 = vmul.f32 %v10391_v12, %v7216_v51 }
 0x848   :  { %v7316_v10 = vadd.f32 %v7315_v24, %v7220_v54 }
 0x84a   :  { %v7317_v62 = vadd.f32 %v7316_v10, %v7221_v25 }
 0x84c   :  { %v7318_v46 = vrot.slane %v7317_v62, 4 }
 0x84e   :  { %v7319_v15 = vadd.f32 %v7318_v46, %v7317_v62 }
 0x850   :  { %v7320_v42 = vrot.slane %v7319_v15, 2 }
 0x852   :  { %v7321_v22 = vadd.f32 %v7320_v42, %v7319_v15 }
 0x854   :  { %v7322_v38 = vrot.slane %v7321_v22, 1 }
 0x856   :  { %v7323_v35 = vadd.f32 %v7322_v38, %v7321_v22 }
 0x858   :  { %v9511_v43 = vpop.f32.mrb[56].mxu1 }
 0x859   :  { %v7308_v45 = vsub.f32 %v9511_v43, %v13947_v1  ;;  %v7288_v33 = vpop.f32.mrb[57].mxu1 }
 0x85a   :  { %v7307_v19 = vsub.f32 %v7288_v33, %v13947_v1 }
 0x85b   :  { %v7312_v11 = vmul.f32 %v10391_v12, %v7308_v45 }
 0x85c   :  { %v7311_v21 = vmul.f32 %v10391_v12, %v7307_v19  ;;  %v9514_v20 = vpop.f32.mrb[58].mxu1 }
 0x85d   :  { %v7310_v61 = vsub.f32 %v9514_v20, %v13947_v1  ;;  %v7298_v55 = vpop.f32.mrb[59].mxu1 }
 0x85e   :  { %v7324_v63 = vadd.f32 %v7312_v11, %v7311_v21  ;;  %v7309_v60 = vsub.f32 %v7298_v55, %v13947_v1 }
 0x85f   :  { %v7314_v48 = vmul.f32 %v10391_v12, %v7310_v61 }
 0x860   :  { %v7313_v5 = vmul.f32 %v10391_v12, %v7309_v60 }
 0x862   :  { %v7325_v31 = vadd.f32 %v7324_v63, %v7313_v5 }
 0x864   :  { %v7326_v40 = vadd.f32 %v7325_v31, %v7314_v48 }
 0x866   :  { %v7327_v14 = vrot.slane %v7326_v40, 4 }
 0x868   :  { %v7328_v34 = vadd.f32 %v7327_v14, %v7326_v40 }
 0x86a   :  { %v7329_v27 = vrot.slane %v7328_v34, 2 }
 0x86c   :  { %v7330_v26 = vadd.f32 %v7329_v27, %v7328_v34 }
 0x86e   :  { %v7331_v9 = vrot.slane %v7330_v26, 1 }
 0x870   :  { %v7332_v13 = vadd.f32 %v7331_v9, %v7330_v26 }
 0x872   :  { %v7333_v16 = vadd.f32 %v7332_v13, %v7323_v35 }
 0x874   :  { %v7334_v41 = vmul.f32 0.015625, %v7333_v16 }
 0x876   :  { %v7335_v49 = vsub.f32 %v7218_v56, %v7334_v41  ;;  %v7336_v30 = vsub.f32 %v7219_v57, %v7334_v41  ;;  %v7337_v1 = vsub.f32 %v7220_v54, %v7334_v41  ;;  %v7338_v3 = vsub.f32 %v7221_v25, %v7334_v41 }
 0x877   :  { %v7352_v29 = vsub.f32 %v7311_v21, %v7334_v41  ;;  %v7353_v4 = vsub.f32 %v7312_v11, %v7334_v41  ;;  %v7354_v44 = vsub.f32 %v7313_v5, %v7334_v41  ;;  %v7355_v6 = vsub.f32 %v7314_v48, %v7334_v41 }
 0x878   :  { %v7339_v59 = vmul.f32 %v7335_v49, %v7335_v49  ;;  %v7340_v32 = vmul.f32 %v7336_v30, %v7336_v30  ;;  %v7341_v8 = vmul.f32 %v7337_v1, %v7337_v1  ;;  %v7342_v47 = vmul.f32 %v7338_v3, %v7338_v3 }
 0x879   :  { %v7356_v23 = vmul.f32 %v7352_v29, %v7352_v29  ;;  %v7357_v7 = vmul.f32 %v7353_v4, %v7353_v4  ;;  %v7358_v28 = vmul.f32 %v7354_v44, %v7354_v44  ;;  %v7359_v50 = vmul.f32 %v7355_v6, %v7355_v6 }
 0x87a   :  { %v7343_v58 = vadd.f32 %v7340_v32, %v7339_v59 }
 0x87b   :  { %v7360_v2 = vadd.f32 %v7357_v7, %v7356_v23 }
 0x87c   :  { %v7344_v52 = vadd.f32 %v7343_v58, %v7341_v8 }
 0x87d   :  { %v7361_v0 = vadd.f32 %v7360_v2, %v7358_v28 }
 0x87e   :  { %v7345_v53 = vadd.f32 %v7344_v52, %v7342_v47 }
 0x87f   :  { %v7362_v36 = vadd.f32 %v7361_v0, %v7359_v50 }
 0x880   :  { %v7346_v12 = vrot.slane %v7345_v53, 4 }
 0x881   :  { %v7363_v39 = vrot.slane %v7362_v36, 4 }
 0x882   :  { %v7347_v57 = vadd.f32 %v7346_v12, %v7345_v53 }
 0x883   :  { %v7364_v56 = vadd.f32 %v7363_v39, %v7362_v36 }
 0x884   :  { %v7348_v18 = vrot.slane %v7347_v57, 2 }
 0x885   :  { %v7365_v37 = vrot.slane %v7364_v56, 2 }
 0x886   :  { %v7349_v17 = vadd.f32 %v7348_v18, %v7347_v57 }
 0x887   :  { %v7366_v24 = vadd.f32 %v7365_v37, %v7364_v56 }
 0x888   :  { %v7350_v51 = vrot.slane %v7349_v17, 1 }
 0x889   :  { %v7367_v25 = vrot.slane %v7366_v24, 1 }
 0x88a   :  { %v7351_v54 = vadd.f32 %v7350_v51, %v7349_v17 }
 0x88b   :  { %v7368_v10 = vadd.f32 %v7367_v25, %v7366_v24 }
 0x88d   :  { %v7369_v62 = vadd.f32 %v7368_v10, %v7351_v54 }
 0x88f   :  { %v7370_v43 = vmul.f32 0.015625, %v7369_v62 }
 0x891   :  { %v7371_v45 = vadd.f32 1e-05, %v7370_v43 }
 0x893   :  { %10392 = vrsqrt.f32 %v7371_v45 }
 0x89d   :  { %v10393_v33 = vpop.eup %10392 }
 0x89e   :  { %v7373_v19 = vmul.f32 %v10393_v33, %v7335_v49  ;;  %v7374_v11 = vmul.f32 %v10393_v33, %v7336_v30  ;;  %v7375_v46 = vmul.f32 %v10393_v33, %v7337_v1  ;;  %v7376_v21 = vmul.f32 %v10393_v33, %v7338_v3 }
 0x89f   :  { %v7397_v20 = vmul.f32 %v10393_v33, %v7352_v29  ;;  %v7398_v61 = vmul.f32 %v10393_v33, %v7353_v4  ;;  %v7399_v55 = vmul.f32 %v10393_v33, %v7354_v44  ;;  %v7400_v63 = vmul.f32 %v10393_v33, %v7355_v6 }
 0x8a0   :  { %v8237_v60 = vpack.c.bf16 %v7374_v11, %v7373_v19  ;;  %v8242_v48 = vpack.c.bf16 %v7376_v21, %v7375_v46 }
 0x8a1   :  { %v8247_v15 = vpack.c.bf16 %v7398_v61, %v7397_v20  ;;  %v8252_v5 = vpack.c.bf16 %v7400_v63, %v7399_v55 }
 0x8a2   :  { %8238 = vst [vmem:[%s14009_s11] sm:$0xff] %v8237_v60   ;;  %8254 = vst [vmem:[%s14009_s11 + $0x8] sm:$0xff] %v8242_v48  }
 0x8a3   :  { %8255 = vst [vmem:[%s14009_s11 + $0x10] sm:$0xff] %v8247_v15   ;;  %8256 = vst [vmem:[%s14009_s11 + $0x18] sm:$0xff] %v8252_v5  }

</bundles_post_ra>
